<compile_context>
chip_gen: v7x
topology: tpu7x:2x2x1
jax: 0.10.0
libtpu: 0.0.40
codegen_flags: <defaults>
</compile_context>

<pallas_src>
import jax
import jax.numpy as jnp
from jax import lax
from jax.experimental import pallas as pl
from jax.experimental.pallas import tpu as pltpu

LANE = 128
SUB = 8


def _rup(n, m):
    return ((n + m - 1) // m) * m


def _pad_axis(a, target, axis):
    pad = target - a.shape[axis]
    if pad <= 0:
        return a
    widths = [(0, 0)] * a.ndim
    widths[axis] = (0, pad)
    return jnp.pad(a, widths)


# ------------------------------ fused C3 kernel ------------------------------

def _make_c3_kernel(n_blocks, height, width, pad_rows):
    hw = height * width

    def bias_silu(z, b_ref):
        # z is f32 with BN scale already folded into the weights; add folded
        # bias then SiLU.  exp + approximate reciprocal both land on the EUP.
        z = z + b_ref[...]
        return z * pl.reciprocal(1.0 + jnp.exp(-z), approx=True)

    def kernel(*refs):
        x_ref = refs[0]
        w1, b1, w2, b2 = refs[1:5]
        blk_refs = refs[5:5 + 4 * n_blocks]
        w3t, w3b, b3 = refs[5 + 4 * n_blocks:5 + 4 * n_blocks + 3]
        o_ref = refs[-2]
        tpad = refs[-1]                       # (hw + 2*pad_rows, hp) f32 scratch

        hp = w1.shape[1]                      # padded hidden channel width

        x = x_ref[0]                          # (HW, Cin_p) bf16
        y1 = bias_silu(jnp.dot(x, w1[...], preferred_element_type=jnp.float32), b1)
        y2 = bias_silu(jnp.dot(x, w2[...], preferred_element_type=jnp.float32), b2)

        # Column index of each flattened pixel -> left/right border masks for
        # the kx = -1 / +1 taps of the 3x3 conv (computed once, reused by all
        # bottleneck blocks).
        col = lax.broadcasted_iota(jnp.int32, (hw, hp), 0) % width
        left_ok = col >= 1
        right_ok = col <= width - 2

        # Zero the top/bottom halo of the scratch once; the body only ever
        # writes the middle hw rows, so the halo provides the vertical SAME
        # padding for every 3x3 conv.
        zeros_pad = jnp.zeros((pad_rows, hp), jnp.float32)
        tpad[pl.ds(0, pad_rows), :] = zeros_pad
        tpad[pl.ds(pad_rows + hw, pad_rows), :] = zeros_pad

        t = y1
        for i in range(n_blocks):
            mw1, mb1, mw2, mb2 = blk_refs[4 * i:4 * i + 4]
            t1 = bias_silu(
                jnp.dot(t.astype(jnp.bfloat16), mw1[...],
                        preferred_element_type=jnp.float32), mb1)

            # 3x3 conv (stride 1, SAME) = 9 shifted dots on the flattened
            # (HW, hp) activation, accumulated in f32.
            tpad[pl.ds(pad_rows, hw), :] = t1
            acc = jnp.zeros((hw, hp), jnp.float32)
            for ky in (-1, 0, 1):
                for kx in (-1, 0, 1):
                    k = (ky + 1) * 3 + (kx + 1)
                    start = pad_rows + ky * width + kx
                    tap = tpad[pl.ds(start, hw), :]
                    if kx == -1:
                        tap = jnp.where(left_ok, tap, 0.0)
                    elif kx == 1:
                        tap = jnp.where(right_ok, tap, 0.0)
                    acc = acc + jnp.dot(tap.astype(jnp.bfloat16), mw2[k],
                                        preferred_element_type=jnp.float32)
            # Bottleneck shortcut (in_ch == out_ch): fused residual add.
            t = t + bias_silu(acc, mb2)

        # cv3 on the (virtual) concat [t, y2]: two dots -> one accumulator,
        # no (HW, 2*hidden) tensor is ever materialized.
        z3 = (jnp.dot(t.astype(jnp.bfloat16), w3t[...],
                      preferred_element_type=jnp.float32) +
              jnp.dot(y2.astype(jnp.bfloat16), w3b[...],
                      preferred_element_type=jnp.float32))
        o_ref[0] = bias_silu(z3, b3).astype(o_ref.dtype)

    return kernel


# --------------------------------- wrapper ------------------------------------

def c3_forward(x_nchw, params):
    n, cin, h, w = x_nchw.shape
    hidden = params["cv1"]["w"].shape[1]
    cout = params["cv3"]["w"].shape[1]
    n_blocks = len(params["m"])
    cp, hp, op = _rup(cin, LANE), _rup(hidden, LANE), _rup(cout, LANE)
    hw = h * w
    pad_rows = _rup(w + 1, SUB)      # vertical halo rows (sublane aligned)

    # NCHW -> NHWC -> (N, H*W, C), pad channels to a full 128-lane width
    # (layout plumbing; padded channels stay exactly zero through the net).
    x = jnp.transpose(x_nchw, (0, 2, 3, 1)).astype(jnp.float32)
    x = _pad_axis(x.reshape(n, hw, cin), cp, 2).astype(jnp.bfloat16)

    def prep_1x1(p, kin_p, kout_p):
        wgt = p["w"] * p["scale"][None, :]               # fold BN scale into W
        wgt = _pad_axis(_pad_axis(wgt, kin_p, 0), kout_p, 1).astype(jnp.bfloat16)
        b = _pad_axis(p["bias"].reshape(1, -1), kout_p, 1).astype(jnp.float32)
        return [wgt, b]

    inputs = [x]
    inputs += prep_1x1(params["cv1"], cp, hp)
    inputs += prep_1x1(params["cv2"], cp, hp)
    for blk in params["m"]:
        inputs += prep_1x1(blk["cv1"], hp, hp)
        w3x3 = blk["cv2"]["w"].reshape(9, hidden, hidden)      # (kh*3+kw, ci, co)
        w3x3 = w3x3 * blk["cv2"]["scale"][None, None, :]       # fold BN scale
        w3x3 = _pad_axis(_pad_axis(w3x3, hp, 1), hp, 2).astype(jnp.bfloat16)
        b = _pad_axis(blk["cv2"]["bias"].reshape(1, -1), hp, 1).astype(jnp.float32)
        inputs += [w3x3, b]
    # cv3 weight split along the concat axis (rows 0:hidden -> t, rest -> y2).
    w3 = params["cv3"]["w"] * params["cv3"]["scale"][None, :]
    w3t = _pad_axis(_pad_axis(w3[:hidden], hp, 0), op, 1).astype(jnp.bfloat16)
    w3b = _pad_axis(_pad_axis(w3[hidden:], hp, 0), op, 1).astype(jnp.bfloat16)
    b3 = _pad_axis(params["cv3"]["bias"].reshape(1, -1), op, 1).astype(jnp.float32)
    inputs += [w3t, w3b, b3]

    # Grid over the batch: each step keeps one image plus every intermediate
    # in VMEM; weights use constant index_maps so they stay resident.
    in_specs = [pl.BlockSpec((1, hw, cp), lambda i: (i, 0, 0))]
    for a in inputs[1:]:
        in_specs.append(pl.BlockSpec(a.shape, lambda i, _nd=a.ndim: (0,) * _nd))
    out_specs = pl.BlockSpec((1, hw, op), lambda i: (i, 0, 0))

    out = pl.pallas_call(
        _make_c3_kernel(n_blocks, h, w, pad_rows),
        out_shape=jax.ShapeDtypeStruct((n, hw, op), jnp.float32),
        grid=(n,),
        in_specs=in_specs,
        out_specs=out_specs,
        scratch_shapes=[pltpu.VMEM((hw + 2 * pad_rows, hp), jnp.float32)],
        compiler_params=pltpu.CompilerParams(
            dimension_semantics=("parallel",)),
    )(*inputs)

    # TODO(synk): for production spatial sizes (H*W too large for VMEM) the
    # grid should additionally tile H with an n_blocks-row halo; unnecessary
    # at these shapes.
    out = out[:, :, :cout].reshape(n, h, w, cout)
    return jnp.transpose(out, (0, 3, 1, 2))      # back to NCHW


# ------------------------------- parameters -----------------------------------

def _fused_conv_params(key, cin, cout, ksize):
    """Deterministic init of Conv2d(bias=False) + BatchNorm2d (eval), BN folded."""
    kw, kg, kb, km, kv = jax.random.split(key, 5)
    if ksize == 1:
        w = jax.random.normal(kw, (cin, cout), jnp.float32) * 0.3             # (Cin, Cout)
    else:
        w = jax.random.normal(kw, (ksize, ksize, cin, cout), jnp.float32) * 0.1  # HWIO
    gamma = jax.random.uniform(kg, (cout,), jnp.float32, 0.5, 1.5)
    beta = jax.random.normal(kb, (cout,), jnp.float32) * 0.1
    mean = jax.random.normal(km, (cout,), jnp.float32) * 0.1
    var = jax.random.uniform(kv, (cout,), jnp.float32, 0.5, 1.5)
    eps = 1e-5  # BatchNorm2d default
    scale = gamma / jnp.sqrt(var + eps)
    bias = beta - mean * scale
    return {"w": w, "scale": scale, "bias": bias}


def init_c3_params(key, input_channels, output_channels, n_blocks, expansion=0.5):
    hidden = int(output_channels * expansion)
    keys = jax.random.split(key, 3 + 2 * n_blocks)
    params = {
        "cv1": _fused_conv_params(keys[0], input_channels, hidden, 1),
        "cv2": _fused_conv_params(keys[1], input_channels, hidden, 1),
        "cv3": _fused_conv_params(keys[2], 2 * hidden, output_channels, 1),
        "m": [],
    }
    for i in range(n_blocks):
        params["m"].append({
            "cv1": _fused_conv_params(keys[3 + 2 * i], hidden, hidden, 1),
            "cv2": _fused_conv_params(keys[4 + 2 * i], hidden, hidden, 3),
        })
    return params


# ------------------------- pure-JAX reference (check) --------------------------

def _ref_conv_bn_silu(x_nhwc, p, ksize):
    w = p["w"].reshape(1, 1, *p["w"].shape) if ksize == 1 else p["w"]
    z = lax.conv_general_dilated(x_nhwc, w, (1, 1), "SAME",
                                 dimension_numbers=("NHWC", "HWIO", "NHWC"))
    z = z * p["scale"] + p["bias"]
    return z * jax.nn.sigmoid(z)


def c3_reference(x_nchw, params):
    x = jnp.transpose(x_nchw, (0, 2, 3, 1)).astype(jnp.float32)
    y1 = _ref_conv_bn_silu(x, params["cv1"], 1)
    y2 = _ref_conv_bn_silu(x, params["cv2"], 1)
    t = y1
    for blk in params["m"]:
        t1 = _ref_conv_bn_silu(t, blk["cv1"], 1)
        t = t + _ref_conv_bn_silu(t1, blk["cv2"], 3)
    out = _ref_conv_bn_silu(jnp.concatenate([t, y2], axis=-1), params["cv3"], 1)
    return out.transpose(0, 3, 1, 2)


# ----------------------------------- main --------------------------------------

if __name__ == "__main__":
    key = jax.random.PRNGKey(0)
    kx, kp = jax.random.split(key)

    # C3(input_channels=4, output_channels=8, bottleneck_blocks_num=2, nn.SiLU)
    N, C_IN, H, W = 2, 4, 16, 16
    C_OUT, N_BLOCKS = 8, 2

    x = jax.random.normal(kx, (N, C_IN, H, W), jnp.float32)
    params = init_c3_params(kp, C_IN, C_OUT, N_BLOCKS)

    out = jax.block_until_ready(jax.jit(c3_forward)(x, params))

    ref = c3_reference(x, params)
    assert out.shape == (N, C_OUT, H, W), out.shape
    # bf16 MXU inputs (f32 accumulate) + EUP approx reciprocal in SiLU vs. the
    # pure f32 reference over a 6-conv-deep chain -> relaxed tolerance.
    assert jnp.allclose(out, ref, atol=1e-1, rtol=1e-1), \
        float(jnp.max(jnp.abs(out - ref)))
    # TODO(synk): BatchNorm training-mode statistics update is not modeled
    # (eval-mode BN is folded into per-channel scale/bias, matching inference).
    print("KERNEL_OK")
</pallas_src>

<mosaic_0001>
module attributes {stable_mosaic.version = 11 : i64} {
  func.func @kernel(%arg0: i32, %arg1: memref<1x256x128xbf16, #tpu.memory_space<vmem>>, %arg2: memref<128x128xbf16, #tpu.memory_space<vmem>>, %arg3: memref<1x128xf32, #tpu.memory_space<vmem>>, %arg4: memref<128x128xbf16, #tpu.memory_space<vmem>>, %arg5: memref<1x128xf32, #tpu.memory_space<vmem>>, %arg6: memref<128x128xbf16, #tpu.memory_space<vmem>>, %arg7: memref<1x128xf32, #tpu.memory_space<vmem>>, %arg8: memref<9x128x128xbf16, #tpu.memory_space<vmem>>, %arg9: memref<1x128xf32, #tpu.memory_space<vmem>>, %arg10: memref<128x128xbf16, #tpu.memory_space<vmem>>, %arg11: memref<1x128xf32, #tpu.memory_space<vmem>>, %arg12: memref<9x128x128xbf16, #tpu.memory_space<vmem>>, %arg13: memref<1x128xf32, #tpu.memory_space<vmem>>, %arg14: memref<128x128xbf16, #tpu.memory_space<vmem>>, %arg15: memref<128x128xbf16, #tpu.memory_space<vmem>>, %arg16: memref<1x128xf32, #tpu.memory_space<vmem>>, %arg17: memref<1x256x128xf32, #tpu.memory_space<vmem>>, %arg18: memref<304x128xf32, #tpu.memory_space<vmem>>) attributes {dimension_semantics = [#tpu.dimension_semantics<parallel>], iteration_bounds = array<i64: 2>, scalar_prefetch = 0 : i64, scratch_operands = 1 : i64, tpu.core_type = #tpu.core_type<tc>, window_params = [{transform_indices = @transform_0, window_bounds = array<i64: 1, 256, 128>}, {pipeline_mode = #tpu.pipeline_mode<synchronous>, transform_indices = @transform_1, window_bounds = array<i64: 128, 128>}, {pipeline_mode = #tpu.pipeline_mode<synchronous>, transform_indices = @transform_2, window_bounds = array<i64: 1, 128>}, {pipeline_mode = #tpu.pipeline_mode<synchronous>, transform_indices = @transform_3, window_bounds = array<i64: 128, 128>}, {pipeline_mode = #tpu.pipeline_mode<synchronous>, transform_indices = @transform_4, window_bounds = array<i64: 1, 128>}, {pipeline_mode = #tpu.pipeline_mode<synchronous>, transform_indices = @transform_5, window_bounds = array<i64: 128, 128>}, {pipeline_mode = #tpu.pipeline_mode<synchronous>, transform_indices = @transform_6, window_bounds = array<i64: 1, 128>}, {pipeline_mode = #tpu.pipeline_mode<synchronous>, transform_indices = @transform_7, window_bounds = array<i64: 9, 128, 128>}, {pipeline_mode = #tpu.pipeline_mode<synchronous>, transform_indices = @transform_8, window_bounds = array<i64: 1, 128>}, {pipeline_mode = #tpu.pipeline_mode<synchronous>, transform_indices = @transform_9, window_bounds = array<i64: 128, 128>}, {pipeline_mode = #tpu.pipeline_mode<synchronous>, transform_indices = @transform_10, window_bounds = array<i64: 1, 128>}, {pipeline_mode = #tpu.pipeline_mode<synchronous>, transform_indices = @transform_11, window_bounds = array<i64: 9, 128, 128>}, {pipeline_mode = #tpu.pipeline_mode<synchronous>, transform_indices = @transform_12, window_bounds = array<i64: 1, 128>}, {pipeline_mode = #tpu.pipeline_mode<synchronous>, transform_indices = @transform_13, window_bounds = array<i64: 128, 128>}, {pipeline_mode = #tpu.pipeline_mode<synchronous>, transform_indices = @transform_14, window_bounds = array<i64: 128, 128>}, {pipeline_mode = #tpu.pipeline_mode<synchronous>, transform_indices = @transform_15, window_bounds = array<i64: 1, 128>}, {transform_indices = @transform_16, window_bounds = array<i64: 1, 256, 128>}]} {
    %c0 = arith.constant 0 : index
    %c0_0 = arith.constant 0 : index
    %c0_1 = arith.constant 0 : index
    %0 = vector.load %arg1[%c0, %c0_0, %c0_1] : memref<1x256x128xbf16, #tpu.memory_space<vmem>>, vector<1x256x128xbf16>
    %1 = vector.shape_cast %0 : vector<1x256x128xbf16> to vector<256x128xbf16>
    %c0_2 = arith.constant 0 : index
    %c0_3 = arith.constant 0 : index
    %2 = vector.load %arg2[%c0_2, %c0_3] : memref<128x128xbf16, #tpu.memory_space<vmem>>, vector<128x128xbf16>
    %cst = arith.constant dense<0.000000e+00> : vector<256x128xf32>
    %3 = tpu.matmul %1, %2, %cst {dimension_numbers = #tpu.dot_dimension_numbers<[1], [0], [0], [1], [0, 0, 1, 1], [], []>} : vector<256x128xbf16>, vector<128x128xbf16>, vector<256x128xf32> -> vector<256x128xf32>
    %c0_4 = arith.constant 0 : index
    %c0_5 = arith.constant 0 : index
    %4 = vector.load %arg3[%c0_4, %c0_5] : memref<1x128xf32, #tpu.memory_space<vmem>>, vector<1x128xf32>
    %5 = vector.broadcast %4 : vector<1x128xf32> to vector<256x128xf32>
    %6 = arith.addf %3, %5 : vector<256x128xf32>
    %cst_6 = arith.constant 0.000000e+00 : f32
    %7 = vector.broadcast %cst_6 : f32 to vector<256x128xf32>
    %8 = arith.subf %7, %6 : vector<256x128xf32>
    %9 = math.exp %8 : vector<256x128xf32>
    %cst_7 = arith.constant 1.000000e+00 : f32
    %10 = vector.broadcast %cst_7 : f32 to vector<256x128xf32>
    %11 = arith.addf %10, %9 : vector<256x128xf32>
    %12 = tpu.reciprocal %11 {approx = true} : vector<256x128xf32> -> vector<256x128xf32>
    %13 = arith.mulf %6, %12 : vector<256x128xf32>
    %c0_8 = arith.constant 0 : index
    %c0_9 = arith.constant 0 : index
    %14 = vector.load %arg4[%c0_8, %c0_9] : memref<128x128xbf16, #tpu.memory_space<vmem>>, vector<128x128xbf16>
    %cst_10 = arith.constant dense<0.000000e+00> : vector<256x128xf32>
    %15 = tpu.matmul %1, %14, %cst_10 {dimension_numbers = #tpu.dot_dimension_numbers<[1], [0], [0], [1], [0, 0, 1, 1], [], []>} : vector<256x128xbf16>, vector<128x128xbf16>, vector<256x128xf32> -> vector<256x128xf32>
    %c0_11 = arith.constant 0 : index
    %c0_12 = arith.constant 0 : index
    %16 = vector.load %arg5[%c0_11, %c0_12] : memref<1x128xf32, #tpu.memory_space<vmem>>, vector<1x128xf32>
    %17 = vector.broadcast %16 : vector<1x128xf32> to vector<256x128xf32>
    %18 = arith.addf %15, %17 : vector<256x128xf32>
    %cst_13 = arith.constant 0.000000e+00 : f32
    %19 = vector.broadcast %cst_13 : f32 to vector<256x128xf32>
    %20 = arith.subf %19, %18 : vector<256x128xf32>
    %21 = math.exp %20 : vector<256x128xf32>
    %cst_14 = arith.constant 1.000000e+00 : f32
    %22 = vector.broadcast %cst_14 : f32 to vector<256x128xf32>
    %23 = arith.addf %22, %21 : vector<256x128xf32>
    %24 = tpu.reciprocal %23 {approx = true} : vector<256x128xf32> -> vector<256x128xf32>
    %25 = arith.mulf %18, %24 : vector<256x128xf32>
    %26 = tpu.iota {dimensions = array<i32: 0>} : vector<256x128xi32>
    %c16_i32 = arith.constant 16 : i32
    %c0_i32 = arith.constant 0 : i32
    %27 = arith.cmpi eq, %c16_i32, %c0_i32 : i32
    %c1_i32 = arith.constant 1 : i32
    %28 = arith.select %27, %c1_i32, %c16_i32 : i32
    %29 = vector.broadcast %28 : i32 to vector<256x128xi32>
    %30 = arith.remsi %26, %29 : vector<256x128xi32>
    %c0_i32_15 = arith.constant 0 : i32
    %31 = vector.broadcast %c0_i32_15 : i32 to vector<256x128xi32>
    %32 = arith.cmpi ne, %30, %31 : vector<256x128xi32>
    %c0_i32_16 = arith.constant 0 : i32
    %33 = vector.broadcast %c0_i32_16 : i32 to vector<256x128xi32>
    %34 = arith.cmpi slt, %30, %33 : vector<256x128xi32>
    %c0_i32_17 = arith.constant 0 : i32
    %35 = arith.cmpi slt, %28, %c0_i32_17 : i32
    %36 = vector.broadcast %35 : i1 to vector<256x128xi1>
    %37 = vector.broadcast %36 : vector<256x128xi1> to vector<256x128xi1>
    %38 = arith.xori %34, %37 : vector<256x128xi1>
    %39 = arith.andi %38, %32 : vector<256x128xi1>
    %40 = vector.broadcast %28 : i32 to vector<256x128xi32>
    %41 = arith.addi %30, %40 : vector<256x128xi32>
    %42 = arith.select %39, %41, %30 : vector<256x128xi1>, vector<256x128xi32>
    %c1_i32_18 = arith.constant 1 : i32
    %43 = vector.broadcast %c1_i32_18 : i32 to vector<256x128xi32>
    %44 = arith.cmpi sge, %42, %43 : vector<256x128xi32>
    %c14_i32 = arith.constant 14 : i32
    %45 = vector.broadcast %c14_i32 : i32 to vector<256x128xi32>
    %46 = arith.cmpi sle, %42, %45 : vector<256x128xi32>
    %cst_19 = arith.constant 0.000000e+00 : f32
    %47 = vector.broadcast %cst_19 : f32 to vector<24x128xf32>
    %c0_20 = arith.constant 0 : index
    %c0_21 = arith.constant 0 : index
    %48 = vector.load %arg18[%c0_20, %c0_21] : memref<304x128xf32, #tpu.memory_space<vmem>>, vector<24x128xf32>
    tpu.vector_store %arg18[%c0_20, %c0_21], %47 {strides = array<i32>} : memref<304x128xf32, #tpu.memory_space<vmem>>, vector<24x128xf32>,
    %c280 = arith.constant 280 : index
    %c0_22 = arith.constant 0 : index
    %49 = vector.load %arg18[%c280, %c0_22] : memref<304x128xf32, #tpu.memory_space<vmem>>, vector<24x128xf32>
    tpu.vector_store %arg18[%c280, %c0_22], %47 {strides = array<i32>} : memref<304x128xf32, #tpu.memory_space<vmem>>, vector<24x128xf32>,
    %50 = arith.truncf %13 : vector<256x128xf32> to vector<256x128xbf16>
    %c0_23 = arith.constant 0 : index
    %c0_24 = arith.constant 0 : index
    %51 = vector.load %arg6[%c0_23, %c0_24] : memref<128x128xbf16, #tpu.memory_space<vmem>>, vector<128x128xbf16>
    %cst_25 = arith.constant dense<0.000000e+00> : vector<256x128xf32>
    %52 = tpu.matmul %50, %51, %cst_25 {dimension_numbers = #tpu.dot_dimension_numbers<[1], [0], [0], [1], [0, 0, 1, 1], [], []>} : vector<256x128xbf16>, vector<128x128xbf16>, vector<256x128xf32> -> vector<256x128xf32>
    %c0_26 = arith.constant 0 : index
    %c0_27 = arith.constant 0 : index
    %53 = vector.load %arg7[%c0_26, %c0_27] : memref<1x128xf32, #tpu.memory_space<vmem>>, vector<1x128xf32>
    %54 = vector.broadcast %53 : vector<1x128xf32> to vector<256x128xf32>
    %55 = arith.addf %52, %54 : vector<256x128xf32>
    %cst_28 = arith.constant 0.000000e+00 : f32
    %56 = vector.broadcast %cst_28 : f32 to vector<256x128xf32>
    %57 = arith.subf %56, %55 : vector<256x128xf32>
    %58 = math.exp %57 : vector<256x128xf32>
    %cst_29 = arith.constant 1.000000e+00 : f32
    %59 = vector.broadcast %cst_29 : f32 to vector<256x128xf32>
    %60 = arith.addf %59, %58 : vector<256x128xf32>
    %61 = tpu.reciprocal %60 {approx = true} : vector<256x128xf32> -> vector<256x128xf32>
    %62 = arith.mulf %55, %61 : vector<256x128xf32>
    %c24 = arith.constant 24 : index
    %c0_30 = arith.constant 0 : index
    %63 = vector.load %arg18[%c24, %c0_30] : memref<304x128xf32, #tpu.memory_space<vmem>>, vector<256x128xf32>
    tpu.vector_store %arg18[%c24, %c0_30], %62 {strides = array<i32>} : memref<304x128xf32, #tpu.memory_space<vmem>>, vector<256x128xf32>,
    %cst_31 = arith.constant 0.000000e+00 : f32
    %64 = vector.broadcast %cst_31 : f32 to vector<256x128xf32>
    %c7 = arith.constant 7 : index
    %c0_32 = arith.constant 0 : index
    %65 = vector.load %arg18[%c7, %c0_32] : memref<304x128xf32, #tpu.memory_space<vmem>>, vector<256x128xf32>
    %cst_33 = arith.constant 0.000000e+00 : f32
    %66 = vector.broadcast %cst_33 : f32 to vector<256x128xf32>
    %67 = arith.select %44, %65, %66 : vector<256x128xi1>, vector<256x128xf32>
    %68 = arith.truncf %67 : vector<256x128xf32> to vector<256x128xbf16>
    %c0_34 = arith.constant 0 : index
    %c0_35 = arith.constant 0 : index
    %c0_36 = arith.constant 0 : index
    %69 = vector.load %arg8[%c0_34, %c0_35, %c0_36] : memref<9x128x128xbf16, #tpu.memory_space<vmem>>, vector<1x128x128xbf16>
    %70 = vector.shape_cast %69 : vector<1x128x128xbf16> to vector<128x128xbf16>
    %cst_37 = arith.constant dense<0.000000e+00> : vector<256x128xf32>
    %71 = tpu.matmul %68, %70, %cst_37 {dimension_numbers = #tpu.dot_dimension_numbers<[1], [0], [0], [1], [0, 0, 1, 1], [], []>} : vector<256x128xbf16>, vector<128x128xbf16>, vector<256x128xf32> -> vector<256x128xf32>
    %72 = arith.addf %64, %71 : vector<256x128xf32>
    %c8 = arith.constant 8 : index
    %c0_38 = arith.constant 0 : index
    %73 = vector.load %arg18[%c8, %c0_38] : memref<304x128xf32, #tpu.memory_space<vmem>>, vector<256x128xf32>
    %74 = arith.truncf %73 : vector<256x128xf32> to vector<256x128xbf16>
    %c1 = arith.constant 1 : index
    %c0_39 = arith.constant 0 : index
    %c0_40 = arith.constant 0 : index
    %75 = vector.load %arg8[%c1, %c0_39, %c0_40] : memref<9x128x128xbf16, #tpu.memory_space<vmem>>, vector<1x128x128xbf16>
    %76 = vector.shape_cast %75 : vector<1x128x128xbf16> to vector<128x128xbf16>
    %cst_41 = arith.constant dense<0.000000e+00> : vector<256x128xf32>
    %77 = tpu.matmul %74, %76, %cst_41 {dimension_numbers = #tpu.dot_dimension_numbers<[1], [0], [0], [1], [0, 0, 1, 1], [], []>} : vector<256x128xbf16>, vector<128x128xbf16>, vector<256x128xf32> -> vector<256x128xf32>
    %78 = arith.addf %72, %77 : vector<256x128xf32>
    %c9 = arith.constant 9 : index
    %c0_42 = arith.constant 0 : index
    %79 = vector.load %arg18[%c9, %c0_42] : memref<304x128xf32, #tpu.memory_space<vmem>>, vector<256x128xf32>
    %cst_43 = arith.constant 0.000000e+00 : f32
    %80 = vector.broadcast %cst_43 : f32 to vector<256x128xf32>
    %81 = arith.select %46, %79, %80 : vector<256x128xi1>, vector<256x128xf32>
    %82 = arith.truncf %81 : vector<256x128xf32> to vector<256x128xbf16>
    %c2 = arith.constant 2 : index
    %c0_44 = arith.constant 0 : index
    %c0_45 = arith.constant 0 : index
    %83 = vector.load %arg8[%c2, %c0_44, %c0_45] : memref<9x128x128xbf16, #tpu.memory_space<vmem>>, vector<1x128x128xbf16>
    %84 = vector.shape_cast %83 : vector<1x128x128xbf16> to vector<128x128xbf16>
    %cst_46 = arith.constant dense<0.000000e+00> : vector<256x128xf32>
    %85 = tpu.matmul %82, %84, %cst_46 {dimension_numbers = #tpu.dot_dimension_numbers<[1], [0], [0], [1], [0, 0, 1, 1], [], []>} : vector<256x128xbf16>, vector<128x128xbf16>, vector<256x128xf32> -> vector<256x128xf32>
    %86 = arith.addf %78, %85 : vector<256x128xf32>
    %c23 = arith.constant 23 : index
    %c0_47 = arith.constant 0 : index
    %87 = vector.load %arg18[%c23, %c0_47] : memref<304x128xf32, #tpu.memory_space<vmem>>, vector<256x128xf32>
    %cst_48 = arith.constant 0.000000e+00 : f32
    %88 = vector.broadcast %cst_48 : f32 to vector<256x128xf32>
    %89 = arith.select %44, %87, %88 : vector<256x128xi1>, vector<256x128xf32>
    %90 = arith.truncf %89 : vector<256x128xf32> to vector<256x128xbf16>
    %c3 = arith.constant 3 : index
    %c0_49 = arith.constant 0 : index
    %c0_50 = arith.constant 0 : index
    %91 = vector.load %arg8[%c3, %c0_49, %c0_50] : memref<9x128x128xbf16, #tpu.memory_space<vmem>>, vector<1x128x128xbf16>
    %92 = vector.shape_cast %91 : vector<1x128x128xbf16> to vector<128x128xbf16>
    %cst_51 = arith.constant dense<0.000000e+00> : vector<256x128xf32>
    %93 = tpu.matmul %90, %92, %cst_51 {dimension_numbers = #tpu.dot_dimension_numbers<[1], [0], [0], [1], [0, 0, 1, 1], [], []>} : vector<256x128xbf16>, vector<128x128xbf16>, vector<256x128xf32> -> vector<256x128xf32>
    %94 = arith.addf %86, %93 : vector<256x128xf32>
    %c24_52 = arith.constant 24 : index
    %c0_53 = arith.constant 0 : index
    %95 = vector.load %arg18[%c24_52, %c0_53] : memref<304x128xf32, #tpu.memory_space<vmem>>, vector<256x128xf32>
    %96 = arith.truncf %95 : vector<256x128xf32> to vector<256x128xbf16>
    %c4 = arith.constant 4 : index
    %c0_54 = arith.constant 0 : index
    %c0_55 = arith.constant 0 : index
    %97 = vector.load %arg8[%c4, %c0_54, %c0_55] : memref<9x128x128xbf16, #tpu.memory_space<vmem>>, vector<1x128x128xbf16>
    %98 = vector.shape_cast %97 : vector<1x128x128xbf16> to vector<128x128xbf16>
    %cst_56 = arith.constant dense<0.000000e+00> : vector<256x128xf32>
    %99 = tpu.matmul %96, %98, %cst_56 {dimension_numbers = #tpu.dot_dimension_numbers<[1], [0], [0], [1], [0, 0, 1, 1], [], []>} : vector<256x128xbf16>, vector<128x128xbf16>, vector<256x128xf32> -> vector<256x128xf32>
    %100 = arith.addf %94, %99 : vector<256x128xf32>
    %c25 = arith.constant 25 : index
    %c0_57 = arith.constant 0 : index
    %101 = vector.load %arg18[%c25, %c0_57] : memref<304x128xf32, #tpu.memory_space<vmem>>, vector<256x128xf32>
    %cst_58 = arith.constant 0.000000e+00 : f32
    %102 = vector.broadcast %cst_58 : f32 to vector<256x128xf32>
    %103 = arith.select %46, %101, %102 : vector<256x128xi1>, vector<256x128xf32>
    %104 = arith.truncf %103 : vector<256x128xf32> to vector<256x128xbf16>
    %c5 = arith.constant 5 : index
    %c0_59 = arith.constant 0 : index
    %c0_60 = arith.constant 0 : index
    %105 = vector.load %arg8[%c5, %c0_59, %c0_60] : memref<9x128x128xbf16, #tpu.memory_space<vmem>>, vector<1x128x128xbf16>
    %106 = vector.shape_cast %105 : vector<1x128x128xbf16> to vector<128x128xbf16>
    %cst_61 = arith.constant dense<0.000000e+00> : vector<256x128xf32>
    %107 = tpu.matmul %104, %106, %cst_61 {dimension_numbers = #tpu.dot_dimension_numbers<[1], [0], [0], [1], [0, 0, 1, 1], [], []>} : vector<256x128xbf16>, vector<128x128xbf16>, vector<256x128xf32> -> vector<256x128xf32>
    %108 = arith.addf %100, %107 : vector<256x128xf32>
    %c39 = arith.constant 39 : index
    %c0_62 = arith.constant 0 : index
    %109 = vector.load %arg18[%c39, %c0_62] : memref<304x128xf32, #tpu.memory_space<vmem>>, vector<256x128xf32>
    %cst_63 = arith.constant 0.000000e+00 : f32
    %110 = vector.broadcast %cst_63 : f32 to vector<256x128xf32>
    %111 = arith.select %44, %109, %110 : vector<256x128xi1>, vector<256x128xf32>
    %112 = arith.truncf %111 : vector<256x128xf32> to vector<256x128xbf16>
    %c6 = arith.constant 6 : index
    %c0_64 = arith.constant 0 : index
    %c0_65 = arith.constant 0 : index
    %113 = vector.load %arg8[%c6, %c0_64, %c0_65] : memref<9x128x128xbf16, #tpu.memory_space<vmem>>, vector<1x128x128xbf16>
    %114 = vector.shape_cast %113 : vector<1x128x128xbf16> to vector<128x128xbf16>
    %cst_66 = arith.constant dense<0.000000e+00> : vector<256x128xf32>
    %115 = tpu.matmul %112, %114, %cst_66 {dimension_numbers = #tpu.dot_dimension_numbers<[1], [0], [0], [1], [0, 0, 1, 1], [], []>} : vector<256x128xbf16>, vector<128x128xbf16>, vector<256x128xf32> -> vector<256x128xf32>
    %116 = arith.addf %108, %115 : vector<256x128xf32>
    %c40 = arith.constant 40 : index
    %c0_67 = arith.constant 0 : index
    %117 = vector.load %arg18[%c40, %c0_67] : memref<304x128xf32, #tpu.memory_space<vmem>>, vector<256x128xf32>
    %118 = arith.truncf %117 : vector<256x128xf32> to vector<256x128xbf16>
    %c7_68 = arith.constant 7 : index
    %c0_69 = arith.constant 0 : index
    %c0_70 = arith.constant 0 : index
    %119 = vector.load %arg8[%c7_68, %c0_69, %c0_70] : memref<9x128x128xbf16, #tpu.memory_space<vmem>>, vector<1x128x128xbf16>
    %120 = vector.shape_cast %119 : vector<1x128x128xbf16> to vector<128x128xbf16>
    %cst_71 = arith.constant dense<0.000000e+00> : vector<256x128xf32>
    %121 = tpu.matmul %118, %120, %cst_71 {dimension_numbers = #tpu.dot_dimension_numbers<[1], [0], [0], [1], [0, 0, 1, 1], [], []>} : vector<256x128xbf16>, vector<128x128xbf16>, vector<256x128xf32> -> vector<256x128xf32>
    %122 = arith.addf %116, %121 : vector<256x128xf32>
    %c41 = arith.constant 41 : index
    %c0_72 = arith.constant 0 : index
    %123 = vector.load %arg18[%c41, %c0_72] : memref<304x128xf32, #tpu.memory_space<vmem>>, vector<256x128xf32>
    %cst_73 = arith.constant 0.000000e+00 : f32
    %124 = vector.broadcast %cst_73 : f32 to vector<256x128xf32>
    %125 = arith.select %46, %123, %124 : vector<256x128xi1>, vector<256x128xf32>
    %126 = arith.truncf %125 : vector<256x128xf32> to vector<256x128xbf16>
    %c8_74 = arith.constant 8 : index
    %c0_75 = arith.constant 0 : index
    %c0_76 = arith.constant 0 : index
    %127 = vector.load %arg8[%c8_74, %c0_75, %c0_76] : memref<9x128x128xbf16, #tpu.memory_space<vmem>>, vector<1x128x128xbf16>
    %128 = vector.shape_cast %127 : vector<1x128x128xbf16> to vector<128x128xbf16>
    %cst_77 = arith.constant dense<0.000000e+00> : vector<256x128xf32>
    %129 = tpu.matmul %126, %128, %cst_77 {dimension_numbers = #tpu.dot_dimension_numbers<[1], [0], [0], [1], [0, 0, 1, 1], [], []>} : vector<256x128xbf16>, vector<128x128xbf16>, vector<256x128xf32> -> vector<256x128xf32>
    %130 = arith.addf %122, %129 : vector<256x128xf32>
    %c0_78 = arith.constant 0 : index
    %c0_79 = arith.constant 0 : index
    %131 = vector.load %arg9[%c0_78, %c0_79] : memref<1x128xf32, #tpu.memory_space<vmem>>, vector<1x128xf32>
    %132 = vector.broadcast %131 : vector<1x128xf32> to vector<256x128xf32>
    %133 = arith.addf %130, %132 : vector<256x128xf32>
    %cst_80 = arith.constant 0.000000e+00 : f32
    %134 = vector.broadcast %cst_80 : f32 to vector<256x128xf32>
    %135 = arith.subf %134, %133 : vector<256x128xf32>
    %136 = math.exp %135 : vector<256x128xf32>
    %cst_81 = arith.constant 1.000000e+00 : f32
    %137 = vector.broadcast %cst_81 : f32 to vector<256x128xf32>
    %138 = arith.addf %137, %136 : vector<256x128xf32>
    %139 = tpu.reciprocal %138 {approx = true} : vector<256x128xf32> -> vector<256x128xf32>
    %140 = arith.mulf %133, %139 : vector<256x128xf32>
    %141 = arith.addf %13, %140 : vector<256x128xf32>
    %142 = arith.truncf %141 : vector<256x128xf32> to vector<256x128xbf16>
    %c0_82 = arith.constant 0 : index
    %c0_83 = arith.constant 0 : index
    %143 = vector.load %arg10[%c0_82, %c0_83] : memref<128x128xbf16, #tpu.memory_space<vmem>>, vector<128x128xbf16>
    %cst_84 = arith.constant dense<0.000000e+00> : vector<256x128xf32>
    %144 = tpu.matmul %142, %143, %cst_84 {dimension_numbers = #tpu.dot_dimension_numbers<[1], [0], [0], [1], [0, 0, 1, 1], [], []>} : vector<256x128xbf16>, vector<128x128xbf16>, vector<256x128xf32> -> vector<256x128xf32>
    %c0_85 = arith.constant 0 : index
    %c0_86 = arith.constant 0 : index
    %145 = vector.load %arg11[%c0_85, %c0_86] : memref<1x128xf32, #tpu.memory_space<vmem>>, vector<1x128xf32>
    %146 = vector.broadcast %145 : vector<1x128xf32> to vector<256x128xf32>
    %147 = arith.addf %144, %146 : vector<256x128xf32>
    %cst_87 = arith.constant 0.000000e+00 : f32
    %148 = vector.broadcast %cst_87 : f32 to vector<256x128xf32>
    %149 = arith.subf %148, %147 : vector<256x128xf32>
    %150 = math.exp %149 : vector<256x128xf32>
    %cst_88 = arith.constant 1.000000e+00 : f32
    %151 = vector.broadcast %cst_88 : f32 to vector<256x128xf32>
    %152 = arith.addf %151, %150 : vector<256x128xf32>
    %153 = tpu.reciprocal %152 {approx = true} : vector<256x128xf32> -> vector<256x128xf32>
    %154 = arith.mulf %147, %153 : vector<256x128xf32>
    %c24_89 = arith.constant 24 : index
    %c0_90 = arith.constant 0 : index
    %155 = vector.load %arg18[%c24_89, %c0_90] : memref<304x128xf32, #tpu.memory_space<vmem>>, vector<256x128xf32>
    tpu.vector_store %arg18[%c24_89, %c0_90], %154 {strides = array<i32>} : memref<304x128xf32, #tpu.memory_space<vmem>>, vector<256x128xf32>,
    %cst_91 = arith.constant 0.000000e+00 : f32
    %156 = vector.broadcast %cst_91 : f32 to vector<256x128xf32>
    %c7_92 = arith.constant 7 : index
    %c0_93 = arith.constant 0 : index
    %157 = vector.load %arg18[%c7_92, %c0_93] : memref<304x128xf32, #tpu.memory_space<vmem>>, vector<256x128xf32>
    %cst_94 = arith.constant 0.000000e+00 : f32
    %158 = vector.broadcast %cst_94 : f32 to vector<256x128xf32>
    %159 = arith.select %44, %157, %158 : vector<256x128xi1>, vector<256x128xf32>
    %160 = arith.truncf %159 : vector<256x128xf32> to vector<256x128xbf16>
    %c0_95 = arith.constant 0 : index
    %c0_96 = arith.constant 0 : index
    %c0_97 = arith.constant 0 : index
    %161 = vector.load %arg12[%c0_95, %c0_96, %c0_97] : memref<9x128x128xbf16, #tpu.memory_space<vmem>>, vector<1x128x128xbf16>
    %162 = vector.shape_cast %161 : vector<1x128x128xbf16> to vector<128x128xbf16>
    %cst_98 = arith.constant dense<0.000000e+00> : vector<256x128xf32>
    %163 = tpu.matmul %160, %162, %cst_98 {dimension_numbers = #tpu.dot_dimension_numbers<[1], [0], [0], [1], [0, 0, 1, 1], [], []>} : vector<256x128xbf16>, vector<128x128xbf16>, vector<256x128xf32> -> vector<256x128xf32>
    %164 = arith.addf %156, %163 : vector<256x128xf32>
    %c8_99 = arith.constant 8 : index
    %c0_100 = arith.constant 0 : index
    %165 = vector.load %arg18[%c8_99, %c0_100] : memref<304x128xf32, #tpu.memory_space<vmem>>, vector<256x128xf32>
    %166 = arith.truncf %165 : vector<256x128xf32> to vector<256x128xbf16>
    %c1_101 = arith.constant 1 : index
    %c0_102 = arith.constant 0 : index
    %c0_103 = arith.constant 0 : index
    %167 = vector.load %arg12[%c1_101, %c0_102, %c0_103] : memref<9x128x128xbf16, #tpu.memory_space<vmem>>, vector<1x128x128xbf16>
    %168 = vector.shape_cast %167 : vector<1x128x128xbf16> to vector<128x128xbf16>
    %cst_104 = arith.constant dense<0.000000e+00> : vector<256x128xf32>
    %169 = tpu.matmul %166, %168, %cst_104 {dimension_numbers = #tpu.dot_dimension_numbers<[1], [0], [0], [1], [0, 0, 1, 1], [], []>} : vector<256x128xbf16>, vector<128x128xbf16>, vector<256x128xf32> -> vector<256x128xf32>
    %170 = arith.addf %164, %169 : vector<256x128xf32>
    %c9_105 = arith.constant 9 : index
    %c0_106 = arith.constant 0 : index
    %171 = vector.load %arg18[%c9_105, %c0_106] : memref<304x128xf32, #tpu.memory_space<vmem>>, vector<256x128xf32>
    %cst_107 = arith.constant 0.000000e+00 : f32
    %172 = vector.broadcast %cst_107 : f32 to vector<256x128xf32>
    %173 = arith.select %46, %171, %172 : vector<256x128xi1>, vector<256x128xf32>
    %174 = arith.truncf %173 : vector<256x128xf32> to vector<256x128xbf16>
    %c2_108 = arith.constant 2 : index
    %c0_109 = arith.constant 0 : index
    %c0_110 = arith.constant 0 : index
    %175 = vector.load %arg12[%c2_108, %c0_109, %c0_110] : memref<9x128x128xbf16, #tpu.memory_space<vmem>>, vector<1x128x128xbf16>
    %176 = vector.shape_cast %175 : vector<1x128x128xbf16> to vector<128x128xbf16>
    %cst_111 = arith.constant dense<0.000000e+00> : vector<256x128xf32>
    %177 = tpu.matmul %174, %176, %cst_111 {dimension_numbers = #tpu.dot_dimension_numbers<[1], [0], [0], [1], [0, 0, 1, 1], [], []>} : vector<256x128xbf16>, vector<128x128xbf16>, vector<256x128xf32> -> vector<256x128xf32>
    %178 = arith.addf %170, %177 : vector<256x128xf32>
    %c23_112 = arith.constant 23 : index
    %c0_113 = arith.constant 0 : index
    %179 = vector.load %arg18[%c23_112, %c0_113] : memref<304x128xf32, #tpu.memory_space<vmem>>, vector<256x128xf32>
    %cst_114 = arith.constant 0.000000e+00 : f32
    %180 = vector.broadcast %cst_114 : f32 to vector<256x128xf32>
    %181 = arith.select %44, %179, %180 : vector<256x128xi1>, vector<256x128xf32>
    %182 = arith.truncf %181 : vector<256x128xf32> to vector<256x128xbf16>
    %c3_115 = arith.constant 3 : index
    %c0_116 = arith.constant 0 : index
    %c0_117 = arith.constant 0 : index
    %183 = vector.load %arg12[%c3_115, %c0_116, %c0_117] : memref<9x128x128xbf16, #tpu.memory_space<vmem>>, vector<1x128x128xbf16>
    %184 = vector.shape_cast %183 : vector<1x128x128xbf16> to vector<128x128xbf16>
    %cst_118 = arith.constant dense<0.000000e+00> : vector<256x128xf32>
    %185 = tpu.matmul %182, %184, %cst_118 {dimension_numbers = #tpu.dot_dimension_numbers<[1], [0], [0], [1], [0, 0, 1, 1], [], []>} : vector<256x128xbf16>, vector<128x128xbf16>, vector<256x128xf32> -> vector<256x128xf32>
    %186 = arith.addf %178, %185 : vector<256x128xf32>
    %c24_119 = arith.constant 24 : index
    %c0_120 = arith.constant 0 : index
    %187 = vector.load %arg18[%c24_119, %c0_120] : memref<304x128xf32, #tpu.memory_space<vmem>>, vector<256x128xf32>
    %188 = arith.truncf %187 : vector<256x128xf32> to vector<256x128xbf16>
    %c4_121 = arith.constant 4 : index
    %c0_122 = arith.constant 0 : index
    %c0_123 = arith.constant 0 : index
    %189 = vector.load %arg12[%c4_121, %c0_122, %c0_123] : memref<9x128x128xbf16, #tpu.memory_space<vmem>>, vector<1x128x128xbf16>
    %190 = vector.shape_cast %189 : vector<1x128x128xbf16> to vector<128x128xbf16>
    %cst_124 = arith.constant dense<0.000000e+00> : vector<256x128xf32>
    %191 = tpu.matmul %188, %190, %cst_124 {dimension_numbers = #tpu.dot_dimension_numbers<[1], [0], [0], [1], [0, 0, 1, 1], [], []>} : vector<256x128xbf16>, vector<128x128xbf16>, vector<256x128xf32> -> vector<256x128xf32>
    %192 = arith.addf %186, %191 : vector<256x128xf32>
    %c25_125 = arith.constant 25 : index
    %c0_126 = arith.constant 0 : index
    %193 = vector.load %arg18[%c25_125, %c0_126] : memref<304x128xf32, #tpu.memory_space<vmem>>, vector<256x128xf32>
    %cst_127 = arith.constant 0.000000e+00 : f32
    %194 = vector.broadcast %cst_127 : f32 to vector<256x128xf32>
    %195 = arith.select %46, %193, %194 : vector<256x128xi1>, vector<256x128xf32>
    %196 = arith.truncf %195 : vector<256x128xf32> to vector<256x128xbf16>
    %c5_128 = arith.constant 5 : index
    %c0_129 = arith.constant 0 : index
    %c0_130 = arith.constant 0 : index
    %197 = vector.load %arg12[%c5_128, %c0_129, %c0_130] : memref<9x128x128xbf16, #tpu.memory_space<vmem>>, vector<1x128x128xbf16>
    %198 = vector.shape_cast %197 : vector<1x128x128xbf16> to vector<128x128xbf16>
    %cst_131 = arith.constant dense<0.000000e+00> : vector<256x128xf32>
    %199 = tpu.matmul %196, %198, %cst_131 {dimension_numbers = #tpu.dot_dimension_numbers<[1], [0], [0], [1], [0, 0, 1, 1], [], []>} : vector<256x128xbf16>, vector<128x128xbf16>, vector<256x128xf32> -> vector<256x128xf32>
    %200 = arith.addf %192, %199 : vector<256x128xf32>
    %c39_132 = arith.constant 39 : index
    %c0_133 = arith.constant 0 : index
    %201 = vector.load %arg18[%c39_132, %c0_133] : memref<304x128xf32, #tpu.memory_space<vmem>>, vector<256x128xf32>
    %cst_134 = arith.constant 0.000000e+00 : f32
    %202 = vector.broadcast %cst_134 : f32 to vector<256x128xf32>
    %203 = arith.select %44, %201, %202 : vector<256x128xi1>, vector<256x128xf32>
    %204 = arith.truncf %203 : vector<256x128xf32> to vector<256x128xbf16>
    %c6_135 = arith.constant 6 : index
    %c0_136 = arith.constant 0 : index
    %c0_137 = arith.constant 0 : index
    %205 = vector.load %arg12[%c6_135, %c0_136, %c0_137] : memref<9x128x128xbf16, #tpu.memory_space<vmem>>, vector<1x128x128xbf16>
    %206 = vector.shape_cast %205 : vector<1x128x128xbf16> to vector<128x128xbf16>
    %cst_138 = arith.constant dense<0.000000e+00> : vector<256x128xf32>
    %207 = tpu.matmul %204, %206, %cst_138 {dimension_numbers = #tpu.dot_dimension_numbers<[1], [0], [0], [1], [0, 0, 1, 1], [], []>} : vector<256x128xbf16>, vector<128x128xbf16>, vector<256x128xf32> -> vector<256x128xf32>
    %208 = arith.addf %200, %207 : vector<256x128xf32>
    %c40_139 = arith.constant 40 : index
    %c0_140 = arith.constant 0 : index
    %209 = vector.load %arg18[%c40_139, %c0_140] : memref<304x128xf32, #tpu.memory_space<vmem>>, vector<256x128xf32>
    %210 = arith.truncf %209 : vector<256x128xf32> to vector<256x128xbf16>
    %c7_141 = arith.constant 7 : index
    %c0_142 = arith.constant 0 : index
    %c0_143 = arith.constant 0 : index
    %211 = vector.load %arg12[%c7_141, %c0_142, %c0_143] : memref<9x128x128xbf16, #tpu.memory_space<vmem>>, vector<1x128x128xbf16>
    %212 = vector.shape_cast %211 : vector<1x128x128xbf16> to vector<128x128xbf16>
    %cst_144 = arith.constant dense<0.000000e+00> : vector<256x128xf32>
    %213 = tpu.matmul %210, %212, %cst_144 {dimension_numbers = #tpu.dot_dimension_numbers<[1], [0], [0], [1], [0, 0, 1, 1], [], []>} : vector<256x128xbf16>, vector<128x128xbf16>, vector<256x128xf32> -> vector<256x128xf32>
    %214 = arith.addf %208, %213 : vector<256x128xf32>
    %c41_145 = arith.constant 41 : index
    %c0_146 = arith.constant 0 : index
    %215 = vector.load %arg18[%c41_145, %c0_146] : memref<304x128xf32, #tpu.memory_space<vmem>>, vector<256x128xf32>
    %cst_147 = arith.constant 0.000000e+00 : f32
    %216 = vector.broadcast %cst_147 : f32 to vector<256x128xf32>
    %217 = arith.select %46, %215, %216 : vector<256x128xi1>, vector<256x128xf32>
    %218 = arith.truncf %217 : vector<256x128xf32> to vector<256x128xbf16>
    %c8_148 = arith.constant 8 : index
    %c0_149 = arith.constant 0 : index
    %c0_150 = arith.constant 0 : index
    %219 = vector.load %arg12[%c8_148, %c0_149, %c0_150] : memref<9x128x128xbf16, #tpu.memory_space<vmem>>, vector<1x128x128xbf16>
    %220 = vector.shape_cast %219 : vector<1x128x128xbf16> to vector<128x128xbf16>
    %cst_151 = arith.constant dense<0.000000e+00> : vector<256x128xf32>
    %221 = tpu.matmul %218, %220, %cst_151 {dimension_numbers = #tpu.dot_dimension_numbers<[1], [0], [0], [1], [0, 0, 1, 1], [], []>} : vector<256x128xbf16>, vector<128x128xbf16>, vector<256x128xf32> -> vector<256x128xf32>
    %222 = arith.addf %214, %221 : vector<256x128xf32>
    %c0_152 = arith.constant 0 : index
    %c0_153 = arith.constant 0 : index
    %223 = vector.load %arg13[%c0_152, %c0_153] : memref<1x128xf32, #tpu.memory_space<vmem>>, vector<1x128xf32>
    %224 = vector.broadcast %223 : vector<1x128xf32> to vector<256x128xf32>
    %225 = arith.addf %222, %224 : vector<256x128xf32>
    %cst_154 = arith.constant 0.000000e+00 : f32
    %226 = vector.broadcast %cst_154 : f32 to vector<256x128xf32>
    %227 = arith.subf %226, %225 : vector<256x128xf32>
    %228 = math.exp %227 : vector<256x128xf32>
    %cst_155 = arith.constant 1.000000e+00 : f32
    %229 = vector.broadcast %cst_155 : f32 to vector<256x128xf32>
    %230 = arith.addf %229, %228 : vector<256x128xf32>
    %231 = tpu.reciprocal %230 {approx = true} : vector<256x128xf32> -> vector<256x128xf32>
    %232 = arith.mulf %225, %231 : vector<256x128xf32>
    %233 = arith.addf %141, %232 : vector<256x128xf32>
    %234 = arith.truncf %233 : vector<256x128xf32> to vector<256x128xbf16>
    %c0_156 = arith.constant 0 : index
    %c0_157 = arith.constant 0 : index
    %235 = vector.load %arg14[%c0_156, %c0_157] : memref<128x128xbf16, #tpu.memory_space<vmem>>, vector<128x128xbf16>
    %cst_158 = arith.constant dense<0.000000e+00> : vector<256x128xf32>
    %236 = tpu.matmul %234, %235, %cst_158 {dimension_numbers = #tpu.dot_dimension_numbers<[1], [0], [0], [1], [0, 0, 1, 1], [], []>} : vector<256x128xbf16>, vector<128x128xbf16>, vector<256x128xf32> -> vector<256x128xf32>
    %237 = arith.truncf %25 : vector<256x128xf32> to vector<256x128xbf16>
    %c0_159 = arith.constant 0 : index
    %c0_160 = arith.constant 0 : index
    %238 = vector.load %arg15[%c0_159, %c0_160] : memref<128x128xbf16, #tpu.memory_space<vmem>>, vector<128x128xbf16>
    %cst_161 = arith.constant dense<0.000000e+00> : vector<256x128xf32>
    %239 = tpu.matmul %237, %238, %cst_161 {dimension_numbers = #tpu.dot_dimension_numbers<[1], [0], [0], [1], [0, 0, 1, 1], [], []>} : vector<256x128xbf16>, vector<128x128xbf16>, vector<256x128xf32> -> vector<256x128xf32>
    %240 = arith.addf %236, %239 : vector<256x128xf32>
    %c0_162 = arith.constant 0 : index
    %c0_163 = arith.constant 0 : index
    %241 = vector.load %arg16[%c0_162, %c0_163] : memref<1x128xf32, #tpu.memory_space<vmem>>, vector<1x128xf32>
    %242 = vector.broadcast %241 : vector<1x128xf32> to vector<256x128xf32>
    %243 = arith.addf %240, %242 : vector<256x128xf32>
    %cst_164 = arith.constant 0.000000e+00 : f32
    %244 = vector.broadcast %cst_164 : f32 to vector<256x128xf32>
    %245 = arith.subf %244, %243 : vector<256x128xf32>
    %246 = math.exp %245 : vector<256x128xf32>
    %cst_165 = arith.constant 1.000000e+00 : f32
    %247 = vector.broadcast %cst_165 : f32 to vector<256x128xf32>
    %248 = arith.addf %247, %246 : vector<256x128xf32>
    %249 = tpu.reciprocal %248 {approx = true} : vector<256x128xf32> -> vector<256x128xf32>
    %250 = arith.mulf %243, %249 : vector<256x128xf32>
    %c0_166 = arith.constant 0 : index
    %c0_167 = arith.constant 0 : index
    %c0_168 = arith.constant 0 : index
    %251 = vector.load %arg17[%c0_166, %c0_167, %c0_168] : memref<1x256x128xf32, #tpu.memory_space<vmem>>, vector<1x256x128xf32>
    %252 = vector.shape_cast %251 : vector<1x256x128xf32> to vector<256x128xf32>
    %253 = vector.shape_cast %250 : vector<256x128xf32> to vector<1x256x128xf32>
    tpu.vector_store %arg17[%c0_166, %c0_167, %c0_168], %253 {strides = array<i32>} : memref<1x256x128xf32, #tpu.memory_space<vmem>>, vector<1x256x128xf32>,
    return
  }
  func.func @transform_0(%arg0: i32) -> (i32, i32, i32) {
    %c0_i32 = arith.constant 0 : i32
    %c0_i32_0 = arith.constant 0 : i32
    %c0_i32_1 = arith.constant 0 : i32
    return %arg0, %c0_i32, %c0_i32_0 : i32, i32, i32
  }
  func.func @transform_1(%arg0: i32) -> (i32, i32) {
    %c0_i32 = arith.constant 0 : i32
    %c0_i32_0 = arith.constant 0 : i32
    %c0_i32_1 = arith.constant 0 : i32
    return %c0_i32, %c0_i32_0 : i32, i32
  }
  func.func @transform_2(%arg0: i32) -> (i32, i32) {
    %c0_i32 = arith.constant 0 : i32
    %c0_i32_0 = arith.constant 0 : i32
    %c0_i32_1 = arith.constant 0 : i32
    return %c0_i32, %c0_i32_0 : i32, i32
  }
  func.func @transform_3(%arg0: i32) -> (i32, i32) {
    %c0_i32 = arith.constant 0 : i32
    %c0_i32_0 = arith.constant 0 : i32
    %c0_i32_1 = arith.constant 0 : i32
    return %c0_i32, %c0_i32_0 : i32, i32
  }
  func.func @transform_4(%arg0: i32) -> (i32, i32) {
    %c0_i32 = arith.constant 0 : i32
    %c0_i32_0 = arith.constant 0 : i32
    %c0_i32_1 = arith.constant 0 : i32
    return %c0_i32, %c0_i32_0 : i32, i32
  }
  func.func @transform_5(%arg0: i32) -> (i32, i32) {
    %c0_i32 = arith.constant 0 : i32
    %c0_i32_0 = arith.constant 0 : i32
    %c0_i32_1 = arith.constant 0 : i32
    return %c0_i32, %c0_i32_0 : i32, i32
  }
  func.func @transform_6(%arg0: i32) -> (i32, i32) {
    %c0_i32 = arith.constant 0 : i32
    %c0_i32_0 = arith.constant 0 : i32
    %c0_i32_1 = arith.constant 0 : i32
    return %c0_i32, %c0_i32_0 : i32, i32
  }
  func.func @transform_7(%arg0: i32) -> (i32, i32, i32) {
    %c0_i32 = arith.constant 0 : i32
    %c0_i32_0 = arith.constant 0 : i32
    %c0_i32_1 = arith.constant 0 : i32
    %c0_i32_2 = arith.constant 0 : i32
    return %c0_i32, %c0_i32_0, %c0_i32_1 : i32, i32, i32
  }
  func.func @transform_8(%arg0: i32) -> (i32, i32) {
    %c0_i32 = arith.constant 0 : i32
    %c0_i32_0 = arith.constant 0 : i32
    %c0_i32_1 = arith.constant 0 : i32
    return %c0_i32, %c0_i32_0 : i32, i32
  }
  func.func @transform_9(%arg0: i32) -> (i32, i32) {
    %c0_i32 = arith.constant 0 : i32
    %c0_i32_0 = arith.constant 0 : i32
    %c0_i32_1 = arith.constant 0 : i32
    return %c0_i32, %c0_i32_0 : i32, i32
  }
  func.func @transform_10(%arg0: i32) -> (i32, i32) {
    %c0_i32 = arith.constant 0 : i32
    %c0_i32_0 = arith.constant 0 : i32
    %c0_i32_1 = arith.constant 0 : i32
    return %c0_i32, %c0_i32_0 : i32, i32
  }
  func.func @transform_11(%arg0: i32) -> (i32, i32, i32) {
    %c0_i32 = arith.constant 0 : i32
    %c0_i32_0 = arith.constant 0 : i32
    %c0_i32_1 = arith.constant 0 : i32
    %c0_i32_2 = arith.constant 0 : i32
    return %c0_i32, %c0_i32_0, %c0_i32_1 : i32, i32, i32
  }
  func.func @transform_12(%arg0: i32) -> (i32, i32) {
    %c0_i32 = arith.constant 0 : i32
    %c0_i32_0 = arith.constant 0 : i32
    %c0_i32_1 = arith.constant 0 : i32
    return %c0_i32, %c0_i32_0 : i32, i32
  }
  func.func @transform_13(%arg0: i32) -> (i32, i32) {
    %c0_i32 = arith.constant 0 : i32
    %c0_i32_0 = arith.constant 0 : i32
    %c0_i32_1 = arith.constant 0 : i32
    return %c0_i32, %c0_i32_0 : i32, i32
  }
  func.func @transform_14(%arg0: i32) -> (i32, i32) {
    %c0_i32 = arith.constant 0 : i32
    %c0_i32_0 = arith.constant 0 : i32
    %c0_i32_1 = arith.constant 0 : i32
    return %c0_i32, %c0_i32_0 : i32, i32
  }
  func.func @transform_15(%arg0: i32) -> (i32, i32) {
    %c0_i32 = arith.constant 0 : i32
    %c0_i32_0 = arith.constant 0 : i32
    %c0_i32_1 = arith.constant 0 : i32
    return %c0_i32, %c0_i32_0 : i32, i32
  }
  func.func @transform_16(%arg0: i32) -> (i32, i32, i32) {
    %c0_i32 = arith.constant 0 : i32
    %c0_i32_0 = arith.constant 0 : i32
    %c0_i32_1 = arith.constant 0 : i32
    return %arg0, %c0_i32, %c0_i32_0 : i32, i32, i32
  }
}

</mosaic_0001>

<bundles_post_ra>
// kernel: c3_forward.1
= control target key start
LH: loop header
LB: loop body
LE: loop exit
PB: predicated region body
PF: predicated region fallthrough
CT: control target
= control target key end

     0   :  { %s14564_s21 = smov 0   ;;  %s18096_s0 = inlined_call_operand.vmem [shape: bf16[2,256,128], index: 0, kind: input, shape index: {}]   ;;  %s18097_s1 = inlined_call_operand.vmem [shape: bf16[128,128], index: 1, kind: input, shape index: {}]   ;;  %s18098_s2 = inlined_call_operand.vmem [shape: f32[1,128], index: 2, kind: input, shape index: {}]   ;;  %s18099_s3 = inlined_call_operand.vmem [shape: bf16[128,128], index: 3, kind: input, shape index: {}]   ;;  %s18100_s4 = inlined_call_operand.vmem [shape: f32[1,128], index: 4, kind: input, shape index: {}]   ;;  %s18101_s5 = inlined_call_operand.vmem [shape: bf16[128,128], index: 5, kind: input, shape index: {}]   ;;  %s18102_s6 = inlined_call_operand.vmem [shape: f32[1,128], index: 6, kind: input, shape index: {}]   ;;  %s18103_s7 = inlined_call_operand.vmem [shape: bf16[9,128,128], index: 7, kind: input, shape index: {}]   ;;  %s18104_s8 = inlined_call_operand.vmem [shape: f32[1,128], index: 8, kind: input, shape index: {}]   ;;  %s18105_s9 = inlined_call_operand.vmem [shape: bf16[128,128], index: 9, kind: input, shape index: {}]   ;;  %s18106_s10 = inlined_call_operand.vmem [shape: f32[1,128], index: 10, kind: input, shape index: {}]   ;;  %s18107_s11 = inlined_call_operand.vmem [shape: bf16[9,128,128], index: 11, kind: input, shape index: {}]   ;;  %s18108_s12 = inlined_call_operand.vmem [shape: f32[1,128], index: 12, kind: input, shape index: {}]   ;;  %s18109_s13 = inlined_call_operand.vmem [shape: bf16[128,128], index: 13, kind: input, shape index: {}]   ;;  %s18110_s14 = inlined_call_operand.vmem [shape: bf16[128,128], index: 14, kind: input, shape index: {}]   ;;  %s18111_s15 = inlined_call_operand.vmem [shape: f32[1,128], index: 15, kind: input, shape index: {}]   ;;  %s18112_s16 = inlined_call_operand.vmem [shape: f32[2,256,128], index: 16, kind: output, shape index: {}]  }
   0x1   :  { %18374 = sst [smem:[#allocation99_spill]] %s18096_s0 }
   0x2 LB: > { %s10018_s22 = sadd.s32 4294967295, %s14474_s21   ;;  %p10022_p0 = scmp.ge.s32.totalorder %s14474_s21, 1  ;;  %s14474_s21 = sphi %s14564_s21, %s26_s21  }
   0x3   : > { %p462_p1 = scmp.lt.s32.totalorder %s14474_s21, 3 }
   0x5   : > { %p463_p2 = pnand %p10022_p0, %p462_p1 }
   0x7   : > { %466 = sbr.rel (%p463_p2) target bundleno = 2661 (0xa65), region = 84 }
   0xe   : > { %v13360_v0 = vld [vmem:[%s18097_s1] sm:$0xff]   ;;  %p512_p3 = scmp.lt.s32.totalorder %s10018_s22, 1  ;;  %v13361_v1 = vld [vmem:[%s18097_s1 + $0x8] sm:$0xff]   ;;  %v13362_v2 = vld [vmem:[%s18097_s1 + $0x10] sm:$0xff]   ;;  %s18375_s17 = sld [smem:[#allocation99_spill]]  ;;  %vm18153_vm1 = vmmov 1  }
   0xf   : > { %11654 = vmatprep.subr.bf16.mxu0 %v13360_v0  ;;  %v13363_v3 = vld [vmem:[%s18097_s1 + $0x18] sm:$0xff]   ;;  %v13364_v5 = vld [vmem:[%s18097_s1 + $0x20] sm:$0xff]   ;;  %v13365_v6 = vld [vmem:[%s18097_s1 + $0x28] sm:$0xff]  }
  0x10   : > { %s18912_s22 = smov (!%p512_p3, %s10018_s22), 1  ;;  %11655 = vmatpush3.bf16.msra.mxu0 %v13360_v0  ;;  %v13366_v7 = vld [vmem:[%s18097_s1 + $0x30] sm:$0xff]   ;;  %v13367_v8 = vld [vmem:[%s18097_s1 + $0x38] sm:$0xff]   ;;  %v13384_v9 = vld [vmem:[%s18101_s5] sm:$0xff]  }
  0x11   : > { %11656 = vmatprep.subr.bf16.mxu0 %v13361_v1  ;;  %s11076_s29 = sshll.u32 %s18912_s22, 7  ;;  %v13385_v12 = vld [vmem:[%s18101_s5 + $0x8] sm:$0xff]   ;;  %v13386_v13 = vld [vmem:[%s18101_s5 + $0x10] sm:$0xff]   ;;  %v13387_v16 = vld [vmem:[%s18101_s5 + $0x18] sm:$0xff]   ;;  %s11077_s26 = sshll.u32 %s18912_s22, 8 }
  0x12   : > { %v13388_v28 = vld [vmem:[%s18101_s5 + $0x20] sm:$0xff]   ;;  %v13389_v29 = vld [vmem:[%s18101_s5 + $0x28] sm:$0xff]   ;;  %v13390_v30 = vld [vmem:[%s18101_s5 + $0x30] sm:$0xff]   ;;  %s17961_s28 = scalar_lea.vmem %s18112_s16, %s11077_s26 }
  0x13   : > { %v13391_v31 = vld [vmem:[%s18101_s5 + $0x38] sm:$0xff]   ;;  %v13392_v32 = vld [vmem:[%s18099_s3] sm:$0xff]   ;;  %v13393_v33 = vld [vmem:[%s18099_s3 + $0x8] sm:$0xff]  }
  0x14   : > { %s14587_s18 = scalar_lea.vmem %s18375_s17, %s11076_s29  ;;  %11657 = vmatpush3.bf16.msra.mxu0 %v13361_v1  ;;  %11702 = vmatprep.subr.bf16.mxu1 %v13392_v32  ;;  %v13394_v34 = vld [vmem:[%s18099_s3 + $0x10] sm:$0xff]   ;;  %v13395_v35 = vld [vmem:[%s18099_s3 + $0x18] sm:$0xff]   ;;  %v13396_v36 = vld [vmem:[%s18099_s3 + $0x20] sm:$0xff]  }
  0x15   : > { %11658 = vmatprep.subr.bf16.mxu0 %v13362_v2  ;;  %v13368_v4 = vld [vmem:[%s14587_s18] sm:$0xff]   ;;  %v14609_v10 = vld [vmem:[%s14587_s18 + $0x8] sm:$0xff]   ;;  %v14612_v11 = vld [vmem:[%s14587_s18 + $0x10] sm:$0xff]   ;;  %11703 = vmatpush3.bf16.msra.mxu1 %v13392_v32 }
  0x16   : > { %11670 = vmatprep.mubr.bf16.mxu0 %v13368_v4  ;;  %11718 = vmatprep.mubr.bf16.mxu1 %v13368_v4  ;;  %v14623_v14 = vld [vmem:[%s14587_s18 + $0x18] sm:$0xff]   ;;  %v14626_v15 = vld [vmem:[%s14587_s18 + $0x20] sm:$0xff]   ;;  %v14634_v17 = vld [vmem:[%s14587_s18 + $0x28] sm:$0xff]  }
  0x17   : > { %v14637_v18 = vld [vmem:[%s14587_s18 + $0x30] sm:$0xff]   ;;  %v14642_v19 = vld [vmem:[%s14587_s18 + $0x38] sm:$0xff]   ;;  %v14645_v20 = vld [vmem:[%s14587_s18 + $0x40] sm:$0xff]   ;;  %11704 = vmatprep.subr.bf16.mxu1 %v13393_v33 }
  0x18   : > { %11659 = vmatpush3.bf16.msra.mxu0 %v13362_v2  ;;  %v14650_v21 = vld [vmem:[%s14587_s18 + $0x48] sm:$0xff]   ;;  %v14653_v22 = vld [vmem:[%s14587_s18 + $0x50] sm:$0xff]   ;;  %v14658_v23 = vld [vmem:[%s14587_s18 + $0x58] sm:$0xff]  }
  0x19   : > { %11660 = vmatprep.subr.bf16.mxu0 %v13363_v3  ;;  %v14661_v24 = vld [vmem:[%s14587_s18 + $0x60] sm:$0xff]   ;;  %v14666_v25 = vld [vmem:[%s14587_s18 + $0x68] sm:$0xff]   ;;  %v14669_v26 = vld [vmem:[%s14587_s18 + $0x70] sm:$0xff]   ;;  %11705 = vmatpush3.bf16.msra.mxu1 %v13393_v33 }
  0x1a   : > { %v14674_v27 = vld [vmem:[%s14587_s18 + $0x78] sm:$0xff]   ;;  %11706 = vmatprep.subr.bf16.mxu1 %v13394_v34  ;;  %v13397_v37 = vld [vmem:[%s18099_s3 + $0x28] sm:$0xff]   ;;  %v13398_v38 = vld [vmem:[%s18099_s3 + $0x30] sm:$0xff]  }
  0x1b   : > { %v13399_v39 = vld [vmem:[%s18099_s3 + $0x38] sm:$0xff]   ;;  %v14716_v40 = vld [vmem:[%s18098_s2] ss:$0 sm:$0xff]  ;;  %v13401_v47 = vld [vmem:[%s18103_s7 + $0x48] sm:$0xff]  }
  0x1c   : > { %11661 = vmatpush3.bf16.msra.mxu0 %v13363_v3  ;;  %v13400_v41 = vld [vmem:[%s18103_s7 + $0x40] sm:$0xff]   ;;  %v13402_v57 = vld [vmem:[%s18103_s7 + $0x50] sm:$0xff]  }
  0x1d   : > { %11662 = vmatprep.subr.bf16.mxu0 %v13364_v5  ;;  %11707 = vmatpush3.bf16.msra.mxu1 %v13394_v34 }
  0x1e   : > { %11708 = vmatprep.subr.bf16.mxu1 %v13395_v35 }
  0x20   : > { %11663 = vmatpush3.bf16.msra.mxu0 %v13364_v5 }
  0x21   : > { %11664 = vmatprep.subr.bf16.mxu0 %v13365_v6  ;;  %11709 = vmatpush3.bf16.msra.mxu1 %v13395_v35 }
  0x22   : > { %11710 = vmatprep.subr.bf16.mxu1 %v13396_v36 }
  0x24   : > { %11665 = vmatpush3.bf16.msra.mxu0 %v13365_v6 }
  0x25   : > { %11666 = vmatprep.subr.bf16.mxu0 %v13366_v7  ;;  %11711 = vmatpush3.bf16.msra.mxu1 %v13396_v36 }
  0x26   : > { %11712 = vmatprep.subr.bf16.mxu1 %v13397_v37 }
  0x28   : > { %11667 = vmatpush3.bf16.msra.mxu0 %v13366_v7 }
  0x29   : > { %11668 = vmatprep.subr.bf16.mxu0 %v13367_v8  ;;  %11713 = vmatpush3.bf16.msra.mxu1 %v13397_v37 }
  0x2a   : > { %11714 = vmatprep.subr.bf16.mxu1 %v13398_v38 }
  0x2c   : > { %11669 = vmatpush3.bf16.msra.mxu0 %v13367_v8 }
  0x2d   : > { %11750 = vmatprep.subr.bf16.mxu0 %v13384_v9  ;;  %11715 = vmatpush3.bf16.msra.mxu1 %v13398_v38 }
  0x2e   : > { %11716 = vmatprep.subr.bf16.mxu1 %v13399_v39 }
  0x2f   : > { %11671 = vmatmul.mubr.bf16.vlgmr.msra.gmra.mrb[0].mxu0 %v14609_v10 }
  0x30   : > { %11674 = vmatprep.mubr.bf16.mxu0 %v14612_v11  ;;  %11751 = vmatpush3.bf16.msra.mxu0 %v13384_v9 }
  0x31   : > { %11752 = vmatprep.subr.bf16.mxu0 %v13385_v12  ;;  %11717 = vmatpush3.bf16.msra.mxu1 %v13399_v39 }
  0x32   : > { %11798 = vmatprep.subr.bf16.mxu1 %v13400_v41 }
  0x34   : > { %11753 = vmatpush3.bf16.msra.mxu0 %v13385_v12  ;;  %11719 = vmatmul.mubr.bf16.vlgmr.msra.gmra.mrb[0].mxu1 %v14609_v10 }
  0x35   : > { %11754 = vmatprep.subr.bf16.mxu0 %v13386_v13  ;;  %11722 = vmatprep.mubr.bf16.mxu1 %v14612_v11 }
  0x36   : > { %11799 = vmatpush3.bf16.msra.mxu1 %v13400_v41 }
  0x37   : > { %11675 = vmatmul.mubr.bf16.gmra.mrb[4].mxu0 %v14623_v14  ;;  %11800 = vmatprep.subr.bf16.mxu1 %v13401_v47 }
  0x38   : > { %11678 = vmatprep.mubr.bf16.mxu0 %v14626_v15  ;;  %11755 = vmatpush3.bf16.msra.mxu0 %v13386_v13 }
  0x39   : > { %11756 = vmatprep.subr.bf16.mxu0 %v13387_v16 }
  0x3a   : > { %11801 = vmatpush3.bf16.msra.mxu1 %v13401_v47 }
  0x3b   : > { %11802 = vmatprep.subr.bf16.mxu1 %v13402_v57 }
  0x3c   : > { %11757 = vmatpush3.bf16.msra.mxu0 %v13387_v16  ;;  %11723 = vmatmul.mubr.bf16.gmra.mrb[4].mxu1 %v14623_v14 }
  0x3d   : > { %11758 = vmatprep.subr.bf16.mxu0 %v13388_v28  ;;  %11726 = vmatprep.mubr.bf16.mxu1 %v14626_v15 }
  0x3e   : > { %11803 = vmatpush3.bf16.msra.mxu1 %v13402_v57 }
  0x3f   : > { %11679 = vmatmul.mubr.bf16.gmra.mrb[8].mxu0 %v14634_v17 }
  0x40   : > { %11682 = vmatprep.mubr.bf16.mxu0 %v14637_v18  ;;  %11759 = vmatpush3.bf16.msra.mxu0 %v13388_v28 }
  0x41   : > { %11760 = vmatprep.subr.bf16.mxu0 %v13389_v29 }
  0x44   : > { %11761 = vmatpush3.bf16.msra.mxu0 %v13389_v29  ;;  %11727 = vmatmul.mubr.bf16.gmra.mrb[8].mxu1 %v14634_v17 }
  0x45   : > { %11762 = vmatprep.subr.bf16.mxu0 %v13390_v30  ;;  %11730 = vmatprep.mubr.bf16.mxu1 %v14637_v18 }
  0x47   : > { %11683 = vmatmul.mubr.bf16.gmra.mrb[12].mxu0 %v14642_v19 }
  0x48   : > { %11686 = vmatprep.mubr.bf16.mxu0 %v14645_v20  ;;  %11763 = vmatpush3.bf16.msra.mxu0 %v13390_v30 }
  0x49   : > { %11764 = vmatprep.subr.bf16.mxu0 %v13391_v31 }
  0x4c   : > { %11765 = vmatpush3.bf16.msra.mxu0 %v13391_v31  ;;  %11731 = vmatmul.mubr.bf16.gmra.mrb[12].mxu1 %v14642_v19 }
  0x4d   : > { %11734 = vmatprep.mubr.bf16.mxu1 %v14645_v20 }
  0x4f   : > { %11687 = vmatmul.mubr.bf16.gmra.mrb[16].mxu0 %v14650_v21 }
  0x50   : > { %11690 = vmatprep.mubr.bf16.mxu0 %v14653_v22 }
  0x54   : > { %11735 = vmatmul.mubr.bf16.gmra.mrb[16].mxu1 %v14650_v21 }
  0x55   : > { %11738 = vmatprep.mubr.bf16.mxu1 %v14653_v22 }
  0x57   : > { %11691 = vmatmul.mubr.bf16.gmra.mrb[20].mxu0 %v14658_v23 }
  0x58   : > { %11694 = vmatprep.mubr.bf16.mxu0 %v14661_v24 }
  0x5c   : > { %11739 = vmatmul.mubr.bf16.gmra.mrb[20].mxu1 %v14658_v23 }
  0x5d   : > { %11742 = vmatprep.mubr.bf16.mxu1 %v14661_v24 }
  0x5f   : > { %11695 = vmatmul.mubr.bf16.gmra.mrb[24].mxu0 %v14666_v25 }
  0x60   : > { %11698 = vmatprep.mubr.bf16.mxu0 %v14669_v26 }
  0x64   : > { %11743 = vmatmul.mubr.bf16.gmra.mrb[24].mxu1 %v14666_v25 }
  0x65   : > { %11746 = vmatprep.mubr.bf16.mxu1 %v14669_v26 }
  0x67   : > { %11699 = vmatmul.mubr.bf16.gmra.mrb[28].mxu0 %v14674_v27 }
  0x6c   : > { %11747 = vmatmul.mubr.bf16.gmra.mrb[28].mxu1 %v14674_v27 }
 0x102   : > { %v11672_v42 = vpop.f32.mrb[0].mxu0 }
 0x103   : > { %v14722_v43 = vadd.f32 %v11672_v42, %v14716_v40  ;;  %v756_v44 = vpop.f32.mrb[1].mxu0 }
 0x104   : > { %v14725_v45 = vadd.f32 %v14716_v40, %v756_v44  ;;  %v11673_v46 = vpop.f32.mrb[2].mxu0 }
 0x105   : > { %v885_v48 = vsub.f32 0.0, %v14722_v43  ;;  %v14732_v49 = vadd.f32 %v11673_v46, %v14716_v40  ;;  %v759_v50 = vpop.f32.mrb[3].mxu0 }
 0x106   : > { %v883_v51 = vsub.f32 0.0, %v14725_v45  ;;  %v14736_v52 = vadd.f32 %v14716_v40, %v759_v50 }
 0x107   : > { %v919_v53 = vmul.f32 1.442695, %v885_v48  ;;  %v886_v54 = vsub.f32 0.0, %v14732_v49 }
 0x108   : > { %v915_v55 = vmul.f32 1.442695, %v883_v51  ;;  %v884_v56 = vsub.f32 0.0, %v14736_v52 }
 0x109   : > { %13568 = vpow2.f32 %v919_v53  ;;  %v921_v58 = vmul.f32 1.442695, %v886_v54 }
 0x10a   : > { %13570 = vpow2.f32 %v915_v55  ;;  %v917_v59 = vmul.f32 1.442695, %v884_v56  ;;  %v11676_v60 = vpop.f32.mrb[4].mxu0 }
 0x10b   : > { %13572 = vpow2.f32 %v921_v58  ;;  %v14746_v61 = vadd.f32 %v11676_v60, %v14716_v40  ;;  %v772_v62 = vpop.f32.mrb[5].mxu0 }
 0x10c   : > { %13574 = vpow2.f32 %v917_v59  ;;  %v14749_v63 = vadd.f32 %v14716_v40, %v772_v62  ;;  %v11677_v0 = vpop.f32.mrb[6].mxu0 }
 0x10d   : > { %v889_v1 = vsub.f32 0.0, %v14746_v61  ;;  %v14753_v2 = vadd.f32 %v11677_v0, %v14716_v40  ;;  %v775_v3 = vpop.f32.mrb[7].mxu0 }
 0x10e   : > { %v887_v4 = vsub.f32 0.0, %v14749_v63  ;;  %v14757_v5 = vadd.f32 %v14716_v40, %v775_v3 }
 0x10f   : > { %v927_v6 = vmul.f32 1.442695, %v889_v1  ;;  %v890_v7 = vsub.f32 0.0, %v14753_v2 }
 0x110   : > { %v923_v8 = vmul.f32 1.442695, %v887_v4  ;;  %v888_v9 = vsub.f32 0.0, %v14757_v5 }
 0x111   : > { %13576 = vpow2.f32 %v927_v6  ;;  %v929_v10 = vmul.f32 1.442695, %v890_v7 }
 0x112   : > { %13578 = vpow2.f32 %v923_v8  ;;  %v925_v11 = vmul.f32 1.442695, %v888_v9  ;;  %v11680_v12 = vpop.f32.mrb[8].mxu0 }
 0x113   : > { %v13569_v13 = vpop.eup %13568  ;;  %13580 = vpow2.f32 %v929_v10  ;;  %v14764_v16 = vadd.f32 %v11680_v12, %v14716_v40  ;;  %v788_v14 = vpop.f32.mrb[9].mxu0 }
 0x114   : > { %v13571_v28 = vpop.eup %13570  ;;  %v981_v29 = vadd.f32 1.0, %v13569_v13  ;;  %13582 = vpow2.f32 %v925_v11  ;;  %v14767_v15 = vadd.f32 %v14716_v40, %v788_v14  ;;  %v11681_v30 = vpop.f32.mrb[10].mxu0 }
 0x115   : > { %v13573_v31 = vpop.eup %13572  ;;  %v979_v32 = vadd.f32 1.0, %v13571_v28  ;;  %v893_v33 = vsub.f32 0.0, %v14764_v16  ;;  %v14771_v34 = vadd.f32 %v11681_v30, %v14716_v40  ;;  %v791_v35 = vpop.f32.mrb[11].mxu0 }
 0x116   : > { %v13575_v36 = vpop.eup %13574  ;;  %13584 = vrcp.f32 %v981_v29  ;;  %v982_v37 = vadd.f32 1.0, %v13573_v31  ;;  %v891_v38 = vsub.f32 0.0, %v14767_v15  ;;  %v14775_v39 = vadd.f32 %v14716_v40, %v791_v35 }
 0x117   : > { %13586 = vrcp.f32 %v979_v32  ;;  %v980_v41 = vadd.f32 1.0, %v13575_v36  ;;  %v935_v42 = vmul.f32 1.442695, %v893_v33  ;;  %v894_v44 = vsub.f32 0.0, %v14771_v34 }
 0x118   : > { %13588 = vrcp.f32 %v982_v37  ;;  %v931_v46 = vmul.f32 1.442695, %v891_v38  ;;  %v892_v47 = vsub.f32 0.0, %v14775_v39 }
 0x119   : > { %13590 = vrcp.f32 %v980_v41  ;;  %v937_v48 = vmul.f32 1.442695, %v894_v44 }
 0x11a   : > { %13592 = vpow2.f32 %v935_v42  ;;  %v933_v50 = vmul.f32 1.442695, %v892_v47  ;;  %v11684_v51 = vpop.f32.mrb[12].mxu0 }
 0x11b   : > { %v13577_v53 = vpop.eup %13576  ;;  %13594 = vpow2.f32 %v931_v46  ;;  %v14782_v17 = vadd.f32 %v11684_v51, %v14716_v40  ;;  %v804_v54 = vpop.f32.mrb[13].mxu0 }
 0x11c   : > { %v13579_v55 = vpop.eup %13578  ;;  %v985_v56 = vadd.f32 1.0, %v13577_v53  ;;  %13596 = vpow2.f32 %v937_v48  ;;  %v14785_v18 = vadd.f32 %v14716_v40, %v804_v54  ;;  %v11685_v57 = vpop.f32.mrb[14].mxu0 }
 0x11d   : > { %v13581_v58 = vpop.eup %13580  ;;  %v983_v59 = vadd.f32 1.0, %v13579_v55  ;;  %13598 = vpow2.f32 %v933_v50  ;;  %v897_v60 = vsub.f32 0.0, %v14782_v17  ;;  %v14789_v62 = vadd.f32 %v11685_v57, %v14716_v40  ;;  %v807_v0 = vpop.f32.mrb[15].mxu0 }
 0x11e   : > { %v13583_v1 = vpop.eup %13582  ;;  %13600 = vrcp.f32 %v985_v56  ;;  %v986_v3 = vadd.f32 1.0, %v13581_v58  ;;  %v895_v4 = vsub.f32 0.0, %v14785_v18  ;;  %v14793_v6 = vadd.f32 %v14716_v40, %v807_v0 }
 0x11f   : > { %13602 = vrcp.f32 %v983_v59  ;;  %v984_v7 = vadd.f32 1.0, %v13583_v1  ;;  %v943_v8 = vmul.f32 1.442695, %v897_v60  ;;  %v898_v9 = vsub.f32 0.0, %v14789_v62 }
 0x120   : > { %v13585_v10 = vpop.eup %13584  ;;  %13604 = vrcp.f32 %v986_v3  ;;  %v939_v11 = vmul.f32 1.442695, %v895_v4  ;;  %v896_v12 = vsub.f32 0.0, %v14793_v6 }
 0x121   : > { %v13587_v13 = vpop.eup %13586  ;;  %13606 = vrcp.f32 %v984_v7  ;;  %v945_v14 = vmul.f32 1.442695, %v898_v9  ;;  %v14800_v31 = vmul.f32 %v13585_v10, %v14722_v43 }
 0x122   : > { %v13589_v28 = vpop.eup %13588  ;;  %13608 = vpow2.f32 %v943_v8  ;;  %v941_v29 = vmul.f32 1.442695, %v896_v12  ;;  %v11688_v30 = vpop.f32.mrb[16].mxu0  ;;  %v14809_v36 = vmul.f32 %v13587_v13, %v14725_v45 }
 0x123   : > { %v13591_v19 = vpop.eup %13590  ;;  %18376 = vst [vmem:[#allocation3_spill] sm:$0xff] %v14800_v31  ;;  %v14803_v32 = vmul.f32 %v13589_v28, %v14732_v49  ;;  %13610 = vpow2.f32 %v939_v11  ;;  %v14806_v20 = vadd.f32 %v11688_v30, %v14716_v40  ;;  %v820_v33 = vpop.f32.mrb[17].mxu0 }
 0x124   : > { %v13593_v35 = vpop.eup %13592  ;;  %18378 = vst [vmem:[#allocation5_spill] sm:$0xff] %v14809_v36  ;;  %v14812_v37 = vmul.f32 %v13591_v19, %v14736_v52  ;;  %13612 = vpow2.f32 %v945_v14  ;;  %v14815_v38 = vadd.f32 %v14716_v40, %v820_v33  ;;  %v11689_v43 = vpop.f32.mrb[18].mxu0 }
 0x125   : > { %18377 = vst [vmem:[#allocation4_spill] sm:$0xff] %v14803_v32  ;;  %v13595_v41 = vpop.eup %13594  ;;  %v1987_v49 = vpack.c.bf16 %v14803_v32, %v14800_v31  ;;  %v989_v42 = vadd.f32 1.0, %v13593_v35  ;;  %13614 = vpow2.f32 %v941_v29  ;;  %v901_v44 = vsub.f32 0.0, %v14806_v20  ;;  %v823_v46 = vpop.f32.mrb[19].mxu0 }
 0x126   : > { %18379 = vst [vmem:[#allocation6_spill] sm:$0xff] %v14812_v37  ;;  %v13597_v47 = vpop.eup %13596  ;;  %v987_v45 = vadd.f32 1.0, %v13595_v41  ;;  %v899_v48 = vsub.f32 0.0, %v14815_v38  ;;  %v14822_v52 = vadd.f32 %v11689_v43, %v14716_v40  ;;  %v14825_v50 = vadd.f32 %v14716_v40, %v823_v46 }
 0x127   : > { %v13599_v51 = vpop.eup %13598  ;;  %13616 = vrcp.f32 %v989_v42  ;;  %v990_v53 = vadd.f32 1.0, %v13597_v47  ;;  %v951_v54 = vmul.f32 1.442695, %v901_v44  ;;  %v1986_v55 = vpack.c.bf16 %v14812_v37, %v14809_v36 }
 0x128   : > { %v13601_v56 = vpop.eup %13600  ;;  %13618 = vrcp.f32 %v987_v45  ;;  %v988_v57 = vadd.f32 1.0, %v13599_v51  ;;  %v947_v58 = vmul.f32 1.442695, %v899_v48  ;;  %v902_v59 = vsub.f32 0.0, %v14822_v52 }
 0x129   : > { %v13603_v60 = vpop.eup %13602  ;;  %13620 = vrcp.f32 %v990_v53  ;;  %v900_v0 = vsub.f32 0.0, %v14825_v50  ;;  %11766 = vmatprep.mubr.bf16.mxu0 %v1986_v55  ;;  %v14834_v1 = vmul.f32 %v13601_v56, %v14746_v61 }
 0x12a   : > { %v13605_v21 = vpop.eup %13604  ;;  %13622 = vrcp.f32 %v988_v57  ;;  %v953_v3 = vmul.f32 1.442695, %v902_v59  ;;  %11767 = vmatmul.mubr.bf16.vlgmr.msra.gmra.mrb[32].mxu0 %v1987_v49  ;;  %v11692_v4 = vpop.f32.mrb[20].mxu0  ;;  %v14837_v7 = vmul.f32 %v13603_v60, %v14749_v63 }
 0x12b   : > { %18380 = vst [vmem:[#allocation7_spill] sm:$0xff] %v14834_v1  ;;  %v13607_v22 = vpop.eup %13606  ;;  %13624 = vpow2.f32 %v951_v54  ;;  %v949_v8 = vmul.f32 1.442695, %v900_v0  ;;  %v14840_v9 = vadd.f32 %v11692_v4, %v14716_v40  ;;  %v836_v10 = vpop.f32.mrb[21].mxu0  ;;  %v14843_v12 = vmul.f32 %v13605_v21, %v14753_v2 }
 0x12c   : > { %18381 = vst [vmem:[#allocation8_spill] sm:$0xff] %v14837_v7  ;;  %v13609_v11 = vpop.eup %13608  ;;  %v14846_v61 = vmul.f32 %v13607_v22, %v14757_v5  ;;  %13626 = vpow2.f32 %v947_v58  ;;  %v14849_v13 = vadd.f32 %v14716_v40, %v836_v10  ;;  %v11693_v14 = vpop.f32.mrb[22].mxu0 }
 0x12d   : > { %18382 = vst [vmem:[#allocation9_spill] sm:$0xff] %v14843_v12  ;;  %v13611_v63 = vpop.eup %13610  ;;  %v993_v28 = vadd.f32 1.0, %v13609_v11  ;;  %13628 = vpow2.f32 %v953_v3  ;;  %v905_v29 = vsub.f32 0.0, %v14840_v9  ;;  %v14853_v30 = vadd.f32 %v11693_v14, %v14716_v40  ;;  %v839_v19 = vpop.f32.mrb[23].mxu0 }
 0x12e   : > { %18383 = vst [vmem:[#allocation10_spill] sm:$0xff] %v14846_v61  ;;  %v13613_v33 = vpop.eup %13612  ;;  %v991_v2 = vadd.f32 1.0, %v13611_v63  ;;  %13630 = vpow2.f32 %v949_v8  ;;  %v903_v5 = vsub.f32 0.0, %v14849_v13  ;;  %v14857_v35 = vadd.f32 %v14716_v40, %v839_v19 }
 0x12f   : > { %v13615_v43 = vpop.eup %13614  ;;  %13632 = vrcp.f32 %v993_v28  ;;  %v994_v41 = vadd.f32 1.0, %v13613_v33  ;;  %v959_v49 = vmul.f32 1.442695, %v905_v29  ;;  %v906_v42 = vsub.f32 0.0, %v14853_v30 }
 0x130   : > { %13634 = vrcp.f32 %v991_v2  ;;  %v992_v44 = vadd.f32 1.0, %v13615_v43  ;;  %v955_v46 = vmul.f32 1.442695, %v903_v5  ;;  %v904_v47 = vsub.f32 0.0, %v14857_v35 }
 0x131   : > { %v13617_v45 = vpop.eup %13616  ;;  %13636 = vrcp.f32 %v994_v41  ;;  %v961_v48 = vmul.f32 1.442695, %v906_v42  ;;  %v1988_v51 = vpack.c.bf16 %v14846_v61, %v14837_v7  ;;  %v1989_v54 = vpack.c.bf16 %v14843_v12, %v14834_v1 }
 0x132   : > { %v13619_v23 = vpop.eup %13618  ;;  %13638 = vrcp.f32 %v992_v44  ;;  %v957_v53 = vmul.f32 1.442695, %v904_v47  ;;  %v11696_v55 = vpop.f32.mrb[24].mxu0 }
 0x133   : > { %v13621_v56 = vpop.eup %13620  ;;  %13640 = vpow2.f32 %v959_v49  ;;  %11770 = vmatprep.mubr.bf16.mxu0 %v1988_v51  ;;  %v14868_v24 = vadd.f32 %v11696_v55, %v14716_v40  ;;  %v852_v57 = vpop.f32.mrb[25].mxu0  ;;  %v14871_v59 = vmul.f32 %v13619_v23, %v14767_v15 }
 0x134   : > { %v13623_v58 = vpop.eup %13622  ;;  %v14874_v60 = vmul.f32 %v13621_v56, %v14771_v34  ;;  %13642 = vpow2.f32 %v955_v46  ;;  %11771 = vmatmul.mubr.bf16.gmra.mrb[36].mxu0 %v1989_v54  ;;  %v14877_v0 = vadd.f32 %v14716_v40, %v852_v57  ;;  %v11697_v21 = vpop.f32.mrb[26].mxu0 }
 0x135   : > { %18384 = vst [vmem:[#allocation11_spill] sm:$0xff] %v14871_v59  ;;  %v13625_v3 = vpop.eup %13624  ;;  %v14880_v4 = vmul.f32 %v13623_v58, %v14775_v39  ;;  %13644 = vpow2.f32 %v961_v48  ;;  %v909_v22 = vsub.f32 0.0, %v14868_v24  ;;  %v14884_v8 = vadd.f32 %v11697_v21, %v14716_v40  ;;  %v855_v15 = vpop.f32.mrb[27].mxu0 }
 0x136   : > { %18385 = vst [vmem:[#allocation12_spill] sm:$0xff] %v14874_v60  ;;  %v13627_v10 = vpop.eup %13626  ;;  %v997_v34 = vadd.f32 1.0, %v13625_v3  ;;  %13646 = vpow2.f32 %v957_v53  ;;  %v907_v11 = vsub.f32 0.0, %v14877_v0  ;;  %v14888_v14 = vadd.f32 %v14716_v40, %v855_v15 }
 0x137   : > { %18386 = vst [vmem:[#allocation13_spill] sm:$0xff] %v14880_v4  ;;  %v13629_v63 = vpop.eup %13628  ;;  %v14892_v39 = vmul.f32 %v13617_v45, %v14764_v16  ;;  %v995_v28 = vadd.f32 1.0, %v13627_v10  ;;  %v910_v29 = vsub.f32 0.0, %v14884_v8  ;;  %v1990_v19 = vpack.c.bf16 %v14880_v4, %v14871_v59 }
 0x138   : > { %v13631_v33 = vpop.eup %13630  ;;  %13648 = vrcp.f32 %v997_v34  ;;  %v998_v2 = vadd.f32 1.0, %v13629_v63  ;;  %v967_v5 = vmul.f32 1.442695, %v909_v22  ;;  %v908_v43 = vsub.f32 0.0, %v14888_v14 }
 0x139   : > { %18387 = vst [vmem:[#allocation14_spill] sm:$0xff] %v14892_v39  ;;  %v13633_v41 = vpop.eup %13632  ;;  %13650 = vrcp.f32 %v995_v28  ;;  %v996_v25 = vadd.f32 1.0, %v13631_v33  ;;  %v963_v49 = vmul.f32 1.442695, %v907_v11  ;;  %11774 = vmatprep.mubr.bf16.mxu0 %v1990_v19  ;;  %v969_v42 = vmul.f32 1.442695, %v910_v29 }
 0x13a   : > { %v13635_v16 = vpop.eup %13634  ;;  %13652 = vrcp.f32 %v998_v2  ;;  %v1991_v44 = vpack.c.bf16 %v14874_v60, %v14892_v39  ;;  %v11700_v46 = vpop.f32.mrb[28].mxu0  ;;  %v965_v26 = vmul.f32 1.442695, %v908_v43  ;;  %v14905_v23 = vmul.f32 %v13633_v41, %v14782_v17 }
 0x13b   : > { %v13637_v47 = vpop.eup %13636  ;;  %13654 = vrcp.f32 %v996_v25  ;;  %v14902_v45 = vadd.f32 %v11700_v46, %v14716_v40  ;;  %v868_v48 = vpop.f32.mrb[29].mxu0 }
 0x13c   : > { %v13639_v51 = vpop.eup %13638  ;;  %18388 = vst [vmem:[#allocation15_spill] sm:$0xff] %v14905_v23  ;;  %v14908_v53 = vmul.f32 %v13637_v47, %v14789_v62  ;;  %13656 = vpow2.f32 %v967_v5  ;;  %11775 = vmatmul.mubr.bf16.gmra.mrb[40].mxu0 %v1991_v44  ;;  %v14911_v54 = vadd.f32 %v14716_v40, %v868_v48  ;;  %v11701_v55 = vpop.f32.mrb[30].mxu0 }
 0x13d   : > { %v13641_v56 = vpop.eup %13640  ;;  %v14914_v57 = vmul.f32 %v13639_v51, %v14793_v6  ;;  %13658 = vpow2.f32 %v963_v49  ;;  %v913_v58 = vsub.f32 0.0, %v14902_v45  ;;  %v14918_v21 = vadd.f32 %v11701_v55, %v14716_v40  ;;  %v871_v17 = vpop.f32.mrb[31].mxu0 }
 0x13e   : > { %18389 = vst [vmem:[#allocation16_spill] sm:$0xff] %v14908_v53  ;;  %v13643_v3 = vpop.eup %13642  ;;  %v1001_v62 = vadd.f32 1.0, %v13641_v56  ;;  %13660 = vpow2.f32 %v969_v42  ;;  %v911_v22 = vsub.f32 0.0, %v14911_v54  ;;  %v14922_v15 = vadd.f32 %v14716_v40, %v871_v17 }
 0x13f   : > { %18390 = vst [vmem:[#allocation17_spill] sm:$0xff] %v14914_v57  ;;  %v13645_v10 = vpop.eup %13644  ;;  %v14926_v6 = vmul.f32 %v13635_v16, %v14785_v18  ;;  %v999_v34 = vadd.f32 1.0, %v13643_v3  ;;  %13662 = vpow2.f32 %v965_v26  ;;  %v914_v11 = vsub.f32 0.0, %v14918_v21 }
 0x140   : > { %v13647_v63 = vpop.eup %13646  ;;  %13664 = vrcp.f32 %v1001_v62  ;;  %v1002_v28 = vadd.f32 1.0, %v13645_v10  ;;  %v975_v29 = vmul.f32 1.442695, %v913_v58  ;;  %v912_v19 = vsub.f32 0.0, %v14922_v15 }
 0x141   : > { %18391 = vst [vmem:[#allocation18_spill] sm:$0xff] %v14926_v6  ;;  %13666 = vrcp.f32 %v999_v34  ;;  %v1000_v33 = vadd.f32 1.0, %v13647_v63  ;;  %v971_v40 = vmul.f32 1.442695, %v911_v22  ;;  %v1992_v27 = vpack.c.bf16 %v14914_v57, %v14926_v6 }
 0x142   : > { %v13649_v2 = vpop.eup %13648  ;;  %13668 = vrcp.f32 %v1002_v28  ;;  %v977_v18 = vmul.f32 1.442695, %v914_v11  ;;  %v1993_v5 = vpack.c.bf16 %v14908_v53, %v14905_v23  ;;  %v973_v41 = vmul.f32 1.442695, %v912_v19 }
 0x143   : > { %v13651_v43 = vpop.eup %13650  ;;  %13670 = vrcp.f32 %v1000_v33  ;;  %11778 = vmatprep.mubr.bf16.mxu0 %v1992_v27  ;;  %v14944_v51 = vmul.f32 %v13649_v2, %v14806_v20 }
 0x144   : > { %v13653_v25 = vpop.eup %13652  ;;  %13672 = vpow2.f32 %v975_v29  ;;  %11779 = vmatmul.mubr.bf16.gmra.mrb[44].mxu0 %v1993_v5  ;;  %v14935_v42 = vmul.f32 %v13651_v43, %v14815_v38 }
 0x145   : > { %v13655_v49 = vpop.eup %13654  ;;  %13674 = vpow2.f32 %v971_v40  ;;  %v14938_v44 = vmul.f32 %v13653_v25, %v14822_v52  ;;  %18395 = vst [vmem:[#allocation22_spill] sm:$0xff] %v14944_v51 }
 0x146   : > { %v13657_v16 = vpop.eup %13656  ;;  %18392 = vst [vmem:[#allocation19_spill] sm:$0xff] %v14935_v42  ;;  %v14941_v46 = vmul.f32 %v13655_v49, %v14825_v50  ;;  %13676 = vpow2.f32 %v977_v18 }
 0x147   : > { %18393 = vst [vmem:[#allocation20_spill] sm:$0xff] %v14938_v44  ;;  %v13659_v47 = vpop.eup %13658  ;;  %v1005_v26 = vadd.f32 1.0, %v13657_v16  ;;  %13678 = vpow2.f32 %v973_v41  ;;  %v1995_v50 = vpack.c.bf16 %v14938_v44, %v14944_v51 }
 0x148   : > { %18394 = vst [vmem:[#allocation21_spill] sm:$0xff] %v14941_v46  ;;  %v13661_v48 = vpop.eup %13660  ;;  %v1003_v55 = vadd.f32 1.0, %v13659_v47  ;;  %v1994_v56 = vpack.c.bf16 %v14941_v46, %v14935_v42 }
 0x149   : > { %v13663_v38 = vpop.eup %13662  ;;  %13680 = vrcp.f32 %v1005_v26  ;;  %v1006_v58 = vadd.f32 1.0, %v13661_v48 }
 0x14a   : > { %v13665_v52 = vpop.eup %13664  ;;  %13682 = vrcp.f32 %v1003_v55  ;;  %v1004_v17 = vadd.f32 1.0, %v13663_v38  ;;  %11782 = vmatprep.mubr.bf16.mxu0 %v1994_v56 }
 0x14b   : > { %v13667_v3 = vpop.eup %13666  ;;  %13684 = vrcp.f32 %v1006_v58  ;;  %v14960_v19 = vmul.f32 %v13665_v52, %v14840_v9  ;;  %v13407_v52 = vld [vmem:[%s18103_s7 + $0x78] sm:$0xff]  }
 0x14c   : > { %v13669_v62 = vpop.eup %13668  ;;  %13686 = vrcp.f32 %v1004_v17  ;;  %11783 = vmatmul.mubr.bf16.gmra.mrb[48].mxu0 %v1995_v50  ;;  %v14951_v10 = vmul.f32 %v13667_v3, %v14849_v13  ;;  %v14476_v17 = vmov 0.0   ;;  %v14477_v50 = vmov 0.0|0.0   ;;  %v15016_v3 = vld [vmem:[%s18103_s7] sm:$0xff]  }
 0x14d   : > { %v13671_v20 = vpop.eup %13670  ;;  %v14954_v34 = vmul.f32 %v13669_v62, %v14853_v30  ;;  %18399 = vst [vmem:[#allocation26_spill] sm:$0xff] %v14960_v19  ;;  %1981 = vst [vmem:[#allocation2 + $0x8] sm:$0xff] %v14476_v17  ;;  %11814 = vmatprep.mubr.bf16.mxu1 %v14477_v50  ;;  %v15022_v62 = vld [vmem:[%s18102_s6] ss:$0 sm:$0xff] }
 0x14e   : > { %v13673_v22 = vpop.eup %13672  ;;  %18396 = vst [vmem:[#allocation23_spill] sm:$0xff] %v14951_v10  ;;  %v14957_v11 = vmul.f32 %v13671_v20, %v14857_v35  ;;  %1982 = vst [vmem:[#allocation2 + $0x10] sm:$0xff] %v14476_v17 }
 0x14f   : > { %18397 = vst [vmem:[#allocation24_spill] sm:$0xff] %v14954_v34  ;;  %v13675_v63 = vpop.eup %13674  ;;  %v1009_v28 = vadd.f32 1.0, %v13673_v22  ;;  %v1997_v30 = vpack.c.bf16 %v14954_v34, %v14960_v19  ;;  %1980 = vst [vmem:[#allocation2] sm:$0xff] %v14476_v17 }
 0x150   : > { %18398 = vst [vmem:[#allocation25_spill] sm:$0xff] %v14957_v11  ;;  %v13677_v29 = vpop.eup %13676  ;;  %v1007_v33 = vadd.f32 1.0, %v13675_v63  ;;  %v1996_v40 = vpack.c.bf16 %v14957_v11, %v14951_v10  ;;  %1983 = vst [vmem:[#allocation2 + $0x118] sm:$0xff] %v14476_v17 }
 0x151   : > { %v13679_v27 = vpop.eup %13678  ;;  %13688 = vrcp.f32 %v1009_v28  ;;  %v1010_v13 = vadd.f32 1.0, %v13677_v29  ;;  %1984 = vst [vmem:[#allocation2 + $0x120] sm:$0xff] %v14476_v17  ;;  %1985 = vst [vmem:[#allocation2 + $0x128] sm:$0xff] %v14476_v17 }
 0x152   : > { %13690 = vrcp.f32 %v1007_v33  ;;  %v1008_v2 = vadd.f32 1.0, %v13679_v27  ;;  %11786 = vmatprep.mubr.bf16.mxu0 %v1996_v40 }
 0x153   : > { %v13681_v35 = vpop.eup %13680  ;;  %13692 = vrcp.f32 %v1010_v13 }
 0x154   : > { %v13683_v18 = vpop.eup %13682  ;;  %13694 = vrcp.f32 %v1008_v2  ;;  %11787 = vmatmul.mubr.bf16.gmra.mrb[52].mxu0 %v1997_v30  ;;  %v14976_v49 = vmul.f32 %v13681_v35, %v14868_v24 }
 0x155   : > { %v13685_v9 = vpop.eup %13684  ;;  %v14970_v41 = vmul.f32 %v13683_v18, %v14877_v0 }
 0x156   : > { %v13687_v5 = vpop.eup %13686  ;;  %v14967_v43 = vmul.f32 %v13685_v9, %v14884_v8  ;;  %18403 = vst [vmem:[#allocation30_spill] sm:$0xff] %v14976_v49 }
 0x157   : > { %18401 = vst [vmem:[#allocation28_spill] sm:$0xff] %v14970_v41  ;;  %v14973_v25 = vmul.f32 %v13687_v5, %v14888_v14 }
 0x158   : > { %18400 = vst [vmem:[#allocation27_spill] sm:$0xff] %v14967_v43  ;;  %v1999_v47 = vpack.c.bf16 %v14967_v43, %v14976_v49 }
 0x159   : > { %18402 = vst [vmem:[#allocation29_spill] sm:$0xff] %v14973_v25  ;;  %v1998_v16 = vpack.c.bf16 %v14973_v25, %v14970_v41 }
 0x15b   : > { %v13689_v26 = vpop.eup %13688  ;;  %11790 = vmatprep.mubr.bf16.mxu0 %v1998_v16 }
 0x15c   : > { %v13691_v48 = vpop.eup %13690  ;;  %11791 = vmatmul.mubr.bf16.gmra.mrb[56].mxu0 %v1999_v47  ;;  %v14992_v56 = vmul.f32 %v13689_v26, %v14902_v45  ;;  %v13405_v45 = vld [vmem:[%s18103_s7 + $0x68] sm:$0xff]  }
 0x15d   : > { %v13693_v8 = vpop.eup %13692  ;;  %v14986_v14 = vmul.f32 %v13691_v48, %v14911_v54  ;;  %v13404_v54 = vld [vmem:[%s18103_s7 + $0x60] sm:$0xff]  }
 0x15e   : > { %v13695_v55 = vpop.eup %13694  ;;  %v14983_v0 = vmul.f32 %v13693_v8, %v14918_v21  ;;  %18407 = vst [vmem:[#allocation34_spill] sm:$0xff] %v14992_v56  ;;  %v13403_v21 = vld [vmem:[%s18103_s7 + $0x58] sm:$0xff]  }
 0x15f   : > { %18405 = vst [vmem:[#allocation32_spill] sm:$0xff] %v14986_v14  ;;  %v14989_v24 = vmul.f32 %v13695_v55, %v14922_v15  ;;  %11804 = vmatprep.subr.bf16.mxu1 %v13403_v21  ;;  %v13406_v15 = vld [vmem:[%s18103_s7 + $0x70] sm:$0xff]  }
 0x160   : > { %18404 = vst [vmem:[#allocation31_spill] sm:$0xff] %v14983_v0  ;;  %v2001_v58 = vpack.c.bf16 %v14983_v0, %v14992_v56  ;;  %11805 = vmatpush3.bf16.msra.mxu1 %v13403_v21 }
 0x161   : > { %18406 = vst [vmem:[#allocation33_spill] sm:$0xff] %v14989_v24  ;;  %v2000_v38 = vpack.c.bf16 %v14989_v24, %v14986_v14  ;;  %11806 = vmatprep.subr.bf16.mxu1 %v13404_v54 }
 0x163   : > { %11794 = vmatprep.mubr.bf16.mxu0 %v2000_v38 }
 0x164   : > { %11795 = vmatmul.mubr.bf16.gmra.mrb[60].mxu0 %v2001_v58  ;;  %11807 = vmatpush3.bf16.msra.mxu1 %v13404_v54 }
 0x165   : > { %11808 = vmatprep.subr.bf16.mxu1 %v13405_v45 }
 0x168   : > { %11809 = vmatpush3.bf16.msra.mxu1 %v13405_v45 }
 0x169   : > { %11810 = vmatprep.subr.bf16.mxu1 %v13406_v15 }
 0x16c   : > { %11811 = vmatpush3.bf16.msra.mxu1 %v13406_v15 }
 0x16d   : > { %11812 = vmatprep.subr.bf16.mxu1 %v13407_v52 }
 0x170   : > { %11813 = vmatpush3.bf16.msra.mxu1 %v13407_v52 }
 0x171   : > { %11846 = vmatprep.subr.bf16.mxu1 %v15016_v3 }
 0x1fd   : > { %v11768_v20 = vpop.f32.mrb[32].mxu0 }
 0x1fe   : > { %v15025_v22 = vadd.f32 %v11768_v20, %v15022_v62  ;;  %v2107_v63 = vpop.f32.mrb[33].mxu0 }
 0x1ff   : > { %v15028_v28 = vadd.f32 %v15022_v62, %v2107_v63  ;;  %v11769_v29 = vpop.f32.mrb[34].mxu0 }
 0x200   : > { %v2236_v33 = vsub.f32 0.0, %v15025_v22  ;;  %v15032_v40 = vadd.f32 %v11769_v29, %v15022_v62  ;;  %v2110_v27 = vpop.f32.mrb[35].mxu0 }
 0x201   : > { %v2234_v13 = vsub.f32 0.0, %v15028_v28  ;;  %v15036_v2 = vadd.f32 %v15022_v62, %v2110_v27 }
 0x202   : > { %v2270_v30 = vmul.f32 1.442695, %v2236_v33  ;;  %v2237_v35 = vsub.f32 0.0, %v15032_v40 }
 0x203   : > { %v2266_v18 = vmul.f32 1.442695, %v2234_v13  ;;  %v2235_v9 = vsub.f32 0.0, %v15036_v2 }
 0x204   : > { %13696 = vpow2.f32 %v2270_v30  ;;  %v2272_v5 = vmul.f32 1.442695, %v2237_v35 }
 0x205   : > { %13698 = vpow2.f32 %v2266_v18  ;;  %v2268_v16 = vmul.f32 1.442695, %v2235_v9 }
 0x206   : > { %13700 = vpow2.f32 %v2272_v5 }
 0x207   : > { %13702 = vpow2.f32 %v2268_v16  ;;  %v11772_v47 = vpop.f32.mrb[36].mxu0 }
 0x208   : > { %v15041_v26 = vadd.f32 %v11772_v47, %v15022_v62  ;;  %v2123_v48 = vpop.f32.mrb[37].mxu0 }
 0x209   : > { %v15044_v8 = vadd.f32 %v15022_v62, %v2123_v48  ;;  %v11773_v55 = vpop.f32.mrb[38].mxu0 }
 0x20a   : > { %v2240_v38 = vsub.f32 0.0, %v15041_v26  ;;  %v15048_v58 = vadd.f32 %v11773_v55, %v15022_v62  ;;  %v2126_v21 = vpop.f32.mrb[39].mxu0 }
 0x20b   : > { %v2238_v54 = vsub.f32 0.0, %v15044_v8  ;;  %v15052_v45 = vadd.f32 %v15022_v62, %v2126_v21 }
 0x20c   : > { %v2278_v15 = vmul.f32 1.442695, %v2240_v38  ;;  %v2241_v52 = vsub.f32 0.0, %v15048_v58 }
 0x20d   : > { %v2274_v17 = vmul.f32 1.442695, %v2238_v54  ;;  %v2239_v50 = vsub.f32 0.0, %v15052_v45 }
 0x20e   : > { %v13697_v20 = vpop.eup %13696  ;;  %13704 = vpow2.f32 %v2278_v15  ;;  %v2280_v63 = vmul.f32 1.442695, %v2241_v52 }
 0x20f   : > { %v13699_v29 = vpop.eup %13698  ;;  %v2332_v33 = vadd.f32 1.0, %v13697_v20  ;;  %13706 = vpow2.f32 %v2274_v17  ;;  %v11776_v27 = vpop.f32.mrb[40].mxu0  ;;  %v2276_v16 = vmul.f32 1.442695, %v2239_v50 }
 0x210   : > { %v13701_v13 = vpop.eup %13700  ;;  %v2330_v30 = vadd.f32 1.0, %v13699_v29  ;;  %13708 = vpow2.f32 %v2280_v63  ;;  %v15057_v35 = vadd.f32 %v11776_v27, %v15022_v62  ;;  %v2139_v18 = vpop.f32.mrb[41].mxu0 }
 0x211   : > { %v13703_v9 = vpop.eup %13702  ;;  %13710 = vrcp.f32 %v2332_v33  ;;  %v2333_v5 = vadd.f32 1.0, %v13701_v13  ;;  %v15060_v47 = vadd.f32 %v15022_v62, %v2139_v18  ;;  %v11777_v48 = vpop.f32.mrb[42].mxu0 }
 0x212   : > { %13712 = vrcp.f32 %v2330_v30  ;;  %v2331_v55 = vadd.f32 1.0, %v13703_v9  ;;  %v2244_v38 = vsub.f32 0.0, %v15057_v35  ;;  %v15064_v21 = vadd.f32 %v11777_v48, %v15022_v62  ;;  %v2142_v54 = vpop.f32.mrb[43].mxu0 }
 0x213   : > { %13714 = vrcp.f32 %v2333_v5  ;;  %v2242_v15 = vsub.f32 0.0, %v15060_v47  ;;  %v15068_v52 = vadd.f32 %v15022_v62, %v2142_v54 }
 0x214   : > { %13716 = vrcp.f32 %v2331_v55  ;;  %v2286_v17 = vmul.f32 1.442695, %v2244_v38  ;;  %v2245_v50 = vsub.f32 0.0, %v15064_v21 }
 0x215   : > { %13718 = vpow2.f32 %v2276_v16  ;;  %v2282_v20 = vmul.f32 1.442695, %v2242_v15  ;;  %v2243_v63 = vsub.f32 0.0, %v15068_v52 }
 0x216   : > { %13720 = vpow2.f32 %v2286_v17  ;;  %v2288_v29 = vmul.f32 1.442695, %v2245_v50  ;;  %v15082_v50 = vpop.f32.mrb[0].mxu1 }
 0x217   : > { %13722 = vpow2.f32 %v2282_v20  ;;  %v2284_v33 = vmul.f32 1.442695, %v2243_v63  ;;  %v11780_v27 = vpop.f32.mrb[44].mxu0 }
 0x218   : > { %v13705_v13 = vpop.eup %13704  ;;  %13724 = vpow2.f32 %v2288_v29  ;;  %v15073_v30 = vadd.f32 %v11780_v27, %v15022_v62  ;;  %v2155_v18 = vpop.f32.mrb[45].mxu0 }
 0x219   : > { %v13707_v9 = vpop.eup %13706  ;;  %v2336_v5 = vadd.f32 1.0, %v13705_v13  ;;  %13726 = vpow2.f32 %v2284_v33  ;;  %v15076_v48 = vadd.f32 %v15022_v62, %v2155_v18  ;;  %v11781_v16 = vpop.f32.mrb[46].mxu0 }
 0x21a   : > { %v13709_v55 = vpop.eup %13708  ;;  %v2334_v38 = vadd.f32 1.0, %v13707_v9  ;;  %v2248_v54 = vsub.f32 0.0, %v15073_v30  ;;  %v15080_v15 = vadd.f32 %v11781_v16, %v15022_v62  ;;  %v2158_v17 = vpop.f32.mrb[47].mxu0 }
 0x21b   : > { %v13711_v20 = vpop.eup %13710  ;;  %13728 = vrcp.f32 %v2336_v5  ;;  %v2337_v63 = vadd.f32 1.0, %v13709_v55  ;;  %v2246_v29 = vsub.f32 0.0, %v15076_v48  ;;  %v15086_v33 = vadd.f32 %v15022_v62, %v2158_v17  ;;  %v15088_v27 = vpop.f32.mrb[1].mxu1 }
 0x21c   : > { %v13713_v13 = vpop.eup %13712  ;;  %v2396_v18 = vmul.f32 %v13711_v20, %v15025_v22  ;;  %13730 = vrcp.f32 %v2334_v38  ;;  %v2294_v9 = vmul.f32 1.442695, %v2248_v54  ;;  %v2249_v16 = vsub.f32 0.0, %v15080_v15  ;;  %v15092_v56 = vpop.f32.mrb[2].mxu1 }
 0x21d   : > { %v13715_v24 = vpop.eup %13714  ;;  %v2394_v5 = vmul.f32 %v13713_v13, %v15028_v28  ;;  %13732 = vrcp.f32 %v2337_v63  ;;  %v2290_v55 = vmul.f32 1.442695, %v2246_v29  ;;  %v2247_v0 = vsub.f32 0.0, %v15086_v33  ;;  %v15096_v17 = vpop.f32.mrb[3].mxu1 }
 0x21e   : > { %v13717_v14 = vpop.eup %13716  ;;  %2428 = vst [vmem:[#allocation2 + $0x28] sm:$0xff] %v2396_v18  ;;  %v2397_v49 = vmul.f32 %v13715_v24, %v15032_v40  ;;  %13734 = vpow2.f32 %v2294_v9  ;;  %v2296_v22 = vmul.f32 1.442695, %v2249_v16 }
 0x21f   : > { %v13719_v38 = vpop.eup %13718  ;;  %2426 = vst [vmem:[#allocation2 + $0x18] sm:$0xff] %v2394_v5  ;;  %v2395_v54 = vmul.f32 %v13717_v14, %v15036_v2  ;;  %13736 = vpow2.f32 %v2290_v55  ;;  %v2292_v20 = vmul.f32 1.442695, %v2247_v0  ;;  %v11784_v43 = vpop.f32.mrb[48].mxu0  ;;  %v13409_v0 = vld [vmem:[%s18103_s7 + $0x8] sm:$0xff]  }
 0x220   : > { %v13721_v28 = vpop.eup %13720  ;;  %2429 = vst [vmem:[#allocation2 + $0x30] sm:$0xff] %v2397_v49  ;;  %v2335_v63 = vadd.f32 1.0, %v13719_v38  ;;  %13738 = vpow2.f32 %v2296_v22  ;;  %v15101_v29 = vadd.f32 %v11784_v43, %v15022_v62  ;;  %v2171_v13 = vpop.f32.mrb[49].mxu0  ;;  %v2588_v25 = vpack.c.bf16 %v2397_v49, %v2396_v18 }
 0x221   : > { %v13723_v41 = vpop.eup %13722  ;;  %2427 = vst [vmem:[#allocation2 + $0x20] sm:$0xff] %v2395_v54  ;;  %v2340_v24 = vadd.f32 1.0, %v13721_v28  ;;  %13740 = vpow2.f32 %v2292_v20  ;;  %v15104_v40 = vadd.f32 %v15022_v62, %v2171_v13  ;;  %v11785_v14 = vpop.f32.mrb[50].mxu0  ;;  %v2587_v2 = vpack.c.bf16 %v2395_v54, %v2394_v5 }
 0x222   : > { %v13725_v9 = vpop.eup %13724  ;;  %13742 = vrcp.f32 %v2335_v63  ;;  %v2338_v16 = vadd.f32 1.0, %v13723_v41  ;;  %v2252_v43 = vsub.f32 0.0, %v15101_v29  ;;  %v15111_v49 = vadd.f32 %v11785_v14, %v15022_v62  ;;  %v2174_v18 = vpop.f32.mrb[51].mxu0 }
 0x223   : > { %v15113_v55 = vpop.f32.mrb[4].mxu1  ;;  %v13727_v22 = vpop.eup %13726  ;;  %13744 = vrcp.f32 %v2340_v24  ;;  %v2341_v38 = vadd.f32 1.0, %v13725_v9  ;;  %v2250_v5 = vsub.f32 0.0, %v15104_v40  ;;  %v15117_v54 = vadd.f32 %v15022_v62, %v2174_v18  ;;  %11815 = vmatmul.mubr.bf16.vlgmr.msra.gmra.mrb[32].mxu1 %v2587_v2  ;;  %v13410_v2 = vld [vmem:[%s18103_s7 + $0x10] sm:$0xff]  }
 0x224   : > { %v15119_v20 = vpop.f32.mrb[5].mxu1  ;;  %13746 = vrcp.f32 %v2338_v16  ;;  %v2339_v41 = vadd.f32 1.0, %v13727_v22  ;;  %v2302_v28 = vmul.f32 1.442695, %v2252_v43  ;;  %v2253_v63 = vsub.f32 0.0, %v15111_v49  ;;  %11847 = vmatpush3.bf16.msra.mxu1 %v15016_v3  ;;  %11818 = vmatprep.mubr.bf16.mxu1 %v2588_v25 }
 0x225   : > { %v15123_v13 = vpop.f32.mrb[6].mxu1  ;;  %v13729_v24 = vpop.eup %13728  ;;  %13748 = vrcp.f32 %v2341_v38  ;;  %v2298_v14 = vmul.f32 1.442695, %v2250_v5  ;;  %v2251_v9 = vsub.f32 0.0, %v15117_v54  ;;  %11848 = vmatprep.subr.bf16.mxu1 %v13409_v0 }
 0x226   : > { %v15129_v16 = vpop.f32.mrb[7].mxu1  ;;  %v13731_v43 = vpop.eup %13730  ;;  %v15132_v18 = vmul.f32 %v13729_v24, %v15041_v26  ;;  %13750 = vrcp.f32 %v2339_v41  ;;  %v2304_v25 = vmul.f32 1.442695, %v2253_v63 }
 0x227   : > { %v13733_v3 = vpop.eup %13732  ;;  %v15135_v22 = vmul.f32 %v13731_v43, %v15044_v8  ;;  %13752 = vpow2.f32 %v2302_v28  ;;  %v2300_v38 = vmul.f32 1.442695, %v2251_v9  ;;  %v11788_v5 = vpop.f32.mrb[52].mxu0 }
 0x228   : > { %v13735_v19 = vpop.eup %13734  ;;  %2432 = vst [vmem:[#allocation2 + $0x48] sm:$0xff] %v15132_v18  ;;  %v15139_v34 = vmul.f32 %v13733_v3, %v15048_v58  ;;  %13754 = vpow2.f32 %v2298_v14  ;;  %v15142_v11 = vadd.f32 %v11788_v5, %v15022_v62  ;;  %v2187_v26 = vpop.f32.mrb[53].mxu0  ;;  %11849 = vmatpush3.bf16.msra.mxu1 %v13409_v0  ;;  %v13411_v58 = vld [vmem:[%s18103_s7 + $0x18] sm:$0xff]  }
 0x229   : > { %v13737_v41 = vpop.eup %13736  ;;  %2430 = vst [vmem:[#allocation2 + $0x38] sm:$0xff] %v15135_v22  ;;  %v2344_v8 = vadd.f32 1.0, %v13735_v19  ;;  %13756 = vpow2.f32 %v2304_v25  ;;  %v15146_v28 = vadd.f32 %v15022_v62, %v2187_v26  ;;  %v11789_v63 = vpop.f32.mrb[54].mxu0  ;;  %11850 = vmatprep.subr.bf16.mxu1 %v13410_v2 }
 0x22a   : > { %v13739_v24 = vpop.eup %13738  ;;  %2433 = vst [vmem:[#allocation2 + $0x50] sm:$0xff] %v15139_v34  ;;  %v2342_v14 = vadd.f32 1.0, %v13737_v41  ;;  %13758 = vpow2.f32 %v2300_v38  ;;  %v2256_v0 = vsub.f32 0.0, %v15142_v11  ;;  %v15154_v9 = vadd.f32 %v11789_v63, %v15022_v62  ;;  %v2190_v19 = vpop.f32.mrb[55].mxu0 }
 0x22b   : > { %v15156_v43 = vpop.f32.mrb[8].mxu1  ;;  %v13741_v25 = vpop.eup %13740  ;;  %13760 = vrcp.f32 %v2344_v8  ;;  %v2345_v3 = vadd.f32 1.0, %v13739_v24  ;;  %v2254_v5 = vsub.f32 0.0, %v15146_v28  ;;  %v15160_v26 = vadd.f32 %v15022_v62, %v2190_v19  ;;  %v13412_v19 = vld [vmem:[%s18103_s7 + $0x20] sm:$0xff]  }
 0x22c   : > { %v15162_v10 = vpop.f32.mrb[9].mxu1  ;;  %v13743_v41 = vpop.eup %13742  ;;  %13762 = vrcp.f32 %v2342_v14  ;;  %v2343_v38 = vadd.f32 1.0, %v13741_v25  ;;  %v2310_v51 = vmul.f32 1.442695, %v2256_v0  ;;  %v2257_v63 = vsub.f32 0.0, %v15154_v9  ;;  %11851 = vmatpush3.bf16.msra.mxu1 %v13410_v2 }
 0x22d   : > { %v15165_v46 = vpop.f32.mrb[10].mxu1  ;;  %v13745_v42 = vpop.eup %13744  ;;  %v2399_v8 = vmul.f32 %v13743_v41, %v15052_v45  ;;  %13764 = vrcp.f32 %v2345_v3  ;;  %v2306_v24 = vmul.f32 1.442695, %v2254_v5  ;;  %v2255_v44 = vsub.f32 0.0, %v15160_v26  ;;  %11852 = vmatprep.subr.bf16.mxu1 %v13411_v58  ;;  %v15182_v3 = vld [vmem:[%s18100_s4] ss:$0 sm:$0xff] }
 0x22e   : > { %v15172_v14 = vpop.f32.mrb[11].mxu1  ;;  %v13747_v0 = vpop.eup %13746  ;;  %v15175_v25 = vmul.f32 %v13745_v42, %v15057_v35  ;;  %13766 = vrcp.f32 %v2343_v38  ;;  %v2312_v2 = vmul.f32 1.442695, %v2257_v63  ;;  %v2590_v45 = vpack.c.bf16 %v15139_v34, %v15132_v18 }
 0x22f   : > { %v13749_v5 = vpop.eup %13748  ;;  %2431 = vst [vmem:[#allocation2 + $0x40] sm:$0xff] %v2399_v8  ;;  %v15185_v41 = vmul.f32 %v13747_v0, %v15060_v47  ;;  %13768 = vpow2.f32 %v2310_v51  ;;  %v2308_v57 = vmul.f32 1.442695, %v2255_v44  ;;  %v11792_v53 = vpop.f32.mrb[56].mxu0  ;;  %v2589_v42 = vpack.c.bf16 %v2399_v8, %v15135_v22 }
 0x230   : > { %v13751_v35 = vpop.eup %13750  ;;  %2436 = vst [vmem:[#allocation2 + $0x68] sm:$0xff] %v15175_v25  ;;  %v15190_v34 = vmul.f32 %v13749_v5, %v15064_v21  ;;  %13770 = vpow2.f32 %v2306_v24  ;;  %v15193_v18 = vadd.f32 %v11792_v53, %v15022_v62  ;;  %v2203_v38 = vpop.f32.mrb[57].mxu0  ;;  %11853 = vmatpush3.bf16.msra.mxu1 %v13411_v58  ;;  %v13413_v53 = vld [vmem:[%s18103_s7 + $0x28] sm:$0xff]   ;;  %v15207_v21 = vadd.f32 %v15082_v50, %v15182_v3 }
 0x231   : > { %v13753_v63 = vpop.eup %13752  ;;  %2434 = vst [vmem:[#allocation2 + $0x58] sm:$0xff] %v15185_v41  ;;  %v15197_v44 = vmul.f32 %v13751_v35, %v15068_v52  ;;  %13772 = vpow2.f32 %v2312_v2  ;;  %v15200_v51 = vadd.f32 %v15022_v62, %v2203_v38  ;;  %v11793_v47 = vpop.f32.mrb[58].mxu0  ;;  %11819 = vmatmul.mubr.bf16.gmra.mrb[36].mxu1 %v2589_v42  ;;  %11854 = vmatprep.subr.bf16.mxu1 %v13412_v19 }
 0x232   : > { %v13755_v22 = vpop.eup %13754  ;;  %2437 = vst [vmem:[#allocation2 + $0x70] sm:$0xff] %v15190_v34  ;;  %v2348_v52 = vadd.f32 1.0, %v13753_v63  ;;  %13774 = vpow2.f32 %v2308_v57  ;;  %v2260_v58 = vsub.f32 0.0, %v15193_v18  ;;  %v15212_v8 = vadd.f32 %v11793_v47, %v15022_v62  ;;  %v2206_v24 = vpop.f32.mrb[59].mxu0  ;;  %11822 = vmatprep.mubr.bf16.mxu1 %v2590_v45 }
 0x233   : > { %v15214_v0 = vpop.f32.mrb[12].mxu1  ;;  %v13757_v2 = vpop.eup %13756  ;;  %2435 = vst [vmem:[#allocation2 + $0x60] sm:$0xff] %v15197_v44  ;;  %v2346_v5 = vadd.f32 1.0, %v13755_v22  ;;  %v2258_v50 = vsub.f32 0.0, %v15200_v51  ;;  %v15219_v42 = vadd.f32 %v15022_v62, %v2206_v24  ;;  %v2591_v57 = vpack.c.bf16 %v15197_v44, %v15185_v41  ;;  %v13414_v41 = vld [vmem:[%s18103_s7 + $0x30] sm:$0xff]  }
 0x234   : > { %v15223_v35 = vpop.f32.mrb[13].mxu1  ;;  %v13759_v38 = vpop.eup %13758  ;;  %13776 = vrcp.f32 %v2348_v52  ;;  %v2349_v63 = vadd.f32 1.0, %v13757_v2  ;;  %v2318_v45 = vmul.f32 1.442695, %v2260_v58  ;;  %v2261_v47 = vsub.f32 0.0, %v15212_v8  ;;  %11855 = vmatpush3.bf16.msra.mxu1 %v13412_v19 }
 0x235   : > { %v15226_v6 = vpop.f32.mrb[14].mxu1  ;;  %v13761_v22 = vpop.eup %13760  ;;  %13778 = vrcp.f32 %v2346_v5  ;;  %v2347_v23 = vadd.f32 1.0, %v13759_v38  ;;  %v2314_v4 = vmul.f32 1.442695, %v2258_v50  ;;  %v2259_v24 = vsub.f32 0.0, %v15219_v42  ;;  %11856 = vmatprep.subr.bf16.mxu1 %v13413_v53 }
 0x236   : > { %v15232_v44 = vpop.f32.mrb[15].mxu1  ;;  %v13763_v52 = vpop.eup %13762  ;;  %v15235_v58 = vmul.f32 %v13761_v22, %v15073_v30  ;;  %13780 = vrcp.f32 %v2349_v63  ;;  %v2320_v19 = vmul.f32 1.442695, %v2261_v47  ;;  %v2592_v2 = vpack.c.bf16 %v15190_v34, %v15175_v25 }
 0x237   : > { %v13765_v5 = vpop.eup %13764  ;;  %v15240_v50 = vmul.f32 %v13763_v52, %v15076_v48  ;;  %13782 = vrcp.f32 %v2347_v23  ;;  %v2316_v38 = vmul.f32 1.442695, %v2259_v24  ;;  %v11796_v60 = vpop.f32.mrb[60].mxu0  ;;  %v1309_v25 = vsub.f32 0.0, %v15207_v21 }
 0x238   : > { %v13767_v59 = vpop.eup %13766  ;;  %2440 = vst [vmem:[#allocation2 + $0x88] sm:$0xff] %v15235_v58  ;;  %v15244_v39 = vmul.f32 %v13765_v5, %v15080_v15  ;;  %13784 = vpow2.f32 %v2318_v45  ;;  %v15247_v30 = vadd.f32 %v11796_v60, %v15022_v62  ;;  %v2219_v63 = vpop.f32.mrb[61].mxu0  ;;  %11857 = vmatpush3.bf16.msra.mxu1 %v13413_v53  ;;  %v13415_v60 = vld [vmem:[%s18103_s7 + $0x38] sm:$0xff]   ;;  %v15260_v15 = vadd.f32 %v15092_v56, %v15182_v3 }
 0x239   : > { %v13769_v34 = vpop.eup %13768  ;;  %2438 = vst [vmem:[#allocation2 + $0x78] sm:$0xff] %v15240_v50  ;;  %v2407_v23 = vmul.f32 %v13767_v59, %v15086_v33  ;;  %13786 = vpow2.f32 %v2314_v4  ;;  %v15253_v48 = vadd.f32 %v15022_v62, %v2219_v63  ;;  %v11797_v47 = vpop.f32.mrb[62].mxu0  ;;  %11823 = vmatmul.mubr.bf16.gmra.mrb[40].mxu1 %v2591_v57  ;;  %11858 = vmatprep.subr.bf16.mxu1 %v13414_v41  ;;  %v1343_v1 = vmul.f32 1.442695, %v1309_v25 }
 0x23a   : > { %v13771_v53 = vpop.eup %13770  ;;  %2441 = vst [vmem:[#allocation2 + $0x90] sm:$0xff] %v15244_v39  ;;  %v2352_v45 = vadd.f32 1.0, %v13769_v34  ;;  %13788 = vpow2.f32 %v2320_v19  ;;  %v2264_v59 = vsub.f32 0.0, %v15247_v30  ;;  %v15265_v4 = vadd.f32 %v11797_v47, %v15022_v62  ;;  %v2222_v33 = vpop.f32.mrb[63].mxu0  ;;  %11826 = vmatprep.mubr.bf16.mxu1 %v2592_v2 }
 0x23b   : > { %v13773_v57 = vpop.eup %13772  ;;  %2439 = vst [vmem:[#allocation2 + $0x80] sm:$0xff] %v2407_v23  ;;  %v2350_v22 = vadd.f32 1.0, %v13771_v53  ;;  %13790 = vpow2.f32 %v2316_v38  ;;  %v2262_v24 = vsub.f32 0.0, %v15253_v48  ;;  %v15269_v56 = vadd.f32 %v15022_v62, %v2222_v33  ;;  %v15271_v52 = vpop.f32.mrb[16].mxu1  ;;  %v15280_v62 = vld [vmem:[%s18103_s7 + $0x80] sm:$0xff]  }
 0x23c   : > { %v13775_v5 = vpop.eup %13774  ;;  %13792 = vrcp.f32 %v2352_v45  ;;  %v2353_v19 = vadd.f32 1.0, %v13773_v57  ;;  %v2326_v63 = vmul.f32 1.442695, %v2264_v59  ;;  %v2265_v34 = vsub.f32 0.0, %v15265_v4  ;;  %11859 = vmatpush3.bf16.msra.mxu1 %v13414_v41  ;;  %v15274_v47 = vpop.f32.mrb[17].mxu1 }
 0x23d   : > { %13794 = vrcp.f32 %v2350_v22  ;;  %v2351_v2 = vadd.f32 1.0, %v13775_v5  ;;  %v2322_v53 = vmul.f32 1.442695, %v2262_v24  ;;  %v2263_v38 = vsub.f32 0.0, %v15269_v56  ;;  %11860 = vmatprep.subr.bf16.mxu1 %v13415_v60  ;;  %v15282_v33 = vpop.f32.mrb[18].mxu1 }
 0x23e   : > { %v13777_v45 = vpop.eup %13776  ;;  %13796 = vrcp.f32 %v2353_v19  ;;  %v2328_v59 = vmul.f32 1.442695, %v2265_v34  ;;  %v2593_v41 = vpack.c.bf16 %v2407_v23, %v15240_v50  ;;  %v2594_v57 = vpack.c.bf16 %v15244_v39, %v15235_v58  ;;  %v15287_v22 = vpop.f32.mrb[19].mxu1 }
 0x23f   : > { %v13779_v24 = vpop.eup %13778  ;;  %v2412_v5 = vmul.f32 %v13777_v45, %v15101_v29  ;;  %13798 = vrcp.f32 %v2351_v2  ;;  %v2324_v61 = vmul.f32 1.442695, %v2263_v38  ;;  %v1310_v58 = vsub.f32 0.0, %v15260_v15 }
 0x240   : > { %v13781_v12 = vpop.eup %13780  ;;  %v2410_v7 = vmul.f32 %v13779_v24, %v15104_v40  ;;  %13800 = vpow2.f32 %v2326_v63  ;;  %11861 = vmatpush3.bf16.msra.mxu1 %v13415_v60  ;;  %v15295_v40 = vpop.f32.mrb[20].mxu1 }
 0x241   : > { %v13783_v19 = vpop.eup %13782  ;;  %2444 = vst [vmem:[#allocation2 + $0xa8] sm:$0xff] %v2412_v5  ;;  %v2413_v50 = vmul.f32 %v13781_v12, %v15111_v49  ;;  %13802 = vpow2.f32 %v2322_v53  ;;  %11827 = vmatmul.mubr.bf16.gmra.mrb[44].mxu1 %v2593_v41  ;;  %11894 = vmatprep.subr.bf16.mxu1 %v15280_v62  ;;  %v15297_v12 = vpop.f32.mrb[21].mxu1  ;;  %v1345_v41 = vmul.f32 1.442695, %v1310_v58 }
 0x242   : > { %v13785_v39 = vpop.eup %13784  ;;  %2442 = vst [vmem:[#allocation2 + $0x98] sm:$0xff] %v2410_v7  ;;  %v2411_v29 = vmul.f32 %v13783_v19, %v15117_v54  ;;  %13804 = vpow2.f32 %v2328_v59  ;;  %11830 = vmatprep.mubr.bf16.mxu1 %v2594_v57  ;;  %v15299_v2 = vpop.f32.mrb[22].mxu1 }
 0x243   : > { %v13787_v23 = vpop.eup %13786  ;;  %2445 = vst [vmem:[#allocation2 + $0xb0] sm:$0xff] %v2413_v50  ;;  %v2356_v25 = vadd.f32 1.0, %v13785_v39  ;;  %13806 = vpow2.f32 %v2324_v61  ;;  %v2596_v60 = vpack.c.bf16 %v2413_v50, %v2412_v5  ;;  %v15301_v38 = vpop.f32.mrb[23].mxu1 }
 0x244   : > { %v13789_v49 = vpop.eup %13788  ;;  %2443 = vst [vmem:[#allocation2 + $0xa0] sm:$0xff] %v2411_v29  ;;  %v2354_v63 = vadd.f32 1.0, %v13787_v23  ;;  %v2595_v34 = vpack.c.bf16 %v2411_v29, %v2410_v7  ;;  %13808 = vpow2.f32 %v1343_v1  ;;  %v15307_v39 = vpop.f32.mrb[24].mxu1 }
 0x245   : > { %v13791_v54 = vpop.eup %13790  ;;  %13810 = vrcp.f32 %v2356_v25  ;;  %v2357_v53 = vadd.f32 1.0, %v13789_v49  ;;  %v15309_v23 = vpop.f32.mrb[25].mxu1 }
 0x246   : > { %v13793_v45 = vpop.eup %13792  ;;  %13812 = vrcp.f32 %v2354_v63  ;;  %v2355_v59 = vadd.f32 1.0, %v13791_v54 }
 0x247   : > { %v13795_v61 = vpop.eup %13794  ;;  %v2416_v57 = vmul.f32 %v13793_v45, %v15142_v11  ;;  %13814 = vrcp.f32 %v2357_v53 }
 0x248   : > { %v13797_v24 = vpop.eup %13796  ;;  %v2414_v5 = vmul.f32 %v13795_v61, %v15146_v28  ;;  %13816 = vrcp.f32 %v2355_v59  ;;  %v1499_v61 = vlaneseq }
 0x249   : > { %v13799_v1 = vpop.eup %13798  ;;  %2448 = vst [vmem:[#allocation2 + $0xc8] sm:$0xff] %v2416_v57  ;;  %v2417_v7 = vmul.f32 %v13797_v24, %v15154_v9  ;;  %11831 = vmatmul.mubr.bf16.gmra.mrb[48].mxu1 %v2595_v34  ;;  %13818 = vpow2.f32 %v1345_v41  ;;  %v15311_v9 = vpop.f32.mrb[26].mxu1 }
 0x24a   : > { %v13801_v19 = vpop.eup %13800  ;;  %2446 = vst [vmem:[#allocation2 + $0xb8] sm:$0xff] %v2414_v5  ;;  %v2415_v50 = vmul.f32 %v13799_v1, %v15160_v26  ;;  %11834 = vmatprep.mubr.bf16.mxu1 %v2596_v60  ;;  %v15313_v26 = vpop.f32.mrb[27].mxu1 }
 0x24b   : > { %v13803_v29 = vpop.eup %13802  ;;  %2449 = vst [vmem:[#allocation2 + $0xd0] sm:$0xff] %v2417_v7  ;;  %v2360_v11 = vadd.f32 1.0, %v13801_v19  ;;  %v2598_v58 = vpack.c.bf16 %v2417_v7, %v2416_v57  ;;  %v15318_v7 = vpop.f32.mrb[28].mxu1 }
 0x24c   : > { %v13805_v28 = vpop.eup %13804  ;;  %2447 = vst [vmem:[#allocation2 + $0xc0] sm:$0xff] %v2415_v50  ;;  %v2358_v25 = vadd.f32 1.0, %v13803_v29  ;;  %v2597_v49 = vpack.c.bf16 %v2415_v50, %v2414_v5  ;;  %v15321_v50 = vpop.f32.mrb[29].mxu1 }
 0x24d   : > { %v13807_v63 = vpop.eup %13806  ;;  %13820 = vrcp.f32 %v2360_v11  ;;  %v2361_v34 = vadd.f32 1.0, %v13805_v28  ;;  %v15323_v11 = vshrl.u32 %v1499_v61, 7 }
 0x24e   : > { %v13809_v60 = vpop.eup %13808  ;;  %13822 = vrcp.f32 %v2358_v25  ;;  %v2359_v54 = vadd.f32 1.0, %v13807_v63 }
 0x24f   : > { %v13811_v53 = vpop.eup %13810  ;;  %13824 = vrcp.f32 %v2361_v34  ;;  %v1405_v45 = vadd.f32 1.0, %v13809_v60  ;;  %v1536_v63 = vand.u32 15, %v15323_v11  ;;  %v1502_v61 = vadd.s32 16, %v15323_v11 }
 0x250   : > { %v13813_v59 = vpop.eup %13812  ;;  %v2420_v41 = vmul.f32 %v13811_v53, %v15193_v18  ;;  %13826 = vrcp.f32 %v2359_v54 }
 0x251   : > { %v13815_v57 = vpop.eup %13814  ;;  %v2418_v24 = vmul.f32 %v13813_v59, %v15200_v51  ;;  %11835 = vmatmul.mubr.bf16.gmra.mrb[52].mxu1 %v2597_v49  ;;  %13828 = vrcp.f32 %v1405_v45  ;;  %v15325_v51 = vpop.f32.mrb[30].mxu1  ;;  %v2458_v59 = vld [vmem:[#allocation2 + $0x7] sm:$0xff]  ;;  %vm1916_vm0 = vcmp.ge.s32.totalorder %v1536_v63, 1  ;;  %v18413_v63 = vmov 0  ;;  %v2480_v31 = vld [vmem:[#allocation2 + $0xb7] sm:$0xff] }
 0x252   : > { %v13817_v5 = vpop.eup %13816  ;;  %2452 = vst [vmem:[#allocation2 + $0xe8] sm:$0xff] %v2420_v41  ;;  %v2421_v1 = vmul.f32 %v13815_v57, %v15212_v8  ;;  %11838 = vmatprep.mubr.bf16.mxu1 %v2598_v58  ;;  %v15327_v8 = vpop.f32.mrb[31].mxu1  ;;  %vm15337_vm2 = vmpackc.low %vm18153_vm1, %vm1916_vm0 }
 0x253   : > { %2450 = vst [vmem:[#allocation2 + $0xd8] sm:$0xff] %v2418_v24  ;;  %v2419_v19 = vmul.f32 %v13817_v5, %v15219_v42  ;;  %v13819_v18 = vpop.eup %13818  ;;  %v1550_v5 = vand.u32 15, %v1502_v61  ;;  %v2465_v61 = vld [vmem:[#allocation2 + $0x3f] sm:$0xff] }
 0x254   : > { %2453 = vst [vmem:[#allocation2 + $0xf0] sm:$0xff] %v2421_v1  ;;  %v2600_v29 = vpack.c.bf16 %v2421_v1, %v2420_v41  ;;  %v1406_v25 = vadd.f32 1.0, %v13819_v18  ;;  %v2459_v41 = vld [vmem:[#allocation2 + $0xf] sm:$0xff] }
 0x255   : > { %2451 = vst [vmem:[#allocation2 + $0xe0] sm:$0xff] %v2419_v19  ;;  %v2599_v28 = vpack.c.bf16 %v2419_v19, %v2418_v24  ;;  %v10103_v24 = vpack.c.bf16 %v2459_v41, %v2458_v59  ;;  %vm1918_vm3 = vcmp.ge.s32.totalorder %v1550_v5, 1  ;;  %v13418_v59 = vld [vmem:[%s18103_s7 + $0x90] sm:$0xff]   ;;  %v1510_v41 = vadd.s32 80, %v15323_v11 }
 0x256   : > { %13830 = vrcp.f32 %v1406_v25  ;;  %v1508_v25 = vadd.s32 64, %v15323_v11  ;;  %vm15354_vm5 = vmpackc.low %vm18153_vm1, %vm1918_vm3 }
 0x257   : > { %v13821_v58 = vpop.eup %13820  ;;  %v18414_v63 = vsel %vm15354_vm5, 4294967295, %v18413_v63 }
 0x258   : > { %v13823_v49 = vpop.eup %13822  ;;  %v2424_v42 = vmul.f32 %v13821_v58, %v15247_v30  ;;  %v1504_v30 = vadd.s32 32, %v15323_v11  ;;  %18415 = vst [vmem:[#allocation38_spill] sm:$0xff] %v18414_v63  ;;  %v18437_v58 = vmov 0 }
 0x259   : > { %v13825_v34 = vpop.eup %13824  ;;  %v2422_v60 = vmul.f32 %v13823_v49, %v15253_v48  ;;  %11839 = vmatmul.mubr.bf16.gmra.mrb[56].mxu1 %v2599_v28  ;;  %v2461_v28 = vld [vmem:[#allocation2 + $0x1f] sm:$0xff]  ;;  %v2463_v49 = vld [vmem:[#allocation2 + $0x2f] sm:$0xff] }
 0x25a   : > { %v13827_v54 = vpop.eup %13826  ;;  %2456 = vst [vmem:[#allocation2 + $0x108] sm:$0xff] %v2424_v42  ;;  %v2425_v53 = vmul.f32 %v13825_v34, %v15265_v4  ;;  %11842 = vmatprep.mubr.bf16.mxu1 %v2600_v29  ;;  %v18408_v4 = vmov 0  ;;  %v1506_v29 = vadd.s32 48, %v15323_v11  ;;  %v2460_v42 = vld [vmem:[#allocation2 + $0x17] sm:$0xff]  ;;  %v18416_v34 = vmov 0 }
 0x25b   : > { %2454 = vst [vmem:[#allocation2 + $0xf8] sm:$0xff] %v2422_v60  ;;  %v2423_v45 = vmul.f32 %v13827_v54, %v15269_v56  ;;  %v13829_v57 = vpop.eup %13828  ;;  %v18409_v4 = vsel %vm15337_vm2, 4294967295, %v18408_v4  ;;  %v1564_v56 = vand.u32 15, %v1504_v30  ;;  %v1512_v30 = vadd.s32 96, %v15323_v11 }
 0x25c   : > { %2457 = vst [vmem:[#allocation2 + $0x110] sm:$0xff] %v2425_v53  ;;  %18410 = vst [vmem:[#allocation35_spill] sm:$0xff] %v18409_v4  ;;  %v15342_v1 = vmul.f32 %v13829_v57, %v15207_v21  ;;  %v2462_v21 = vld [vmem:[#allocation2 + $0x27] sm:$0xff]  ;;  %v1578_v54 = vand.u32 15, %v1506_v29  ;;  %v13419_v29 = vld [vmem:[%s18103_s7 + $0x98] sm:$0xff]  }
 0x25d   : > { %2455 = vst [vmem:[#allocation2 + $0x100] sm:$0xff] %v2423_v45  ;;  %v2601_v48 = vpack.c.bf16 %v2423_v45, %v2422_v60  ;;  %vm1920_vm4 = vcmp.ge.s32.totalorder %v1564_v56, 1  ;;  %v13417_v60 = vld [vmem:[%s18103_s7 + $0x88] sm:$0xff]   ;;  %v10109_v53 = vpack.c.bf16 %v2463_v49, %v2462_v21  ;;  %v1592_v45 = vand.u32 15, %v1508_v25  ;;  %v13420_v49 = vld [vmem:[%s18103_s7 + $0xa0] sm:$0xff]  }
 0x25e   : > { %18411 = vst [vmem:[#allocation36_spill] sm:$0xff] %v15342_v1  ;;  %vm15359_vm6 = vmpackc.low %vm18153_vm1, %vm1920_vm4  ;;  %vm1922_vm7 = vcmp.ge.s32.totalorder %v1578_v54, 1  ;;  %v2466_v57 = vld [vmem:[#allocation2 + $0x47] sm:$0xff]  ;;  %v18422_v56 = vmov 0  ;;  %v1620_v25 = vand.u32 15, %v1512_v30  ;;  %v1514_v21 = vadd.s32 112, %v15323_v11 }
 0x25f   : > { %v18417_v34 = vsel %vm15359_vm6, 4294967295, %v18416_v34  ;;  %vm1924_vm8 = vcmp.ge.s32.totalorder %v1592_v45, 1  ;;  %vm15377_vm9 = vmpackc.low %vm18153_vm1, %vm1922_vm7  ;;  %v2471_v54 = vld [vmem:[#allocation2 + $0x6f] sm:$0xff]  ;;  %v18425_v45 = vmov 0 }
 0x260   : > { %v13831_v19 = vpop.eup %13830  ;;  %18418 = vst [vmem:[#allocation39_spill] sm:$0xff] %v18417_v34  ;;  %vm15382_vm10 = vmpackc.low %vm18153_vm1, %vm1924_vm8  ;;  %vm1928_vm12 = vcmp.ge.s32.totalorder %v1620_v25, 1  ;;  %v13421_v30 = vld [vmem:[%s18103_s7 + $0xa8] sm:$0xff]   ;;  %v15426_v25 = vadd.f32 %v15182_v3, %v15096_v17 }
 0x261   : > { %11843 = vmatmul.mubr.bf16.gmra.mrb[60].mxu1 %v2601_v48  ;;  %v15347_v18 = vmul.f32 %v13831_v19, %v15260_v15  ;;  %v10106_v15 = vpack.c.bf16 %v2461_v28, %v2460_v42  ;;  %v2467_v48 = vld [vmem:[#allocation2 + $0x4f] sm:$0xff]  ;;  %v18423_v56 = vsel %vm15382_vm10, 4294967295, %v18422_v56  ;;  %v1606_v19 = vand.u32 15, %v1510_v41  ;;  %v2469_v42 = vld [vmem:[#allocation2 + $0x5f] sm:$0xff]  ;;  %vm15404_vm14 = vmpackc.low %vm18153_vm1, %vm1928_vm12 }
 0x262   : > { %11862 = vmatprep.mubr.msk.bf16.mxu1 %vm15337_vm2, %v10103_v24  ;;  %v2464_v24 = vld [vmem:[#allocation2 + $0x37] sm:$0xff]  ;;  %18424 = vst [vmem:[#allocation41_spill] sm:$0xff] %v18423_v56  ;;  %v10115_v28 = vpack.c.bf16 %v2467_v48, %v2466_v57  ;;  %v18428_v41 = vmov 0 }
 0x263   : > { %18412 = vst [vmem:[#allocation37_spill] sm:$0xff] %v15347_v18  ;;  %v10112_v5 = vpack.c.bf16 %v2465_v61, %v2464_v24  ;;  %vm1926_vm11 = vcmp.ge.s32.totalorder %v1606_v19, 1  ;;  %v18429_v41 = vsel %vm15404_vm14, 4294967295, %v18428_v41  ;;  %v1634_v61 = vand.u32 15, %v1514_v21  ;;  %v2474_v21 = vld [vmem:[#allocation2 + $0x87] sm:$0xff] }
 0x264   : > { %vm15399_vm13 = vmpackc.low %vm18153_vm1, %vm1926_vm11  ;;  %18430 = vst [vmem:[#allocation43_spill] sm:$0xff] %v18429_v41  ;;  %v1518_v24 = vadd.s32 144, %v15323_v11  ;;  %v15421_v19 = vadd.f32 %v15182_v3, %v15088_v27  ;;  %v15435_v27 = vadd.f32 %v15113_v55, %v15182_v3  ;;  %v15571_v41 = vadd.f32 %v15182_v3, %v15232_v44 }
 0x265   : > { %v18426_v45 = vsel %vm15399_vm13, 4294967295, %v18425_v45  ;;  %vm1930_vm15 = vcmp.ge.s32.totalorder %v1634_v61, 1  ;;  %v15448_v61 = vadd.f32 %v15182_v3, %v15119_v20  ;;  %v15584_v44 = vadd.f32 %v15271_v52, %v15182_v3 }
 0x266   : > { %18427 = vst [vmem:[#allocation42_spill] sm:$0xff] %v18426_v45  ;;  %vm15429_vm3 = vmpackc.low %vm18153_vm1, %vm1930_vm15  ;;  %v1662_v17 = vand.u32 15, %v1518_v24  ;;  %v1313_v24 = vsub.f32 0.0, %v15435_v27  ;;  %v1320_v52 = vsub.f32 0.0, %v15571_v41 }
 0x267   : > { %v1311_v20 = vsub.f32 0.0, %v15448_v61  ;;  %18463 = vst [vmem:[#allocation51_spill] sm:$0xff] %v15584_v44 }
 0x268   : > { %vm1934_vm7 = vcmp.ge.s32.totalorder %v1662_v17, 1  ;;  %v2479_v17 = vld [vmem:[#allocation2 + $0xaf] sm:$0xff]  ;;  %v1351_v36 = vmul.f32 1.442695, %v1313_v24  ;;  %v1526_v24 = vadd.s32 208, %v15323_v11 }
 0x269   : > { %11863 = vmatmul.mubr.msk.bf16.vlgmr.msra.gmra.mrb[32].mxu1 %vm15354_vm5, %v10106_v15  ;;  %v1516_v15 = vadd.s32 128, %v15323_v11  ;;  %vm15469_vm11 = vmpackc.low %vm18153_vm1, %vm1934_vm7 }
 0x26a   : > { %11895 = vmatpush3.bf16.msra.mxu1 %v15280_v62  ;;  %11866 = vmatprep.mubr.msk.bf16.mxu1 %vm15359_vm6, %v10109_v53  ;;  %v18419_v62 = vmov 0  ;;  %v2468_v53 = vld [vmem:[#allocation2 + $0x57] sm:$0xff]  ;;  %v18438_v58 = vsel %vm15469_vm11, 4294967295, %v18437_v58 }
 0x26b   : > { %11896 = vmatprep.subr.bf16.mxu1 %v13417_v60  ;;  %v18420_v62 = vsel %vm15377_vm9, 4294967295, %v18419_v62  ;;  %v1648_v48 = vand.u32 15, %v1516_v15  ;;  %v18431_v15 = vmov 0  ;;  %18439 = vst [vmem:[#allocation46_spill] sm:$0xff] %v18438_v58  ;;  %v15528_v58 = vld [vmem:[#allocation2 + $0x9] sm:$0xff] }
 0x26c   : > { %18421 = vst [vmem:[#allocation40_spill] sm:$0xff] %v18420_v62  ;;  %v18432_v15 = vsel %vm15429_vm3, 4294967295, %v18431_v15  ;;  %v15595_v62 = vld [vmem:[#allocation2 + $0x21] sm:$0xff] }
 0x26d   : > { %vm1932_vm0 = vcmp.ge.s32.totalorder %v1648_v48, 1  ;;  %18433 = vst [vmem:[#allocation44_spill] sm:$0xff] %v18432_v15  ;;  %v1522_v48 = vadd.s32 176, %v15323_v11 }
 0x26e   : > { %11897 = vmatpush3.bf16.msra.mxu1 %v13417_v60  ;;  %v2470_v60 = vld [vmem:[#allocation2 + $0x67] sm:$0xff]  ;;  %vm15438_vm4 = vmpackc.low %vm18153_vm1, %vm1932_vm0 }
 0x26f   : > { %11898 = vmatprep.subr.bf16.mxu1 %v13418_v59  ;;  %v10121_v57 = vpack.c.bf16 %v2471_v54, %v2470_v60  ;;  %v18434_v54 = vmov 0 }
 0x270   : > { %v18435_v54 = vsel %vm15438_vm4, 4294967295, %v18434_v54 }
 0x271   : > { %11867 = vmatmul.mubr.msk.bf16.gmra.mrb[36].mxu1 %vm15377_vm9, %v10112_v5  ;;  %v13422_v5 = vld [vmem:[%s18103_s7 + $0xb0] sm:$0xff]   ;;  %18436 = vst [vmem:[#allocation45_spill] sm:$0xff] %v18435_v54 }
 0x272   : > { %11870 = vmatprep.mubr.msk.bf16.mxu1 %vm15382_vm10, %v10115_v28  ;;  %11899 = vmatpush3.bf16.msra.mxu1 %v13418_v59  ;;  %v10118_v59 = vpack.c.bf16 %v2469_v42, %v2468_v53  ;;  %v1520_v28 = vadd.s32 160, %v15323_v11  ;;  %v2472_v42 = vld [vmem:[#allocation2 + $0x77] sm:$0xff]  ;;  %v1307_v53 = vsub.f32 0.0, %v15421_v19 }
 0x273   : > { %11900 = vmatprep.subr.bf16.mxu1 %v13419_v29  ;;  %v15530_v54 = vld [vmem:[#allocation2 + $0x11] sm:$0xff] }
 0x276   : > { %11901 = vmatpush3.bf16.msra.mxu1 %v13419_v29  ;;  %v2473_v29 = vld [vmem:[#allocation2 + $0x7f] sm:$0xff] }
 0x277   : > { %11902 = vmatprep.subr.bf16.mxu1 %v13420_v49  ;;  %v10124_v60 = vpack.c.bf16 %v2473_v29, %v2472_v42  ;;  %v1339_v29 = vmul.f32 1.442695, %v1307_v53  ;;  %v1690_v53 = vand.u32 15, %v1522_v48  ;;  %v1347_v48 = vmul.f32 1.442695, %v1311_v20 }
 0x278   : > { %v1528_v20 = vadd.s32 224, %v15323_v11 }
 0x279   : > { %11871 = vmatmul.mubr.msk.bf16.gmra.mrb[40].mxu1 %vm15399_vm13, %v10118_v59  ;;  %v13423_v59 = vld [vmem:[%s18103_s7 + $0xb8] sm:$0xff]   ;;  %13832 = vpow2.f32 %v1339_v29  ;;  %vm15486_vm15 = vcmp.ge.s32.totalorder %v1690_v53, 1  ;;  %v15493_v29 = vadd.f32 %v15156_v43, %v15182_v3  ;;  %v15507_v43 = vadd.f32 %v15165_v46, %v15182_v3  ;;  %v2482_v53 = vld [vmem:[#allocation2 + $0xc7] sm:$0xff] }
 0x27a   : > { %11874 = vmatprep.mubr.msk.bf16.mxu1 %vm15404_vm14, %v10121_v57  ;;  %11903 = vmatpush3.bf16.msra.mxu1 %v13420_v49  ;;  %v2475_v49 = vld [vmem:[#allocation2 + $0x8f] sm:$0xff]  ;;  %v1308_v57 = vsub.f32 0.0, %v15426_v25  ;;  %vm15517_vm7 = vmpackc.low %vm18153_vm1, %vm15486_vm15  ;;  %v1732_v46 = vand.u32 15, %v1528_v20  ;;  %v1503_v20 = vadd.s32 24, %v15323_v11 }
 0x27b   : > { %11904 = vmatprep.subr.bf16.mxu1 %v13421_v30  ;;  %v10127_v55 = vpack.c.bf16 %v2475_v49, %v2474_v21  ;;  %v2477_v21 = vld [vmem:[#allocation2 + $0x9f] sm:$0xff]  ;;  %v1524_v49 = vadd.s32 192, %v15323_v11 }
 0x27c   : > { %v1341_v42 = vmul.f32 1.442695, %v1308_v57 }
 0x27d   : > { %v1704_v32 = vand.u32 15, %v1524_v49  ;;  %v15501_v49 = vadd.f32 %v15182_v3, %v15162_v10  ;;  %v1718_v10 = vand.u32 15, %v1526_v24 }
 0x27e   : > { %11905 = vmatpush3.bf16.msra.mxu1 %v13421_v30  ;;  %v1676_v30 = vand.u32 15, %v1520_v28  ;;  %v15461_v28 = vld [vmem:[%s18103_s7 + $0xc0] sm:$0xff]   ;;  %13834 = vpow2.f32 %v1341_v42  ;;  %v1530_v42 = vadd.s32 240, %v15323_v11 }
 0x27f   : > { %11906 = vmatprep.subr.bf16.mxu1 %v13422_v5  ;;  %13836 = vpow2.f32 %v1351_v36  ;;  %vm1940_vm0 = vcmp.ge.s32.totalorder %v1704_v32, 1  ;;  %v15511_v36 = vadd.f32 %v15182_v3, %v15172_v14  ;;  %v18448_v14 = vmov 0 }
 0x280   : > { %vm1936_vm8 = vcmp.ge.s32.totalorder %v1676_v30, 1  ;;  %v15475_v30 = vadd.f32 %v15182_v3, %v15129_v16  ;;  %13838 = vpow2.f32 %v1347_v48  ;;  %v18445_v48 = vmov 0 }
 0x281   : > { %11875 = vmatmul.mubr.msk.bf16.gmra.mrb[44].mxu1 %vm15429_vm3, %v10124_v60  ;;  %v2478_v60 = vld [vmem:[#allocation2 + $0xa7] sm:$0xff]  ;;  %vm15478_vm12 = vmpackc.low %vm18153_vm1, %vm1936_vm8  ;;  %v18446_v48 = vsel %vm15517_vm7, 4294967295, %v18445_v48  ;;  %v1746_v24 = vand.u32 15, %v1530_v42  ;;  %vm15536_vm15 = vcmp.ge.s32.totalorder %v1718_v10, 1  ;;  %v2485_v10 = vld [vmem:[#allocation2 + $0xdf] sm:$0xff] }
 0x282   : > { %11878 = vmatprep.mubr.msk.bf16.mxu1 %vm15438_vm4, %v10127_v55  ;;  %11907 = vmatpush3.bf16.msra.mxu1 %v13422_v5  ;;  %v15466_v5 = vadd.f32 %v15123_v13, %v15182_v3  ;;  %v2476_v55 = vld [vmem:[#allocation2 + $0x97] sm:$0xff]  ;;  %v18440_v13 = vmov 0  ;;  %v10133_v37 = vpack.c.bf16 %v2479_v17, %v2478_v60  ;;  %v1501_v60 = vadd.s32 8, %v15323_v11  ;;  %v2481_v17 = vld [vmem:[#allocation2 + $0xbf] sm:$0xff]  ;;  %18447 = vst [vmem:[#allocation48_spill] sm:$0xff] %v18446_v48  ;;  %vm15523_vm8 = vmpackc.low %vm18153_vm1, %vm1940_vm0 }
 0x283   : > { %11908 = vmatprep.subr.bf16.mxu1 %v13423_v59  ;;  %v10130_v57 = vpack.c.bf16 %v2477_v21, %v2476_v55  ;;  %v18441_v13 = vsel %vm15478_vm12, 4294967295, %v18440_v13  ;;  %v1312_v21 = vsub.f32 0.0, %v15475_v30  ;;  %v2483_v55 = vld [vmem:[#allocation2 + $0xcf] sm:$0xff]  ;;  %v10136_v1 = vpack.c.bf16 %v2481_v17, %v2480_v31  ;;  %v13833_v31 = vpop.eup %13832 }
 0x284   : > { %18442 = vst [vmem:[#allocation47_spill] sm:$0xff] %v18441_v13  ;;  %v18449_v14 = vsel %vm15523_vm8, 4294967295, %v18448_v14  ;;  %v1543_v18 = vand.u32 15, %v1501_v60  ;;  %v1318_v13 = vsub.f32 0.0, %v15507_v43  ;;  %v10139_v16 = vpack.c.bf16 %v2483_v55, %v2482_v53 }
 0x285   : > { %v1349_v32 = vmul.f32 1.442695, %v1312_v21  ;;  %18450 = vst [vmem:[#allocation49_spill] sm:$0xff] %v18449_v14  ;;  %v1316_v21 = vsub.f32 0.0, %v15511_v36  ;;  %v15542_v60 = vadd.f32 %v15214_v0, %v15182_v3  ;;  %vm15546_vm0 = vcmp.ge.s32.totalorder %v1732_v46, 1  ;;  %v2484_v0 = vld [vmem:[#allocation2 + $0xd7] sm:$0xff] }
 0x286   : > { %11909 = vmatpush3.bf16.msra.mxu1 %v13423_v59  ;;  %v1314_v59 = vsub.f32 0.0, %v15466_v5  ;;  %vm15554_vm1 = vcmp.ge.s32.totalorder %v1746_v24, 1  ;;  %v1361_v14 = vmul.f32 1.442695, %v1318_v13  ;;  %v15562_v46 = vadd.f32 %v15226_v6, %v15182_v3 }
 0x287   : > { %11942 = vmatprep.subr.bf16.mxu1 %v15461_v28  ;;  %v1505_v24 = vadd.s32 40, %v15323_v11  ;;  %v1357_v15 = vmul.f32 1.442695, %v1316_v21  ;;  %v1403_v45 = vadd.f32 1.0, %v13833_v31  ;;  %v1321_v56 = vsub.f32 0.0, %v15542_v60 }
 0x288   : > { %v13835_v53 = vpop.eup %13834  ;;  %v18464_v31 = vmov 0  ;;  %v1511_v48 = vadd.s32 88, %v15323_v11 }
 0x289   : > { %11879 = vmatmul.mubr.msk.bf16.gmra.mrb[48].mxu1 %vm15469_vm11, %v10130_v57  ;;  %v1317_v57 = vsub.f32 0.0, %v15493_v29  ;;  %v1404_v6 = vadd.f32 1.0, %v13835_v53  ;;  %v15593_v53 = vld [vmem:[#allocation2 + $0x19] sm:$0xff] }
 0x28a   : > { %11882 = vmatprep.mubr.msk.bf16.mxu1 %vm15478_vm12, %v10133_v37  ;;  %v1353_v37 = vmul.f32 1.442695, %v1314_v59  ;;  %v1315_v59 = vsub.f32 0.0, %v15501_v49 }
 0x28b   : > { %v1359_v42 = vmul.f32 1.442695, %v1317_v57  ;;  %v18478_v57 = vmov 0 }
 0x28c   : > { %13840 = vpow2.f32 %v1353_v37  ;;  %v1355_v55 = vmul.f32 1.442695, %v1315_v59  ;;  %v2487_v59 = vld [vmem:[#allocation2 + $0xef] sm:$0xff]  ;;  %v15603_v37 = vadd.f32 %v15182_v3, %v15274_v47 }
 0x28d   : > { %13842 = vpow2.f32 %v1349_v32  ;;  %v2486_v32 = vld [vmem:[#allocation2 + $0xe7] sm:$0xff] }
 0x28e   : > { %13844 = vpow2.f32 %v1359_v42  ;;  %v10145_v17 = vpack.c.bf16 %v2487_v59, %v2486_v32  ;;  %18467 = vst [vmem:[#allocation53_spill] sm:$0xff] %v15603_v37  ;;  %v1367_v32 = vmul.f32 1.442695, %v1321_v56  ;;  %v15615_v47 = vld [vmem:[#allocation2 + $0x29] sm:$0xff] }
 0x28f   : > { %13846 = vpow2.f32 %v1355_v55  ;;  %v1322_v55 = vsub.f32 0.0, %v15562_v46 }
 0x290   : > { %13848 = vpow2.f32 %v1361_v14  ;;  %v15609_v14 = vadd.f32 %v15282_v33, %v15182_v3  ;;  %v2488_v33 = vld [vmem:[#allocation2 + $0xf7] sm:$0xff] }
 0x291   : > { %11883 = vmatmul.mubr.msk.bf16.gmra.mrb[52].mxu1 %vm15517_vm7, %v10136_v1  ;;  %v15552_v1 = vadd.f32 %v15182_v3, %v15223_v35  ;;  %v1557_v35 = vand.u32 15, %v1503_v20  ;;  %vm18459_vm7 = vmmov 1   ;;  %v10142_v20 = vpack.c.bf16 %v2485_v10, %v2484_v0  ;;  %v15598_v0 = vld [vmem:[#allocation2 + $0x31] sm:$0xff] }
 0x292   : > { %11886 = vmatprep.mubr.msk.bf16.mxu1 %vm15523_vm8, %v10139_v16  ;;  %v13837_v16 = vpop.eup %13836  ;;  %vm15564_vm8 = vcmp.le.s32.totalorder %v1543_v18, 14  ;;  %vm15577_vm12 = vmpackc.low %vm18459_vm7, %vm15536_vm15  ;;  %v18460_v18 = vmov 0  ;;  %13850 = vpow2.f32 %v1357_v15  ;;  %18468 = vst [vmem:[#allocation54_spill] sm:$0xff] %v15609_v14  ;;  %v1365_v15 = vmul.f32 1.442695, %v1320_v52 }
 0x293   : > { %v13839_v13 = vpop.eup %13838  ;;  %v18461_v18 = vsel %vm15577_vm12, 4294967295, %v18460_v18  ;;  %v1319_v21 = vsub.f32 0.0, %v15552_v1  ;;  %vm15589_vm11 = vmpackc.low %vm18459_vm7, %vm15546_vm0  ;;  %v1409_v42 = vadd.f32 1.0, %v13837_v16  ;;  %13852 = vrcp.f32 %v1403_v45 }
 0x294   : > { %18462 = vst [vmem:[#allocation50_spill] sm:$0xff] %v18461_v18  ;;  %v18465_v31 = vsel %vm15589_vm11, 4294967295, %v18464_v31  ;;  %v1407_v10 = vadd.f32 1.0, %v13839_v13  ;;  %v1571_v16 = vand.u32 15, %v1505_v24  ;;  %13854 = vrcp.f32 %v1404_v6 }
 0x295   : > { %18466 = vst [vmem:[#allocation52_spill] sm:$0xff] %v18465_v31  ;;  %v1363_v13 = vmul.f32 1.442695, %v1319_v21  ;;  %13856 = vrcp.f32 %v1409_v42  ;;  %vm15618_vm15 = vcmp.le.s32.totalorder %v1557_v35, 14  ;;  %v1369_v45 = vmul.f32 1.442695, %v1322_v55 }
 0x296   : > { %v13841_v59 = vpop.eup %13840  ;;  %13858 = vrcp.f32 %v1407_v10  ;;  %v1507_v6 = vadd.s32 56, %v15323_v11  ;;  %v1323_v31 = vsub.f32 0.0, %v15603_v37  ;;  %vm15626_vm0 = vcmp.le.s32.totalorder %v1571_v16, 14  ;;  %v15630_v35 = vld [vmem:[#allocation2 + $0x39] sm:$0xff]  ;;  %v15640_v10 = vld [vmem:[#allocation2 + $0x41] sm:$0xff] }
 0x297   : > { %v13843_v24 = vpop.eup %13842  ;;  %v1410_v21 = vadd.f32 1.0, %v13841_v59  ;;  %13860 = vpow2.f32 %v1367_v32  ;;  %v1326_v42 = vsub.f32 0.0, %v15609_v14  ;;  %v18473_v55 = vmov 0  ;;  %v3049_v14 = vld [vmem:[#allocation2 + $0x69] sm:$0xff] }
 0x298   : > { %v1509_v52 = vadd.s32 72, %v15323_v11  ;;  %13862 = vpow2.f32 %v1363_v13  ;;  %v15645_v59 = vadd.f32 %v15182_v3, %v15287_v22  ;;  %v13845_v32 = vpop.eup %13844  ;;  %v1408_v63 = vadd.f32 1.0, %v13843_v24 }
 0x299   : > { %11887 = vmatmul.mubr.msk.bf16.gmra.mrb[56].mxu1 %vm15577_vm12, %v10142_v20  ;;  %v1325_v20 = vsub.f32 0.0, %v15584_v44  ;;  %13864 = vpow2.f32 %v1369_v45  ;;  %v15658_v13 = vadd.f32 %v15295_v40, %v15182_v3  ;;  %v1585_v4 = vand.u32 15, %v1507_v6  ;;  %v3046_v6 = vld [vmem:[#allocation2 + $0x51] sm:$0xff] }
 0x29a   : > { %11890 = vmatprep.mubr.msk.bf16.mxu1 %vm15589_vm11, %v10145_v17  ;;  %v2489_v17 = vld [vmem:[#allocation2 + $0xff] sm:$0xff]  ;;  %vm15636_vm11 = vmpackc.low %vm18459_vm7, %vm15554_vm1  ;;  %18476 = vst [vmem:[#allocation56_spill] sm:$0xff] %v15645_v59  ;;  %13866 = vpow2.f32 %v1365_v15  ;;  %v1371_v22 = vmul.f32 1.442695, %v1323_v31  ;;  %v1377_v45 = vmul.f32 1.442695, %v1326_v42  ;;  %v15671_v40 = vadd.f32 %v15299_v2, %v15182_v3 }
 0x29b   : > { %v18474_v55 = vsel %vm15636_vm11, 4294967295, %v18473_v55  ;;  %v1375_v16 = vmul.f32 1.442695, %v1325_v20  ;;  %v15647_v34 = vpack.c.bf16 %v2489_v17, %v2488_v33  ;;  %vm15652_vm1 = vmpackc.low %vm15564_vm8, %vm18459_vm7  ;;  %18481 = vst [vmem:[#allocation59_spill] sm:$0xff] %v15658_v13  ;;  %v13847_v20 = vpop.eup %13846  ;;  %v15662_v33 = vadd.f32 %v15182_v3, %v15297_v12 }
 0x29c   : > { %18475 = vst [vmem:[#allocation55_spill] sm:$0xff] %v18474_v55  ;;  %v18479_v57 = vsel %vm15652_vm1, 4294967295, %v18478_v57  ;;  %v13849_v17 = vpop.eup %13848  ;;  %13868 = vrcp.f32 %v1410_v21  ;;  %18483 = vst [vmem:[#allocation61_spill] sm:$0xff] %v15671_v40  ;;  %v18484_v31 = vpack.c.bf16 %v15530_v54, %v15528_v58  ;;  %v1413_v12 = vadd.f32 1.0, %v13845_v32  ;;  %v3045_v54 = vld [vmem:[#allocation2 + $0x49] sm:$0xff] }
 0x29d   : > { %18477 = vst [vmem:[#allocation57_spill] sm:$0xff] %v15647_v34  ;;  %18480 = vst [vmem:[#allocation58_spill] sm:$0xff] %v18479_v57  ;;  %v13851_v15 = vpop.eup %13850  ;;  %v1599_v24 = vand.u32 15, %v1509_v52  ;;  %13870 = vpow2.f32 %v1375_v16  ;;  %v1324_v21 = vsub.f32 0.0, %v15645_v59  ;;  %v1411_v42 = vadd.f32 1.0, %v13847_v20 }
 0x29e   : > { %18482 = vst [vmem:[#allocation60_spill] sm:$0xff] %v15662_v33  ;;  %v13853_v55 = vpop.eup %13852  ;;  %13872 = vrcp.f32 %v1408_v63  ;;  %v1329_v3 = vsub.f32 0.0, %v15658_v13  ;;  %vm15681_vm8 = vcmp.le.s32.totalorder %v1585_v4, 14  ;;  %v1327_v52 = vsub.f32 0.0, %v15662_v33  ;;  %v3047_v63 = vld [vmem:[#allocation2 + $0x59] sm:$0xff] }
 0x29f   : > { %v13855_v2 = vpop.eup %13854  ;;  %13874 = vpow2.f32 %v1371_v22  ;;  %v1412_v32 = vadd.f32 1.0, %v13851_v15  ;;  %v1330_v20 = vsub.f32 0.0, %v15671_v40  ;;  %v18487_v4 = vmov 0  ;;  %v3048_v22 = vld [vmem:[#allocation2 + $0x61] sm:$0xff]  ;;  %v3050_v15 = vld [vmem:[#allocation2 + $0x71] sm:$0xff] }
 0x2a0   : > { %v13857_v16 = vpop.eup %13856  ;;  %13876 = vpow2.f32 %v1377_v45  ;;  %v15702_v45 = vld [vmem:[%s18100_s4] ss:$0 sm:$0xff]  ;;  %v1613_v33 = vand.u32 15, %v1511_v48  ;;  %v15723_v59 = vmul.f32 %v13853_v55, %v15421_v19  ;;  %v15726_v18 = vmul.f32 %v13855_v2, %v15426_v25 }
 0x2a1   : > { %11891 = vmatmul.mubr.msk.bf16.gmra.mrb[60].mxu1 %vm15636_vm11, %v15647_v34  ;;  %v1414_v34 = vadd.f32 1.0, %v13849_v17  ;;  %v13859_v57 = vpop.eup %13858  ;;  %13878 = vrcp.f32 %v1413_v12  ;;  %v15697_v17 = vadd.s32 104, %v15323_v11  ;;  %v18489_v12 = vmov 0 }
 0x2a2   : > { %11910 = vmatprep.mubr.msk.bf16.mxu1 %vm15652_vm1, %v18484_v31  ;;  %v15686_v31 = vpack.c.bf16 %v3046_v6, %v3045_v54  ;;  %vm15692_vm1 = vmpackc.low %vm15618_vm15, %vm18459_vm7  ;;  %v1373_v6 = vmul.f32 1.442695, %v1324_v21  ;;  %v15706_v54 = vadd.f32 %v15702_v45, %v15301_v38  ;;  %v13861_v56 = vpop.eup %13860  ;;  %13880 = vrcp.f32 %v1411_v42  ;;  %v13425_v21 = vld [vmem:[%s18103_s7 + $0xc8] sm:$0xff]   ;;  %18493 = vst [vmem:[#allocation62_spill] sm:$0xff] %v15723_v59 }
 0x2a3   : > { %v18488_v4 = vsel %vm15692_vm1, 4294967295, %v18487_v4  ;;  %vm15711_vm15 = vmpackc.low %vm15626_vm0, %vm18459_vm7  ;;  %vm15718_vm11 = vcmp.le.s32.totalorder %v1599_v24, 14  ;;  %v1383_v38 = vmul.f32 1.442695, %v1329_v3  ;;  %v13863_v13 = vpop.eup %13862  ;;  %18494 = vst [vmem:[#allocation63_spill] sm:$0xff] %v15726_v18  ;;  %13882 = vrcp.f32 %v1414_v34  ;;  %v3713_v18 = vld [vmem:[#allocation2 + $0x18] sm:$0xff] }
 0x2a4   : > { %v18490_v12 = vsel %vm15711_vm15, 4294967295, %v18489_v12  ;;  %v1379_v42 = vmul.f32 1.442695, %v1327_v52  ;;  %v13865_v37 = vpop.eup %13864  ;;  %v18495_v44 = vpack.c.bf16 %v15595_v62, %v15593_v53  ;;  %13884 = vrcp.f32 %v1412_v32 }
 0x2a5   : > { %v15733_v48 = vpack.c.bf16 %v3048_v22, %v3047_v63  ;;  %v15735_v24 = vpack.c.bf16 %v3050_v15, %v3049_v14  ;;  %v1385_v19 = vmul.f32 1.442695, %v1330_v20  ;;  %v13867_v55 = vpop.eup %13866  ;;  %v18496_v34 = vpack.c.bf16 %v15598_v0, %v15615_v47  ;;  %v13427_v22 = vld [vmem:[%s18103_s7 + $0xd8] sm:$0xff]  }
 0x2a6   : > { %v1417_v25 = vadd.f32 1.0, %v13861_v56  ;;  %v1627_v62 = vand.u32 15, %v15697_v17  ;;  %13886 = vpow2.f32 %v1373_v6  ;;  %v13869_v53 = vpop.eup %13868  ;;  %v15746_v14 = vmul.f32 %v13857_v16, %v15435_v27 }
 0x2a7   : > { %v1415_v3 = vadd.f32 1.0, %v13863_v13  ;;  %vm15751_vm0 = vcmp.le.s32.totalorder %v1613_v33, 14  ;;  %13888 = vpow2.f32 %v1383_v38  ;;  %v15757_v47 = vadd.f32 %v15702_v45, %v15307_v39  ;;  %v13871_v2 = vpop.eup %13870  ;;  %v18539_v13 = vld [vmem:[#allocation51_spill] sm:$0xff] }
 0x2a8   : > { %18497 = vst [vmem:[#allocation64_spill] sm:$0xff] %v15746_v14  ;;  %v1418_v52 = vadd.f32 1.0, %v13865_v37  ;;  %13890 = vpow2.f32 %v1379_v42  ;;  %v15761_v27 = vadd.f32 %v15702_v45, %v15309_v23  ;;  %v13873_v16 = vpop.eup %13872  ;;  %v15766_v33 = vmul.f32 %v13859_v57, %v15448_v61  ;;  %v3402_v14 = vld [vmem:[#allocation2 + $0xef] sm:$0xff] }
 0x2a9   : > { %11911 = vmatmul.mubr.msk.bf16.vlgmr.msra.gmra.mrb[32].mxu1 %vm15692_vm1, %v18495_v44  ;;  %v1328_v44 = vsub.f32 0.0, %v15706_v54  ;;  %v1416_v32 = vadd.f32 1.0, %v13867_v55  ;;  %13892 = vpow2.f32 %v1385_v19  ;;  %v15770_v39 = vadd.f32 %v15702_v45, %v15311_v9  ;;  %v13875_v63 = vpop.eup %13874  ;;  %vm15789_vm1 = vmpackc.low %vm15718_vm11, %vm18459_vm7 }
 0x2aa   : > { %11943 = vmatpush3.bf16.msra.mxu1 %v15461_v28  ;;  %11914 = vmatprep.mubr.msk.bf16.mxu1 %vm15711_vm15, %v18496_v34  ;;  %v13426_v28 = vld [vmem:[%s18103_s7 + $0xd0] sm:$0xff]   ;;  %18500 = vst [vmem:[#allocation65_spill] sm:$0xff] %v15766_v33  ;;  %vm15775_vm15 = vmpackc.low %vm15681_vm8, %vm18459_vm7  ;;  %v18501_v23 = vmov 0  ;;  %13894 = vrcp.f32 %v1417_v25  ;;  %v15780_v37 = vadd.s32 120, %v15323_v11  ;;  %v15784_v57 = vadd.f32 %v15702_v45, %v15313_v26  ;;  %v13877_v9 = vpop.eup %13876  ;;  %v3715_v33 = vld [vmem:[#allocation2 + $0x28] sm:$0xff] }
 0x2ab   : > { %11944 = vmatprep.subr.bf16.mxu1 %v13425_v21  ;;  %v18502_v23 = vsel %vm15775_vm15, 4294967295, %v18501_v23  ;;  %v1381_v61 = vmul.f32 1.442695, %v1328_v44  ;;  %v18503_v58 = vmov 0  ;;  %13896 = vrcp.f32 %v1415_v3  ;;  %v13879_v15 = vpop.eup %13878  ;;  %vm15851_vm8 = vmpackc.low %vm15751_vm0, %vm18459_vm7 }
 0x2ac   : > { %v18504_v58 = vsel %vm15789_vm1, 4294967295, %v18503_v58  ;;  %v1421_v20 = vadd.f32 1.0, %v13871_v2  ;;  %v15797_v17 = vadd.s32 136, %v15323_v11  ;;  %v1333_v26 = vsub.f32 0.0, %v15757_v47 }
 0x2ad   : > { %v15801_v6 = vmul.f32 %v13869_v53, %v15466_v5  ;;  %v15804_v40 = vmul.f32 %v13873_v16, %v15475_v30  ;;  %13898 = vrcp.f32 %v1418_v52  ;;  %v1331_v56 = vsub.f32 0.0, %v15761_v27 }
 0x2ae   : > { %11945 = vmatpush3.bf16.msra.mxu1 %v13425_v21  ;;  %v13881_v21 = vpop.eup %13880  ;;  %v18507_v38 = vpack.c.bf16 %v15640_v10, %v15630_v35  ;;  %13900 = vrcp.f32 %v1416_v32  ;;  %vm15812_vm11 = vcmp.le.s32.totalorder %v1627_v62, 14  ;;  %v1419_v5 = vadd.f32 1.0, %v13875_v63  ;;  %v13428_v62 = vld [vmem:[%s18103_s7 + $0xe0] sm:$0xff]  }
 0x2af   : > { %11946 = vmatprep.subr.bf16.mxu1 %v13426_v28  ;;  %18505 = vst [vmem:[#allocation66_spill] sm:$0xff] %v15801_v6  ;;  %18506 = vst [vmem:[#allocation67_spill] sm:$0xff] %v15804_v40  ;;  %v1334_v19 = vsub.f32 0.0, %v15770_v39  ;;  %v13883_v30 = vpop.eup %13882  ;;  %v1422_v55 = vadd.f32 1.0, %v13877_v9  ;;  %v1641_v35 = vand.u32 15, %v15780_v37  ;;  %13902 = vpow2.f32 %v1381_v61  ;;  %v3714_v40 = vld [vmem:[#allocation2 + $0x20] sm:$0xff] }
 0x2b0   : > { %v1332_v10 = vsub.f32 0.0, %v15784_v57  ;;  %v13885_v34 = vpop.eup %13884  ;;  %13904 = vrcp.f32 %v1421_v20  ;;  %v1655_v25 = vand.u32 15, %v15797_v17  ;;  %v1391_v44 = vmul.f32 1.442695, %v1333_v26 }
 0x2b1   : > { %11915 = vmatmul.mubr.msk.bf16.gmra.mrb[36].mxu1 %vm15775_vm15, %v18507_v38  ;;  %v15828_v53 = vadd.f32 %v15702_v45, %v15318_v7  ;;  %v13887_v3 = vpop.eup %13886  ;;  %v15832_v2 = vadd.f32 %v15702_v45, %v15321_v50  ;;  %v15839_v63 = vmul.f32 %v13879_v15, %v15493_v29  ;;  %13906 = vrcp.f32 %v1419_v5 }
 0x2b2   : > { %11918 = vmatprep.mubr.msk.bf16.mxu1 %vm15789_vm1, %v15686_v31  ;;  %11947 = vmatpush3.bf16.msra.mxu1 %v13426_v28  ;;  %v1387_v28 = vmul.f32 1.442695, %v1331_v56  ;;  %v13889_v32 = vpop.eup %13888  ;;  %v1393_v37 = vmul.f32 1.442695, %v1334_v19  ;;  %v15843_v7 = vadd.f32 %v15702_v45, %v15325_v51  ;;  %v15846_v50 = vmul.f32 %v13881_v21, %v15501_v49  ;;  %vm15865_vm1 = vmpackc.low %vm15812_vm11, %vm18459_vm7  ;;  %v3052_v19 = vld [vmem:[#allocation2 + $0x81] sm:$0xff] }
 0x2b3   : > { %11948 = vmatprep.subr.bf16.mxu1 %v13427_v22  ;;  %18510 = vst [vmem:[#allocation68_spill] sm:$0xff] %v15839_v63  ;;  %v13891_v61 = vpop.eup %13890  ;;  %v18512_v9 = vmov 0  ;;  %13908 = vrcp.f32 %v1422_v55  ;;  %v1389_v29 = vmul.f32 1.442695, %v1332_v10  ;;  %v15857_v20 = vadd.f32 %v15702_v45, %v15327_v8 }
 0x2b4   : > { %18511 = vst [vmem:[#allocation69_spill] sm:$0xff] %v15846_v50  ;;  %v18513_v9 = vsel %vm15851_vm8, 4294967295, %v18512_v9  ;;  %v13893_v51 = vpop.eup %13892  ;;  %v15860_v17 = vmul.f32 %v13883_v30, %v15507_v43  ;;  %v18515_v49 = vmov 0  ;;  %v1420_v0 = vadd.f32 1.0, %v13887_v3  ;;  %v3400_v50 = vld [vmem:[#allocation2 + $0xdf] sm:$0xff] }
 0x2b5   : > { %v18516_v49 = vsel %vm15865_vm1, 4294967295, %v18515_v49  ;;  %13910 = vpow2.f32 %v1391_v44  ;;  %v1337_v8 = vsub.f32 0.0, %v15828_v53  ;;  %v13895_v45 = vpop.eup %13894  ;;  %v15874_v43 = vmul.f32 %v13885_v34, %v15511_v36  ;;  %v3051_v36 = vld [vmem:[#allocation2 + $0x79] sm:$0xff]  ;;  %v3054_v44 = vld [vmem:[#allocation2 + $0x91] sm:$0xff] }
 0x2b6   : > { %11949 = vmatpush3.bf16.msra.mxu1 %v13427_v22  ;;  %18514 = vst [vmem:[#allocation70_spill] sm:$0xff] %v15860_v17  ;;  %v13429_v22 = vld [vmem:[%s18103_s7 + $0xe8] sm:$0xff]   ;;  %v1425_v26 = vadd.f32 1.0, %v13889_v32  ;;  %13912 = vpow2.f32 %v1387_v28  ;;  %v1335_v15 = vsub.f32 0.0, %v15832_v2  ;;  %v13897_v56 = vpop.eup %13896  ;;  %vm15880_vm0 = vcmp.le.s32.totalorder %v1641_v35, 14  ;;  %v13430_v32 = vld [vmem:[%s18103_s7 + $0xf0] sm:$0xff]  }
 0x2b7   : > { %11950 = vmatprep.subr.bf16.mxu1 %v13428_v62  ;;  %18517 = vst [vmem:[#allocation71_spill] sm:$0xff] %v15874_v43  ;;  %v1423_v38 = vadd.f32 1.0, %v13891_v61  ;;  %13914 = vpow2.f32 %v1393_v37  ;;  %v1338_v42 = vsub.f32 0.0, %v15843_v7  ;;  %v13899_v5 = vpop.eup %13898  ;;  %v1426_v30 = vadd.f32 1.0, %v13893_v51  ;;  %v15950_v34 = vld [vmem:[%s18103_s7 + $0x100] sm:$0xff]   ;;  %v3398_v17 = vld [vmem:[#allocation2 + $0xcf] sm:$0xff] }
 0x2b8   : > { %v1519_v55 = vadd.s32 152, %v15323_v11  ;;  %13916 = vpow2.f32 %v1389_v29  ;;  %v1336_v35 = vsub.f32 0.0, %v15857_v20  ;;  %v13901_v10 = vpop.eup %13900  ;;  %vm15890_vm11 = vcmp.le.s32.totalorder %v1655_v25, 14 }
 0x2b9   : > { %11919 = vmatmul.mubr.msk.bf16.gmra.mrb[40].mxu1 %vm15851_vm8, %v15733_v48  ;;  %13918 = vrcp.f32 %v1420_v0  ;;  %v1521_v3 = vadd.s32 168, %v15323_v11  ;;  %v1399_v28 = vmul.f32 1.442695, %v1337_v8  ;;  %v13903_v37 = vpop.eup %13902  ;;  %v15902_v51 = vpack.c.bf16 %v3052_v19, %v3051_v36  ;;  %v3053_v0 = vld [vmem:[#allocation2 + $0x89] sm:$0xff]  ;;  %vm15919_vm8 = vmpackc.low %vm15890_vm11, %vm18459_vm7 }
 0x2ba   : > { %11922 = vmatprep.mubr.msk.bf16.mxu1 %vm15865_vm1, %v15735_v24  ;;  %11951 = vmatpush3.bf16.msra.mxu1 %v13428_v62  ;;  %13920 = vrcp.f32 %v1425_v26  ;;  %v1395_v62 = vmul.f32 1.442695, %v1335_v15  ;;  %v13905_v29 = vpop.eup %13904  ;;  %v1401_v16 = vmul.f32 1.442695, %v1338_v42  ;;  %vm15907_vm1 = vmpackc.low %vm15880_vm0, %vm18459_vm7  ;;  %v18522_v8 = vmov 0 }
 0x2bb   : > { %11952 = vmatprep.subr.bf16.mxu1 %v13429_v22  ;;  %13922 = vrcp.f32 %v1423_v38  ;;  %v18523_v8 = vsel %vm15907_vm1, 4294967295, %v18522_v8  ;;  %v15911_v26 = vpack.c.bf16 %v3054_v44, %v3053_v0  ;;  %v1669_v15 = vand.u32 15, %v1519_v55  ;;  %v13907_v25 = vpop.eup %13906 }
 0x2bc   : > { %18524 = vst [vmem:[#allocation72_spill] sm:$0xff] %v18523_v8  ;;  %13924 = vrcp.f32 %v1426_v30  ;;  %v1397_v61 = vmul.f32 1.442695, %v1336_v35  ;;  %v15914_v36 = vmul.f32 %v13895_v45, %v15542_v60  ;;  %v18526_v38 = vmov 0 }
 0x2bd   : > { %v18527_v38 = vsel %vm15919_vm8, 4294967295, %v18526_v38  ;;  %v1424_v21 = vadd.f32 1.0, %v13903_v37  ;;  %v1683_v42 = vand.u32 15, %v1521_v3  ;;  %13926 = vpow2.f32 %v1399_v28  ;;  %v13909_v19 = vpop.eup %13908 }
 0x2be   : > { %11953 = vmatpush3.bf16.msra.mxu1 %v13429_v22  ;;  %18525 = vst [vmem:[#allocation73_spill] sm:$0xff] %v15914_v36  ;;  %18528 = vst [vmem:[#allocation74_spill] sm:$0xff] %v18527_v38  ;;  %v13431_v22 = vld [vmem:[%s18103_s7 + $0xf8] sm:$0xff]   ;;  %v15927_v30 = vmul.f32 %v13897_v56, %v15552_v1  ;;  %v15930_v60 = vmul.f32 %v13899_v5, %v15562_v46  ;;  %v15933_v45 = vmul.f32 %v13901_v10, %v15571_v41  ;;  %v3056_v56 = vld [vmem:[#allocation2 + $0xa1] sm:$0xff] }
 0x2bf   : > { %11954 = vmatprep.subr.bf16.mxu1 %v13430_v32  ;;  %13928 = vpow2.f32 %v1395_v62  ;;  %v13911_v55 = vpop.eup %13910  ;;  %v3055_v1 = vld [vmem:[#allocation2 + $0x99] sm:$0xff]  ;;  %vm15941_vm0 = vcmp.le.s32.totalorder %v1669_v15, 14  ;;  %v3058_v5 = vld [vmem:[#allocation2 + $0xb1] sm:$0xff]  ;;  %v1523_v10 = vadd.s32 184, %v15323_v11  ;;  %vm15952_vm11 = vcmp.le.s32.totalorder %v1683_v42, 14 }
 0x2c0   : > { %18529 = vst [vmem:[#allocation75_spill] sm:$0xff] %v15927_v30  ;;  %18530 = vst [vmem:[#allocation76_spill] sm:$0xff] %v15930_v60  ;;  %13930 = vpow2.f32 %v1401_v16  ;;  %v13913_v35 = vpop.eup %13912  ;;  %v1525_v16 = vadd.s32 200, %v15323_v11  ;;  %v1429_v28 = vadd.f32 1.0, %v13911_v55  ;;  %v15967_v42 = vpack.c.bf16 %v3056_v56, %v3055_v1  ;;  %v18544_v56 = vld [vmem:[#allocation53_spill] sm:$0xff] }
 0x2c1   : > { %18531 = vst [vmem:[#allocation77_spill] sm:$0xff] %v15933_v45  ;;  %11923 = vmatmul.mubr.msk.bf16.gmra.mrb[44].mxu1 %vm15907_vm1, %v15902_v51  ;;  %13932 = vpow2.f32 %v1397_v61  ;;  %v13915_v46 = vpop.eup %13914  ;;  %v3057_v61 = vld [vmem:[#allocation2 + $0xa9] sm:$0xff]  ;;  %v1427_v0 = vadd.f32 1.0, %v13913_v35  ;;  %v15972_v37 = vmul.f32 %v13905_v29, %v18539_v13  ;;  %vm15977_vm1 = vmpackc.low %vm15952_vm11, %vm18459_vm7  ;;  %v18541_v35 = vmov 0  ;;  %v18548_v13 = vld [vmem:[#allocation56_spill] sm:$0xff] }
 0x2c2   : > { %11926 = vmatprep.mubr.msk.bf16.mxu1 %vm15919_vm8, %v15911_v26  ;;  %11955 = vmatpush3.bf16.msra.mxu1 %v13430_v32  ;;  %13934 = vrcp.f32 %v1424_v21  ;;  %v13917_v44 = vpop.eup %13916  ;;  %vm15963_vm8 = vmpackc.low %vm15941_vm0, %vm18459_vm7  ;;  %v18536_v21 = vmov 0  ;;  %v15969_v55 = vpack.c.bf16 %v3058_v5, %v3057_v61  ;;  %v1430_v52 = vadd.f32 1.0, %v13915_v46 }
 0x2c3   : > { %11956 = vmatprep.subr.bf16.mxu1 %v13431_v22  ;;  %v13919_v62 = vpop.eup %13918  ;;  %v18537_v21 = vsel %vm15963_vm8, 4294967295, %v18536_v21  ;;  %18540 = vst [vmem:[#allocation51_spill] sm:$0xff] %v15972_v37  ;;  %v18542_v35 = vsel %vm15977_vm1, 4294967295, %v18541_v35  ;;  %v1428_v41 = vadd.f32 1.0, %v13917_v44  ;;  %v1697_v36 = vand.u32 15, %v1523_v10  ;;  %v3062_v44 = vld [vmem:[#allocation2 + $0xd1] sm:$0xff] }
 0x2c4   : > { %v13921_v15 = vpop.eup %13920  ;;  %18538 = vst [vmem:[#allocation78_spill] sm:$0xff] %v18537_v21  ;;  %18543 = vst [vmem:[#allocation79_spill] sm:$0xff] %v18542_v35  ;;  %v1711_v60 = vand.u32 15, %v1525_v16  ;;  %v15983_v46 = vmul.f32 %v13907_v25, %v18544_v56  ;;  %v15989_v29 = vmul.f32 %v13919_v62, %v18548_v13  ;;  %13936 = vrcp.f32 %v1429_v28  ;;  %v3060_v16 = vld [vmem:[#allocation2 + $0xc1] sm:$0xff]  ;;  %v3061_v13 = vld [vmem:[#allocation2 + $0xc9] sm:$0xff] }
 0x2c5   : > { %v13923_v32 = vpop.eup %13922  ;;  %13938 = vrcp.f32 %v1427_v0  ;;  %vm1971_vm0 = vcmp.le.s32.totalorder %v1697_v36, 14  ;;  %v1527_v28 = vadd.s32 216, %v15323_v11  ;;  %v1529_v62 = vadd.s32 232, %v15323_v11 }
 0x2c6   : > { %11957 = vmatpush3.bf16.msra.mxu1 %v13431_v22  ;;  %v13925_v1 = vpop.eup %13924  ;;  %18545 = vst [vmem:[#allocation53_spill] sm:$0xff] %v15983_v46  ;;  %v18546_v22 = vld [vmem:[#allocation54_spill] sm:$0xff]  ;;  %18549 = vst [vmem:[#allocation56_spill] sm:$0xff] %v15989_v29  ;;  %13940 = vrcp.f32 %v1430_v52  ;;  %vm1973_vm11 = vcmp.le.s32.totalorder %v1711_v60, 14  ;;  %v18550_v36 = vmov 0  ;;  %v16010_v45 = vpack.c.bf16 %v3062_v44, %v3061_v13  ;;  %v18560_v29 = vld [vmem:[#allocation61_spill] sm:$0xff] }
 0x2c7   : > { %11990 = vmatprep.subr.bf16.mxu1 %v15950_v34  ;;  %v15986_v5 = vmul.f32 %v13909_v19, %v18546_v22  ;;  %v13927_v3 = vpop.eup %13926  ;;  %13942 = vrcp.f32 %v1428_v41  ;;  %v3059_v19 = vld [vmem:[#allocation2 + $0xb9] sm:$0xff]  ;;  %v18555_v0 = vmov 0  ;;  %v1739_v37 = vand.u32 15, %v1529_v62 }
 0x2c8   : > { %v1433_v56 = vadd.f32 1.0, %v13927_v3  ;;  %v16008_v30 = vpack.c.bf16 %v3060_v16, %v3059_v19  ;;  %v18553_v3 = vld [vmem:[#allocation59_spill] sm:$0xff]  ;;  %v16024_v19 = vmul.f32 %v13925_v1, %v18560_v29  ;;  %v1531_v1 = vadd.s32 248, %v15323_v11  ;;  %v3064_v29 = vld [vmem:[#allocation2 + $0xe1] sm:$0xff] }
 0x2c9   : > { %18547 = vst [vmem:[#allocation54_spill] sm:$0xff] %v15986_v5  ;;  %11927 = vmatmul.mubr.msk.bf16.gmra.mrb[48].mxu1 %vm15963_vm8, %v15967_v42  ;;  %v13929_v10 = vpop.eup %13928  ;;  %v16013_v63 = vmul.f32 %v13921_v15, %v18553_v3  ;;  %vm16016_vm8 = vmpackc.low %vm1973_vm11, %vm18459_vm7  ;;  %v18558_v5 = vld [vmem:[#allocation60_spill] sm:$0xff]  ;;  %vm1977_vm11 = vcmp.le.s32.totalorder %v1739_v37, 14  ;;  %v18566_v11 = vmov 0  ;;  %v18584_v44 = vld [vmem:[#allocation41_spill] sm:$0xff] }
 0x2ca   : > { %11930 = vmatprep.mubr.msk.bf16.mxu1 %vm15977_vm1, %v15969_v55  ;;  %v13931_v25 = vpop.eup %13930  ;;  %v1431_v41 = vadd.f32 1.0, %v13929_v10  ;;  %vm16004_vm1 = vmpackc.low %vm1971_vm0, %vm18459_vm7  ;;  %v18556_v0 = vsel %vm16016_vm8, 4294967295, %v18555_v0  ;;  %v1725_v10 = vand.u32 15, %v1527_v28  ;;  %v16021_v46 = vmul.f32 %v13923_v32, %v18558_v5  ;;  %18561 = vst [vmem:[#allocation61_spill] sm:$0xff] %v16024_v19  ;;  %v18580_v28 = vld [vmem:[#allocation35_spill] sm:$0xff] }
 0x2cb   : > { %v13933_v61 = vpop.eup %13932  ;;  %v18551_v36 = vsel %vm16004_vm1, 4294967295, %v18550_v36  ;;  %v1434_v60 = vadd.f32 1.0, %v13931_v25  ;;  %18554 = vst [vmem:[#allocation59_spill] sm:$0xff] %v16013_v63  ;;  %18557 = vst [vmem:[#allocation81_spill] sm:$0xff] %v18556_v0  ;;  %13944 = vrcp.f32 %v1433_v56  ;;  %v3066_v25 = vld [vmem:[#allocation2 + $0xf1] sm:$0xff]  ;;  %v3065_v56 = vld [vmem:[#allocation2 + $0xe9] sm:$0xff] }
 0x2cc   : > { %v13935_v52 = vpop.eup %13934  ;;  %18552 = vst [vmem:[#allocation80_spill] sm:$0xff] %v18551_v36  ;;  %v1432_v22 = vadd.f32 1.0, %v13933_v61  ;;  %18559 = vst [vmem:[#allocation60_spill] sm:$0xff] %v16021_v46  ;;  %13946 = vrcp.f32 %v1431_v41  ;;  %vm1975_vm0 = vcmp.le.s32.totalorder %v1725_v10, 14  ;;  %v18563_v61 = vmov 0  ;;  %v3396_v63 = vld [vmem:[#allocation2 + $0xbf] sm:$0xff] }
 0x2cd   : > { %v16027_v16 = vmul.f32 %v13935_v52, %v15706_v54  ;;  %13948 = vrcp.f32 %v1434_v60  ;;  %v3063_v54 = vld [vmem:[#allocation2 + $0xd9] sm:$0xff]  ;;  %v16052_v37 = vpack.c.bf16 %v3066_v25, %v3065_v56  ;;  %v1753_v52 = vand.u32 15, %v1531_v1  ;;  %v18589_v46 = vld [vmem:[#allocation46_spill] sm:$0xff] }
 0x2ce   : > { %v13937_v15 = vpop.eup %13936  ;;  %13950 = vrcp.f32 %v1432_v22  ;;  %v16045_v22 = vpack.c.bf16 %v3064_v29, %v3063_v54  ;;  %v3376_v1 = vld [vmem:[#allocation2 + $0x1f] sm:$0xff]  ;;  %v18573_v54 = vmov 0  ;;  %v3375_v29 = vld [vmem:[#allocation2 + $0x17] sm:$0xff] }
 0x2cf   : > { %18562 = vst [vmem:[#allocation82_spill] sm:$0xff] %v16027_v16  ;;  %v13939_v32 = vpop.eup %13938  ;;  %v16055_v13 = vmul.f32 %v13937_v15, %v15757_v47  ;;  %v3397_v16 = vld [vmem:[#allocation2 + $0xc7] sm:$0xff] }
 0x2d0   : > { %v13941_v5 = vpop.eup %13940  ;;  %v16058_v41 = vmul.f32 %v13939_v32, %v15761_v27  ;;  %v3067_v27 = vld [vmem:[#allocation2 + $0xf9] sm:$0xff]  ;;  %v3068_v32 = vld [vmem:[#allocation2 + $0x101] sm:$0xff]  ;;  %v16179_v43 = vpack.c.bf16 %v3398_v17, %v3397_v16 }
 0x2d1   : > { %11931 = vmatmul.mubr.msk.bf16.gmra.mrb[52].mxu1 %vm16004_vm1, %v16008_v30  ;;  %v13943_v62 = vpop.eup %13942  ;;  %vm16048_vm1 = vmpackc.low %vm1977_vm11, %vm18459_vm7  ;;  %18569 = vst [vmem:[#allocation85_spill] sm:$0xff] %v16055_v13  ;;  %v16061_v60 = vmul.f32 %v13941_v5, %v15770_v39  ;;  %v16081_v25 = vpack.c.bf16 %v3068_v32, %v3067_v27  ;;  %v3377_v27 = vld [vmem:[#allocation2 + $0x27] sm:$0xff]  ;;  %v3378_v32 = vld [vmem:[#allocation2 + $0x2f] sm:$0xff] }
 0x2d2   : > { %11934 = vmatprep.mubr.msk.bf16.mxu1 %vm16016_vm8, %v16010_v45  ;;  %vm16041_vm8 = vmpackc.low %vm1975_vm0, %vm18459_vm7  ;;  %v18567_v11 = vsel %vm16048_vm1, 4294967295, %v18566_v11  ;;  %18570 = vst [vmem:[#allocation86_spill] sm:$0xff] %v16058_v41  ;;  %v16064_v3 = vmul.f32 %v13943_v62, %v15784_v57  ;;  %vm1979_vm0 = vcmp.le.s32.totalorder %v1753_v52, 14  ;;  %v10247_v62 = vpack.c.bf16 %v3376_v1, %v3375_v29  ;;  %v18581_v1 = vld [vmem:[#allocation38_spill] sm:$0xff]  ;;  %v13434_v29 = vld [vmem:[%s18103_s7 + $0x110] sm:$0xff]  }
 0x2d3   : > { %v18564_v61 = vsel %vm16041_vm8, 4294967295, %v18563_v61  ;;  %18568 = vst [vmem:[#allocation84_spill] sm:$0xff] %v18567_v11  ;;  %18571 = vst [vmem:[#allocation87_spill] sm:$0xff] %v16061_v60  ;;  %v3392_v13 = vld [vmem:[#allocation2 + $0x9f] sm:$0xff] }
 0x2d4   : > { %18565 = vst [vmem:[#allocation83_spill] sm:$0xff] %v18564_v61  ;;  %18572 = vst [vmem:[#allocation88_spill] sm:$0xff] %v16064_v3  ;;  %v13439_v60 = vld [vmem:[%s18103_s7 + $0x138] sm:$0xff]   ;;  %v18588_v3 = vld [vmem:[#allocation45_spill] sm:$0xff] }
 0x2d5   : > { %v13945_v10 = vpop.eup %13944  ;;  %vm16077_vm11 = vmpackc.low %vm1979_vm0, %vm18459_vm7  ;;  %vm18590_vm7 = vnez %v18589_v46  ;;  %v18600_v17 = vld [vmem:[#allocation57_spill] sm:$0xff]  ;;  %v18601_v16 = vld [vmem:[#allocation52_spill] sm:$0xff] }
 0x2d6   : > { %v13947_v47 = vpop.eup %13946  ;;  %v18574_v54 = vsel %vm16077_vm11, 4294967295, %v18573_v54  ;;  %v16084_v56 = vmul.f32 %v13945_v10, %v15828_v53  ;;  %v16104_v10 = vpack.c.bf16 %v3378_v32, %v3377_v27  ;;  %v3382_v27 = vld [vmem:[#allocation2 + $0x4f] sm:$0xff]  ;;  %v3384_v32 = vld [vmem:[#allocation2 + $0x5f] sm:$0xff] }
 0x2d7   : > { %v13949_v15 = vpop.eup %13948  ;;  %18575 = vst [vmem:[#allocation89_spill] sm:$0xff] %v18574_v54  ;;  %v16087_v52 = vmul.f32 %v13947_v47, %v15832_v2  ;;  %v13433_v47 = vld [vmem:[%s18103_s7 + $0x108] sm:$0xff]   ;;  %v18583_v53 = vld [vmem:[#allocation40_spill] sm:$0xff] }
 0x2d8   : > { %v13951_v5 = vpop.eup %13950  ;;  %18576 = vst [vmem:[#allocation90_spill] sm:$0xff] %v16084_v56  ;;  %v16090_v39 = vmul.f32 %v13949_v15, %v15843_v7  ;;  %v3380_v7 = vld [vmem:[#allocation2 + $0x3f] sm:$0xff] }
 0x2d9   : > { %11935 = vmatmul.mubr.msk.bf16.gmra.mrb[56].mxu1 %vm16041_vm8, %v16045_v22  ;;  %18577 = vst [vmem:[#allocation91_spill] sm:$0xff] %v16087_v52  ;;  %v16093_v57 = vmul.f32 %v13951_v5, %v15857_v20  ;;  %v3379_v20 = vld [vmem:[#allocation2 + $0x37] sm:$0xff]  ;;  %v3388_v56 = vld [vmem:[#allocation2 + $0x7f] sm:$0xff] }
 0x2da   : > { %11938 = vmatprep.mubr.msk.bf16.mxu1 %vm16048_vm1, %v16052_v37  ;;  %18578 = vst [vmem:[#allocation92_spill] sm:$0xff] %v16090_v39  ;;  %v16109_v15 = vpack.c.bf16 %v3380_v7, %v3379_v20  ;;  %v18582_v5 = vld [vmem:[#allocation39_spill] sm:$0xff]  ;;  %v13437_v39 = vld [vmem:[%s18103_s7 + $0x128] sm:$0xff]  }
 0x2db   : > { %18579 = vst [vmem:[#allocation93_spill] sm:$0xff] %v16093_v57  ;;  %v3383_v20 = vld [vmem:[#allocation2 + $0x57] sm:$0xff] }
 0x2dc   : > { %v16126_v2 = vpack.c.bf16 %v3384_v32, %v3383_v20  ;;  %v3387_v20 = vld [vmem:[#allocation2 + $0x77] sm:$0xff] }
 0x2dd   : > { %v16142_v52 = vpack.c.bf16 %v3388_v56, %v3387_v20  ;;  %v18586_v57 = vld [vmem:[#allocation43_spill] sm:$0xff] }
 0x2de   : > { %v3391_v20 = vld [vmem:[#allocation2 + $0x97] sm:$0xff] }
 0x2df   : > { %v16158_v41 = vpack.c.bf16 %v3392_v13, %v3391_v20  ;;  %v3395_v20 = vld [vmem:[#allocation2 + $0xb7] sm:$0xff] }
 0x2e0   : > { %v16171_v19 = vpack.c.bf16 %v3396_v63, %v3395_v20  ;;  %v18596_v63 = vld [vmem:[#allocation49_spill] sm:$0xff] }
 0x2e1   : > { %11939 = vmatmul.mubr.msk.bf16.gmra.mrb[60].mxu1 %vm16077_vm11, %v16081_v25  ;;  %v3401_v20 = vld [vmem:[#allocation2 + $0xe7] sm:$0xff] }
 0x2e2   : > { %11958 = vmatprep.mubr.msk.bf16.mxu1 %vm15337_vm2, %v10247_v62  ;;  %v3381_v62 = vld [vmem:[#allocation2 + $0x47] sm:$0xff]  ;;  %v16189_v6 = vpack.c.bf16 %v3402_v14, %v3401_v20  ;;  %v3716_v14 = vld [vmem:[#allocation2 + $0x30] sm:$0xff] }
 0x2e3   : > { %v16121_v7 = vpack.c.bf16 %v3382_v27, %v3381_v62  ;;  %v3385_v62 = vld [vmem:[#allocation2 + $0x67] sm:$0xff]  ;;  %v3386_v27 = vld [vmem:[#allocation2 + $0x6f] sm:$0xff] }
 0x2e4   : > { %v16137_v32 = vpack.c.bf16 %v3386_v27, %v3385_v62  ;;  %v3389_v62 = vld [vmem:[#allocation2 + $0x87] sm:$0xff]  ;;  %v3390_v27 = vld [vmem:[#allocation2 + $0x8f] sm:$0xff]  ;;  %18598 = vst [vmem:[#allocation38_spill] sm:$0xff] %v16189_v6 }
 0x2e5   : > { %v16153_v56 = vpack.c.bf16 %v3390_v27, %v3389_v62  ;;  %v3393_v62 = vld [vmem:[#allocation2 + $0xa7] sm:$0xff]  ;;  %v3394_v27 = vld [vmem:[#allocation2 + $0xaf] sm:$0xff] }
 0x2e6   : > { %v16169_v13 = vpack.c.bf16 %v3394_v27, %v3393_v62  ;;  %v18594_v27 = vld [vmem:[#allocation48_spill] sm:$0xff]  ;;  %v3718_v20 = vld [vmem:[#allocation2 + $0x40] sm:$0xff] }
 0x2e9   : > { %11959 = vmatmul.mubr.msk.bf16.vlgmr.msra.gmra.mrb[32].mxu1 %vm15354_vm5, %v16104_v10 }
 0x2ea   : > { %11991 = vmatpush3.bf16.msra.mxu1 %v15950_v34  ;;  %11962 = vmatprep.mubr.msk.bf16.mxu1 %vm15359_vm6, %v16109_v15  ;;  %v13435_v34 = vld [vmem:[%s18103_s7 + $0x118] sm:$0xff]  }
 0x2eb   : > { %11992 = vmatprep.subr.bf16.mxu1 %v13433_v47 }
 0x2ee   : > { %11993 = vmatpush3.bf16.msra.mxu1 %v13433_v47  ;;  %v13436_v47 = vld [vmem:[%s18103_s7 + $0x120] sm:$0xff]  }
 0x2ef   : > { %11994 = vmatprep.subr.bf16.mxu1 %v13434_v29 }
 0x2f1   : > { %11963 = vmatmul.mubr.msk.bf16.gmra.mrb[36].mxu1 %vm15377_vm9, %v16121_v7 }
 0x2f2   : > { %11966 = vmatprep.mubr.msk.bf16.mxu1 %vm15382_vm10, %v16126_v2  ;;  %11995 = vmatpush3.bf16.msra.mxu1 %v13434_v29  ;;  %v18585_v29 = vld [vmem:[#allocation42_spill] sm:$0xff] }
 0x2f3   : > { %11996 = vmatprep.subr.bf16.mxu1 %v13435_v34 }
 0x2f6   : > { %11997 = vmatpush3.bf16.msra.mxu1 %v13435_v34  ;;  %v13438_v34 = vld [vmem:[%s18103_s7 + $0x130] sm:$0xff]  }
 0x2f7   : > { %11998 = vmatprep.subr.bf16.mxu1 %v13436_v47 }
 0x2f9   : > { %11967 = vmatmul.mubr.msk.bf16.gmra.mrb[40].mxu1 %vm15399_vm13, %v16137_v32 }
 0x2fa   : > { %11970 = vmatprep.mubr.msk.bf16.mxu1 %vm15404_vm14, %v16142_v52  ;;  %11999 = vmatpush3.bf16.msra.mxu1 %v13436_v47  ;;  %v18587_v47 = vld [vmem:[#allocation44_spill] sm:$0xff] }
 0x2fb   : > { %12000 = vmatprep.subr.bf16.mxu1 %v13437_v39 }
 0x2fe   : > { %12001 = vmatpush3.bf16.msra.mxu1 %v13437_v39  ;;  %v13440_v39 = vld [vmem:[%s18103_s7 + $0x140] sm:$0xff]  }
 0x2ff   : > { %12002 = vmatprep.subr.bf16.mxu1 %v13438_v34 }
 0x301   : > { %11971 = vmatmul.mubr.msk.bf16.gmra.mrb[44].mxu1 %vm15429_vm3, %v16153_v56  ;;  %vm18597_vm3 = vnez %v18596_v63  ;;  %v3745_v63 = vpack.c.bf16 %v3714_v40, %v3713_v18  ;;  %v13442_v18 = vld [vmem:[%s18103_s7 + $0x150] sm:$0xff]  }
 0x302   : > { %11974 = vmatprep.mubr.msk.bf16.mxu1 %vm15438_vm4, %v16158_v41  ;;  %12003 = vmatpush3.bf16.msra.mxu1 %v13438_v34  ;;  %v18591_v34 = vld [vmem:[#allocation47_spill] sm:$0xff]  ;;  %vm18595_vm4 = vnez %v18594_v27 }
 0x303   : > { %12004 = vmatprep.subr.bf16.mxu1 %v13439_v60  ;;  %vm18592_vm0 = vnez %v18591_v34  ;;  %v18604_v27 = vld [vmem:[#allocation55_spill] sm:$0xff] }
 0x304   : > { %v3720_v40 = vld [vmem:[#allocation2 + $0x50] sm:$0xff] }
 0x306   : > { %12005 = vmatpush3.bf16.msra.mxu1 %v13439_v60  ;;  %v3399_v60 = vld [vmem:[#allocation2 + $0xd7] sm:$0xff] }
 0x307   : > { %12038 = vmatprep.subr.bf16.mxu1 %v13440_v39  ;;  %v16181_v62 = vpack.c.bf16 %v3400_v50, %v3399_v60  ;;  %v3405_v50 = vld [vmem:[#allocation2 + $0x107] sm:$0xff]  ;;  %v3406_v60 = vld [vmem:[#allocation2 + $0x10f] sm:$0xff] }
 0x308   : > { %v16197_v59 = vpack.c.bf16 %v3406_v60, %v3405_v50  ;;  %v3721_v60 = vld [vmem:[#allocation2 + $0x58] sm:$0xff] }
 0x309   : > { %11975 = vmatmul.mubr.msk.bf16.gmra.mrb[48].mxu1 %vm18590_vm7, %v16169_v13  ;;  %18593 = vst [vmem:[#allocation35_spill] sm:$0xff] %v16181_v62 }
 0x30a   : > { %11978 = vmatprep.mubr.msk.bf16.mxu1 %vm18592_vm0, %v16171_v19  ;;  %vm18602_vm0 = vnez %v18601_v16  ;;  %18603 = vst [vmem:[#allocation39_spill] sm:$0xff] %v16197_v59 }
 0x311   : > { %11979 = vmatmul.mubr.msk.bf16.gmra.mrb[52].mxu1 %vm18595_vm4, %v16179_v43 }
 0x312   : > { %11982 = vmatprep.mubr.msk.bf16.mxu1 %vm18597_vm3, %v16181_v62  ;;  %vm18605_vm3 = vnez %v18604_v27  ;;  %v3717_v62 = vld [vmem:[#allocation2 + $0x38] sm:$0xff] }
 0x313   : > { %v16207_v16 = vpack.c.bf16 %v3718_v20, %v3717_v62  ;;  %v13443_v62 = vld [vmem:[%s18103_s7 + $0x158] sm:$0xff]   ;;  %v3724_v20 = vld [vmem:[#allocation2 + $0x70] sm:$0xff] }
 0x315   : > { %18607 = vst [vmem:[#allocation41_spill] sm:$0xff] %v16207_v16 }
 0x319   : > { %11983 = vmatmul.mubr.msk.bf16.gmra.mrb[56].mxu1 %vm15577_vm12, %v16189_v6  ;;  %v16202_v6 = vpack.c.bf16 %v3716_v14, %v3715_v33  ;;  %v3722_v33 = vld [vmem:[#allocation2 + $0x60] sm:$0xff]  ;;  %vm18630_vm12 = vnez %v18542_v35 }
 0x31a   : > { %11986 = vmatprep.mubr.msk.bf16.mxu1 %vm18602_vm0, %v18600_v17  ;;  %v13441_v17 = vld [vmem:[%s18103_s7 + $0x148] sm:$0xff]   ;;  %v13444_v14 = vld [vmem:[%s18103_s7 + $0x160] sm:$0xff]   ;;  %vm18622_vm0 = vnez %v18488_v4 }
 0x31b   : > { %18606 = vst [vmem:[#allocation40_spill] sm:$0xff] %v16202_v6 }
 0x321   : > { %11987 = vmatmul.mubr.msk.bf16.gmra.mrb[60].mxu1 %vm18605_vm3, %v16197_v59 }
 0x322   : > { %12006 = vmatprep.mubr.bf16.mxu1 %v3745_v63  ;;  %v3719_v63 = vld [vmem:[#allocation2 + $0x48] sm:$0xff] }
 0x323   : > { %v16214_v50 = vpack.c.bf16 %v3720_v40, %v3719_v63  ;;  %v3723_v40 = vld [vmem:[#allocation2 + $0x68] sm:$0xff] }
 0x324   : > { %v16226_v63 = vpack.c.bf16 %v3724_v20, %v3723_v40  ;;  %v3730_v20 = vld [vmem:[#allocation2 + $0xa0] sm:$0xff]  ;;  %v3727_v40 = vld [vmem:[#allocation2 + $0x88] sm:$0xff] }
 0x325   : > { %18608 = vst [vmem:[#allocation42_spill] sm:$0xff] %v16214_v50 }
 0x326   : > { %18610 = vst [vmem:[#allocation44_spill] sm:$0xff] %v16226_v63 }
 0x329   : > { %12007 = vmatmul.mubr.bf16.vlgmr.msra.gmra.mrb[32].mxu1 %v16202_v6  ;;  %v3737_v6 = vld [vmem:[#allocation2 + $0xd8] sm:$0xff] }
 0x32a   : > { %12039 = vmatpush3.bf16.msra.mxu1 %v13440_v39  ;;  %12010 = vmatprep.mubr.bf16.mxu1 %v16207_v16  ;;  %v16219_v39 = vpack.c.bf16 %v3722_v33, %v3721_v60  ;;  %v3725_v16 = vld [vmem:[#allocation2 + $0x78] sm:$0xff]  ;;  %v13445_v33 = vld [vmem:[%s18103_s7 + $0x168] sm:$0xff]  }
 0x32b   : > { %12040 = vmatprep.subr.bf16.mxu1 %v13441_v17 }
 0x32c   : > { %18609 = vst [vmem:[#allocation43_spill] sm:$0xff] %v16219_v39 }
 0x32e   : > { %12041 = vmatpush3.bf16.msra.mxu1 %v13441_v17  ;;  %v3726_v17 = vld [vmem:[#allocation2 + $0x80] sm:$0xff] }
 0x32f   : > { %12042 = vmatprep.subr.bf16.mxu1 %v13442_v18  ;;  %v16231_v60 = vpack.c.bf16 %v3726_v17, %v3725_v16  ;;  %v13447_v16 = vld [vmem:[%s18103_s7 + $0x178] sm:$0xff]  }
 0x331   : > { %12011 = vmatmul.mubr.bf16.gmra.mrb[36].mxu1 %v16214_v50  ;;  %18611 = vst [vmem:[#allocation45_spill] sm:$0xff] %v16231_v60  ;;  %v3729_v50 = vld [vmem:[#allocation2 + $0x98] sm:$0xff] }
 0x332   : > { %12014 = vmatprep.mubr.bf16.mxu1 %v16219_v39  ;;  %12043 = vmatpush3.bf16.msra.mxu1 %v13442_v18  ;;  %v13446_v18 = vld [vmem:[%s18103_s7 + $0x170] sm:$0xff]   ;;  %v16243_v17 = vpack.c.bf16 %v3730_v20, %v3729_v50  ;;  %v3738_v20 = vld [vmem:[#allocation2 + $0xe0] sm:$0xff] }
 0x333   : > { %12044 = vmatprep.subr.bf16.mxu1 %v13443_v62  ;;  %v16258_v27 = vpack.c.bf16 %v3738_v20, %v3737_v6  ;;  %v4020_v6 = vld [vmem:[#allocation2 + $0x21] sm:$0xff] }
 0x334   : > { %18613 = vst [vmem:[#allocation47_spill] sm:$0xff] %v16243_v17  ;;  %v3743_v20 = vld [vmem:[#allocation2 + $0x108] sm:$0xff] }
 0x335   : > { %18617 = vst [vmem:[#allocation96_spill] sm:$0xff] %v16258_v27 }
 0x336   : > { %12045 = vmatpush3.bf16.msra.mxu1 %v13443_v62  ;;  %v3728_v62 = vld [vmem:[#allocation2 + $0x90] sm:$0xff] }
 0x337   : > { %12046 = vmatprep.subr.bf16.mxu1 %v13444_v14  ;;  %v16238_v39 = vpack.c.bf16 %v3728_v62, %v3727_v40  ;;  %v3734_v62 = vld [vmem:[#allocation2 + $0xc0] sm:$0xff]  ;;  %v3731_v40 = vld [vmem:[#allocation2 + $0xa8] sm:$0xff] }
 0x339   : > { %12015 = vmatmul.mubr.bf16.gmra.mrb[40].mxu1 %v16226_v63  ;;  %18612 = vst [vmem:[#allocation46_spill] sm:$0xff] %v16238_v39  ;;  %v3733_v63 = vld [vmem:[#allocation2 + $0xb8] sm:$0xff] }
 0x33a   : > { %12018 = vmatprep.mubr.bf16.mxu1 %v16231_v60  ;;  %12047 = vmatpush3.bf16.msra.mxu1 %v13444_v14  ;;  %v13448_v14 = vld [vmem:[%s18103_s7 + $0x180] sm:$0xff]   ;;  %v16252_v50 = vpack.c.bf16 %v3734_v62, %v3733_v63  ;;  %v3739_v63 = vld [vmem:[#allocation2 + $0xe8] sm:$0xff] }
 0x33b   : > { %12048 = vmatprep.subr.bf16.mxu1 %v13445_v33 }
 0x33c   : > { %18615 = vst [vmem:[#allocation94_spill] sm:$0xff] %v16252_v50 }
 0x33e   : > { %12049 = vmatpush3.bf16.msra.mxu1 %v13445_v33  ;;  %v3732_v33 = vld [vmem:[#allocation2 + $0xb0] sm:$0xff] }
 0x33f   : > { %12050 = vmatprep.subr.bf16.mxu1 %v13446_v18  ;;  %v16250_v60 = vpack.c.bf16 %v3732_v33, %v3731_v40  ;;  %v3742_v33 = vld [vmem:[#allocation2 + $0x100] sm:$0xff]  ;;  %v3741_v40 = vld [vmem:[#allocation2 + $0xf8] sm:$0xff] }
 0x341   : > { %12019 = vmatmul.mubr.bf16.gmra.mrb[44].mxu1 %v16238_v39  ;;  %18614 = vst [vmem:[#allocation57_spill] sm:$0xff] %v16250_v60 }
 0x342   : > { %12022 = vmatprep.mubr.bf16.mxu1 %v16243_v17  ;;  %12051 = vmatpush3.bf16.msra.mxu1 %v13446_v18  ;;  %v3736_v18 = vld [vmem:[#allocation2 + $0xd0] sm:$0xff]  ;;  %v3735_v17 = vld [vmem:[#allocation2 + $0xc8] sm:$0xff] }
 0x343   : > { %12052 = vmatprep.subr.bf16.mxu1 %v13447_v16  ;;  %v16256_v39 = vpack.c.bf16 %v3736_v18, %v3735_v17  ;;  %v3744_v17 = vld [vmem:[#allocation2 + $0x110] sm:$0xff]  ;;  %v4019_v18 = vld [vmem:[#allocation2 + $0x19] sm:$0xff] }
 0x345   : > { %18616 = vst [vmem:[#allocation95_spill] sm:$0xff] %v16256_v39 }
 0x346   : > { %12053 = vmatpush3.bf16.msra.mxu1 %v13447_v16  ;;  %v3740_v16 = vld [vmem:[#allocation2 + $0xf0] sm:$0xff] }
 0x347   : > { %12086 = vmatprep.subr.bf16.mxu1 %v13448_v14  ;;  %v16262_v62 = vpack.c.bf16 %v3740_v16, %v3739_v63  ;;  %v4022_v16 = vld [vmem:[#allocation2 + $0x31] sm:$0xff]  ;;  %v4023_v63 = vld [vmem:[#allocation2 + $0x39] sm:$0xff] }
 0x349   : > { %12023 = vmatmul.mubr.bf16.gmra.mrb[48].mxu1 %v16250_v60  ;;  %18618 = vst [vmem:[#allocation97_spill] sm:$0xff] %v16262_v62  ;;  %v16264_v60 = vpack.c.bf16 %v3742_v33, %v3741_v40  ;;  %v4024_v33 = vld [vmem:[#allocation2 + $0x41] sm:$0xff]  ;;  %v4021_v40 = vld [vmem:[#allocation2 + $0x29] sm:$0xff] }
 0x34a   : > { %12026 = vmatprep.mubr.bf16.mxu1 %v16252_v50  ;;  %v16268_v50 = vpack.c.bf16 %v3744_v17, %v3743_v20  ;;  %v16273_v59 = vpack.c.bf16 %v4022_v16, %v4021_v40  ;;  %v13451_v17 = vld [vmem:[%s18103_s7 + $0x198] sm:$0xff]   ;;  %v13465_v40 = vld [vmem:[%s18103_s7 + $0x208] sm:$0xff]  }
 0x34b   : > { %18619 = vst [vmem:[#allocation98_spill] sm:$0xff] %v16264_v60  ;;  %v4387_v20 = vld [vmem:[#allocation2 + $0x117] sm:$0xff] }
 0x351   : > { %12027 = vmatmul.mubr.bf16.gmra.mrb[52].mxu1 %v16256_v39  ;;  %v10343_v39 = vpack.c.bf16 %v4020_v6, %v4019_v18  ;;  %v18641_v18 = vld [vmem:[#allocation50_spill] sm:$0xff]  ;;  %v18643_v6 = vld [vmem:[#allocation39_spill] sm:$0xff] }
 0x352   : > { %12030 = vmatprep.mubr.bf16.mxu1 %v16258_v27  ;;  %v18620_v27 = vld [vmem:[#allocation58_spill] sm:$0xff] }
 0x353   : > { %vm18621_vm3 = vnez %v18620_v27 }
 0x359   : > { %12031 = vmatmul.mubr.bf16.gmra.mrb[56].mxu1 %v16262_v62  ;;  %v16278_v62 = vpack.c.bf16 %v4024_v33, %v4023_v63  ;;  %v18646_v63 = vld [vmem:[#allocation55_spill] sm:$0xff]  ;;  %v18648_v33 = vld [vmem:[#allocation40_spill] sm:$0xff] }
 0x35a   : > { %12034 = vmatprep.mubr.bf16.mxu1 %v16264_v60  ;;  %v13449_v60 = vld [vmem:[%s18103_s7 + $0x188] sm:$0xff]  }
 0x361   : > { %12035 = vmatmul.mubr.bf16.gmra.mrb[60].mxu1 %v16268_v50 }
 0x362   : > { %12054 = vmatprep.mubr.msk.bf16.mxu1 %vm18621_vm3, %v10343_v39  ;;  %vm18623_vm3 = vnez %v18490_v12  ;;  %v13450_v39 = vld [vmem:[%s18103_s7 + $0x190] sm:$0xff]  }
 0x369   : > { %12055 = vmatmul.mubr.msk.bf16.vlgmr.msra.gmra.mrb[32].mxu1 %vm18622_vm0, %v16273_v59  ;;  %vm18624_vm0 = vnez %v18504_v58 }
 0x36a   : > { %12087 = vmatpush3.bf16.msra.mxu1 %v13448_v14  ;;  %12058 = vmatprep.mubr.msk.bf16.mxu1 %vm18623_vm3, %v16278_v62  ;;  %v13452_v14 = vld [vmem:[%s18103_s7 + $0x1a0] sm:$0xff]   ;;  %vm18625_vm3 = vnez %v18513_v9 }
 0x36b   : > { %12088 = vmatprep.subr.bf16.mxu1 %v13449_v60 }
 0x36e   : > { %12089 = vmatpush3.bf16.msra.mxu1 %v13449_v60  ;;  %v13453_v60 = vld [vmem:[%s18103_s7 + $0x1a8] sm:$0xff]  }
 0x36f   : > { %12090 = vmatprep.subr.bf16.mxu1 %v13450_v39 }
 0x371   : > { %12059 = vmatmul.mubr.msk.bf16.gmra.mrb[36].mxu1 %vm15775_vm15, %v15686_v31  ;;  %vm18626_vm15 = vnez %v18516_v49  ;;  %v13454_v31 = vld [vmem:[%s18103_s7 + $0x1b0] sm:$0xff]  }
 0x372   : > { %12062 = vmatprep.mubr.msk.bf16.mxu1 %vm18624_vm0, %v15733_v48  ;;  %12091 = vmatpush3.bf16.msra.mxu1 %v13450_v39  ;;  %v13455_v48 = vld [vmem:[%s18103_s7 + $0x1b8] sm:$0xff]   ;;  %vm18627_vm0 = vnez %v18523_v8  ;;  %v18649_v39 = vld [vmem:[#allocation41_spill] sm:$0xff] }
 0x373   : > { %12092 = vmatprep.subr.bf16.mxu1 %v13451_v17 }
 0x376   : > { %12093 = vmatpush3.bf16.msra.mxu1 %v13451_v17  ;;  %v18650_v17 = vld [vmem:[#allocation42_spill] sm:$0xff] }
 0x377   : > { %12094 = vmatprep.subr.bf16.mxu1 %v13452_v14 }
 0x379   : > { %12063 = vmatmul.mubr.msk.bf16.gmra.mrb[40].mxu1 %vm18625_vm3, %v15735_v24  ;;  %vm18628_vm3 = vnez %v18527_v38  ;;  %v13456_v24 = vld [vmem:[%s18103_s7 + $0x1c0] sm:$0xff]  }
 0x37a   : > { %12066 = vmatprep.mubr.msk.bf16.mxu1 %vm18626_vm15, %v15902_v51  ;;  %12095 = vmatpush3.bf16.msra.mxu1 %v13452_v14  ;;  %vm18629_vm15 = vnez %v18537_v21  ;;  %v4049_v51 = vld [vmem:[#allocation2 + $0x109] sm:$0xff] }
 0x37b   : > { %12096 = vmatprep.subr.bf16.mxu1 %v13453_v60  ;;  %v13466_v14 = vld [vmem:[%s18103_s7 + $0x210] sm:$0xff]  }
 0x37e   : > { %12097 = vmatpush3.bf16.msra.mxu1 %v13453_v60  ;;  %v13467_v60 = vld [vmem:[%s18103_s7 + $0x218] sm:$0xff]  }
 0x37f   : > { %12098 = vmatprep.subr.bf16.mxu1 %v13454_v31 }
 0x381   : > { %12067 = vmatmul.mubr.msk.bf16.gmra.mrb[44].mxu1 %vm18627_vm0, %v15911_v26  ;;  %vm18631_vm0 = vnez %v18551_v36  ;;  %v4050_v26 = vld [vmem:[#allocation2 + $0x111] sm:$0xff] }
 0x382   : > { %12070 = vmatprep.mubr.msk.bf16.mxu1 %vm18628_vm3, %v15967_v42  ;;  %12099 = vmatpush3.bf16.msra.mxu1 %v13454_v31  ;;  %vm18632_vm3 = vnez %v18556_v0  ;;  %v16343_v42 = vpack.c.bf16 %v4050_v26, %v4049_v51  ;;  %v18651_v31 = vld [vmem:[#allocation43_spill] sm:$0xff]  ;;  %v13469_v51 = vld [vmem:[%s18103_s7 + $0x228] sm:$0xff]   ;;  %v18653_v26 = vld [vmem:[#allocation45_spill] sm:$0xff] }
 0x383   : > { %12100 = vmatprep.subr.bf16.mxu1 %v13455_v48  ;;  %v18719_v36 = vld [vmem:[#allocation3_spill] sm:$0xff] }
 0x386   : > { %12101 = vmatpush3.bf16.msra.mxu1 %v13455_v48  ;;  %v18652_v48 = vld [vmem:[#allocation44_spill] sm:$0xff] }
 0x387   : > { %12134 = vmatprep.subr.bf16.mxu1 %v13456_v24 }
 0x389   : > { %12071 = vmatmul.mubr.msk.bf16.gmra.mrb[48].mxu1 %vm18629_vm15, %v15969_v55  ;;  %v13459_v55 = vld [vmem:[%s18103_s7 + $0x1d8] sm:$0xff]  }
 0x38a   : > { %12074 = vmatprep.mubr.msk.bf16.mxu1 %vm18630_vm12, %v16008_v30  ;;  %v13457_v30 = vld [vmem:[%s18103_s7 + $0x1c8] sm:$0xff]  }
 0x391   : > { %12075 = vmatmul.mubr.msk.bf16.gmra.mrb[52].mxu1 %vm18631_vm0, %v16010_v45  ;;  %v13458_v45 = vld [vmem:[%s18103_s7 + $0x1d0] sm:$0xff]  }
 0x392   : > { %12078 = vmatprep.mubr.msk.bf16.mxu1 %vm18632_vm3, %v16045_v22  ;;  %v13460_v22 = vld [vmem:[%s18103_s7 + $0x1e0] sm:$0xff]  }
 0x399   : > { %12079 = vmatmul.mubr.msk.bf16.gmra.mrb[56].mxu1 %vm16041_vm8, %v16052_v37  ;;  %v13461_v37 = vld [vmem:[%s18103_s7 + $0x1e8] sm:$0xff]  }
 0x39a   : > { %12082 = vmatprep.mubr.msk.bf16.mxu1 %vm16048_vm1, %v16081_v25  ;;  %v13462_v25 = vld [vmem:[%s18103_s7 + $0x1f0] sm:$0xff]  }
 0x3a1   : > { %12083 = vmatmul.mubr.msk.bf16.gmra.mrb[60].mxu1 %vm16077_vm11, %v16343_v42 }
 0x3a2   : > { %12102 = vmatprep.mubr.msk.bf16.mxu1 %vm15337_vm2, %v16104_v10  ;;  %v18637_v10 = vld [vmem:[#allocation48_spill] sm:$0xff] }
 0x3a9   : > { %12103 = vmatmul.mubr.msk.bf16.vlgmr.msra.gmra.mrb[32].mxu1 %vm15354_vm5, %v16109_v15  ;;  %v18638_v15 = vld [vmem:[#allocation38_spill] sm:$0xff] }
 0x3aa   : > { %12135 = vmatpush3.bf16.msra.mxu1 %v13456_v24  ;;  %12106 = vmatprep.mubr.msk.bf16.mxu1 %vm15359_vm6, %v16121_v7  ;;  %v18639_v7 = vld [vmem:[#allocation49_spill] sm:$0xff] }
 0x3ab   : > { %12136 = vmatprep.subr.bf16.mxu1 %v13457_v30  ;;  %v13468_v24 = vld [vmem:[%s18103_s7 + $0x220] sm:$0xff]  }
 0x3ae   : > { %12137 = vmatpush3.bf16.msra.mxu1 %v13457_v30  ;;  %v18654_v30 = vld [vmem:[#allocation46_spill] sm:$0xff] }
 0x3af   : > { %12138 = vmatprep.subr.bf16.mxu1 %v13458_v45 }
 0x3b1   : > { %12107 = vmatmul.mubr.msk.bf16.gmra.mrb[36].mxu1 %vm15377_vm9, %v16126_v2  ;;  %v13463_v2 = vld [vmem:[%s18103_s7 + $0x1f8] sm:$0xff]  }
 0x3b2   : > { %12110 = vmatprep.mubr.msk.bf16.mxu1 %vm15382_vm10, %v16137_v32  ;;  %12139 = vmatpush3.bf16.msra.mxu1 %v13458_v45  ;;  %vm18633_vm10 = vnez %v18587_v47  ;;  %v4384_v32 = vld [vmem:[#allocation2 + $0xff] sm:$0xff]  ;;  %v13470_v45 = vld [vmem:[%s18103_s7 + $0x230] sm:$0xff]  }
 0x3b3   : > { %12140 = vmatprep.subr.bf16.mxu1 %v13459_v55 }
 0x3b6   : > { %12141 = vmatpush3.bf16.msra.mxu1 %v13459_v55  ;;  %v13471_v55 = vld [vmem:[%s18103_s7 + $0x238] sm:$0xff]  }
 0x3b7   : > { %12142 = vmatprep.subr.bf16.mxu1 %v13460_v22 }
 0x3b9   : > { %12111 = vmatmul.mubr.msk.bf16.gmra.mrb[40].mxu1 %vm15399_vm13, %v16142_v52  ;;  %vm18634_vm13 = vnez %v18588_v3  ;;  %v13464_v52 = vld [vmem:[%s18103_s7 + $0x200] sm:$0xff]  }
 0x3ba   : > { %12114 = vmatprep.mubr.msk.bf16.mxu1 %vm15404_vm14, %v16153_v56  ;;  %12143 = vmatpush3.bf16.msra.mxu1 %v13460_v22  ;;  %vm18635_vm14 = vnez %v18591_v34  ;;  %v4383_v56 = vld [vmem:[#allocation2 + $0xf7] sm:$0xff] }
 0x3bb   : > { %12144 = vmatprep.subr.bf16.mxu1 %v13461_v37  ;;  %v18655_v22 = vld [vmem:[#allocation47_spill] sm:$0xff] }
 0x3be   : > { %12145 = vmatpush3.bf16.msra.mxu1 %v13461_v37  ;;  %v18656_v37 = vld [vmem:[#allocation57_spill] sm:$0xff] }
 0x3bf   : > { %12146 = vmatprep.subr.bf16.mxu1 %v13462_v25 }
 0x3c1   : > { %12115 = vmatmul.mubr.msk.bf16.gmra.mrb[44].mxu1 %vm18633_vm10, %v16158_v41  ;;  %v18636_v41 = vld [vmem:[#allocation35_spill] sm:$0xff]  ;;  %vm18642_vm10 = vnez %v18641_v18 }
 0x3c2   : > { %12118 = vmatprep.mubr.msk.bf16.mxu1 %vm18634_vm13, %v16169_v13  ;;  %12147 = vmatpush3.bf16.msra.mxu1 %v13462_v25  ;;  %vm18640_vm13 = vnez %v18639_v7  ;;  %v10454_v13 = vpack.c.bf16 %v4384_v32, %v4383_v56  ;;  %v13472_v25 = vld [vmem:[%s18110_s14] sm:$0xff]   ;;  %v18661_v32 = vld [vmem:[#allocation98_spill] sm:$0xff] }
 0x3c3   : > { %12148 = vmatprep.subr.bf16.mxu1 %v13463_v2  ;;  %v14465_v56 = vld [vmem:[#allocation2 + $0x8] sm:$0xff] }
 0x3c6   : > { %12149 = vmatpush3.bf16.msra.mxu1 %v13463_v2  ;;  %v18657_v2 = vld [vmem:[#allocation94_spill] sm:$0xff] }
 0x3c7   : > { %12182 = vmatprep.subr.bf16.mxu1 %v13464_v52 }
 0x3c9   : > { %12119 = vmatmul.mubr.msk.bf16.gmra.mrb[48].mxu1 %vm18590_vm7, %v16171_v19  ;;  %v18644_v19 = vld [vmem:[#allocation52_spill] sm:$0xff] }
 0x3ca   : > { %12122 = vmatprep.mubr.msk.bf16.mxu1 %vm18635_vm14, %v16179_v43  ;;  %vm18645_vm7 = vnez %v18644_v19  ;;  %v4388_v43 = vld [vmem:[#allocation2 + $0x11f] sm:$0xff]  ;;  %vm18647_vm14 = vnez %v18646_v63 }
 0x3cb   : > { %v10460_v16 = vpack.c.bf16 %v4388_v43, %v4387_v20  ;;  %v13481_v20 = vld [vmem:[%s18105_s9 + $0x8] sm:$0xff]   ;;  %v5006_v43 = vld [vmem:[#allocation2 + $0x51] sm:$0xff] }
 0x3d1   : > { %12123 = vmatmul.mubr.msk.bf16.gmra.mrb[52].mxu1 %vm18595_vm4, %v18636_v41  ;;  %v18659_v41 = vld [vmem:[#allocation96_spill] sm:$0xff] }
 0x3d2   : > { %12126 = vmatprep.mubr.msk.bf16.mxu1 %vm18640_vm13, %v18638_v15  ;;  %v18660_v15 = vld [vmem:[#allocation97_spill] sm:$0xff] }
 0x3d9   : > { %12127 = vmatmul.mubr.msk.bf16.gmra.mrb[56].mxu1 %vm18642_vm10, %v10454_v13  ;;  %v4742_v13 = vpack.c.bf16 %v14465_v56, %v14465_v56  ;;  %v13479_v56 = vld [vmem:[%s18110_s14 + $0x38] sm:$0xff]  }
 0x3da   : > { %12130 = vmatprep.mubr.msk.bf16.mxu1 %vm18645_vm7, %v18643_v6  ;;  %v13480_v6 = vld [vmem:[%s18105_s9] sm:$0xff]   ;;  %vm18663_vm7 = vnez %v18488_v4 }
 0x3db   : > { %12230 = vmatprep.subr.bf16.mxu0 %v13480_v6 }
 0x3dc   : > { %12231 = vmatpush3.bf16.msra.mxu0 %v13480_v6  ;;  %v5019_v6 = vld [vmem:[#allocation2 + $0xb9] sm:$0xff] }
 0x3dd   : > { %12232 = vmatprep.subr.bf16.mxu0 %v13481_v20 }
 0x3e0   : > { %12233 = vmatpush3.bf16.msra.mxu0 %v13481_v20  ;;  %v5020_v20 = vld [vmem:[#allocation2 + $0xc1] sm:$0xff] }
 0x3e1   : > { %12131 = vmatmul.mubr.msk.bf16.gmra.mrb[60].mxu1 %vm18647_vm14, %v10460_v16  ;;  %vm18662_vm14 = vnez %v18620_v27  ;;  %v5005_v16 = vld [vmem:[#allocation2 + $0x49] sm:$0xff] }
 0x3e2   : > { %12150 = vmatprep.mubr.bf16.mxu1 %v18648_v33  ;;  %v13473_v33 = vld [vmem:[%s18110_s14 + $0x8] sm:$0xff]  }
 0x3e9   : > { %12151 = vmatmul.mubr.bf16.vlgmr.msra.gmra.mrb[32].mxu1 %v18649_v39  ;;  %v5007_v39 = vld [vmem:[#allocation2 + $0x59] sm:$0xff] }
 0x3ea   : > { %12183 = vmatpush3.bf16.msra.mxu1 %v13464_v52  ;;  %12154 = vmatprep.mubr.bf16.mxu1 %v18650_v17  ;;  %v18658_v52 = vld [vmem:[#allocation95_spill] sm:$0xff]  ;;  %v5008_v17 = vld [vmem:[#allocation2 + $0x61] sm:$0xff] }
 0x3eb   : > { %12184 = vmatprep.subr.bf16.mxu1 %v13465_v40 }
 0x3ee   : > { %12185 = vmatpush3.bf16.msra.mxu1 %v13465_v40  ;;  %v10517_v40 = vpack.c.bf16 %v5006_v43, %v5005_v16  ;;  %v5022_v43 = vld [vmem:[#allocation2 + $0xd1] sm:$0xff]  ;;  %v5021_v16 = vld [vmem:[#allocation2 + $0xc9] sm:$0xff] }
 0x3ef   : > { %12186 = vmatprep.subr.bf16.mxu1 %v13466_v14 }
 0x3f1   : > { %12155 = vmatmul.mubr.bf16.gmra.mrb[36].mxu1 %v18651_v31  ;;  %v5009_v31 = vld [vmem:[#allocation2 + $0x69] sm:$0xff] }
 0x3f2   : > { %12158 = vmatprep.mubr.bf16.mxu1 %v18652_v48  ;;  %12187 = vmatpush3.bf16.msra.mxu1 %v13466_v14  ;;  %v5010_v14 = vld [vmem:[#allocation2 + $0x71] sm:$0xff] }
 0x3f3   : > { %12188 = vmatprep.subr.bf16.mxu1 %v13467_v60  ;;  %v10523_v48 = vpack.c.bf16 %v5010_v14, %v5009_v31  ;;  %v5025_v14 = vld [vmem:[#allocation2 + $0xe9] sm:$0xff]  ;;  %v5027_v31 = vld [vmem:[#allocation2 + $0xf9] sm:$0xff] }
 0x3f6   : > { %12189 = vmatpush3.bf16.msra.mxu1 %v13467_v60  ;;  %v10520_v60 = vpack.c.bf16 %v5008_v17, %v5007_v39  ;;  %v5026_v39 = vld [vmem:[#allocation2 + $0xf1] sm:$0xff] }
 0x3f7   : > { %12190 = vmatprep.subr.bf16.mxu1 %v13468_v24 }
 0x3f9   : > { %12159 = vmatmul.mubr.bf16.gmra.mrb[40].mxu1 %v18653_v26  ;;  %v5012_v26 = vld [vmem:[#allocation2 + $0x81] sm:$0xff] }
 0x3fa   : > { %12162 = vmatprep.mubr.bf16.mxu1 %v18654_v30  ;;  %12191 = vmatpush3.bf16.msra.mxu1 %v13468_v24  ;;  %v13476_v24 = vld [vmem:[%s18110_s14 + $0x20] sm:$0xff]   ;;  %v5014_v30 = vld [vmem:[#allocation2 + $0x91] sm:$0xff] }
 0x3fb   : > { %12192 = vmatprep.subr.bf16.mxu1 %v13469_v51 }
 0x3fe   : > { %12193 = vmatpush3.bf16.msra.mxu1 %v13469_v51  ;;  %v5011_v51 = vld [vmem:[#allocation2 + $0x79] sm:$0xff] }
 0x3ff   : > { %12194 = vmatprep.subr.bf16.mxu1 %v13470_v45 }
 0x401   : > { %12163 = vmatmul.mubr.bf16.gmra.mrb[44].mxu1 %v18655_v22  ;;  %v13477_v22 = vld [vmem:[%s18110_s14 + $0x28] sm:$0xff]  }
 0x402   : > { %12166 = vmatprep.mubr.bf16.mxu1 %v18656_v37  ;;  %12195 = vmatpush3.bf16.msra.mxu1 %v13470_v45  ;;  %v10526_v45 = vpack.c.bf16 %v5012_v26, %v5011_v51  ;;  %v5032_v51 = vld [vmem:[#allocation2 + $0x121] sm:$0xff] }
 0x403   : > { %12196 = vmatprep.subr.bf16.mxu1 %v13471_v55 }
 0x406   : > { %12197 = vmatpush3.bf16.msra.mxu1 %v13471_v55  ;;  %v5013_v55 = vld [vmem:[#allocation2 + $0x89] sm:$0xff] }
 0x407   : > { %12710 = vmatprep.subr.bf16.mxu1 %v13472_v25  ;;  %v10529_v37 = vpack.c.bf16 %v5014_v30, %v5013_v55  ;;  %v18671_v30 = vld [vmem:[#allocation63_spill] sm:$0xff] }
 0x409   : > { %12167 = vmatmul.mubr.bf16.gmra.mrb[48].mxu1 %v18657_v2  ;;  %v5015_v2 = vld [vmem:[#allocation2 + $0x99] sm:$0xff] }
 0x40a   : > { %12170 = vmatprep.mubr.bf16.mxu1 %v18658_v52  ;;  %v5016_v52 = vld [vmem:[#allocation2 + $0xa1] sm:$0xff] }
 0x411   : > { %12171 = vmatmul.mubr.bf16.gmra.mrb[52].mxu1 %v18659_v41  ;;  %v5018_v41 = vld [vmem:[#allocation2 + $0xb1] sm:$0xff] }
 0x412   : > { %12174 = vmatprep.mubr.bf16.mxu1 %v18660_v15  ;;  %v10532_v15 = vpack.c.bf16 %v5016_v52, %v5015_v2  ;;  %v18677_v2 = vld [vmem:[#allocation67_spill] sm:$0xff]  ;;  %v18678_v52 = vld [vmem:[#allocation65_spill] sm:$0xff] }
 0x419   : > { %12175 = vmatmul.mubr.bf16.gmra.mrb[56].mxu1 %v18661_v32  ;;  %v5017_v32 = vld [vmem:[#allocation2 + $0xa9] sm:$0xff] }
 0x41a   : > { %12178 = vmatprep.mubr.bf16.mxu1 %v16268_v50  ;;  %v13482_v50 = vld [vmem:[%s18105_s9 + $0x10] sm:$0xff]  }
 0x41b   : > { %12234 = vmatprep.subr.bf16.mxu0 %v13482_v50 }
 0x41c   : > { %12235 = vmatpush3.bf16.msra.mxu0 %v13482_v50  ;;  %v10538_v50 = vpack.c.bf16 %v5020_v20, %v5019_v6  ;;  %v18686_v20 = vld [vmem:[#allocation70_spill] sm:$0xff] }
 0x421   : > { %12179 = vmatmul.mubr.bf16.gmra.mrb[60].mxu1 %v4742_v13  ;;  %v10535_v13 = vpack.c.bf16 %v5018_v41, %v5017_v32  ;;  %v18679_v41 = vpack.c.bf16 %v18677_v2, %v18678_v52  ;;  %v18710_v52 = vld [vmem:[#allocation87_spill] sm:$0xff] }
 0x422   : > { %12198 = vmatprep.mubr.msk.bf16.mxu1 %vm18662_vm14, %v16273_v59  ;;  %vm18664_vm14 = vnez %v18490_v12  ;;  %v13474_v59 = vld [vmem:[%s18110_s14 + $0x10] sm:$0xff]  }
 0x429   : > { %12199 = vmatmul.mubr.msk.bf16.vlgmr.msra.gmra.mrb[32].mxu1 %vm18663_vm7, %v16278_v62  ;;  %v13475_v62 = vld [vmem:[%s18110_s14 + $0x18] sm:$0xff]   ;;  %vm18666_vm7 = vnez %v18504_v58 }
 0x42a   : > { %12202 = vmatprep.mubr.msk.bf16.mxu1 %vm18664_vm14, %v10517_v40  ;;  %12711 = vmatpush3.bf16.msra.mxu1 %v13472_v25  ;;  %vm18665_vm14 = vnez %v18502_v23  ;;  %v13478_v25 = vld [vmem:[%s18110_s14 + $0x30] sm:$0xff]   ;;  %v5023_v40 = vld [vmem:[#allocation2 + $0xd9] sm:$0xff] }
 0x42b   : > { %12712 = vmatprep.subr.bf16.mxu1 %v13473_v33 }
 0x42e   : > { %12713 = vmatpush3.bf16.msra.mxu1 %v13473_v33  ;;  %v10541_v33 = vpack.c.bf16 %v5022_v43, %v5021_v16  ;;  %v18687_v43 = vld [vmem:[#allocation68_spill] sm:$0xff]  ;;  %v18689_v16 = vld [vmem:[#allocation77_spill] sm:$0xff] }
 0x42f   : > { %12714 = vmatprep.subr.bf16.mxu1 %v13474_v59 }
 0x431   : > { %12203 = vmatmul.mubr.msk.bf16.gmra.mrb[36].mxu1 %vm18665_vm14, %v10520_v60  ;;  %vm18668_vm14 = vnez %v18516_v49  ;;  %v10547_v60 = vpack.c.bf16 %v5026_v39, %v5025_v14  ;;  %v18693_v39 = vld [vmem:[#allocation73_spill] sm:$0xff]  ;;  %v18695_v14 = vld [vmem:[#allocation56_spill] sm:$0xff] }
 0x432   : > { %12206 = vmatprep.mubr.msk.bf16.mxu1 %vm18666_vm7, %v10523_v48  ;;  %12715 = vmatpush3.bf16.msra.mxu1 %v13474_v59  ;;  %vm18667_vm7 = vnez %v18513_v9  ;;  %v5024_v59 = vld [vmem:[#allocation2 + $0xe1] sm:$0xff] }
 0x433   : > { %12716 = vmatprep.subr.bf16.mxu1 %v13475_v62  ;;  %v10544_v17 = vpack.c.bf16 %v5024_v59, %v5023_v40  ;;  %v18692_v59 = vld [vmem:[#allocation76_spill] sm:$0xff] }
 0x436   : > { %12717 = vmatpush3.bf16.msra.mxu1 %v13475_v62  ;;  %v5028_v62 = vld [vmem:[#allocation2 + $0x101] sm:$0xff] }
 0x437   : > { %12718 = vmatprep.subr.bf16.mxu1 %v13476_v24  ;;  %v10550_v48 = vpack.c.bf16 %v5028_v62, %v5027_v31  ;;  %v18698_v62 = vld [vmem:[#allocation54_spill] sm:$0xff] }
 0x439   : > { %12207 = vmatmul.mubr.msk.bf16.gmra.mrb[40].mxu1 %vm18667_vm7, %v10526_v45  ;;  %vm18670_vm7 = vnez %v18527_v38  ;;  %v18672_v45 = vld [vmem:[#allocation62_spill] sm:$0xff] }
 0x43a   : > { %12210 = vmatprep.mubr.msk.bf16.mxu1 %vm18668_vm14, %v10529_v37  ;;  %12719 = vmatpush3.bf16.msra.mxu1 %v13476_v24  ;;  %vm18669_vm14 = vnez %v18523_v8  ;;  %v5031_v24 = vld [vmem:[#allocation2 + $0x119] sm:$0xff]  ;;  %v18673_v55 = vpack.c.bf16 %v18671_v30, %v18672_v45 }
 0x43b   : > { %12720 = vmatprep.subr.bf16.mxu1 %v13477_v22  ;;  %v10556_v26 = vpack.c.bf16 %v5032_v51, %v5031_v24  ;;  %v18675_v37 = vld [vmem:[#allocation36_spill] sm:$0xff]  ;;  %v18701_v51 = vld [vmem:[#allocation82_spill] sm:$0xff]  ;;  %v18704_v45 = vld [vmem:[#allocation61_spill] sm:$0xff] }
 0x43e   : > { %12721 = vmatpush3.bf16.msra.mxu1 %v13477_v22  ;;  %v18674_v22 = vld [vmem:[#allocation37_spill] sm:$0xff] }
 0x43f   : > { %12722 = vmatprep.subr.bf16.mxu1 %v13478_v25 }
 0x441   : > { %12211 = vmatmul.mubr.msk.bf16.gmra.mrb[44].mxu1 %vm18669_vm14, %v10532_v15  ;;  %v18680_v15 = vld [vmem:[#allocation66_spill] sm:$0xff] }
 0x442   : > { %12214 = vmatprep.mubr.msk.bf16.mxu1 %vm18670_vm7, %v10535_v13  ;;  %12723 = vmatpush3.bf16.msra.mxu1 %v13478_v25  ;;  %v18676_v25 = vpack.c.bf16 %v18674_v22, %v18675_v37  ;;  %v18684_v13 = vld [vmem:[#allocation69_spill] sm:$0xff]  ;;  %v18707_v37 = vld [vmem:[#allocation88_spill] sm:$0xff] }
 0x443   : > { %12724 = vmatprep.subr.bf16.mxu1 %v13479_v56 }
 0x446   : > { %12725 = vmatpush3.bf16.msra.mxu1 %v13479_v56  ;;  %v18683_v56 = vld [vmem:[#allocation71_spill] sm:$0xff] }
 0x447   : > { %v18685_v6 = vpack.c.bf16 %v18683_v56, %v18684_v13  ;;  %v13483_v13 = vld [vmem:[%s18105_s9 + $0x18] sm:$0xff]  }
 0x448   : > { %12236 = vmatprep.subr.bf16.mxu0 %v13483_v13 }
 0x449   : > { %12215 = vmatmul.mubr.msk.bf16.gmra.mrb[48].mxu1 %vm18629_vm15, %v10538_v50  ;;  %v18688_v50 = vpack.c.bf16 %v18686_v20, %v18687_v43  ;;  %12237 = vmatpush3.bf16.msra.mxu0 %v13483_v13  ;;  %v18717_v20 = vld [vmem:[#allocation90_spill] sm:$0xff] }
 0x44a   : > { %12218 = vmatprep.mubr.msk.bf16.mxu1 %vm18630_vm12, %v10541_v33  ;;  %v18690_v33 = vld [vmem:[#allocation75_spill] sm:$0xff] }
 0x44b   : > { %v18691_v40 = vpack.c.bf16 %v18689_v16, %v18690_v33  ;;  %v13485_v16 = vld [vmem:[%s18105_s9 + $0x28] sm:$0xff]   ;;  %v13486_v33 = vld [vmem:[%s18105_s9 + $0x30] sm:$0xff]  }
 0x451   : > { %12219 = vmatmul.mubr.msk.bf16.gmra.mrb[52].mxu1 %vm18631_vm0, %v10544_v17  ;;  %v18694_v17 = vpack.c.bf16 %v18692_v59, %v18693_v39  ;;  %v16588_v59 = vld [vmem:[%s18107_s11 + $0x40] sm:$0xff]  }
 0x452   : > { %12222 = vmatprep.mubr.msk.bf16.mxu1 %vm18632_vm3, %v10547_v60  ;;  %v18696_v60 = vld [vmem:[#allocation53_spill] sm:$0xff] }
 0x453   : > { %v18697_v31 = vpack.c.bf16 %v18695_v14, %v18696_v60  ;;  %v16594_v39 = vld [vmem:[%s18104_s8] ss:$0 sm:$0xff] }
 0x459   : > { %12223 = vmatmul.mubr.msk.bf16.gmra.mrb[56].mxu1 %vm16041_vm8, %v10550_v48  ;;  %v18699_v48 = vld [vmem:[#allocation51_spill] sm:$0xff] }
 0x45a   : > { %12226 = vmatprep.mubr.msk.bf16.mxu1 %vm16048_vm1, %v16343_v42  ;;  %v18681_v42 = vld [vmem:[#allocation64_spill] sm:$0xff]  ;;  %v18700_v24 = vpack.c.bf16 %v18698_v62, %v18699_v48 }
 0x45b   : > { %v18682_v32 = vpack.c.bf16 %v18680_v15, %v18681_v42  ;;  %v18713_v42 = vld [vmem:[#allocation93_spill] sm:$0xff] }
 0x461   : > { %12227 = vmatmul.mubr.msk.bf16.gmra.mrb[60].mxu1 %vm16077_vm11, %v10556_v26  ;;  %v18702_v26 = vld [vmem:[#allocation60_spill] sm:$0xff] }
 0x462   : > { %12726 = vmatprep.mubr.bf16.mxu1 %v18673_v55  ;;  %v18703_v30 = vpack.c.bf16 %v18701_v51, %v18702_v26  ;;  %v18705_v55 = vld [vmem:[#allocation59_spill] sm:$0xff] }
 0x463   : > { %v18706_v22 = vpack.c.bf16 %v18704_v45, %v18705_v55 }
 0x469   : > { %12727 = vmatmul.mubr.bf16.vlgmr.msra.gmra.mrb[64].mxu1 %v18676_v25  ;;  %v18708_v25 = vld [vmem:[#allocation86_spill] sm:$0xff] }
 0x46a   : > { %12730 = vmatprep.mubr.bf16.mxu1 %v18679_v41  ;;  %v18709_v2 = vpack.c.bf16 %v18707_v37, %v18708_v25  ;;  %v18711_v41 = vld [vmem:[#allocation85_spill] sm:$0xff] }
 0x46b   : > { %v18712_v15 = vpack.c.bf16 %v18710_v52, %v18711_v41 }
 0x471   : > { %12731 = vmatmul.mubr.bf16.gmra.mrb[68].mxu1 %v18682_v32  ;;  %v18714_v32 = vld [vmem:[#allocation91_spill] sm:$0xff] }
 0x472   : > { %12734 = vmatprep.mubr.bf16.mxu1 %v18685_v6  ;;  %v18715_v56 = vpack.c.bf16 %v18713_v42, %v18714_v32  ;;  %v18716_v6 = vld [vmem:[#allocation92_spill] sm:$0xff] }
 0x473   : > { %v18718_v43 = vpack.c.bf16 %v18716_v6, %v18717_v20 }
 0x479   : > { %12735 = vmatmul.mubr.bf16.gmra.mrb[72].mxu1 %v18688_v50  ;;  %v13484_v50 = vld [vmem:[%s18105_s9 + $0x20] sm:$0xff]  }
 0x47a   : > { %12738 = vmatprep.mubr.bf16.mxu1 %v18691_v40  ;;  %12238 = vmatprep.subr.bf16.mxu0 %v13484_v50  ;;  %v13487_v40 = vld [vmem:[%s18105_s9 + $0x38] sm:$0xff]  }
 0x47b   : > { %12239 = vmatpush3.bf16.msra.mxu0 %v13484_v50 }
 0x47c   : > { %12240 = vmatprep.subr.bf16.mxu0 %v13485_v16 }
 0x47f   : > { %12241 = vmatpush3.bf16.msra.mxu0 %v13485_v16 }
 0x480   : > { %12242 = vmatprep.subr.bf16.mxu0 %v13486_v33 }
 0x481   : > { %12739 = vmatmul.mubr.bf16.gmra.mrb[76].mxu1 %v18694_v17 }
 0x482   : > { %12742 = vmatprep.mubr.bf16.mxu1 %v18697_v31 }
 0x483   : > { %12243 = vmatpush3.bf16.msra.mxu0 %v13486_v33 }
 0x484   : > { %12244 = vmatprep.subr.bf16.mxu0 %v13487_v40 }
 0x487   : > { %12245 = vmatpush3.bf16.msra.mxu0 %v13487_v40 }
 0x488   : > { %12278 = vmatprep.subr.bf16.mxu0 %v16588_v59 }
 0x489   : > { %12743 = vmatmul.mubr.bf16.gmra.mrb[80].mxu1 %v18700_v24 }
 0x48a   : > { %12746 = vmatprep.mubr.bf16.mxu1 %v18703_v30 }
 0x491   : > { %12747 = vmatmul.mubr.bf16.gmra.mrb[84].mxu1 %v18706_v22 }
 0x492   : > { %12750 = vmatprep.mubr.bf16.mxu1 %v18709_v2 }
 0x499   : > { %12751 = vmatmul.mubr.bf16.gmra.mrb[88].mxu1 %v18712_v15 }
 0x49a   : > { %12754 = vmatprep.mubr.bf16.mxu1 %v18715_v56 }
 0x4a1   : > { %12755 = vmatmul.mubr.bf16.gmra.mrb[92].mxu1 %v18718_v43 }
 0x4fc   : > { %v12200_v17 = vpop.f32.mrb[32].mxu1 }
 0x4fd   : > { %v16597_v14 = vadd.f32 %v12200_v17, %v16594_v39  ;;  %v5180_v60 = vpop.f32.mrb[33].mxu1 }
 0x4fe   : > { %v16600_v31 = vadd.f32 %v16594_v39, %v5180_v60  ;;  %v12201_v62 = vpop.f32.mrb[34].mxu1 }
 0x4ff   : > { %v5380_v48 = vsub.f32 0.0, %v16597_v14  ;;  %v16604_v24 = vadd.f32 %v12201_v62, %v16594_v39  ;;  %v5183_v51 = vpop.f32.mrb[35].mxu1 }
 0x500   : > { %v5378_v26 = vsub.f32 0.0, %v16600_v31  ;;  %v16608_v30 = vadd.f32 %v16594_v39, %v5183_v51 }
 0x501   : > { %v5414_v45 = vmul.f32 1.442695, %v5380_v48  ;;  %v5381_v55 = vsub.f32 0.0, %v16604_v24 }
 0x502   : > { %v5410_v22 = vmul.f32 1.442695, %v5378_v26  ;;  %v5379_v37 = vsub.f32 0.0, %v16608_v30 }
 0x503   : > { %13952 = vpow2.f32 %v5414_v45  ;;  %v5416_v25 = vmul.f32 1.442695, %v5381_v55 }
 0x504   : > { %13954 = vpow2.f32 %v5410_v22  ;;  %v5412_v2 = vmul.f32 1.442695, %v5379_v37  ;;  %v12204_v52 = vpop.f32.mrb[36].mxu1 }
 0x505   : > { %13956 = vpow2.f32 %v5416_v25  ;;  %v16613_v41 = vadd.f32 %v12204_v52, %v16594_v39  ;;  %v5196_v15 = vpop.f32.mrb[37].mxu1 }
 0x506   : > { %13958 = vpow2.f32 %v5412_v2  ;;  %v16616_v42 = vadd.f32 %v16594_v39, %v5196_v15  ;;  %v12205_v32 = vpop.f32.mrb[38].mxu1 }
 0x507   : > { %v5384_v56 = vsub.f32 0.0, %v16613_v41  ;;  %v16620_v13 = vadd.f32 %v12205_v32, %v16594_v39  ;;  %v5199_v6 = vpop.f32.mrb[39].mxu1 }
 0x508   : > { %v5382_v20 = vsub.f32 0.0, %v16616_v42  ;;  %v16624_v43 = vadd.f32 %v16594_v39, %v5199_v6 }
 0x509   : > { %v5422_v50 = vmul.f32 1.442695, %v5384_v56  ;;  %v5385_v16 = vsub.f32 0.0, %v16620_v13 }
 0x50a   : > { %v5418_v33 = vmul.f32 1.442695, %v5382_v20  ;;  %v5383_v40 = vsub.f32 0.0, %v16624_v43 }
 0x50b   : > { %13960 = vpow2.f32 %v5422_v50  ;;  %v5424_v17 = vmul.f32 1.442695, %v5385_v16 }
 0x50c   : > { %13962 = vpow2.f32 %v5418_v33  ;;  %v5420_v60 = vmul.f32 1.442695, %v5383_v40  ;;  %v12208_v62 = vpop.f32.mrb[40].mxu1 }
 0x50d   : > { %v13953_v48 = vpop.eup %13952  ;;  %13964 = vpow2.f32 %v5424_v17  ;;  %v16629_v51 = vadd.f32 %v12208_v62, %v16594_v39  ;;  %v5212_v26 = vpop.f32.mrb[41].mxu1 }
 0x50e   : > { %v13955_v45 = vpop.eup %13954  ;;  %v5476_v55 = vadd.f32 1.0, %v13953_v48  ;;  %13966 = vpow2.f32 %v5420_v60  ;;  %v16632_v22 = vadd.f32 %v16594_v39, %v5212_v26  ;;  %v12209_v37 = vpop.f32.mrb[42].mxu1 }
 0x50f   : > { %v13957_v25 = vpop.eup %13956  ;;  %v5474_v2 = vadd.f32 1.0, %v13955_v45  ;;  %v5388_v52 = vsub.f32 0.0, %v16629_v51  ;;  %v16636_v15 = vadd.f32 %v12209_v37, %v16594_v39  ;;  %v5215_v32 = vpop.f32.mrb[43].mxu1 }
 0x510   : > { %v13959_v56 = vpop.eup %13958  ;;  %13968 = vrcp.f32 %v5476_v55  ;;  %v5477_v6 = vadd.f32 1.0, %v13957_v25  ;;  %v5386_v20 = vsub.f32 0.0, %v16632_v22  ;;  %v16640_v50 = vadd.f32 %v16594_v39, %v5215_v32 }
 0x511   : > { %13970 = vrcp.f32 %v5474_v2  ;;  %v5475_v16 = vadd.f32 1.0, %v13959_v56  ;;  %v5430_v33 = vmul.f32 1.442695, %v5388_v52  ;;  %v5389_v40 = vsub.f32 0.0, %v16636_v15 }
 0x512   : > { %13972 = vrcp.f32 %v5477_v6  ;;  %v5426_v17 = vmul.f32 1.442695, %v5386_v20  ;;  %v5387_v60 = vsub.f32 0.0, %v16640_v50 }
 0x513   : > { %13974 = vrcp.f32 %v5475_v16  ;;  %v5432_v62 = vmul.f32 1.442695, %v5389_v40 }
 0x514   : > { %13976 = vpow2.f32 %v5430_v33  ;;  %v5428_v48 = vmul.f32 1.442695, %v5387_v60  ;;  %v12212_v26 = vpop.f32.mrb[44].mxu1 }
 0x515   : > { %v13961_v45 = vpop.eup %13960  ;;  %13978 = vpow2.f32 %v5426_v17  ;;  %v16645_v55 = vadd.f32 %v12212_v26, %v16594_v39  ;;  %v5228_v37 = vpop.f32.mrb[45].mxu1 }
 0x516   : > { %v13963_v25 = vpop.eup %13962  ;;  %v5480_v2 = vadd.f32 1.0, %v13961_v45  ;;  %13980 = vpow2.f32 %v5432_v62  ;;  %v16648_v52 = vadd.f32 %v16594_v39, %v5228_v37  ;;  %v12213_v32 = vpop.f32.mrb[46].mxu1 }
 0x517   : > { %v13965_v56 = vpop.eup %13964  ;;  %v5478_v6 = vadd.f32 1.0, %v13963_v25  ;;  %13982 = vpow2.f32 %v5428_v48  ;;  %v5392_v20 = vsub.f32 0.0, %v16645_v55  ;;  %v16652_v16 = vadd.f32 %v12213_v32, %v16594_v39  ;;  %v5231_v33 = vpop.f32.mrb[47].mxu1 }
 0x518   : > { %v13967_v40 = vpop.eup %13966  ;;  %13984 = vrcp.f32 %v5480_v2  ;;  %v5481_v17 = vadd.f32 1.0, %v13965_v56  ;;  %v5390_v60 = vsub.f32 0.0, %v16648_v52  ;;  %v16656_v62 = vadd.f32 %v16594_v39, %v5231_v33 }
 0x519   : > { %13986 = vrcp.f32 %v5478_v6  ;;  %v5479_v26 = vadd.f32 1.0, %v13967_v40  ;;  %v5438_v45 = vmul.f32 1.442695, %v5392_v20  ;;  %v5393_v37 = vsub.f32 0.0, %v16652_v16 }
 0x51a   : > { %v13969_v48 = vpop.eup %13968  ;;  %13988 = vrcp.f32 %v5481_v17  ;;  %v5434_v25 = vmul.f32 1.442695, %v5390_v60  ;;  %v5391_v32 = vsub.f32 0.0, %v16656_v62 }
 0x51b   : > { %v13971_v54 = vpop.eup %13970  ;;  %v5540_v11 = vmul.f32 %v13969_v48, %v16597_v14  ;;  %13990 = vrcp.f32 %v5479_v26  ;;  %v5440_v2 = vmul.f32 1.442695, %v5393_v37 }
 0x51c   : > { %v13973_v56 = vpop.eup %13972  ;;  %13992 = vpow2.f32 %v5438_v45  ;;  %v5436_v61 = vmul.f32 1.442695, %v5391_v32  ;;  %v12216_v33 = vpop.f32.mrb[48].mxu1  ;;  %v5538_v6 = vmul.f32 %v13971_v54, %v16600_v31  ;;  %v18721_v54 = vld [vmem:[#allocation4_spill] sm:$0xff] }
 0x51d   : > { %v13975_v0 = vpop.eup %13974  ;;  %v5541_v20 = vmul.f32 %v13973_v56, %v16604_v24  ;;  %13994 = vpow2.f32 %v5434_v25  ;;  %v16664_v40 = vadd.f32 %v12216_v33, %v16594_v39  ;;  %v5244_v17 = vpop.f32.mrb[49].mxu1  ;;  %v16667_v35 = vadd.f32 %v5540_v11, %v18719_v36  ;;  %v18723_v56 = vld [vmem:[#allocation6_spill] sm:$0xff]  ;;  %v18725_v33 = vld [vmem:[#allocation5_spill] sm:$0xff] }
 0x51e   : > { %v13977_v60 = vpop.eup %13976  ;;  %v5539_v14 = vmul.f32 %v13975_v0, %v16608_v30  ;;  %13996 = vpow2.f32 %v5440_v2  ;;  %v16671_v26 = vadd.f32 %v16594_v39, %v5244_v17  ;;  %v12217_v45 = vpop.f32.mrb[50].mxu1  ;;  %v16685_v17 = vadd.f32 %v5538_v6, %v18725_v33 }
 0x51f   : > { %18720 = vst [vmem:[#allocation58_spill] sm:$0xff] %v16667_v35  ;;  %v13979_v37 = vpop.eup %13978  ;;  %v16674_v31 = vadd.f32 %v5541_v20, %v18721_v54  ;;  %v5484_v24 = vadd.f32 1.0, %v13977_v60  ;;  %13998 = vpow2.f32 %v5436_v61  ;;  %v5396_v48 = vsub.f32 0.0, %v16664_v40  ;;  %v5247_v25 = vpop.f32.mrb[51].mxu1 }
 0x520   : > { %v13981_v32 = vpop.eup %13980  ;;  %v16678_v36 = vadd.f32 %v5539_v14, %v18723_v56  ;;  %v5482_v11 = vadd.f32 1.0, %v13979_v37  ;;  %v5394_v0 = vsub.f32 0.0, %v16671_v26  ;;  %v16682_v30 = vadd.f32 %v12217_v45, %v16594_v39  ;;  %18726 = vst [vmem:[#allocation39_spill] sm:$0xff] %v16685_v17 }
 0x521   : > { %18722 = vst [vmem:[#allocation35_spill] sm:$0xff] %v16674_v31  ;;  %v13983_v2 = vpop.eup %13982  ;;  %14000 = vrcp.f32 %v5484_v24  ;;  %v5485_v20 = vadd.f32 1.0, %v13981_v32  ;;  %v5446_v61 = vmul.f32 1.442695, %v5396_v48  ;;  %v16690_v45 = vadd.f32 %v16594_v39, %v5247_v25 }
 0x522   : > { %18724 = vst [vmem:[#allocation38_spill] sm:$0xff] %v16678_v36  ;;  %v13985_v60 = vpop.eup %13984  ;;  %14002 = vrcp.f32 %v5482_v11  ;;  %v5483_v54 = vadd.f32 1.0, %v13983_v2  ;;  %v5442_v21 = vmul.f32 1.442695, %v5394_v0  ;;  %v5397_v14 = vsub.f32 0.0, %v16682_v30  ;;  %v18727_v2 = vld [vmem:[#allocation7_spill] sm:$0xff] }
 0x523   : > { %v13987_v56 = vpop.eup %13986  ;;  %v5544_v37 = vmul.f32 %v13985_v60, %v16613_v41  ;;  %14004 = vrcp.f32 %v5485_v20  ;;  %v5602_v6 = vpack.c.bf16 %v16678_v36, %v16685_v17  ;;  %v5603_v24 = vpack.c.bf16 %v16674_v31, %v16667_v35  ;;  %v13489_v41 = vld [vmem:[%s18107_s11 + $0x48] sm:$0xff]   ;;  %v18731_v17 = vld [vmem:[#allocation9_spill] sm:$0xff] }
 0x524   : > { %v13989_v33 = vpop.eup %13988  ;;  %v5542_v48 = vmul.f32 %v13987_v56, %v16616_v42  ;;  %14006 = vrcp.f32 %v5483_v54  ;;  %v5448_v32 = vmul.f32 1.442695, %v5397_v14  ;;  %v12220_v11 = vpop.f32.mrb[52].mxu1  ;;  %v5395_v60 = vsub.f32 0.0, %v16690_v45  ;;  %v18729_v42 = vld [vmem:[#allocation8_spill] sm:$0xff] }
 0x525   : > { %v13991_v0 = vpop.eup %13990  ;;  %v16701_v25 = vadd.f32 %v5544_v37, %v18727_v2  ;;  %v5545_v20 = vmul.f32 %v13989_v33, %v16620_v13  ;;  %14008 = vpow2.f32 %v5446_v61  ;;  %12246 = vmatprep.mubr.bf16.mxu0 %v5602_v6  ;;  %v5260_v36 = vpop.f32.mrb[53].mxu1  ;;  %v16710_v56 = vadd.f32 %v12220_v11, %v16594_v39 }
 0x526   : > { %v13993_v31 = vpop.eup %13992  ;;  %v16706_v54 = vadd.f32 %v5542_v48, %v18729_v42  ;;  %v5543_v14 = vmul.f32 %v13991_v0, %v16624_v43  ;;  %14010 = vpow2.f32 %v5442_v21  ;;  %12247 = vmatmul.mubr.bf16.vlgmr.msra.gmra.mrb[64].mxu0 %v5603_v24  ;;  %v12221_v37 = vpop.f32.mrb[54].mxu1  ;;  %v5444_v6 = vmul.f32 1.442695, %v5395_v60  ;;  %v18733_v42 = vld [vmem:[#allocation10_spill] sm:$0xff] }
 0x527   : > { %18728 = vst [vmem:[#allocation40_spill] sm:$0xff] %v16701_v25  ;;  %v13995_v2 = vpop.eup %13994  ;;  %v16713_v13 = vadd.f32 %v5545_v20, %v18731_v17  ;;  %v5488_v61 = vadd.f32 1.0, %v13993_v31  ;;  %14012 = vpow2.f32 %v5448_v32  ;;  %v5263_v33 = vpop.f32.mrb[55].mxu1  ;;  %12279 = vmatpush3.bf16.msra.mxu0 %v16588_v59  ;;  %v5400_v43 = vsub.f32 0.0, %v16710_v56  ;;  %v13490_v31 = vld [vmem:[%s18107_s11 + $0x50] sm:$0xff]  }
 0x528   : > { %18730 = vst [vmem:[#allocation41_spill] sm:$0xff] %v16706_v54  ;;  %v13997_v48 = vpop.eup %13996  ;;  %v16717_v35 = vadd.f32 %v5543_v14, %v18733_v42  ;;  %v5486_v21 = vadd.f32 1.0, %v13995_v2  ;;  %v16721_v24 = vadd.f32 %v16594_v39, %v5260_v36  ;;  %12280 = vmatprep.subr.bf16.mxu0 %v13489_v41  ;;  %v16727_v59 = vadd.f32 %v12221_v37, %v16594_v39 }
 0x529   : > { %18732 = vst [vmem:[#allocation42_spill] sm:$0xff] %v16713_v13  ;;  %v13999_v17 = vpop.eup %13998  ;;  %14014 = vrcp.f32 %v5488_v61  ;;  %v5489_v32 = vadd.f32 1.0, %v13997_v48  ;;  %v16730_v11 = vadd.f32 %v16594_v39, %v5263_v33  ;;  %v5454_v20 = vmul.f32 1.442695, %v5400_v43 }
 0x52a   : > { %18734 = vst [vmem:[#allocation43_spill] sm:$0xff] %v16717_v35  ;;  %14016 = vrcp.f32 %v5486_v21  ;;  %v5487_v0 = vadd.f32 1.0, %v13999_v17  ;;  %v5398_v36 = vsub.f32 0.0, %v16721_v24  ;;  %v5401_v14 = vsub.f32 0.0, %v16727_v59 }
 0x52b   : > { %v14001_v60 = vpop.eup %14000  ;;  %14018 = vrcp.f32 %v5489_v32  ;;  %v5399_v2 = vsub.f32 0.0, %v16730_v11  ;;  %v5604_v61 = vpack.c.bf16 %v16717_v35, %v16706_v54  ;;  %12281 = vmatpush3.bf16.msra.mxu0 %v13489_v41  ;;  %v5605_v21 = vpack.c.bf16 %v16713_v13, %v16701_v25  ;;  %v18735_v41 = vld [vmem:[#allocation14_spill] sm:$0xff]  ;;  %v18737_v13 = vld [vmem:[#allocation11_spill] sm:$0xff] }
 0x52c   : > { %v14003_v37 = vpop.eup %14002  ;;  %v5548_v48 = vmul.f32 %v14001_v60, %v16629_v51  ;;  %14020 = vrcp.f32 %v5487_v0  ;;  %v5450_v33 = vmul.f32 1.442695, %v5398_v36  ;;  %v12224_v42 = vpop.f32.mrb[56].mxu1  ;;  %12282 = vmatprep.subr.bf16.mxu0 %v13490_v31  ;;  %v5456_v32 = vmul.f32 1.442695, %v5401_v14 }
 0x52d   : > { %v14005_v43 = vpop.eup %14004  ;;  %v5546_v17 = vmul.f32 %v14003_v37, %v16632_v22  ;;  %14022 = vpow2.f32 %v5444_v6  ;;  %v5452_v38 = vmul.f32 1.442695, %v5399_v2  ;;  %12250 = vmatprep.mubr.bf16.mxu0 %v5604_v61  ;;  %v5276_v8 = vpop.f32.mrb[57].mxu1  ;;  %v16746_v0 = vadd.f32 %v12224_v42, %v16594_v39 }
 0x52e   : > { %v14007_v35 = vpop.eup %14006  ;;  %v16742_v54 = vadd.f32 %v5548_v48, %v18735_v41  ;;  %v5549_v51 = vmul.f32 %v14005_v43, %v16636_v15  ;;  %14024 = vpow2.f32 %v5454_v20  ;;  %12251 = vmatmul.mubr.bf16.gmra.mrb[68].mxu0 %v5605_v21  ;;  %v12225_v36 = vpop.f32.mrb[58].mxu1  ;;  %v16753_v14 = vadd.f32 %v16594_v39, %v5276_v8  ;;  %v18739_v15 = vld [vmem:[#allocation12_spill] sm:$0xff]  ;;  %v18741_v21 = vld [vmem:[#allocation13_spill] sm:$0xff] }
 0x52f   : > { %v14009_v60 = vpop.eup %14008  ;;  %v16749_v22 = vadd.f32 %v5546_v17, %v18737_v13  ;;  %v5547_v6 = vmul.f32 %v14007_v35, %v16640_v50  ;;  %14026 = vpow2.f32 %v5450_v33  ;;  %v5279_v2 = vpop.f32.mrb[59].mxu1  ;;  %12283 = vmatpush3.bf16.msra.mxu0 %v13490_v31  ;;  %v5404_v48 = vsub.f32 0.0, %v16746_v0 }
 0x530   : > { %18736 = vst [vmem:[#allocation44_spill] sm:$0xff] %v16742_v54  ;;  %v14011_v61 = vpop.eup %14010  ;;  %v16756_v20 = vadd.f32 %v5549_v51, %v18739_v15  ;;  %v5492_v37 = vadd.f32 1.0, %v14009_v60  ;;  %14028 = vpow2.f32 %v5456_v32  ;;  %v5402_v35 = vsub.f32 0.0, %v16753_v14 }
 0x531   : > { %18738 = vst [vmem:[#allocation45_spill] sm:$0xff] %v16749_v22  ;;  %v14013_v42 = vpop.eup %14012  ;;  %v16760_v13 = vadd.f32 %v5547_v6, %v18741_v21  ;;  %v5490_v43 = vadd.f32 1.0, %v14011_v61  ;;  %14030 = vpow2.f32 %v5452_v38  ;;  %v5462_v50 = vmul.f32 1.442695, %v5404_v48 }
 0x532   : > { %18740 = vst [vmem:[#allocation46_spill] sm:$0xff] %v16756_v20  ;;  %14032 = vrcp.f32 %v5492_v37  ;;  %v5493_v8 = vadd.f32 1.0, %v14013_v42  ;;  %v16764_v31 = vadd.f32 %v12225_v36, %v16594_v39  ;;  %v5458_v17 = vmul.f32 1.442695, %v5402_v35 }
 0x533   : > { %18742 = vst [vmem:[#allocation47_spill] sm:$0xff] %v16760_v13  ;;  %v14015_v33 = vpop.eup %14014  ;;  %14034 = vrcp.f32 %v5490_v43  ;;  %v16767_v32 = vadd.f32 %v16594_v39, %v5279_v2  ;;  %v5606_v41 = vpack.c.bf16 %v16760_v13, %v16749_v22  ;;  %v5607_v36 = vpack.c.bf16 %v16756_v20, %v16742_v54  ;;  %v18747_v22 = vld [vmem:[#allocation16_spill] sm:$0xff] }
 0x534   : > { %v14017_v51 = vpop.eup %14016  ;;  %v5552_v38 = vmul.f32 %v14015_v33, %v16645_v55  ;;  %14036 = vrcp.f32 %v5493_v8  ;;  %v5405_v60 = vsub.f32 0.0, %v16764_v31  ;;  %v12228_v6 = vpop.f32.mrb[60].mxu1  ;;  %v18743_v55 = vld [vmem:[#allocation15_spill] sm:$0xff] }
 0x535   : > { %v14019_v61 = vpop.eup %14018  ;;  %v5550_v15 = vmul.f32 %v14017_v51, %v16648_v52  ;;  %14038 = vpow2.f32 %v5462_v50  ;;  %v5403_v2 = vsub.f32 0.0, %v16767_v32  ;;  %v16778_v37 = vadd.f32 %v12228_v6, %v16594_v39  ;;  %12254 = vmatprep.mubr.bf16.mxu0 %v5606_v41  ;;  %v5292_v48 = vpop.f32.mrb[61].mxu1  ;;  %v18745_v52 = vld [vmem:[#allocation18_spill] sm:$0xff] }
 0x536   : > { %v14021_v42 = vpop.eup %14020  ;;  %v16781_v21 = vadd.f32 %v5552_v38, %v18743_v55  ;;  %v5553_v43 = vmul.f32 %v14019_v61, %v16652_v16  ;;  %14040 = vpow2.f32 %v5458_v17  ;;  %v5464_v35 = vmul.f32 1.442695, %v5405_v60  ;;  %12255 = vmatmul.mubr.bf16.gmra.mrb[72].mxu0 %v5607_v36  ;;  %v12229_v8 = vpop.f32.mrb[62].mxu1  ;;  %v18749_v60 = vld [vmem:[#allocation17_spill] sm:$0xff] }
 0x537   : > { %v14023_v33 = vpop.eup %14022  ;;  %v16785_v50 = vadd.f32 %v5550_v15, %v18745_v52  ;;  %v5551_v51 = vmul.f32 %v14021_v42, %v16656_v62  ;;  %v5460_v6 = vmul.f32 1.442695, %v5403_v2  ;;  %v5408_v41 = vsub.f32 0.0, %v16778_v37  ;;  %v5295_v13 = vpop.f32.mrb[63].mxu1 }
 0x538   : > { %18744 = vst [vmem:[#allocation57_spill] sm:$0xff] %v16781_v21  ;;  %v14025_v20 = vpop.eup %14024  ;;  %v16790_v38 = vadd.f32 %v5553_v43, %v18747_v22  ;;  %v5491_v55 = vadd.f32 1.0, %v14023_v33  ;;  %14042 = vpow2.f32 %v5464_v35  ;;  %v16793_v16 = vadd.f32 %v16594_v39, %v5292_v48 }
 0x539   : > { %18746 = vst [vmem:[#allocation94_spill] sm:$0xff] %v16785_v50  ;;  %v14027_v17 = vpop.eup %14026  ;;  %v16796_v36 = vadd.f32 %v5551_v51, %v18749_v60  ;;  %v5496_v61 = vadd.f32 1.0, %v14025_v20  ;;  %14044 = vpow2.f32 %v5460_v6  ;;  %v5470_v62 = vmul.f32 1.442695, %v5408_v41 }
 0x53a   : > { %18748 = vst [vmem:[#allocation95_spill] sm:$0xff] %v16790_v38  ;;  %v14029_v15 = vpop.eup %14028  ;;  %14046 = vrcp.f32 %v5491_v55  ;;  %v5494_v2 = vadd.f32 1.0, %v14027_v17  ;;  %v5406_v42 = vsub.f32 0.0, %v16793_v16  ;;  %v16800_v22 = vadd.f32 %v12229_v8, %v16594_v39 }
 0x53b   : > { %18750 = vst [vmem:[#allocation96_spill] sm:$0xff] %v16796_v36  ;;  %v14031_v43 = vpop.eup %14030  ;;  %14048 = vrcp.f32 %v5496_v61  ;;  %v5497_v35 = vadd.f32 1.0, %v14029_v15  ;;  %v16803_v48 = vadd.f32 %v16594_v39, %v5295_v13  ;;  %v5608_v33 = vpack.c.bf16 %v16796_v36, %v16785_v50 }
 0x53c   : > { %v14033_v20 = vpop.eup %14032  ;;  %14050 = vrcp.f32 %v5494_v2  ;;  %v5495_v52 = vadd.f32 1.0, %v14031_v43  ;;  %v5466_v51 = vmul.f32 1.442695, %v5406_v42  ;;  %v5409_v6 = vsub.f32 0.0, %v16800_v22 }
 0x53d   : > { %v14035_v41 = vpop.eup %14034  ;;  %14052 = vrcp.f32 %v5497_v35  ;;  %v5407_v8 = vsub.f32 0.0, %v16803_v48  ;;  %12258 = vmatprep.mubr.bf16.mxu0 %v5608_v33  ;;  %v5609_v55 = vpack.c.bf16 %v16790_v38, %v16781_v21 }
 0x53e   : > { %v14037_v17 = vpop.eup %14036  ;;  %14054 = vrcp.f32 %v5495_v52  ;;  %v5472_v39 = vmul.f32 1.442695, %v5409_v6  ;;  %v5554_v35 = vmul.f32 %v14035_v41, %v16671_v26  ;;  %v5556_v52 = vmul.f32 %v14033_v20, %v16664_v40  ;;  %v18755_v41 = vld [vmem:[#allocation21_spill] sm:$0xff] }
 0x53f   : > { %v14039_v13 = vpop.eup %14038  ;;  %14056 = vpow2.f32 %v5470_v62  ;;  %12259 = vmatmul.mubr.bf16.gmra.mrb[76].mxu0 %v5609_v55  ;;  %v5468_v61 = vmul.f32 1.442695, %v5407_v8  ;;  %v5557_v42 = vmul.f32 %v14037_v17, %v16682_v30  ;;  %v18751_v55 = vld [vmem:[#allocation20_spill] sm:$0xff]  ;;  %v18753_v17 = vld [vmem:[#allocation19_spill] sm:$0xff] }
 0x540   : > { %v14041_v60 = vpop.eup %14040  ;;  %14058 = vpow2.f32 %v5466_v51  ;;  %v5500_v33 = vadd.f32 1.0, %v14039_v13  ;;  %v16819_v26 = vadd.f32 %v5554_v35, %v18753_v17  ;;  %v18759_v35 = vld [vmem:[#allocation23_spill] sm:$0xff]  ;;  %v18763_v17 = vld [vmem:[#allocation24_spill] sm:$0xff] }
 0x541   : > { %v5498_v15 = vadd.f32 1.0, %v14041_v60  ;;  %14060 = vpow2.f32 %v5472_v39  ;;  %v16816_v39 = vadd.f32 %v5557_v42, %v18751_v55  ;;  %v18757_v60 = vld [vmem:[#allocation22_spill] sm:$0xff] }
 0x542   : > { %v14043_v2 = vpop.eup %14042  ;;  %18754 = vst [vmem:[#allocation98_spill] sm:$0xff] %v16819_v26 }
 0x543   : > { %v14045_v43 = vpop.eup %14044  ;;  %14062 = vrcp.f32 %v5498_v15  ;;  %v5501_v36 = vadd.f32 1.0, %v14043_v2  ;;  %18752 = vst [vmem:[#allocation97_spill] sm:$0xff] %v16816_v39 }
 0x544   : > { %v14047_v38 = vpop.eup %14046  ;;  %v5499_v6 = vadd.f32 1.0, %v14045_v43  ;;  %14064 = vpow2.f32 %v5468_v61  ;;  %v16826_v61 = vadd.f32 %v5556_v52, %v18757_v60 }
 0x545   : > { %v14049_v62 = vpop.eup %14048  ;;  %v5555_v51 = vmul.f32 %v14047_v38, %v16690_v45  ;;  %14066 = vrcp.f32 %v5501_v36 }
 0x546   : > { %v14051_v8 = vpop.eup %14050  ;;  %14068 = vrcp.f32 %v5499_v6  ;;  %18758 = vst [vmem:[#allocation62_spill] sm:$0xff] %v16826_v61  ;;  %v5611_v42 = vpack.c.bf16 %v16816_v39, %v16826_v61 }
 0x547   : > { %v14053_v30 = vpop.eup %14052  ;;  %v16822_v13 = vadd.f32 %v5555_v51, %v18755_v41  ;;  %v5558_v40 = vmul.f32 %v14051_v8, %v16721_v24  ;;  %14070 = vrcp.f32 %v5500_v33  ;;  %v18761_v33 = vld [vmem:[#allocation25_spill] sm:$0xff] }
 0x548   : > { %v14055_v20 = vpop.eup %14054  ;;  %v5561_v2 = vmul.f32 %v14053_v30, %v16727_v59 }
 0x549   : > { %18756 = vst [vmem:[#allocation63_spill] sm:$0xff] %v16822_v13  ;;  %v14057_v45 = vpop.eup %14056  ;;  %v5559_v38 = vmul.f32 %v14055_v20, %v16730_v11  ;;  %v5610_v36 = vpack.c.bf16 %v16822_v13, %v16819_v26  ;;  %v16835_v24 = vadd.f32 %v5558_v40, %v18759_v35  ;;  %v5560_v11 = vmul.f32 %v14049_v62, %v16710_v56  ;;  %v18765_v56 = vld [vmem:[#allocation26_spill] sm:$0xff] }
 0x54a   : > { %v14059_v15 = vpop.eup %14058  ;;  %v5504_v52 = vadd.f32 1.0, %v14057_v45  ;;  %v16844_v41 = vadd.f32 %v5561_v2, %v18763_v17 }
 0x54b   : > { %v14061_v43 = vpop.eup %14060  ;;  %18760 = vst [vmem:[#allocation37_spill] sm:$0xff] %v16835_v24  ;;  %v16838_v6 = vadd.f32 %v5559_v38, %v18761_v33  ;;  %v5502_v51 = vadd.f32 1.0, %v14059_v15  ;;  %12262 = vmatprep.mubr.bf16.mxu0 %v5610_v36  ;;  %v16848_v62 = vadd.f32 %v5560_v11, %v18765_v56 }
 0x54c   : > { %v5505_v8 = vadd.f32 1.0, %v14061_v43  ;;  %12263 = vmatmul.mubr.bf16.gmra.mrb[80].mxu0 %v5611_v42  ;;  %18764 = vst [vmem:[#allocation67_spill] sm:$0xff] %v16844_v41  ;;  %v18767_v42 = vld [vmem:[#allocation28_spill] sm:$0xff] }
 0x54d   : > { %18762 = vst [vmem:[#allocation36_spill] sm:$0xff] %v16838_v6  ;;  %v14063_v55 = vpop.eup %14062  ;;  %14072 = vrcp.f32 %v5502_v51  ;;  %v5612_v59 = vpack.c.bf16 %v16838_v6, %v16835_v24  ;;  %18766 = vst [vmem:[#allocation65_spill] sm:$0xff] %v16848_v62  ;;  %v5613_v2 = vpack.c.bf16 %v16844_v41, %v16848_v62  ;;  %v18771_v51 = vld [vmem:[#allocation27_spill] sm:$0xff] }
 0x54e   : > { %v14065_v30 = vpop.eup %14064  ;;  %14074 = vrcp.f32 %v5505_v8  ;;  %v5562_v20 = vmul.f32 %v14063_v55, %v16753_v14  ;;  %v18769_v14 = vld [vmem:[#allocation29_spill] sm:$0xff]  ;;  %v18773_v8 = vld [vmem:[#allocation30_spill] sm:$0xff] }
 0x54f   : > { %v14067_v40 = vpop.eup %14066  ;;  %14076 = vrcp.f32 %v5504_v52  ;;  %v5503_v60 = vadd.f32 1.0, %v14065_v30  ;;  %12266 = vmatprep.mubr.bf16.mxu0 %v5612_v59 }
 0x550   : > { %v14069_v45 = vpop.eup %14068  ;;  %v5565_v15 = vmul.f32 %v14067_v40, %v16764_v31  ;;  %v16855_v43 = vadd.f32 %v5562_v20, %v18767_v42 }
 0x551   : > { %v14071_v38 = vpop.eup %14070  ;;  %v5563_v36 = vmul.f32 %v14069_v45, %v16767_v32  ;;  %14078 = vrcp.f32 %v5503_v60  ;;  %v18775_v45 = vld [vmem:[#allocation32_spill] sm:$0xff] }
 0x552   : > { %18768 = vst [vmem:[#allocation66_spill] sm:$0xff] %v16855_v43  ;;  %v5564_v33 = vmul.f32 %v14071_v38, %v16746_v0  ;;  %v16864_v32 = vadd.f32 %v5565_v15, %v18771_v51  ;;  %v18777_v38 = vld [vmem:[#allocation31_spill] sm:$0xff]  ;;  %v18779_v15 = vld [vmem:[#allocation33_spill] sm:$0xff]  ;;  %v13495_v51 = vld [vmem:[%s18107_s11 + $0x78] sm:$0xff]  }
 0x553   : > { %v16858_v35 = vadd.f32 %v5563_v36, %v18769_v14  ;;  %v13492_v14 = vld [vmem:[%s18107_s11 + $0x60] sm:$0xff]  }
 0x554   : > { %12267 = vmatmul.mubr.bf16.gmra.mrb[84].mxu0 %v5613_v2  ;;  %18772 = vst [vmem:[#allocation71_spill] sm:$0xff] %v16864_v32  ;;  %v16867_v55 = vadd.f32 %v5564_v33, %v18773_v8  ;;  %v13493_v33 = vld [vmem:[%s18107_s11 + $0x68] sm:$0xff]   ;;  %v16909_v8 = vld [vmem:[%s18107_s11] sm:$0xff]  }
 0x555   : > { %18770 = vst [vmem:[#allocation64_spill] sm:$0xff] %v16858_v35  ;;  %v5614_v52 = vpack.c.bf16 %v16858_v35, %v16855_v43 }
 0x556   : > { %18774 = vst [vmem:[#allocation69_spill] sm:$0xff] %v16867_v55  ;;  %v5615_v0 = vpack.c.bf16 %v16864_v32, %v16867_v55 }
 0x557   : > { %v14073_v11 = vpop.eup %14072  ;;  %12270 = vmatprep.mubr.bf16.mxu0 %v5614_v52  ;;  %v13494_v52 = vld [vmem:[%s18107_s11 + $0x70] sm:$0xff]  }
 0x558   : > { %v14075_v31 = vpop.eup %14074  ;;  %v5566_v30 = vmul.f32 %v14073_v11, %v16793_v16  ;;  %v18781_v16 = vld [vmem:[#allocation34_spill] sm:$0xff] }
 0x559   : > { %v14077_v59 = vpop.eup %14076  ;;  %v5569_v17 = vmul.f32 %v14075_v31, %v16800_v22  ;;  %v14466_v11 = vld [vmem:[#allocation2 + $0x8] sm:$0xff] }
 0x55a   : > { %v5568_v20 = vmul.f32 %v14077_v59, %v16778_v37  ;;  %v16876_v56 = vadd.f32 %v5566_v30, %v18775_v45  ;;  %v6202_v31 = vpack.c.bf16 %v14466_v11, %v14466_v11  ;;  %v16915_v59 = vld [vmem:[%s18106_s10] ss:$0 sm:$0xff] }
 0x55b   : > { %v14079_v40 = vpop.eup %14078  ;;  %v16879_v36 = vadd.f32 %v5569_v17, %v18777_v38 }
 0x55c   : > { %v5567_v60 = vmul.f32 %v14079_v40, %v16803_v48  ;;  %12271 = vmatmul.mubr.bf16.gmra.mrb[88].mxu0 %v5615_v0  ;;  %18776 = vst [vmem:[#allocation70_spill] sm:$0xff] %v16876_v56  ;;  %v16885_v22 = vadd.f32 %v5568_v20, %v18781_v16  ;;  %v13491_v48 = vld [vmem:[%s18107_s11 + $0x58] sm:$0xff]  }
 0x55d   : > { %18778 = vst [vmem:[#allocation68_spill] sm:$0xff] %v16879_v36  ;;  %12284 = vmatprep.subr.bf16.mxu0 %v13491_v48 }
 0x55e   : > { %v16882_v2 = vadd.f32 %v5567_v60, %v18779_v15  ;;  %18782 = vst [vmem:[#allocation75_spill] sm:$0xff] %v16885_v22  ;;  %v5617_v37 = vpack.c.bf16 %v16879_v36, %v16885_v22  ;;  %12285 = vmatpush3.bf16.msra.mxu0 %v13491_v48 }
 0x55f   : > { %12286 = vmatprep.subr.bf16.mxu0 %v13492_v14 }
 0x560   : > { %18780 = vst [vmem:[#allocation77_spill] sm:$0xff] %v16882_v2  ;;  %v5616_v42 = vpack.c.bf16 %v16882_v2, %v16876_v56 }
 0x562   : > { %12274 = vmatprep.mubr.bf16.mxu0 %v5616_v42  ;;  %12287 = vmatpush3.bf16.msra.mxu0 %v13492_v14 }
 0x563   : > { %12288 = vmatprep.subr.bf16.mxu0 %v13493_v33 }
 0x564   : > { %12275 = vmatmul.mubr.bf16.gmra.mrb[92].mxu0 %v5617_v37 }
 0x565   : > { %12294 = vmatprep.mubr.bf16.mxu0 %v6202_v31 }
 0x566   : > { %12289 = vmatpush3.bf16.msra.mxu0 %v13493_v33 }
 0x567   : > { %12290 = vmatprep.subr.bf16.mxu0 %v13494_v52 }
 0x56a   : > { %12291 = vmatpush3.bf16.msra.mxu0 %v13494_v52 }
 0x56b   : > { %12292 = vmatprep.subr.bf16.mxu0 %v13495_v51 }
 0x56e   : > { %12293 = vmatpush3.bf16.msra.mxu0 %v13495_v51 }
 0x56f   : > { %12326 = vmatprep.subr.bf16.mxu0 %v16909_v8 }
 0x5f9   : > { %v12248_v30 = vpop.f32.mrb[64].mxu0 }
 0x5fa   : > { %v16918_v17 = vadd.f32 %v12248_v30, %v16915_v59  ;;  %v5723_v0 = vpop.f32.mrb[65].mxu0 }
 0x5fb   : > { %v16921_v40 = vadd.f32 %v16915_v59, %v5723_v0  ;;  %v12249_v20 = vpop.f32.mrb[66].mxu0 }
 0x5fc   : > { %v5852_v60 = vsub.f32 0.0, %v16918_v17  ;;  %v16925_v45 = vadd.f32 %v12249_v20, %v16915_v59  ;;  %v5726_v38 = vpop.f32.mrb[67].mxu0 }
 0x5fd   : > { %v5850_v15 = vsub.f32 0.0, %v16921_v40  ;;  %v16929_v16 = vadd.f32 %v16915_v59, %v5726_v38 }
 0x5fe   : > { %v5886_v42 = vmul.f32 1.442695, %v5852_v60  ;;  %v5853_v37 = vsub.f32 0.0, %v16925_v45 }
 0x5ff   : > { %v5882_v48 = vmul.f32 1.442695, %v5850_v15  ;;  %v5851_v14 = vsub.f32 0.0, %v16929_v16 }
 0x600   : > { %14080 = vpow2.f32 %v5886_v42  ;;  %v5888_v33 = vmul.f32 1.442695, %v5853_v37 }
 0x601   : > { %14082 = vpow2.f32 %v5882_v48  ;;  %v5884_v52 = vmul.f32 1.442695, %v5851_v14  ;;  %v12252_v51 = vpop.f32.mrb[68].mxu0 }
 0x602   : > { %14084 = vpow2.f32 %v5888_v33  ;;  %v16934_v11 = vadd.f32 %v12252_v51, %v16915_v59  ;;  %v5739_v31 = vpop.f32.mrb[69].mxu0 }
 0x603   : > { %14086 = vpow2.f32 %v5884_v52  ;;  %v16937_v30 = vadd.f32 %v16915_v59, %v5739_v31  ;;  %v12253_v0 = vpop.f32.mrb[70].mxu0 }
 0x604   : > { %v5856_v20 = vsub.f32 0.0, %v16934_v11  ;;  %v16941_v60 = vadd.f32 %v12253_v0, %v16915_v59  ;;  %v5742_v38 = vpop.f32.mrb[71].mxu0 }
 0x605   : > { %v5854_v15 = vsub.f32 0.0, %v16937_v30  ;;  %v16945_v42 = vadd.f32 %v16915_v59, %v5742_v38 }
 0x606   : > { %v5894_v37 = vmul.f32 1.442695, %v5856_v20  ;;  %v5857_v48 = vsub.f32 0.0, %v16941_v60 }
 0x607   : > { %v5890_v14 = vmul.f32 1.442695, %v5854_v15  ;;  %v5855_v33 = vsub.f32 0.0, %v16945_v42 }
 0x608   : > { %14088 = vpow2.f32 %v5894_v37  ;;  %v5896_v52 = vmul.f32 1.442695, %v5857_v48 }
 0x609   : > { %14090 = vpow2.f32 %v5890_v14  ;;  %v5892_v51 = vmul.f32 1.442695, %v5855_v33  ;;  %v12256_v31 = vpop.f32.mrb[72].mxu0 }
 0x60a   : > { %v14081_v2 = vpop.eup %14080  ;;  %14092 = vpow2.f32 %v5896_v52  ;;  %v16950_v0 = vadd.f32 %v12256_v31, %v16915_v59  ;;  %v5755_v56 = vpop.f32.mrb[73].mxu0 }
 0x60b   : > { %v14083_v36 = vpop.eup %14082  ;;  %v5948_v38 = vadd.f32 1.0, %v14081_v2  ;;  %14094 = vpow2.f32 %v5892_v51  ;;  %v16953_v20 = vadd.f32 %v16915_v59, %v5755_v56  ;;  %v12257_v15 = vpop.f32.mrb[74].mxu0 }
 0x60c   : > { %v14085_v22 = vpop.eup %14084  ;;  %v5946_v35 = vadd.f32 1.0, %v14083_v36  ;;  %v5860_v37 = vsub.f32 0.0, %v16950_v0  ;;  %v16957_v48 = vadd.f32 %v12257_v15, %v16915_v59  ;;  %v5758_v14 = vpop.f32.mrb[75].mxu0 }
 0x60d   : > { %v14087_v33 = vpop.eup %14086  ;;  %14096 = vrcp.f32 %v5948_v38  ;;  %v5949_v52 = vadd.f32 1.0, %v14085_v22  ;;  %v5858_v31 = vsub.f32 0.0, %v16953_v20  ;;  %v16961_v2 = vadd.f32 %v16915_v59, %v5758_v14 }
 0x60e   : > { %14098 = vrcp.f32 %v5946_v35  ;;  %v5947_v56 = vadd.f32 1.0, %v14087_v33  ;;  %v5902_v51 = vmul.f32 1.442695, %v5860_v37  ;;  %v5861_v43 = vsub.f32 0.0, %v16957_v48 }
 0x60f   : > { %14100 = vrcp.f32 %v5949_v52  ;;  %v5898_v36 = vmul.f32 1.442695, %v5858_v31  ;;  %v5859_v32 = vsub.f32 0.0, %v16961_v2 }
 0x610   : > { %14102 = vrcp.f32 %v5947_v56  ;;  %v5904_v15 = vmul.f32 1.442695, %v5861_v43 }
 0x611   : > { %14104 = vpow2.f32 %v5902_v51  ;;  %v5900_v55 = vmul.f32 1.442695, %v5859_v32 }
 0x612   : > { %v14089_v38 = vpop.eup %14088  ;;  %14106 = vpow2.f32 %v5898_v36  ;;  %v12260_v22 = vpop.f32.mrb[76].mxu0 }
 0x613   : > { %v14091_v6 = vpop.eup %14090  ;;  %v5952_v24 = vadd.f32 1.0, %v14089_v38  ;;  %14108 = vpow2.f32 %v5904_v15  ;;  %v16966_v35 = vadd.f32 %v12260_v22, %v16915_v59  ;;  %v5771_v37 = vpop.f32.mrb[77].mxu0 }
 0x614   : > { %v14093_v14 = vpop.eup %14092  ;;  %v5950_v33 = vadd.f32 1.0, %v14091_v6  ;;  %14110 = vpow2.f32 %v5900_v55  ;;  %v16969_v52 = vadd.f32 %v16915_v59, %v5771_v37  ;;  %v12261_v31 = vpop.f32.mrb[78].mxu0 }
 0x615   : > { %v14095_v43 = vpop.eup %14094  ;;  %14112 = vrcp.f32 %v5952_v24  ;;  %v5953_v32 = vadd.f32 1.0, %v14093_v14  ;;  %v5864_v56 = vsub.f32 0.0, %v16966_v35  ;;  %v16973_v51 = vadd.f32 %v12261_v31, %v16915_v59  ;;  %v5774_v36 = vpop.f32.mrb[79].mxu0 }
 0x616   : > { %14114 = vrcp.f32 %v5950_v33  ;;  %v5951_v15 = vadd.f32 1.0, %v14095_v43  ;;  %v5862_v38 = vsub.f32 0.0, %v16969_v52  ;;  %v16977_v6 = vadd.f32 %v16915_v59, %v5774_v36 }
 0x617   : > { %v14097_v55 = vpop.eup %14096  ;;  %14116 = vrcp.f32 %v5953_v32  ;;  %v5910_v22 = vmul.f32 1.442695, %v5864_v56  ;;  %v5865_v37 = vsub.f32 0.0, %v16973_v51 }
 0x618   : > { %v14099_v24 = vpop.eup %14098  ;;  %v6012_v14 = vmul.f32 %v14097_v55, %v16918_v17  ;;  %14118 = vrcp.f32 %v5951_v15  ;;  %v5906_v41 = vmul.f32 1.442695, %v5862_v38  ;;  %v5863_v31 = vsub.f32 0.0, %v16977_v6 }
 0x619   : > { %v14101_v62 = vpop.eup %14100  ;;  %v6010_v33 = vmul.f32 %v14099_v24, %v16921_v40  ;;  %14120 = vpow2.f32 %v5910_v22  ;;  %v5912_v43 = vmul.f32 1.442695, %v5865_v37 }
 0x61a   : > { %v14103_v13 = vpop.eup %14102  ;;  %6044 = vst [vmem:[#allocation2 + $0x28] sm:$0xff] %v6012_v14  ;;  %v6013_v36 = vmul.f32 %v14101_v62, %v16925_v45  ;;  %14122 = vpow2.f32 %v5906_v41  ;;  %v5908_v32 = vmul.f32 1.442695, %v5863_v31  ;;  %v13497_v62 = vld [vmem:[%s18107_s11 + $0x8] sm:$0xff]  }
 0x61b   : > { %v14105_v56 = vpop.eup %14104  ;;  %6042 = vst [vmem:[#allocation2 + $0x18] sm:$0xff] %v6010_v33  ;;  %v6011_v26 = vmul.f32 %v14103_v13, %v16929_v16  ;;  %14124 = vpow2.f32 %v5912_v43 }
 0x61c   : > { %v14107_v17 = vpop.eup %14106  ;;  %6045 = vst [vmem:[#allocation2 + $0x30] sm:$0xff] %v6013_v36  ;;  %v5956_v15 = vadd.f32 1.0, %v14105_v56  ;;  %14126 = vpow2.f32 %v5908_v32  ;;  %v6204_v38 = vpack.c.bf16 %v6013_v36, %v6012_v14 }
 0x61d   : > { %v14109_v55 = vpop.eup %14108  ;;  %6043 = vst [vmem:[#allocation2 + $0x20] sm:$0xff] %v6011_v26  ;;  %v5954_v40 = vadd.f32 1.0, %v14107_v17  ;;  %v6203_v22 = vpack.c.bf16 %v6011_v26, %v6010_v33 }
 0x61e   : > { %v14111_v41 = vpop.eup %14110  ;;  %14128 = vrcp.f32 %v5956_v15  ;;  %v5957_v45 = vadd.f32 1.0, %v14109_v55 }
 0x61f   : > { %v14113_v37 = vpop.eup %14112  ;;  %14130 = vrcp.f32 %v5954_v40  ;;  %v5955_v13 = vadd.f32 1.0, %v14111_v41  ;;  %v12264_v16 = vpop.f32.mrb[80].mxu0  ;;  %12295 = vmatmul.mubr.bf16.vlgmr.msra.gmra.mrb[96].mxu0 %v6203_v22 }
 0x620   : > { %v14115_v24 = vpop.eup %14114  ;;  %v6016_v31 = vmul.f32 %v14113_v37, %v16934_v11  ;;  %14132 = vrcp.f32 %v5957_v45  ;;  %v16990_v14 = vadd.f32 %v12264_v16, %v16915_v59  ;;  %v5787_v26 = vpop.f32.mrb[81].mxu0  ;;  %12327 = vmatpush3.bf16.msra.mxu0 %v16909_v8  ;;  %12298 = vmatprep.mubr.bf16.mxu0 %v6204_v38  ;;  %v13498_v11 = vld [vmem:[%s18107_s11 + $0x10] sm:$0xff]  }
 0x621   : > { %v14117_v33 = vpop.eup %14116  ;;  %v6014_v43 = vmul.f32 %v14115_v24, %v16937_v30  ;;  %14134 = vrcp.f32 %v5955_v13  ;;  %v16995_v36 = vadd.f32 %v16915_v59, %v5787_v26  ;;  %v12265_v32 = vpop.f32.mrb[82].mxu0  ;;  %12328 = vmatprep.subr.bf16.mxu0 %v13497_v62  ;;  %v7331_v18 = vld [vmem:[#allocation2 + $0x28] sm:$0xff] }
 0x622   : > { %v14119_v56 = vpop.eup %14118  ;;  %6048 = vst [vmem:[#allocation2 + $0x48] sm:$0xff] %v6016_v31  ;;  %v6017_v17 = vmul.f32 %v14117_v33, %v16941_v60  ;;  %v5868_v8 = vsub.f32 0.0, %v16990_v14  ;;  %v17003_v15 = vadd.f32 %v12265_v32, %v16915_v59  ;;  %v5790_v30 = vpop.f32.mrb[83].mxu0 }
 0x623   : > { %v14121_v38 = vpop.eup %14120  ;;  %6046 = vst [vmem:[#allocation2 + $0x38] sm:$0xff] %v6014_v43  ;;  %v6015_v55 = vmul.f32 %v14119_v56, %v16945_v42  ;;  %v5866_v40 = vsub.f32 0.0, %v16995_v36  ;;  %v17008_v22 = vadd.f32 %v16915_v59, %v5790_v30  ;;  %v13499_v42 = vld [vmem:[%s18107_s11 + $0x18] sm:$0xff]  }
 0x624   : > { %v14123_v41 = vpop.eup %14122  ;;  %6049 = vst [vmem:[#allocation2 + $0x50] sm:$0xff] %v6017_v17  ;;  %v5960_v45 = vadd.f32 1.0, %v14121_v38  ;;  %v5869_v60 = vsub.f32 0.0, %v17003_v15  ;;  %12329 = vmatpush3.bf16.msra.mxu0 %v13497_v62  ;;  %v6206_v37 = vpack.c.bf16 %v6017_v17, %v6016_v31  ;;  %v5918_v56 = vmul.f32 1.442695, %v5868_v8 }
 0x625   : > { %v14125_v13 = vpop.eup %14124  ;;  %6047 = vst [vmem:[#allocation2 + $0x40] sm:$0xff] %v6015_v55  ;;  %v5958_v16 = vadd.f32 1.0, %v14123_v41  ;;  %v5867_v24 = vsub.f32 0.0, %v17008_v22  ;;  %v6205_v26 = vpack.c.bf16 %v6015_v55, %v6014_v43  ;;  %12330 = vmatprep.subr.bf16.mxu0 %v13498_v11  ;;  %v5914_v38 = vmul.f32 1.442695, %v5866_v40 }
 0x626   : > { %v14127_v33 = vpop.eup %14126  ;;  %14136 = vrcp.f32 %v5960_v45  ;;  %v5961_v32 = vadd.f32 1.0, %v14125_v13  ;;  %v5920_v17 = vmul.f32 1.442695, %v5869_v60  ;;  %v13500_v60 = vld [vmem:[%s18107_s11 + $0x20] sm:$0xff]  }
 0x627   : > { %14138 = vrcp.f32 %v5958_v16  ;;  %v5959_v30 = vadd.f32 1.0, %v14127_v33  ;;  %v12268_v62 = vpop.f32.mrb[84].mxu0  ;;  %12299 = vmatmul.mubr.bf16.gmra.mrb[100].mxu0 %v6205_v26  ;;  %v5916_v45 = vmul.f32 1.442695, %v5867_v24 }
 0x628   : > { %v14129_v31 = vpop.eup %14128  ;;  %14140 = vrcp.f32 %v5961_v32  ;;  %v17016_v41 = vadd.f32 %v12268_v62, %v16915_v59  ;;  %v5803_v43 = vpop.f32.mrb[85].mxu0  ;;  %12302 = vmatprep.mubr.bf16.mxu0 %v6206_v37  ;;  %12331 = vmatpush3.bf16.msra.mxu0 %v13498_v11 }
 0x629   : > { %v14131_v55 = vpop.eup %14130  ;;  %v6020_v39 = vmul.f32 %v14129_v31, %v16950_v0  ;;  %14142 = vrcp.f32 %v5959_v30  ;;  %v17020_v8 = vadd.f32 %v16915_v59, %v5803_v43  ;;  %v12269_v40 = vpop.f32.mrb[86].mxu0  ;;  %12332 = vmatprep.subr.bf16.mxu0 %v13499_v42 }
 0x62a   : > { %v14133_v13 = vpop.eup %14132  ;;  %v6018_v16 = vmul.f32 %v14131_v55, %v16953_v20  ;;  %14144 = vpow2.f32 %v5918_v56  ;;  %v5872_v11 = vsub.f32 0.0, %v17016_v41  ;;  %v17028_v37 = vadd.f32 %v12269_v40, %v16915_v59  ;;  %v5806_v0 = vpop.f32.mrb[87].mxu0 }
 0x62b   : > { %v14135_v24 = vpop.eup %14134  ;;  %6052 = vst [vmem:[#allocation2 + $0x68] sm:$0xff] %v6020_v39  ;;  %v6021_v26 = vmul.f32 %v14133_v13, %v16957_v48  ;;  %14146 = vpow2.f32 %v5914_v38  ;;  %v5870_v33 = vsub.f32 0.0, %v17020_v8  ;;  %v17033_v32 = vadd.f32 %v16915_v59, %v5806_v0 }
 0x62c   : > { %6050 = vst [vmem:[#allocation2 + $0x58] sm:$0xff] %v6018_v16  ;;  %v6019_v20 = vmul.f32 %v14135_v24, %v16961_v2  ;;  %14148 = vpow2.f32 %v5920_v17  ;;  %v5926_v56 = vmul.f32 1.442695, %v5872_v11  ;;  %v5873_v30 = vsub.f32 0.0, %v17028_v37  ;;  %12333 = vmatpush3.bf16.msra.mxu0 %v13499_v42  ;;  %v13501_v2 = vld [vmem:[%s18107_s11 + $0x28] sm:$0xff]  }
 0x62d   : > { %6053 = vst [vmem:[#allocation2 + $0x70] sm:$0xff] %v6021_v26  ;;  %14150 = vpow2.f32 %v5916_v45  ;;  %v5922_v62 = vmul.f32 1.442695, %v5870_v33  ;;  %v5871_v31 = vsub.f32 0.0, %v17033_v32  ;;  %v6208_v48 = vpack.c.bf16 %v6021_v26, %v6020_v39  ;;  %12334 = vmatprep.subr.bf16.mxu0 %v13500_v60  ;;  %v13502_v33 = vld [vmem:[%s18107_s11 + $0x30] sm:$0xff]  }
 0x62e   : > { %6051 = vst [vmem:[#allocation2 + $0x60] sm:$0xff] %v6019_v20  ;;  %14152 = vpow2.f32 %v5926_v56  ;;  %v5928_v38 = vmul.f32 1.442695, %v5873_v30  ;;  %v6207_v43 = vpack.c.bf16 %v6019_v20, %v6018_v16 }
 0x62f   : > { %14154 = vpow2.f32 %v5922_v62  ;;  %v5924_v17 = vmul.f32 1.442695, %v5871_v31  ;;  %v12272_v55 = vpop.f32.mrb[88].mxu0 }
 0x630   : > { %v14137_v40 = vpop.eup %14136  ;;  %14156 = vpow2.f32 %v5928_v38  ;;  %v17042_v42 = vadd.f32 %v12272_v55, %v16915_v59  ;;  %v5819_v45 = vpop.f32.mrb[89].mxu0  ;;  %12303 = vmatmul.mubr.bf16.gmra.mrb[104].mxu0 %v6207_v43 }
 0x631   : > { %v14139_v39 = vpop.eup %14138  ;;  %v6024_v13 = vmul.f32 %v14137_v40, %v16966_v35  ;;  %14158 = vpow2.f32 %v5924_v17  ;;  %v12273_v11 = vpop.f32.mrb[90].mxu0  ;;  %12306 = vmatprep.mubr.bf16.mxu0 %v6208_v48  ;;  %12335 = vmatpush3.bf16.msra.mxu0 %v13500_v60  ;;  %v17052_v35 = vadd.f32 %v16915_v59, %v5819_v45 }
 0x632   : > { %v14141_v16 = vpop.eup %14140  ;;  %v6022_v0 = vmul.f32 %v14139_v39, %v16969_v52  ;;  %v5876_v24 = vsub.f32 0.0, %v17042_v42  ;;  %v5822_v26 = vpop.f32.mrb[91].mxu0  ;;  %12336 = vmatprep.subr.bf16.mxu0 %v13501_v2  ;;  %v17056_v62 = vadd.f32 %v12273_v11, %v16915_v59 }
 0x633   : > { %v14143_v20 = vpop.eup %14142  ;;  %6056 = vst [vmem:[#allocation2 + $0x88] sm:$0xff] %v6024_v13  ;;  %v6025_v56 = vmul.f32 %v14141_v16, %v16973_v51  ;;  %v17059_v38 = vadd.f32 %v16915_v59, %v5822_v26  ;;  %v5874_v39 = vsub.f32 0.0, %v17052_v35 }
 0x634   : > { %v14145_v30 = vpop.eup %14144  ;;  %6054 = vst [vmem:[#allocation2 + $0x78] sm:$0xff] %v6022_v0  ;;  %v6023_v60 = vmul.f32 %v14143_v20, %v16977_v6  ;;  %v5934_v52 = vmul.f32 1.442695, %v5876_v24  ;;  %v13503_v6 = vld [vmem:[%s18107_s11 + $0x38] sm:$0xff]  }
 0x635   : > { %v14147_v31 = vpop.eup %14146  ;;  %6057 = vst [vmem:[#allocation2 + $0x90] sm:$0xff] %v6025_v56  ;;  %v5964_v48 = vadd.f32 1.0, %v14145_v30  ;;  %v6210_v43 = vpack.c.bf16 %v6025_v56, %v6024_v13  ;;  %12337 = vmatpush3.bf16.msra.mxu0 %v13501_v2  ;;  %v5877_v2 = vsub.f32 0.0, %v17056_v62  ;;  %v5875_v56 = vsub.f32 0.0, %v17059_v38 }
 0x636   : > { %v14149_v51 = vpop.eup %14148  ;;  %6055 = vst [vmem:[#allocation2 + $0x80] sm:$0xff] %v6023_v60  ;;  %v5962_v17 = vadd.f32 1.0, %v14147_v31  ;;  %14160 = vpow2.f32 %v5934_v52  ;;  %v6209_v55 = vpack.c.bf16 %v6023_v60, %v6022_v0  ;;  %12338 = vmatprep.subr.bf16.mxu0 %v13502_v33 }
 0x637   : > { %v14151_v40 = vpop.eup %14150  ;;  %14162 = vrcp.f32 %v5964_v48  ;;  %v5965_v45 = vadd.f32 1.0, %v14149_v51  ;;  %v12276_v11 = vpop.f32.mrb[92].mxu0 }
 0x638   : > { %v14153_v16 = vpop.eup %14152  ;;  %14164 = vrcp.f32 %v5962_v17  ;;  %v5963_v13 = vadd.f32 1.0, %v14151_v40  ;;  %v17067_v24 = vadd.f32 %v12276_v11, %v16915_v59  ;;  %v5835_v0 = vpop.f32.mrb[93].mxu0  ;;  %12307 = vmatmul.mubr.bf16.gmra.mrb[108].mxu0 %v6209_v55  ;;  %v17080_v55 = vld [vmem:[%s18107_s11 + $0x80] sm:$0xff]  }
 0x639   : > { %v14155_v26 = vpop.eup %14154  ;;  %14166 = vrcp.f32 %v5965_v45  ;;  %v5968_v20 = vadd.f32 1.0, %v14153_v16  ;;  %v17071_v30 = vadd.f32 %v16915_v59, %v5835_v0  ;;  %v12277_v60 = vpop.f32.mrb[94].mxu0  ;;  %12310 = vmatprep.mubr.bf16.mxu0 %v6210_v43  ;;  %12339 = vmatpush3.bf16.msra.mxu0 %v13502_v33  ;;  %v5930_v43 = vmul.f32 1.442695, %v5874_v39 }
 0x63a   : > { %v14157_v52 = vpop.eup %14156  ;;  %14168 = vrcp.f32 %v5963_v13  ;;  %v5966_v31 = vadd.f32 1.0, %v14155_v26  ;;  %v5880_v48 = vsub.f32 0.0, %v17067_v24  ;;  %v17075_v51 = vadd.f32 %v12277_v60, %v16915_v59  ;;  %v5838_v17 = vpop.f32.mrb[95].mxu0  ;;  %12340 = vmatprep.subr.bf16.mxu0 %v13503_v6 }
 0x63b   : > { %v14159_v40 = vpop.eup %14158  ;;  %14170 = vrcp.f32 %v5968_v20  ;;  %v5969_v45 = vadd.f32 1.0, %v14157_v52  ;;  %v17083_v33 = vadd.f32 %v16915_v59, %v5838_v17  ;;  %v5936_v16 = vmul.f32 1.442695, %v5877_v2 }
 0x63c   : > { %14172 = vrcp.f32 %v5966_v31  ;;  %v5967_v11 = vadd.f32 1.0, %v14159_v40  ;;  %v5878_v13 = vsub.f32 0.0, %v17071_v30  ;;  %v5932_v0 = vmul.f32 1.442695, %v5875_v56 }
 0x63d   : > { %14174 = vrcp.f32 %v5969_v45  ;;  %v5881_v26 = vsub.f32 0.0, %v17075_v51  ;;  %12341 = vmatpush3.bf16.msra.mxu0 %v13503_v6  ;;  %v5942_v60 = vmul.f32 1.442695, %v5880_v48  ;;  %v5879_v61 = vsub.f32 0.0, %v17083_v33 }
 0x63e   : > { %14176 = vrcp.f32 %v5967_v11  ;;  %12374 = vmatprep.subr.bf16.mxu0 %v17080_v55  ;;  %v5938_v59 = vmul.f32 1.442695, %v5878_v13 }
 0x63f   : > { %14178 = vpow2.f32 %v5930_v43  ;;  %v5944_v2 = vmul.f32 1.442695, %v5881_v26  ;;  %v5940_v17 = vmul.f32 1.442695, %v5879_v61 }
 0x640   : > { %v14161_v39 = vpop.eup %14160  ;;  %14180 = vpow2.f32 %v5936_v16 }
 0x641   : > { %v14163_v20 = vpop.eup %14162  ;;  %v5972_v52 = vadd.f32 1.0, %v14161_v39  ;;  %14182 = vpow2.f32 %v5932_v0 }
 0x642   : > { %v14165_v31 = vpop.eup %14164  ;;  %v6028_v56 = vmul.f32 %v14163_v20, %v16990_v14  ;;  %14184 = vpow2.f32 %v5942_v60 }
 0x643   : > { %v14167_v6 = vpop.eup %14166  ;;  %v6026_v48 = vmul.f32 %v14165_v31, %v16995_v36  ;;  %14186 = vrcp.f32 %v5972_v52 }
 0x644   : > { %v14169_v40 = vpop.eup %14168  ;;  %6060 = vst [vmem:[#allocation2 + $0xa8] sm:$0xff] %v6028_v56  ;;  %v6029_v45 = vmul.f32 %v14167_v6, %v17003_v15  ;;  %14188 = vpow2.f32 %v5938_v59 }
 0x645   : > { %v14171_v43 = vpop.eup %14170  ;;  %6058 = vst [vmem:[#allocation2 + $0x98] sm:$0xff] %v6026_v48  ;;  %v6027_v11 = vmul.f32 %v14169_v40, %v17008_v22  ;;  %14190 = vpow2.f32 %v5944_v2 }
 0x646   : > { %v14173_v16 = vpop.eup %14172  ;;  %6061 = vst [vmem:[#allocation2 + $0xb0] sm:$0xff] %v6029_v45  ;;  %v6032_v14 = vmul.f32 %v14171_v43, %v17016_v41  ;;  %14192 = vpow2.f32 %v5940_v17  ;;  %v6212_v61 = vpack.c.bf16 %v6029_v45, %v6028_v56 }
 0x647   : > { %v14175_v13 = vpop.eup %14174  ;;  %6059 = vst [vmem:[#allocation2 + $0xa0] sm:$0xff] %v6027_v11  ;;  %v6030_v36 = vmul.f32 %v14173_v16, %v17020_v8  ;;  %v6211_v0 = vpack.c.bf16 %v6027_v11, %v6026_v48 }
 0x648   : > { %v14177_v26 = vpop.eup %14176  ;;  %6064 = vst [vmem:[#allocation2 + $0xc8] sm:$0xff] %v6032_v14  ;;  %v6033_v15 = vmul.f32 %v14175_v13, %v17028_v37 }
 0x649   : > { %v14179_v60 = vpop.eup %14178  ;;  %6062 = vst [vmem:[#allocation2 + $0xb8] sm:$0xff] %v6030_v36  ;;  %v6031_v22 = vmul.f32 %v14177_v26, %v17033_v32  ;;  %12311 = vmatmul.mubr.bf16.gmra.mrb[112].mxu0 %v6211_v0 }
 0x64a   : > { %v14181_v39 = vpop.eup %14180  ;;  %6065 = vst [vmem:[#allocation2 + $0xd0] sm:$0xff] %v6033_v15  ;;  %v5970_v59 = vadd.f32 1.0, %v14179_v60  ;;  %12314 = vmatprep.mubr.bf16.mxu0 %v6212_v61  ;;  %v6214_v41 = vpack.c.bf16 %v6033_v15, %v6032_v14 }
 0x64b   : > { %v14183_v20 = vpop.eup %14182  ;;  %6063 = vst [vmem:[#allocation2 + $0xc0] sm:$0xff] %v6031_v22  ;;  %v5973_v52 = vadd.f32 1.0, %v14181_v39  ;;  %v6213_v2 = vpack.c.bf16 %v6031_v22, %v6030_v36 }
 0x64c   : > { %v14185_v8 = vpop.eup %14184  ;;  %14194 = vrcp.f32 %v5970_v59  ;;  %v5971_v31 = vadd.f32 1.0, %v14183_v20 }
 0x64d   : > { %v14187_v56 = vpop.eup %14186  ;;  %14196 = vrcp.f32 %v5973_v52  ;;  %v5976_v37 = vadd.f32 1.0, %v14185_v8  ;;  %v6079_v52 = vld [vmem:[#allocation2 + $0x2f] sm:$0xff] }
 0x64e   : > { %v14189_v17 = vpop.eup %14188  ;;  %v6036_v6 = vmul.f32 %v14187_v56, %v17042_v42  ;;  %14198 = vrcp.f32 %v5971_v31  ;;  %v13506_v56 = vld [vmem:[%s18107_s11 + $0x90] sm:$0xff]  }
 0x64f   : > { %v14191_v32 = vpop.eup %14190  ;;  %14200 = vrcp.f32 %v5976_v37  ;;  %v5974_v48 = vadd.f32 1.0, %v14189_v17  ;;  %v6081_v37 = vld [vmem:[#allocation2 + $0x3f] sm:$0xff]  ;;  %v6082_v17 = vld [vmem:[#allocation2 + $0x47] sm:$0xff] }
 0x650   : > { %v14193_v40 = vpop.eup %14192  ;;  %6068 = vst [vmem:[#allocation2 + $0xe8] sm:$0xff] %v6036_v6  ;;  %v5977_v45 = vadd.f32 1.0, %v14191_v32  ;;  %v6080_v32 = vld [vmem:[#allocation2 + $0x37] sm:$0xff] }
 0x651   : > { %14202 = vrcp.f32 %v5974_v48  ;;  %v5975_v43 = vadd.f32 1.0, %v14193_v40  ;;  %12315 = vmatmul.mubr.bf16.gmra.mrb[116].mxu0 %v6213_v2  ;;  %v6076_v2 = vld [vmem:[#allocation2 + $0x17] sm:$0xff]  ;;  %v17130_v48 = vpack.c.bf16 %v6081_v37, %v6080_v32 }
 0x652   : > { %14204 = vrcp.f32 %v5977_v45  ;;  %12318 = vmatprep.mubr.bf16.mxu0 %v6214_v41  ;;  %v13508_v45 = vld [vmem:[%s18107_s11 + $0xa0] sm:$0xff]   ;;  %v6096_v37 = vld [vmem:[#allocation2 + $0xb7] sm:$0xff] }
 0x653   : > { %14206 = vrcp.f32 %v5975_v43  ;;  %v6085_v43 = vld [vmem:[#allocation2 + $0x5f] sm:$0xff] }
 0x654   : > { %v6675_v50 = vld [vmem:[#allocation2 + $0xb9] sm:$0xff]  ;;  %v6676_v21 = vld [vmem:[#allocation2 + $0xc1] sm:$0xff] }
 0x655   : > { %v17289_v25 = vpack.c.bf16 %v6676_v21, %v6675_v50  ;;  %v18809_v21 = vld [vmem:[#allocation83_spill] sm:$0xff] }
 0x656   : > { %v14195_v11 = vpop.eup %14194 }
 0x657   : > { %v14197_v16 = vpop.eup %14196  ;;  %v6034_v14 = vmul.f32 %v14195_v11, %v17052_v35  ;;  %v6086_v11 = vld [vmem:[#allocation2 + $0x67] sm:$0xff] }
 0x658   : > { %v14199_v61 = vpop.eup %14198  ;;  %v6037_v42 = vmul.f32 %v14197_v16, %v17056_v62  ;;  %v6087_v16 = vld [vmem:[#allocation2 + $0x6f] sm:$0xff] }
 0x659   : > { %v14201_v13 = vpop.eup %14200  ;;  %6066 = vst [vmem:[#allocation2 + $0xd8] sm:$0xff] %v6034_v14  ;;  %v6035_v36 = vmul.f32 %v14199_v61, %v17059_v38  ;;  %v6074_v38 = vld [vmem:[#allocation2 + $0x7] sm:$0xff] }
 0x65a   : > { %6069 = vst [vmem:[#allocation2 + $0xf0] sm:$0xff] %v6037_v42  ;;  %v6040_v0 = vmul.f32 %v14201_v13, %v17067_v24  ;;  %v6216_v26 = vpack.c.bf16 %v6037_v42, %v6036_v6  ;;  %v6075_v24 = vld [vmem:[#allocation2 + $0xf] sm:$0xff]  ;;  %v17151_v13 = vpack.c.bf16 %v6087_v16, %v6086_v11 }
 0x65b   : > { %v14203_v15 = vpop.eup %14202  ;;  %6067 = vst [vmem:[#allocation2 + $0xe0] sm:$0xff] %v6035_v36  ;;  %v6215_v60 = vpack.c.bf16 %v6035_v36, %v6034_v14  ;;  %v10601_v20 = vpack.c.bf16 %v6075_v24, %v6074_v38  ;;  %v6083_v6 = vld [vmem:[#allocation2 + $0x4f] sm:$0xff]  ;;  %v6084_v14 = vld [vmem:[#allocation2 + $0x57] sm:$0xff]  ;;  %v6093_v38 = vld [vmem:[#allocation2 + $0x9f] sm:$0xff] }
 0x65c   : > { %v14205_v22 = vpop.eup %14204  ;;  %6072 = vst [vmem:[#allocation2 + $0x108] sm:$0xff] %v6040_v0  ;;  %v6038_v39 = vmul.f32 %v14203_v15, %v17071_v30  ;;  %v6077_v30 = vld [vmem:[#allocation2 + $0x1f] sm:$0xff]  ;;  %v17135_v40 = vpack.c.bf16 %v6083_v6, %v6082_v17  ;;  %v17146_v61 = vpack.c.bf16 %v6085_v43, %v6084_v14  ;;  %v13509_v42 = vld [vmem:[%s18107_s11 + $0xa8] sm:$0xff]   ;;  %v13510_v36 = vld [vmem:[%s18107_s11 + $0xb0] sm:$0xff]  }
 0x65d   : > { %v14207_v59 = vpop.eup %14206  ;;  %v17104_v35 = vmul.f32 %v14205_v22, %v17075_v51  ;;  %12319 = vmatmul.mubr.bf16.gmra.mrb[120].mxu0 %v6215_v60  ;;  %v6078_v51 = vld [vmem:[#allocation2 + $0x27] sm:$0xff]  ;;  %v17113_v8 = vpack.c.bf16 %v6077_v30, %v6076_v2  ;;  %v6089_v0 = vld [vmem:[#allocation2 + $0x7f] sm:$0xff]  ;;  %v6091_v15 = vld [vmem:[#allocation2 + $0x8f] sm:$0xff] }
 0x65e   : > { %6070 = vst [vmem:[#allocation2 + $0xf8] sm:$0xff] %v6038_v39  ;;  %v6039_v62 = vmul.f32 %v14207_v59, %v17083_v33  ;;  %12322 = vmatprep.mubr.bf16.mxu0 %v6216_v26  ;;  %v13505_v33 = vld [vmem:[%s18107_s11 + $0x88] sm:$0xff]   ;;  %v17118_v31 = vpack.c.bf16 %v6079_v52, %v6078_v51  ;;  %v6088_v60 = vld [vmem:[#allocation2 + $0x77] sm:$0xff]  ;;  %v6097_v2 = vld [vmem:[#allocation2 + $0xbf] sm:$0xff] }
 0x65f   : > { %6073 = vst [vmem:[#allocation2 + $0x110] sm:$0xff] %v17104_v35  ;;  %v6090_v26 = vld [vmem:[#allocation2 + $0x87] sm:$0xff]  ;;  %v17162_v22 = vpack.c.bf16 %v6089_v0, %v6088_v60  ;;  %v6092_v30 = vld [vmem:[#allocation2 + $0x97] sm:$0xff]  ;;  %v17188_v17 = vpack.c.bf16 %v6097_v2, %v6096_v37 }
 0x660   : > { %6071 = vst [vmem:[#allocation2 + $0x100] sm:$0xff] %v6039_v62  ;;  %v17108_v41 = vpack.c.bf16 %v6039_v62, %v6038_v39  ;;  %v13511_v39 = vld [vmem:[%s18107_s11 + $0xb8] sm:$0xff]   ;;  %v17167_v59 = vpack.c.bf16 %v6091_v15, %v6090_v26  ;;  %v13512_v62 = vld [vmem:[%s18107_s11 + $0xc0] sm:$0xff]   ;;  %v17178_v51 = vpack.c.bf16 %v6093_v38, %v6092_v30  ;;  %v13513_v30 = vld [vmem:[%s18107_s11 + $0xc8] sm:$0xff]  }
 0x661   : > { %v6094_v24 = vld [vmem:[#allocation2 + $0xa7] sm:$0xff]  ;;  %v6100_v43 = vld [vmem:[#allocation2 + $0xd7] sm:$0xff] }
 0x662   : > { %v6101_v32 = vld [vmem:[#allocation2 + $0xdf] sm:$0xff]  ;;  %v6658_v38 = vld [vmem:[#allocation2 + $0x31] sm:$0xff] }
 0x663   : > { %v17198_v11 = vpack.c.bf16 %v6101_v32, %v6100_v43  ;;  %v6655_v60 = vld [vmem:[#allocation2 + $0x19] sm:$0xff]  ;;  %v6660_v37 = vld [vmem:[#allocation2 + $0x41] sm:$0xff]  ;;  %v6662_v32 = vld [vmem:[#allocation2 + $0x51] sm:$0xff] }
 0x664   : > { %v6678_v54 = vld [vmem:[#allocation2 + $0xd1] sm:$0xff] }
 0x665   : > { %12323 = vmatmul.mubr.bf16.gmra.mrb[124].mxu0 %v17108_v41  ;;  %v6104_v0 = vld [vmem:[#allocation2 + $0xf7] sm:$0xff] }
 0x666   : > { %12342 = vmatprep.mubr.msk.bf16.mxu0 %vm15337_vm2, %v10601_v20  ;;  %v6095_v20 = vld [vmem:[#allocation2 + $0xaf] sm:$0xff] }
 0x667   : > { %v17180_v52 = vpack.c.bf16 %v6095_v20, %v6094_v24  ;;  %v6105_v14 = vld [vmem:[#allocation2 + $0xff] sm:$0xff]  ;;  %v6657_v20 = vld [vmem:[#allocation2 + $0x29] sm:$0xff] }
 0x668   : > { %v17208_v26 = vpack.c.bf16 %v6105_v14, %v6104_v0  ;;  %v17220_v2 = vpack.c.bf16 %v6658_v38, %v6657_v20  ;;  %v13516_v14 = vld [vmem:[%s18107_s11 + $0xe0] sm:$0xff]   ;;  %v6666_v0 = vld [vmem:[#allocation2 + $0x71] sm:$0xff] }
 0x669   : > { %v13518_v20 = vld [vmem:[%s18107_s11 + $0xf0] sm:$0xff]   ;;  %v6683_v50 = vld [vmem:[#allocation2 + $0xf9] sm:$0xff] }
 0x66a   : > { %18792 = vst [vmem:[#allocation73_spill] sm:$0xff] %v17208_v26 }
 0x66d   : > { %12343 = vmatmul.mubr.msk.bf16.vlgmr.msra.gmra.mrb[96].mxu0 %vm15354_vm5, %v17113_v8 }
 0x66e   : > { %12375 = vmatpush3.bf16.msra.mxu0 %v17080_v55  ;;  %12346 = vmatprep.mubr.msk.bf16.mxu0 %vm15359_vm6, %v17118_v31  ;;  %v13507_v55 = vld [vmem:[%s18107_s11 + $0x98] sm:$0xff]   ;;  %vm18783_vm6 = vnez %v18584_v44 }
 0x66f   : > { %12376 = vmatprep.subr.bf16.mxu0 %v13505_v33 }
 0x672   : > { %12377 = vmatpush3.bf16.msra.mxu0 %v13505_v33  ;;  %v6098_v33 = vld [vmem:[#allocation2 + $0xc7] sm:$0xff] }
 0x673   : > { %12378 = vmatprep.subr.bf16.mxu0 %v13506_v56 }
 0x675   : > { %12347 = vmatmul.mubr.msk.bf16.gmra.mrb[100].mxu0 %vm15377_vm9, %v17130_v48  ;;  %vm18785_vm9 = vnez %v18586_v57 }
 0x676   : > { %12350 = vmatprep.mubr.msk.bf16.mxu0 %vm18783_vm6, %v17135_v40  ;;  %12379 = vmatpush3.bf16.msra.mxu0 %v13506_v56  ;;  %vm18784_vm6 = vnez %v18585_v29  ;;  %v6099_v56 = vld [vmem:[#allocation2 + $0xcf] sm:$0xff] }
 0x677   : > { %12380 = vmatprep.subr.bf16.mxu0 %v13507_v55  ;;  %v17190_v6 = vpack.c.bf16 %v6099_v56, %v6098_v33  ;;  %v13514_v33 = vld [vmem:[%s18107_s11 + $0xd0] sm:$0xff]   ;;  %v6659_v56 = vld [vmem:[#allocation2 + $0x39] sm:$0xff] }
 0x67a   : > { %12381 = vmatpush3.bf16.msra.mxu0 %v13507_v55  ;;  %v6102_v55 = vld [vmem:[#allocation2 + $0xe7] sm:$0xff] }
 0x67b   : > { %12382 = vmatprep.subr.bf16.mxu0 %v13508_v45 }
 0x67d   : > { %12351 = vmatmul.mubr.msk.bf16.gmra.mrb[104].mxu0 %vm18784_vm6, %v17146_v61  ;;  %vm18787_vm6 = vnez %v18588_v3 }
 0x67e   : > { %12354 = vmatprep.mubr.msk.bf16.mxu0 %vm18785_vm9, %v17151_v13  ;;  %12383 = vmatpush3.bf16.msra.mxu0 %v13508_v45  ;;  %vm18786_vm9 = vnez %v18587_v47  ;;  %v6103_v45 = vld [vmem:[#allocation2 + $0xef] sm:$0xff] }
 0x67f   : > { %12384 = vmatprep.subr.bf16.mxu0 %v13509_v42  ;;  %v17200_v16 = vpack.c.bf16 %v6103_v45, %v6102_v55  ;;  %v17231_v55 = vpack.c.bf16 %v6660_v37, %v6659_v56  ;;  %v6661_v45 = vld [vmem:[#allocation2 + $0x49] sm:$0xff]  ;;  %v6670_v56 = vld [vmem:[#allocation2 + $0x91] sm:$0xff] }
 0x680   : > { %v17236_v43 = vpack.c.bf16 %v6662_v32, %v6661_v45  ;;  %v6669_v32 = vld [vmem:[#allocation2 + $0x89] sm:$0xff]  ;;  %v13519_v45 = vld [vmem:[%s18107_s11 + $0xf8] sm:$0xff]  }
 0x681   : > { %18790 = vst [vmem:[#allocation76_spill] sm:$0xff] %v17200_v16 }
 0x682   : > { %12385 = vmatpush3.bf16.msra.mxu0 %v13509_v42  ;;  %v6653_v42 = vld [vmem:[#allocation2 + $0x9] sm:$0xff] }
 0x683   : > { %12386 = vmatprep.subr.bf16.mxu0 %v13510_v36 }
 0x685   : > { %12355 = vmatmul.mubr.msk.bf16.gmra.mrb[108].mxu0 %vm18786_vm9, %v17162_v22  ;;  %vm18788_vm9 = vnez %v18589_v46  ;;  %v8003_v46 = vld [vmem:[#allocation2 + $0x117] sm:$0xff] }
 0x686   : > { %12358 = vmatprep.mubr.msk.bf16.mxu0 %vm18787_vm6, %v17167_v59  ;;  %12387 = vmatpush3.bf16.msra.mxu0 %v13510_v36  ;;  %vm18789_vm6 = vnez %v18591_v34  ;;  %v6654_v36 = vld [vmem:[#allocation2 + $0x11] sm:$0xff] }
 0x687   : > { %12388 = vmatprep.subr.bf16.mxu0 %v13511_v39  ;;  %v10673_v15 = vpack.c.bf16 %v6654_v36, %v6653_v42  ;;  %v6663_v42 = vld [vmem:[#allocation2 + $0x59] sm:$0xff]  ;;  %v6664_v36 = vld [vmem:[#allocation2 + $0x61] sm:$0xff] }
 0x68a   : > { %12389 = vmatpush3.bf16.msra.mxu0 %v13511_v39  ;;  %v6656_v39 = vld [vmem:[#allocation2 + $0x21] sm:$0xff] }
 0x68b   : > { %12422 = vmatprep.subr.bf16.mxu0 %v13512_v62  ;;  %v17215_v24 = vpack.c.bf16 %v6656_v39, %v6655_v60  ;;  %v6665_v60 = vld [vmem:[#allocation2 + $0x69] sm:$0xff] }
 0x68c   : > { %v13517_v39 = vld [vmem:[%s18107_s11 + $0xe8] sm:$0xff]   ;;  %v17252_v38 = vpack.c.bf16 %v6666_v0, %v6665_v60  ;;  %v6671_v0 = vld [vmem:[#allocation2 + $0x99] sm:$0xff] }
 0x68d   : > { %12359 = vmatmul.mubr.msk.bf16.gmra.mrb[112].mxu0 %vm18788_vm9, %v17178_v51  ;;  %v6672_v60 = vld [vmem:[#allocation2 + $0xa1] sm:$0xff] }
 0x68e   : > { %12362 = vmatprep.mubr.msk.bf16.mxu0 %vm18789_vm6, %v17180_v52  ;;  %vm18791_vm6 = vnez %v18644_v19 }
 0x695   : > { %12363 = vmatmul.mubr.msk.bf16.gmra.mrb[116].mxu0 %vm18595_vm4, %v17188_v17  ;;  %vm18794_vm4 = vnez %v18620_v27 }
 0x696   : > { %12366 = vmatprep.mubr.msk.bf16.mxu0 %vm18640_vm13, %v17190_v6  ;;  %vm18793_vm13 = vnez %v18646_v63 }
 0x69d   : > { %12367 = vmatmul.mubr.msk.bf16.gmra.mrb[120].mxu0 %vm18642_vm10, %v17198_v11 }
 0x69e   : > { %12370 = vmatprep.mubr.msk.bf16.mxu0 %vm18791_vm6, %v17200_v16  ;;  %vm18795_vm6 = vnez %v18488_v4 }
 0x6a5   : > { %12371 = vmatmul.mubr.msk.bf16.gmra.mrb[124].mxu0 %vm18793_vm13, %v17208_v26 }
 0x6a6   : > { %12390 = vmatprep.mubr.msk.bf16.mxu0 %vm18794_vm4, %v10673_v15  ;;  %vm18796_vm4 = vnez %v18490_v12  ;;  %v17247_v15 = vpack.c.bf16 %v6664_v36, %v6663_v42  ;;  %v13520_v36 = vld [vmem:[%s18107_s11 + $0x100] sm:$0xff]   ;;  %v6681_v42 = vld [vmem:[#allocation2 + $0xe9] sm:$0xff] }
 0x6ad   : > { %12391 = vmatmul.mubr.msk.bf16.vlgmr.msra.gmra.mrb[96].mxu0 %vm18795_vm6, %v17215_v24  ;;  %vm18798_vm6 = vnez %v18504_v58 }
 0x6ae   : > { %12423 = vmatpush3.bf16.msra.mxu0 %v13512_v62  ;;  %12394 = vmatprep.mubr.msk.bf16.mxu0 %vm18796_vm4, %v17220_v2  ;;  %v13515_v62 = vld [vmem:[%s18107_s11 + $0xd8] sm:$0xff]   ;;  %vm18797_vm4 = vnez %v18502_v23 }
 0x6af   : > { %12424 = vmatprep.subr.bf16.mxu0 %v13513_v30 }
 0x6b2   : > { %12425 = vmatpush3.bf16.msra.mxu0 %v13513_v30  ;;  %v6667_v30 = vld [vmem:[#allocation2 + $0x79] sm:$0xff] }
 0x6b3   : > { %12426 = vmatprep.subr.bf16.mxu0 %v13514_v33 }
 0x6b5   : > { %12395 = vmatmul.mubr.msk.bf16.gmra.mrb[100].mxu0 %vm18797_vm4, %v17231_v55  ;;  %vm18800_vm4 = vnez %v18516_v49  ;;  %v8639_v49 = vld [vmem:[#allocation2 + $0xd9] sm:$0xff] }
 0x6b6   : > { %12398 = vmatprep.mubr.msk.bf16.mxu0 %vm18798_vm6, %v17236_v43  ;;  %12427 = vmatpush3.bf16.msra.mxu0 %v13514_v33  ;;  %vm18799_vm6 = vnez %v18513_v9  ;;  %v6668_v33 = vld [vmem:[#allocation2 + $0x81] sm:$0xff] }
 0x6b7   : > { %12428 = vmatprep.subr.bf16.mxu0 %v13515_v62  ;;  %v17263_v37 = vpack.c.bf16 %v6668_v33, %v6667_v30  ;;  %v17279_v30 = vpack.c.bf16 %v6672_v60, %v6671_v0  ;;  %v6673_v33 = vld [vmem:[#allocation2 + $0xa9] sm:$0xff]  ;;  %v18811_v60 = vld [vmem:[#allocation89_spill] sm:$0xff] }
 0x6b9   : > { %18803 = vst [vmem:[#allocation56_spill] sm:$0xff] %v17279_v30 }
 0x6ba   : > { %12429 = vmatpush3.bf16.msra.mxu0 %v13515_v62  ;;  %v17268_v62 = vpack.c.bf16 %v6670_v56, %v6669_v32  ;;  %v6680_v32 = vld [vmem:[#allocation2 + $0xe1] sm:$0xff] }
 0x6bb   : > { %12430 = vmatprep.subr.bf16.mxu0 %v13516_v14 }
 0x6bd   : > { %12399 = vmatmul.mubr.msk.bf16.gmra.mrb[104].mxu0 %vm18799_vm6, %v17247_v15 }
 0x6be   : > { %12402 = vmatprep.mubr.msk.bf16.mxu0 %vm18800_vm4, %v17252_v38  ;;  %12431 = vmatpush3.bf16.msra.mxu0 %v13516_v14 }
 0x6bf   : > { %12432 = vmatprep.subr.bf16.mxu0 %v13517_v39 }
 0x6c2   : > { %12433 = vmatpush3.bf16.msra.mxu0 %v13517_v39  ;;  %v6674_v39 = vld [vmem:[#allocation2 + $0xb1] sm:$0xff] }
 0x6c3   : > { %12434 = vmatprep.subr.bf16.mxu0 %v13518_v20  ;;  %v17281_v56 = vpack.c.bf16 %v6674_v39, %v6673_v33  ;;  %v6679_v33 = vld [vmem:[#allocation2 + $0xd9] sm:$0xff] }
 0x6c5   : > { %12403 = vmatmul.mubr.msk.bf16.gmra.mrb[108].mxu0 %vm18669_vm14, %v17263_v37  ;;  %18804 = vst [vmem:[#allocation53_spill] sm:$0xff] %v17281_v56 }
 0x6c6   : > { %12406 = vmatprep.mubr.msk.bf16.mxu0 %vm18670_vm7, %v17268_v62  ;;  %12435 = vmatpush3.bf16.msra.mxu0 %v13518_v20  ;;  %v6682_v20 = vld [vmem:[#allocation2 + $0xf1] sm:$0xff] }
 0x6c7   : > { %12436 = vmatprep.subr.bf16.mxu0 %v13519_v45 }
 0x6ca   : > { %12437 = vmatpush3.bf16.msra.mxu0 %v13519_v45  ;;  %v6677_v45 = vld [vmem:[#allocation2 + $0xc9] sm:$0xff] }
 0x6cb   : > { %12470 = vmatprep.subr.bf16.mxu0 %v13520_v36  ;;  %v17291_v0 = vpack.c.bf16 %v6678_v54, %v6677_v45  ;;  %v18810_v54 = vld [vmem:[#allocation84_spill] sm:$0xff]  ;;  %v6684_v45 = vld [vmem:[#allocation2 + $0x101] sm:$0xff] }
 0x6cc   : > { %v17309_v39 = vpack.c.bf16 %v6684_v45, %v6683_v50  ;;  %v13527_v50 = vld [vmem:[%s18107_s11 + $0x138] sm:$0xff]   ;;  %v13528_v45 = vld [vmem:[%s18107_s11 + $0x140] sm:$0xff]  }
 0x6cd   : > { %12407 = vmatmul.mubr.msk.bf16.gmra.mrb[112].mxu0 %vm18629_vm15, %v17279_v30  ;;  %v17301_v30 = vpack.c.bf16 %v6682_v20, %v6681_v42  ;;  %v13521_v42 = vld [vmem:[%s18107_s11 + $0x108] sm:$0xff]  }
 0x6ce   : > { %12410 = vmatprep.mubr.msk.bf16.mxu0 %vm18630_vm12, %v17281_v56  ;;  %v17299_v56 = vpack.c.bf16 %v6680_v32, %v6679_v33  ;;  %v13522_v32 = vld [vmem:[%s18107_s11 + $0x110] sm:$0xff]   ;;  %v13525_v20 = vld [vmem:[%s18107_s11 + $0x128] sm:$0xff]  }
 0x6cf   : > { %v13526_v33 = vld [vmem:[%s18107_s11 + $0x130] sm:$0xff]  }
 0x6d5   : > { %12411 = vmatmul.mubr.msk.bf16.gmra.mrb[116].mxu0 %vm18631_vm0, %v17289_v25 }
 0x6d6   : > { %12414 = vmatprep.mubr.msk.bf16.mxu0 %vm18632_vm3, %v17291_v0 }
 0x6dd   : > { %12415 = vmatmul.mubr.msk.bf16.gmra.mrb[120].mxu0 %vm16041_vm8, %v17299_v56 }
 0x6de   : > { %12418 = vmatprep.mubr.msk.bf16.mxu0 %vm16048_vm1, %v17301_v30  ;;  %vm18812_vm1 = vnez %v18582_v5 }
 0x6e5   : > { %12419 = vmatmul.mubr.msk.bf16.gmra.mrb[124].mxu0 %vm16077_vm11, %v17309_v39  ;;  %vm18822_vm11 = vnez %v18644_v19  ;;  %v13529_v19 = vld [vmem:[%s18107_s11 + $0x148] sm:$0xff]  }
 0x6e6   : > { %12438 = vmatprep.mubr.msk.bf16.mxu0 %vm15337_vm2, %v17113_v8  ;;  %v13523_v8 = vld [vmem:[%s18107_s11 + $0x118] sm:$0xff]   ;;  %vm18813_vm2 = vnez %v18583_v53 }
 0x6ed   : > { %12439 = vmatmul.mubr.msk.bf16.vlgmr.msra.gmra.mrb[96].mxu0 %vm15354_vm5, %v17118_v31  ;;  %vm18814_vm5 = vnez %v18584_v44 }
 0x6ee   : > { %12471 = vmatpush3.bf16.msra.mxu0 %v13520_v36  ;;  %12442 = vmatprep.mubr.msk.bf16.mxu0 %vm18812_vm1, %v17130_v48  ;;  %v13524_v36 = vld [vmem:[%s18107_s11 + $0x120] sm:$0xff]   ;;  %vm18815_vm1 = vnez %v18585_v29 }
 0x6ef   : > { %12472 = vmatprep.subr.bf16.mxu0 %v13521_v42 }
 0x6f2   : > { %12473 = vmatpush3.bf16.msra.mxu0 %v13521_v42  ;;  %v7021_v42 = vld [vmem:[#allocation2 + $0x107] sm:$0xff] }
 0x6f3   : > { %12474 = vmatprep.subr.bf16.mxu0 %v13522_v32 }
 0x6f5   : > { %12443 = vmatmul.mubr.msk.bf16.gmra.mrb[100].mxu0 %vm18813_vm2, %v17135_v40  ;;  %vm18816_vm2 = vnez %v18586_v57 }
 0x6f6   : > { %12446 = vmatprep.mubr.msk.bf16.mxu0 %vm18814_vm5, %v17146_v61  ;;  %12475 = vmatpush3.bf16.msra.mxu0 %v13522_v32  ;;  %vm18817_vm5 = vnez %v18587_v47  ;;  %v7022_v32 = vld [vmem:[#allocation2 + $0x10f] sm:$0xff] }
 0x6f7   : > { %12476 = vmatprep.subr.bf16.mxu0 %v13523_v8 }
 0x6fa   : > { %12477 = vmatpush3.bf16.msra.mxu0 %v13523_v8  ;;  %v7330_v8 = vld [vmem:[#allocation2 + $0x20] sm:$0xff] }
 0x6fb   : > { %12478 = vmatprep.subr.bf16.mxu0 %v13524_v36 }
 0x6fd   : > { %12447 = vmatmul.mubr.msk.bf16.gmra.mrb[104].mxu0 %vm18815_vm1, %v17151_v13  ;;  %vm18818_vm1 = vnez %v18588_v3 }
 0x6fe   : > { %12450 = vmatprep.mubr.msk.bf16.mxu0 %vm18816_vm2, %v17162_v22  ;;  %12479 = vmatpush3.bf16.msra.mxu0 %v13524_v36  ;;  %vm18819_vm2 = vnez %v18591_v34  ;;  %v17383_v36 = vpack.c.bf16 %v7022_v32, %v7021_v42  ;;  %v13530_v42 = vld [vmem:[%s18107_s11 + $0x150] sm:$0xff]  }
 0x6ff   : > { %12480 = vmatprep.subr.bf16.mxu0 %v13525_v20  ;;  %v7336_v32 = vld [vmem:[#allocation2 + $0x50] sm:$0xff] }
 0x702   : > { %12481 = vmatpush3.bf16.msra.mxu0 %v13525_v20  ;;  %v7329_v20 = vld [vmem:[#allocation2 + $0x18] sm:$0xff] }
 0x703   : > { %12482 = vmatprep.subr.bf16.mxu0 %v13526_v33 }
 0x705   : > { %12451 = vmatmul.mubr.msk.bf16.gmra.mrb[108].mxu0 %vm18817_vm5, %v17167_v59  ;;  %vm18820_vm5 = vnez %v18637_v10  ;;  %v7333_v10 = vld [vmem:[#allocation2 + $0x38] sm:$0xff] }
 0x706   : > { %12454 = vmatprep.mubr.msk.bf16.mxu0 %vm18818_vm1, %v17178_v51  ;;  %12483 = vmatpush3.bf16.msra.mxu0 %v13526_v33  ;;  %vm18821_vm1 = vnez %v18639_v7  ;;  %v7361_v33 = vpack.c.bf16 %v7330_v8, %v7329_v20  ;;  %v7334_v7 = vld [vmem:[#allocation2 + $0x40] sm:$0xff]  ;;  %v7335_v8 = vld [vmem:[#allocation2 + $0x48] sm:$0xff] }
 0x707   : > { %12484 = vmatprep.subr.bf16.mxu0 %v13527_v50  ;;  %v17400_v20 = vpack.c.bf16 %v7336_v32, %v7335_v8  ;;  %v7339_v32 = vld [vmem:[#allocation2 + $0x68] sm:$0xff] }
 0x709   : > { %18825 = vst [vmem:[#allocation82_spill] sm:$0xff] %v17400_v20 }
 0x70a   : > { %12485 = vmatpush3.bf16.msra.mxu0 %v13527_v50  ;;  %v7332_v50 = vld [vmem:[#allocation2 + $0x30] sm:$0xff] }
 0x70b   : > { %12518 = vmatprep.subr.bf16.mxu0 %v13528_v45 }
 0x70d   : > { %12455 = vmatmul.mubr.msk.bf16.gmra.mrb[112].mxu0 %vm18788_vm9, %v17180_v52 }
 0x70e   : > { %12458 = vmatprep.mubr.msk.bf16.mxu0 %vm18819_vm2, %v17188_v17 }
 0x715   : > { %12459 = vmatmul.mubr.msk.bf16.gmra.mrb[116].mxu0 %vm18820_vm5, %v17190_v6 }
 0x716   : > { %12462 = vmatprep.mubr.msk.bf16.mxu0 %vm18821_vm1, %v17198_v11 }
 0x71d   : > { %12463 = vmatmul.mubr.msk.bf16.gmra.mrb[120].mxu0 %vm18642_vm10, %v17200_v16  ;;  %v17388_v16 = vpack.c.bf16 %v7332_v50, %v7331_v18  ;;  %v7338_v18 = vld [vmem:[#allocation2 + $0x60] sm:$0xff]  ;;  %vm18833_vm10 = vnez %v18490_v12 }
 0x71e   : > { %12466 = vmatprep.mubr.msk.bf16.mxu0 %vm18822_vm11, %v17208_v26  ;;  %v17393_v26 = vpack.c.bf16 %v7334_v7, %v7333_v10  ;;  %v13531_v10 = vld [vmem:[%s18107_s11 + $0x158] sm:$0xff]   ;;  %v7342_v50 = vld [vmem:[#allocation2 + $0x80] sm:$0xff]  ;;  %vm18832_vm11 = vnez %v18488_v4 }
 0x71f   : > { %18823 = vst [vmem:[#allocation54_spill] sm:$0xff] %v17388_v16  ;;  %v8631_v12 = vld [vmem:[#allocation2 + $0x99] sm:$0xff] }
 0x720   : > { %18824 = vst [vmem:[#allocation51_spill] sm:$0xff] %v17393_v26 }
 0x725   : > { %12467 = vmatmul.mubr.msk.bf16.gmra.mrb[124].mxu0 %vm18793_vm13, %v17383_v36  ;;  %vm18831_vm13 = vnez %v18620_v27 }
 0x726   : > { %12486 = vmatprep.mubr.bf16.mxu0 %v7361_v33  ;;  %v7337_v33 = vld [vmem:[#allocation2 + $0x58] sm:$0xff] }
 0x727   : > { %v17405_v7 = vpack.c.bf16 %v7338_v18, %v7337_v33  ;;  %v13533_v18 = vld [vmem:[%s18107_s11 + $0x168] sm:$0xff]  }
 0x729   : > { %18826 = vst [vmem:[#allocation60_spill] sm:$0xff] %v17405_v7 }
 0x72d   : > { %12487 = vmatmul.mubr.bf16.vlgmr.msra.gmra.mrb[96].mxu0 %v17388_v16  ;;  %v7353_v16 = vld [vmem:[#allocation2 + $0xd8] sm:$0xff] }
 0x72e   : > { %12519 = vmatpush3.bf16.msra.mxu0 %v13528_v45  ;;  %12490 = vmatprep.mubr.bf16.mxu0 %v17393_v26  ;;  %v7340_v45 = vld [vmem:[#allocation2 + $0x70] sm:$0xff]  ;;  %v7341_v26 = vld [vmem:[#allocation2 + $0x78] sm:$0xff] }
 0x72f   : > { %12520 = vmatprep.subr.bf16.mxu0 %v13529_v19  ;;  %v17412_v8 = vpack.c.bf16 %v7340_v45, %v7339_v32  ;;  %v17417_v33 = vpack.c.bf16 %v7342_v50, %v7341_v26  ;;  %v7346_v45 = vld [vmem:[#allocation2 + $0xa0] sm:$0xff]  ;;  %v7343_v32 = vld [vmem:[#allocation2 + $0x88] sm:$0xff]  ;;  %v13535_v26 = vld [vmem:[%s18107_s11 + $0x178] sm:$0xff]  }
 0x731   : > { %18827 = vst [vmem:[#allocation61_spill] sm:$0xff] %v17412_v8  ;;  %18828 = vst [vmem:[#allocation59_spill] sm:$0xff] %v17417_v33 }
 0x732   : > { %12521 = vmatpush3.bf16.msra.mxu0 %v13529_v19  ;;  %v13532_v19 = vld [vmem:[%s18107_s11 + $0x160] sm:$0xff]  }
 0x733   : > { %12522 = vmatprep.subr.bf16.mxu0 %v13530_v42 }
 0x735   : > { %12491 = vmatmul.mubr.bf16.gmra.mrb[100].mxu0 %v17400_v20  ;;  %v7345_v20 = vld [vmem:[#allocation2 + $0x98] sm:$0xff] }
 0x736   : > { %12494 = vmatprep.mubr.bf16.mxu0 %v17405_v7  ;;  %12523 = vmatpush3.bf16.msra.mxu0 %v13530_v42  ;;  %v13534_v42 = vld [vmem:[%s18107_s11 + $0x170] sm:$0xff]   ;;  %v17429_v50 = vpack.c.bf16 %v7346_v45, %v7345_v20  ;;  %v7354_v45 = vld [vmem:[#allocation2 + $0xe0] sm:$0xff] }
 0x737   : > { %12524 = vmatprep.subr.bf16.mxu0 %v13531_v10  ;;  %v17444_v63 = vpack.c.bf16 %v7354_v45, %v7353_v16  ;;  %v13537_v16 = vld [vmem:[%s18107_s11 + $0x188] sm:$0xff]   ;;  %v13567_v45 = vld [vmem:[%s18109_s13 + $0x38] sm:$0xff]  }
 0x738   : > { %18830 = vst [vmem:[#allocation86_spill] sm:$0xff] %v17429_v50 }
 0x73a   : > { %12525 = vmatpush3.bf16.msra.mxu0 %v13531_v10  ;;  %v7344_v10 = vld [vmem:[#allocation2 + $0x90] sm:$0xff] }
 0x73b   : > { %12526 = vmatprep.subr.bf16.mxu0 %v13532_v19  ;;  %v17424_v7 = vpack.c.bf16 %v7344_v10, %v7343_v32  ;;  %v7350_v10 = vld [vmem:[#allocation2 + $0xc0] sm:$0xff]  ;;  %v7347_v32 = vld [vmem:[#allocation2 + $0xa8] sm:$0xff] }
 0x73d   : > { %12495 = vmatmul.mubr.bf16.gmra.mrb[104].mxu0 %v17412_v8  ;;  %18829 = vst [vmem:[#allocation88_spill] sm:$0xff] %v17424_v7  ;;  %v7349_v8 = vld [vmem:[#allocation2 + $0xb8] sm:$0xff] }
 0x73e   : > { %12498 = vmatprep.mubr.bf16.mxu0 %v17417_v33  ;;  %12527 = vmatpush3.bf16.msra.mxu0 %v13532_v19  ;;  %v13536_v19 = vld [vmem:[%s18107_s11 + $0x180] sm:$0xff]   ;;  %v17438_v20 = vpack.c.bf16 %v7350_v10, %v7349_v8  ;;  %v17452_v10 = vld [vmem:[#allocation2 + $0x108] sm:$0xff] }
 0x73f   : > { %12528 = vmatprep.subr.bf16.mxu0 %v13533_v18 }
 0x742   : > { %12529 = vmatpush3.bf16.msra.mxu0 %v13533_v18  ;;  %v7348_v18 = vld [vmem:[#allocation2 + $0xb0] sm:$0xff] }
 0x743   : > { %12530 = vmatprep.subr.bf16.mxu0 %v13534_v42  ;;  %v17436_v33 = vpack.c.bf16 %v7348_v18, %v7347_v32  ;;  %v7355_v18 = vld [vmem:[#allocation2 + $0xe8] sm:$0xff]  ;;  %v8647_v32 = vld [vmem:[#allocation2 + $0x119] sm:$0xff] }
 0x745   : > { %12499 = vmatmul.mubr.bf16.gmra.mrb[108].mxu0 %v17424_v7 }
 0x746   : > { %12502 = vmatprep.mubr.bf16.mxu0 %v17429_v50  ;;  %12531 = vmatpush3.bf16.msra.mxu0 %v13534_v42  ;;  %v7352_v42 = vld [vmem:[#allocation2 + $0xd0] sm:$0xff]  ;;  %v7351_v50 = vld [vmem:[#allocation2 + $0xc8] sm:$0xff] }
 0x747   : > { %12532 = vmatprep.subr.bf16.mxu0 %v13535_v26  ;;  %v17442_v7 = vpack.c.bf16 %v7352_v42, %v7351_v50  ;;  %v7376_v50 = vpack.c.bf16 %v17104_v35, %v17452_v10  ;;  %v13538_v35 = vld [vmem:[%s18107_s11 + $0x190] sm:$0xff]  }
 0x748   : > { %v18840_v42 = vld [vmem:[#allocation79_spill] sm:$0xff] }
 0x74a   : > { %12533 = vmatpush3.bf16.msra.mxu0 %v13535_v26  ;;  %v7356_v26 = vld [vmem:[#allocation2 + $0xf0] sm:$0xff] }
 0x74b   : > { %12566 = vmatprep.subr.bf16.mxu0 %v13536_v19  ;;  %v17448_v8 = vpack.c.bf16 %v7356_v26, %v7355_v18  ;;  %v7665_v26 = vld [vmem:[#allocation2 + $0x109] sm:$0xff]  ;;  %v7666_v18 = vld [vmem:[#allocation2 + $0x111] sm:$0xff] }
 0x74d   : > { %12503 = vmatmul.mubr.bf16.gmra.mrb[112].mxu0 %v17436_v33 }
 0x74e   : > { %12506 = vmatprep.mubr.bf16.mxu0 %v17438_v20 }
 0x755   : > { %12507 = vmatmul.mubr.bf16.gmra.mrb[116].mxu0 %v17442_v7 }
 0x756   : > { %12510 = vmatprep.mubr.bf16.mxu0 %v17444_v63 }
 0x75d   : > { %12511 = vmatmul.mubr.bf16.gmra.mrb[120].mxu0 %v17448_v8 }
 0x75e   : > { %12514 = vmatprep.mubr.bf16.mxu0 %v17108_v41  ;;  %v13539_v41 = vld [vmem:[%s18107_s11 + $0x198] sm:$0xff]  }
 0x765   : > { %12515 = vmatmul.mubr.bf16.gmra.mrb[124].mxu0 %v7376_v50  ;;  %v17525_v50 = vpack.c.bf16 %v7666_v18, %v7665_v26 }
 0x766   : > { %12534 = vmatprep.mubr.msk.bf16.mxu0 %vm18831_vm13, %v17215_v24  ;;  %vm18834_vm13 = vnez %v18502_v23  ;;  %v13540_v24 = vld [vmem:[%s18107_s11 + $0x1a0] sm:$0xff]  }
 0x76d   : > { %12535 = vmatmul.mubr.msk.bf16.vlgmr.msra.gmra.mrb[96].mxu0 %vm18832_vm11, %v17220_v2  ;;  %vm18835_vm11 = vnez %v18504_v58  ;;  %v13541_v2 = vld [vmem:[%s18107_s11 + $0x1a8] sm:$0xff]   ;;  %v8635_v58 = vld [vmem:[#allocation2 + $0xb9] sm:$0xff] }
 0x76e   : > { %12567 = vmatpush3.bf16.msra.mxu0 %v13536_v19  ;;  %12538 = vmatprep.mubr.msk.bf16.mxu0 %vm18833_vm10, %v17231_v55  ;;  %v13542_v55 = vld [vmem:[%s18107_s11 + $0x1b0] sm:$0xff]   ;;  %v18838_v19 = vld [vmem:[#allocation53_spill] sm:$0xff] }
 0x76f   : > { %12568 = vmatprep.subr.bf16.mxu0 %v13537_v16 }
 0x772   : > { %12569 = vmatpush3.bf16.msra.mxu0 %v13537_v16  ;;  %v13556_v16 = vld [vmem:[%s18107_s11 + $0x220] sm:$0xff]  }
 0x773   : > { %12570 = vmatprep.subr.bf16.mxu0 %v13538_v35 }
 0x775   : > { %12539 = vmatmul.mubr.msk.bf16.gmra.mrb[100].mxu0 %vm18834_vm13, %v17236_v43  ;;  %v13543_v43 = vld [vmem:[%s18107_s11 + $0x1b8] sm:$0xff]  }
 0x776   : > { %12542 = vmatprep.mubr.msk.bf16.mxu0 %vm18835_vm11, %v17247_v15  ;;  %12571 = vmatpush3.bf16.msra.mxu0 %v13538_v35  ;;  %v18836_v15 = vld [vmem:[#allocation56_spill] sm:$0xff]  ;;  %v13557_v35 = vld [vmem:[%s18107_s11 + $0x228] sm:$0xff]  }
 0x777   : > { %12572 = vmatprep.subr.bf16.mxu0 %v13539_v41 }
 0x77a   : > { %12573 = vmatpush3.bf16.msra.mxu0 %v13539_v41  ;;  %v18869_v41 = vld [vmem:[#allocation59_spill] sm:$0xff] }
 0x77b   : > { %12574 = vmatprep.subr.bf16.mxu0 %v13540_v24 }
 0x77d   : > { %12543 = vmatmul.mubr.msk.bf16.gmra.mrb[104].mxu0 %vm18799_vm6, %v17252_v38  ;;  %v18837_v38 = vld [vmem:[#allocation74_spill] sm:$0xff] }
 0x77e   : > { %12546 = vmatprep.mubr.msk.bf16.mxu0 %vm18800_vm4, %v17263_v37  ;;  %12575 = vmatpush3.bf16.msra.mxu0 %v13540_v24  ;;  %v13544_v37 = vld [vmem:[%s18107_s11 + $0x1c0] sm:$0xff]   ;;  %v18870_v24 = vld [vmem:[#allocation88_spill] sm:$0xff] }
 0x77f   : > { %12576 = vmatprep.subr.bf16.mxu0 %v13541_v2 }
 0x782   : > { %12577 = vmatpush3.bf16.msra.mxu0 %v13541_v2  ;;  %v13558_v2 = vld [vmem:[%s18107_s11 + $0x230] sm:$0xff]  }
 0x783   : > { %12578 = vmatprep.subr.bf16.mxu0 %v13542_v55 }
 0x785   : > { %12547 = vmatmul.mubr.msk.bf16.gmra.mrb[108].mxu0 %vm18669_vm14, %v17268_v62  ;;  %v18841_v62 = vld [vmem:[#allocation80_spill] sm:$0xff] }
 0x786   : > { %12550 = vmatprep.mubr.msk.bf16.mxu0 %vm18670_vm7, %v18836_v15  ;;  %12579 = vmatpush3.bf16.msra.mxu0 %v13542_v55  ;;  %vm18843_vm7 = vnez %v18810_v54  ;;  %v13559_v55 = vld [vmem:[%s18107_s11 + $0x238] sm:$0xff]   ;;  %v8338_v15 = vld [vmem:[#allocation2 + $0x100] sm:$0xff] }
 0x787   : > { %12580 = vmatprep.subr.bf16.mxu0 %v13543_v43 }
 0x78a   : > { %12581 = vmatpush3.bf16.msra.mxu0 %v13543_v43  ;;  %v18871_v43 = vld [vmem:[#allocation86_spill] sm:$0xff] }
 0x78b   : > { %12614 = vmatprep.subr.bf16.mxu0 %v13544_v37 }
 0x78d   : > { %12551 = vmatmul.mubr.msk.bf16.gmra.mrb[112].mxu0 %vm18629_vm15, %v18838_v19  ;;  %v8337_v19 = vld [vmem:[#allocation2 + $0xf8] sm:$0xff] }
 0x78e   : > { %12554 = vmatprep.mubr.msk.bf16.mxu0 %vm18630_vm12, %v17289_v25  ;;  %vm18844_vm12 = vnez %v18811_v60  ;;  %v13545_v25 = vld [vmem:[%s18107_s11 + $0x1c8] sm:$0xff]   ;;  %v8356_v26 = vpack.c.bf16 %v8338_v15, %v8337_v19  ;;  %v13566_v60 = vld [vmem:[%s18109_s13 + $0x30] sm:$0xff]  }
 0x795   : > { %12555 = vmatmul.mubr.msk.bf16.gmra.mrb[116].mxu0 %vm18631_vm0, %v17291_v0  ;;  %vm18845_vm0 = vnez %v18580_v28  ;;  %v13547_v28 = vld [vmem:[%s18107_s11 + $0x1d8] sm:$0xff]  }
 0x796   : > { %12558 = vmatprep.mubr.msk.bf16.mxu0 %vm18632_vm3, %v17299_v56  ;;  %v13554_v56 = vld [vmem:[%s18107_s11 + $0x210] sm:$0xff]   ;;  %v13555_v0 = vld [vmem:[%s18107_s11 + $0x218] sm:$0xff]  }
 0x79d   : > { %12559 = vmatmul.mubr.msk.bf16.gmra.mrb[120].mxu0 %vm16041_vm8, %v17301_v30  ;;  %vm18846_vm8 = vnez %v18581_v1  ;;  %v13546_v30 = vld [vmem:[%s18107_s11 + $0x1d0] sm:$0xff]   ;;  %v13548_v1 = vld [vmem:[%s18107_s11 + $0x1e0] sm:$0xff]  }
 0x79e   : > { %12562 = vmatprep.mubr.msk.bf16.mxu0 %vm18843_vm7, %v17309_v39  ;;  %vm18847_vm7 = vnez %v18582_v5  ;;  %v13549_v5 = vld [vmem:[%s18107_s11 + $0x1e8] sm:$0xff]   ;;  %v18867_v39 = vld [vmem:[#allocation60_spill] sm:$0xff] }
 0x7a5   : > { %12563 = vmatmul.mubr.msk.bf16.gmra.mrb[124].mxu0 %vm18844_vm12, %v17525_v50 }
 0x7a6   : > { %12582 = vmatprep.mubr.msk.bf16.mxu0 %vm18845_vm0, %v17118_v31  ;;  %vm18848_vm0 = vnez %v18583_v53  ;;  %v13551_v53 = vld [vmem:[%s18107_s11 + $0x1f8] sm:$0xff]   ;;  %v18857_v31 = vld [vmem:[#allocation73_spill] sm:$0xff] }
 0x7ad   : > { %12583 = vmatmul.mubr.msk.bf16.vlgmr.msra.gmra.mrb[96].mxu0 %vm18846_vm8, %v17130_v48  ;;  %vm18849_vm8 = vnez %v18584_v44  ;;  %v13550_v44 = vld [vmem:[%s18107_s11 + $0x1f0] sm:$0xff]   ;;  %v18858_v48 = vld [vmem:[#allocation50_spill] sm:$0xff] }
 0x7ae   : > { %12615 = vmatpush3.bf16.msra.mxu0 %v13544_v37  ;;  %12586 = vmatprep.mubr.msk.bf16.mxu0 %vm18847_vm7, %v17135_v40  ;;  %vm18850_vm7 = vnez %v18585_v29  ;;  %v18860_v40 = vld [vmem:[#allocation52_spill] sm:$0xff]  ;;  %v8340_v37 = vld [vmem:[#allocation2 + $0x110] sm:$0xff] }
 0x7af   : > { %12616 = vmatprep.subr.bf16.mxu0 %v13545_v25  ;;  %v8357_v18 = vpack.c.bf16 %v8340_v37, %v17452_v10  ;;  %v8623_v10 = vld [vmem:[#allocation2 + $0x59] sm:$0xff] }
 0x7b2   : > { %12617 = vmatpush3.bf16.msra.mxu0 %v13545_v25 }
 0x7b3   : > { %12618 = vmatprep.subr.bf16.mxu0 %v13546_v30 }
 0x7b5   : > { %12587 = vmatmul.mubr.msk.bf16.gmra.mrb[100].mxu0 %vm18848_vm0, %v17146_v61  ;;  %vm18851_vm0 = vnez %v18586_v57  ;;  %v13552_v57 = vld [vmem:[%s18107_s11 + $0x200] sm:$0xff]  }
 0x7b6   : > { %12590 = vmatprep.mubr.msk.bf16.mxu0 %vm18849_vm8, %v17151_v13  ;;  %12619 = vmatpush3.bf16.msra.mxu0 %v13546_v30  ;;  %vm18852_vm8 = vnez %v18587_v47  ;;  %v8004_v61 = vld [vmem:[#allocation2 + $0x11f] sm:$0xff]  ;;  %v18862_v13 = vld [vmem:[#allocation55_spill] sm:$0xff] }
 0x7b7   : > { %12620 = vmatprep.subr.bf16.mxu0 %v13547_v28  ;;  %v10958_v34 = vpack.c.bf16 %v8004_v61, %v8003_v46  ;;  %v8618_v30 = vld [vmem:[#allocation2 + $0x31] sm:$0xff]  ;;  %v8632_v61 = vld [vmem:[#allocation2 + $0xa1] sm:$0xff] }
 0x7b8   : > { %v11030_v23 = vpack.c.bf16 %v8632_v61, %v8631_v12 }
 0x7ba   : > { %12621 = vmatpush3.bf16.msra.mxu0 %v13547_v28  ;;  %v8617_v28 = vld [vmem:[#allocation2 + $0x29] sm:$0xff] }
 0x7bb   : > { %12622 = vmatprep.subr.bf16.mxu0 %v13548_v1 }
 0x7bd   : > { %12591 = vmatmul.mubr.msk.bf16.gmra.mrb[104].mxu0 %vm18850_vm7, %v17162_v22  ;;  %vm18853_vm7 = vnez %v18588_v3  ;;  %v18855_v3 = vld [vmem:[#allocation76_spill] sm:$0xff]  ;;  %v13560_v22 = vld [vmem:[%s18109_s13] sm:$0xff]  }
 0x7be   : > { %12594 = vmatprep.mubr.msk.bf16.mxu0 %vm18851_vm0, %v17167_v59  ;;  %12623 = vmatpush3.bf16.msra.mxu0 %v13548_v1  ;;  %vm18859_vm0 = vnez %v18858_v48  ;;  %v13561_v59 = vld [vmem:[%s18109_s13 + $0x8] sm:$0xff]   ;;  %v11009_v1 = vpack.c.bf16 %v8618_v30, %v8617_v28  ;;  %v8630_v48 = vld [vmem:[#allocation2 + $0x91] sm:$0xff] }
 0x7bf   : > { %12624 = vmatprep.subr.bf16.mxu0 %v13549_v5  ;;  %12758 = vmatprep.subr.bf16.mxu1 %v13560_v22 }
 0x7c0   : > { %12759 = vmatpush3.bf16.msra.mxu1 %v13560_v22 }
 0x7c1   : > { %12760 = vmatprep.subr.bf16.mxu1 %v13561_v59 }
 0x7c2   : > { %12625 = vmatpush3.bf16.msra.mxu0 %v13549_v5  ;;  %v8621_v5 = vld [vmem:[#allocation2 + $0x49] sm:$0xff] }
 0x7c3   : > { %12626 = vmatprep.subr.bf16.mxu0 %v13550_v44 }
 0x7c4   : > { %12761 = vmatpush3.bf16.msra.mxu1 %v13561_v59  ;;  %v8636_v59 = vld [vmem:[#allocation2 + $0xc1] sm:$0xff] }
 0x7c5   : > { %12595 = vmatmul.mubr.msk.bf16.gmra.mrb[108].mxu0 %vm18852_vm8, %v17178_v51  ;;  %vm18861_vm8 = vnez %v18860_v40  ;;  %v18864_v51 = vld [vmem:[#allocation54_spill] sm:$0xff]  ;;  %v11036_v9 = vpack.c.bf16 %v8636_v59, %v8635_v58 }
 0x7c6   : > { %12598 = vmatprep.mubr.msk.bf16.mxu0 %vm18853_vm7, %v17180_v52  ;;  %12627 = vmatpush3.bf16.msra.mxu0 %v13550_v44  ;;  %v13562_v52 = vld [vmem:[%s18109_s13 + $0x10] sm:$0xff]  }
 0x7c7   : > { %12628 = vmatprep.subr.bf16.mxu0 %v13551_v53  ;;  %12762 = vmatprep.subr.bf16.mxu1 %v13562_v52  ;;  %v8629_v40 = vld [vmem:[#allocation2 + $0x89] sm:$0xff] }
 0x7c8   : > { %12763 = vmatpush3.bf16.msra.mxu1 %v13562_v52  ;;  %v11027_v46 = vpack.c.bf16 %v8630_v48, %v8629_v40  ;;  %v8637_v52 = vld [vmem:[#allocation2 + $0xc9] sm:$0xff] }
 0x7ca   : > { %12629 = vmatpush3.bf16.msra.mxu0 %v13551_v53  ;;  %v8624_v53 = vld [vmem:[#allocation2 + $0x61] sm:$0xff] }
 0x7cb   : > { %12662 = vmatprep.subr.bf16.mxu0 %v13552_v57  ;;  %v11018_v29 = vpack.c.bf16 %v8624_v53, %v8623_v10 }
 0x7cd   : > { %12599 = vmatmul.mubr.msk.bf16.gmra.mrb[112].mxu0 %vm18788_vm9, %v17188_v17  ;;  %v13553_v17 = vld [vmem:[%s18107_s11 + $0x208] sm:$0xff]   ;;  %vm18873_vm9 = vnez %v18488_v4 }
 0x7ce   : > { %12602 = vmatprep.mubr.msk.bf16.mxu0 %vm18819_vm2, %v17190_v6  ;;  %vm18863_vm2 = vnez %v18862_v13  ;;  %v18865_v6 = vld [vmem:[#allocation51_spill] sm:$0xff] }
 0x7cf   : > { %v8633_v13 = vld [vmem:[#allocation2 + $0xa9] sm:$0xff] }
 0x7d5   : > { %12603 = vmatmul.mubr.msk.bf16.gmra.mrb[116].mxu0 %vm18820_vm5, %v17198_v11  ;;  %v18866_v11 = vld [vmem:[#allocation82_spill] sm:$0xff]  ;;  %vm18872_vm5 = vnez %v18620_v27  ;;  %v8627_v27 = vld [vmem:[#allocation2 + $0x79] sm:$0xff] }
 0x7d6   : > { %12606 = vmatprep.mubr.msk.bf16.mxu0 %vm18821_vm1, %v18855_v3  ;;  %v8625_v3 = vld [vmem:[#allocation2 + $0x69] sm:$0xff] }
 0x7dd   : > { %12607 = vmatmul.mubr.msk.bf16.gmra.mrb[120].mxu0 %vm18859_vm0, %v18857_v31  ;;  %v8628_v31 = vld [vmem:[#allocation2 + $0x81] sm:$0xff] }
 0x7de   : > { %12610 = vmatprep.mubr.msk.bf16.mxu0 %vm18861_vm8, %v17383_v36  ;;  %v18868_v36 = vld [vmem:[#allocation61_spill] sm:$0xff]  ;;  %v11024_v4 = vpack.c.bf16 %v8628_v31, %v8627_v27 }
 0x7e5   : > { %12611 = vmatmul.mubr.msk.bf16.gmra.mrb[124].mxu0 %vm18863_vm2, %v10958_v34  ;;  %v8634_v34 = vld [vmem:[#allocation2 + $0xb1] sm:$0xff] }
 0x7e6   : > { %12630 = vmatprep.mubr.bf16.mxu0 %v18864_v51  ;;  %v11033_v22 = vpack.c.bf16 %v8634_v34, %v8633_v13  ;;  %v8638_v51 = vld [vmem:[#allocation2 + $0xd1] sm:$0xff] }
 0x7ed   : > { %12631 = vmatmul.mubr.bf16.vlgmr.msra.gmra.mrb[96].mxu0 %v18865_v6  ;;  %v8640_v6 = vld [vmem:[#allocation2 + $0xe1] sm:$0xff] }
 0x7ee   : > { %12663 = vmatpush3.bf16.msra.mxu0 %v13552_v57  ;;  %12634 = vmatprep.mubr.bf16.mxu0 %v18866_v11  ;;  %v8626_v57 = vld [vmem:[#allocation2 + $0x71] sm:$0xff]  ;;  %v11042_v14 = vpack.c.bf16 %v8640_v6, %v8639_v49 }
 0x7ef   : > { %12664 = vmatprep.subr.bf16.mxu0 %v13553_v17  ;;  %v11021_v47 = vpack.c.bf16 %v8626_v57, %v8625_v3  ;;  %v8642_v11 = vld [vmem:[#allocation2 + $0xf1] sm:$0xff] }
 0x7f2   : > { %12665 = vmatpush3.bf16.msra.mxu0 %v13553_v17  ;;  %v11039_v17 = vpack.c.bf16 %v8638_v51, %v8637_v52 }
 0x7f3   : > { %12666 = vmatprep.subr.bf16.mxu0 %v13554_v56 }
 0x7f5   : > { %12635 = vmatmul.mubr.bf16.gmra.mrb[100].mxu0 %v18867_v39  ;;  %v8644_v39 = vld [vmem:[#allocation2 + $0x101] sm:$0xff] }
 0x7f6   : > { %12638 = vmatprep.mubr.bf16.mxu0 %v18868_v36  ;;  %12667 = vmatpush3.bf16.msra.mxu0 %v13554_v56  ;;  %v8641_v56 = vld [vmem:[#allocation2 + $0xe9] sm:$0xff] }
 0x7f7   : > { %12668 = vmatprep.subr.bf16.mxu0 %v13555_v0 }
 0x7fa   : > { %12669 = vmatpush3.bf16.msra.mxu0 %v13555_v0  ;;  %v11045_v0 = vpack.c.bf16 %v8642_v11, %v8641_v56 }
 0x7fb   : > { %12670 = vmatprep.subr.bf16.mxu0 %v13556_v16 }
 0x7fd   : > { %12639 = vmatmul.mubr.bf16.gmra.mrb[104].mxu0 %v18869_v41 }
 0x7fe   : > { %12642 = vmatprep.mubr.bf16.mxu0 %v18870_v24  ;;  %12671 = vmatpush3.bf16.msra.mxu0 %v13556_v16 }
 0x7ff   : > { %12672 = vmatprep.subr.bf16.mxu0 %v13557_v35 }
 0x802   : > { %12673 = vmatpush3.bf16.msra.mxu0 %v13557_v35 }
 0x803   : > { %12674 = vmatprep.subr.bf16.mxu0 %v13558_v2 }
 0x805   : > { %12643 = vmatmul.mubr.bf16.gmra.mrb[108].mxu0 %v18871_v43 }
 0x806   : > { %12646 = vmatprep.mubr.bf16.mxu0 %v17436_v33  ;;  %12675 = vmatpush3.bf16.msra.mxu0 %v13558_v2  ;;  %v14467_v33 = vld [vmem:[#allocation2 + $0x8] sm:$0xff] }
 0x807   : > { %12676 = vmatprep.subr.bf16.mxu0 %v13559_v55  ;;  %v8358_v25 = vpack.c.bf16 %v14467_v33, %v14467_v33 }
 0x80a   : > { %12677 = vmatpush3.bf16.msra.mxu0 %v13559_v55 }
 0x80d   : > { %12647 = vmatmul.mubr.bf16.gmra.mrb[112].mxu0 %v17438_v20  ;;  %v8622_v20 = vld [vmem:[#allocation2 + $0x51] sm:$0xff] }
 0x80e   : > { %12650 = vmatprep.mubr.bf16.mxu0 %v17442_v7  ;;  %v8620_v7 = vld [vmem:[#allocation2 + $0x41] sm:$0xff]  ;;  %v11015_v44 = vpack.c.bf16 %v8622_v20, %v8621_v5 }
 0x815   : > { %12651 = vmatmul.mubr.bf16.gmra.mrb[116].mxu0 %v17444_v63  ;;  %v8619_v63 = vld [vmem:[#allocation2 + $0x39] sm:$0xff] }
 0x816   : > { %12654 = vmatprep.mubr.bf16.mxu0 %v17448_v8  ;;  %v11012_v8 = vpack.c.bf16 %v8620_v7, %v8619_v63 }
 0x81d   : > { %12655 = vmatmul.mubr.bf16.gmra.mrb[120].mxu0 %v8356_v26 }
 0x81e   : > { %12658 = vmatprep.mubr.bf16.mxu0 %v8357_v18 }
 0x825   : > { %12659 = vmatmul.mubr.bf16.gmra.mrb[124].mxu0 %v8358_v25 }
 0x826   : > { %12678 = vmatprep.mubr.msk.bf16.mxu0 %vm18872_vm5, %v11009_v1 }
 0x82d   : > { %12679 = vmatmul.mubr.msk.bf16.vlgmr.msra.gmra.mrb[96].mxu0 %vm18873_vm9, %v11012_v8 }
 0x82e   : > { %12682 = vmatprep.mubr.msk.bf16.mxu0 %vm18833_vm10, %v11015_v44  ;;  %vm18874_vm10 = vnez %v18837_v38  ;;  %v8643_v38 = vld [vmem:[#allocation2 + $0xf9] sm:$0xff] }
 0x82f   : > { %v11048_v36 = vpack.c.bf16 %v8644_v39, %v8643_v38 }
 0x835   : > { %12683 = vmatmul.mubr.msk.bf16.gmra.mrb[100].mxu0 %vm18834_vm13, %v11018_v29  ;;  %vm18876_vm13 = vnez %v18841_v62  ;;  %v13563_v62 = vld [vmem:[%s18109_s13 + $0x18] sm:$0xff]  }
 0x836   : > { %12686 = vmatprep.mubr.msk.bf16.mxu0 %vm18835_vm11, %v11021_v47  ;;  %12764 = vmatprep.subr.bf16.mxu1 %v13563_v62 }
 0x837   : > { %12765 = vmatpush3.bf16.msra.mxu1 %v13563_v62 }
 0x83d   : > { %12687 = vmatmul.mubr.msk.bf16.gmra.mrb[104].mxu0 %vm18799_vm6, %v11024_v4  ;;  %vm18875_vm6 = vnez %v18840_v42  ;;  %v8648_v42 = vld [vmem:[#allocation2 + $0x121] sm:$0xff] }
 0x83e   : > { %12690 = vmatprep.mubr.msk.bf16.mxu0 %vm18800_vm4, %v11027_v46  ;;  %vm18878_vm4 = vnez %v18810_v54  ;;  %v11054_v16 = vpack.c.bf16 %v8648_v42, %v8647_v32  ;;  %v13565_v54 = vld [vmem:[%s18109_s13 + $0x28] sm:$0xff]  }
 0x845   : > { %12691 = vmatmul.mubr.msk.bf16.gmra.mrb[108].mxu0 %vm18669_vm14, %v11030_v23  ;;  %vm18877_vm14 = vnez %v18809_v21  ;;  %v13564_v21 = vld [vmem:[%s18109_s13 + $0x20] sm:$0xff]  }
 0x846   : > { %12694 = vmatprep.mubr.msk.bf16.mxu0 %vm18874_vm10, %v11033_v22  ;;  %12766 = vmatprep.subr.bf16.mxu1 %v13564_v21 }
 0x847   : > { %12767 = vmatpush3.bf16.msra.mxu1 %v13564_v21 }
 0x848   : > { %12768 = vmatprep.subr.bf16.mxu1 %v13565_v54 }
 0x84b   : > { %12769 = vmatpush3.bf16.msra.mxu1 %v13565_v54 }
 0x84c   : > { %12770 = vmatprep.subr.bf16.mxu1 %v13566_v60 }
 0x84d   : > { %12695 = vmatmul.mubr.msk.bf16.gmra.mrb[112].mxu0 %vm18629_vm15, %v11036_v9 }
 0x84e   : > { %12698 = vmatprep.mubr.msk.bf16.mxu0 %vm18875_vm6, %v11039_v17 }
 0x84f   : > { %12771 = vmatpush3.bf16.msra.mxu1 %v13566_v60 }
 0x850   : > { %12772 = vmatprep.subr.bf16.mxu1 %v13567_v45 }
 0x853   : > { %12773 = vmatpush3.bf16.msra.mxu1 %v13567_v45 }
 0x855   : > { %12699 = vmatmul.mubr.msk.bf16.gmra.mrb[116].mxu0 %vm18876_vm13, %v11042_v14 }
 0x856   : > { %12702 = vmatprep.mubr.msk.bf16.mxu0 %vm18632_vm3, %v11045_v0 }
 0x85d   : > { %12703 = vmatmul.mubr.msk.bf16.gmra.mrb[120].mxu0 %vm18877_vm14, %v11048_v36 }
 0x85e   : > { %12706 = vmatprep.mubr.msk.bf16.mxu0 %vm18878_vm4, %v17525_v50  ;;  %v17696_v50 = vld [vmem:[%s18108_s12] ss:$0 sm:$0xff] }
 0x865   : > { %12707 = vmatmul.mubr.msk.bf16.gmra.mrb[124].mxu0 %vm18844_vm12, %v11054_v16 }
 0x900   : > { %v12680_v35 = vpop.f32.mrb[96].mxu0 }
 0x901   : > { %v17699_v41 = vadd.f32 %v12680_v35, %v17696_v50  ;;  %v8796_v24 = vpop.f32.mrb[97].mxu0 }
 0x902   : > { %v17702_v2 = vadd.f32 %v17696_v50, %v8796_v24  ;;  %v12681_v55 = vpop.f32.mrb[98].mxu0 }
 0x903   : > { %v8996_v43 = vsub.f32 0.0, %v17699_v41  ;;  %v17706_v15 = vadd.f32 %v12681_v55, %v17696_v50  ;;  %v8799_v37 = vpop.f32.mrb[99].mxu0 }
 0x904   : > { %v8994_v19 = vsub.f32 0.0, %v17702_v2  ;;  %v17710_v26 = vadd.f32 %v17696_v50, %v8799_v37 }
 0x905   : > { %v9030_v18 = vmul.f32 1.442695, %v8996_v43  ;;  %v8997_v33 = vsub.f32 0.0, %v17706_v15 }
 0x906   : > { %v9026_v25 = vmul.f32 1.442695, %v8994_v19  ;;  %v8995_v30 = vsub.f32 0.0, %v17710_v26 }
 0x907   : > { %14208 = vpow2.f32 %v9030_v18  ;;  %v9032_v28 = vmul.f32 1.442695, %v8997_v33 }
 0x908   : > { %14210 = vpow2.f32 %v9026_v25  ;;  %v9028_v1 = vmul.f32 1.442695, %v8995_v30  ;;  %v12684_v63 = vpop.f32.mrb[100].mxu0 }
 0x909   : > { %14212 = vpow2.f32 %v9032_v28  ;;  %v17715_v7 = vadd.f32 %v12684_v63, %v17696_v50  ;;  %v8812_v20 = vpop.f32.mrb[101].mxu0 }
 0x90a   : > { %14214 = vpow2.f32 %v9028_v1  ;;  %v17718_v8 = vadd.f32 %v17696_v50, %v8812_v20  ;;  %v12685_v5 = vpop.f32.mrb[102].mxu0 }
 0x90b   : > { %v9000_v44 = vsub.f32 0.0, %v17715_v7  ;;  %v17722_v10 = vadd.f32 %v12685_v5, %v17696_v50  ;;  %v8815_v53 = vpop.f32.mrb[103].mxu0 }
 0x90c   : > { %v8998_v57 = vsub.f32 0.0, %v17718_v8  ;;  %v17726_v29 = vadd.f32 %v17696_v50, %v8815_v53 }
 0x90d   : > { %v9038_v3 = vmul.f32 1.442695, %v9000_v44  ;;  %v9001_v47 = vsub.f32 0.0, %v17722_v10 }
 0x90e   : > { %v9034_v27 = vmul.f32 1.442695, %v8998_v57  ;;  %v8999_v31 = vsub.f32 0.0, %v17726_v29 }
 0x90f   : > { %14216 = vpow2.f32 %v9038_v3  ;;  %v9040_v48 = vmul.f32 1.442695, %v9001_v47 }
 0x910   : > { %14218 = vpow2.f32 %v9034_v27  ;;  %v9036_v4 = vmul.f32 1.442695, %v8999_v31  ;;  %v12688_v40 = vpop.f32.mrb[104].mxu0 }
 0x911   : > { %v14209_v46 = vpop.eup %14208  ;;  %14220 = vpow2.f32 %v9040_v48  ;;  %v17731_v12 = vadd.f32 %v12688_v40, %v17696_v50  ;;  %v8828_v61 = vpop.f32.mrb[105].mxu0  ;;  %v18879_v40 = vld [vmem:[#allocation58_spill] sm:$0xff] }
 0x912   : > { %v14211_v34 = vpop.eup %14210  ;;  %v9092_v23 = vadd.f32 1.0, %v14209_v46  ;;  %14222 = vpow2.f32 %v9036_v4  ;;  %v17734_v13 = vadd.f32 %v17696_v50, %v8828_v61  ;;  %v12689_v22 = vpop.f32.mrb[106].mxu0 }
 0x913   : > { %v14213_v58 = vpop.eup %14212  ;;  %v9090_v59 = vadd.f32 1.0, %v14211_v34  ;;  %v9004_v51 = vsub.f32 0.0, %v17731_v12  ;;  %v17738_v9 = vadd.f32 %v12689_v22, %v17696_v50  ;;  %v8831_v52 = vpop.f32.mrb[107].mxu0 }
 0x914   : > { %v14215_v17 = vpop.eup %14214  ;;  %14224 = vrcp.f32 %v9092_v23  ;;  %v9093_v49 = vadd.f32 1.0, %v14213_v58  ;;  %v9002_v6 = vsub.f32 0.0, %v17734_v13  ;;  %v17742_v11 = vadd.f32 %v17696_v50, %v8831_v52 }
 0x915   : > { %14226 = vrcp.f32 %v9090_v59  ;;  %v9091_v14 = vadd.f32 1.0, %v14215_v17  ;;  %v9046_v56 = vmul.f32 1.442695, %v9004_v51  ;;  %v9005_v0 = vsub.f32 0.0, %v17738_v9  ;;  %v18881_v17 = vld [vmem:[#allocation35_spill] sm:$0xff] }
 0x916   : > { %14228 = vrcp.f32 %v9093_v49  ;;  %v9042_v38 = vmul.f32 1.442695, %v9002_v6  ;;  %v9003_v39 = vsub.f32 0.0, %v17742_v11 }
 0x917   : > { %14230 = vrcp.f32 %v9091_v14  ;;  %v9048_v36 = vmul.f32 1.442695, %v9005_v0  ;;  %v18882_v0 = vld [vmem:[#allocation38_spill] sm:$0xff] }
 0x918   : > { %14232 = vpow2.f32 %v9046_v56  ;;  %v9044_v32 = vmul.f32 1.442695, %v9003_v39  ;;  %v12692_v42 = vpop.f32.mrb[108].mxu0 }
 0x919   : > { %v14217_v16 = vpop.eup %14216  ;;  %14234 = vpow2.f32 %v9042_v38  ;;  %v17747_v62 = vadd.f32 %v12692_v42, %v17696_v50  ;;  %v8844_v21 = vpop.f32.mrb[109].mxu0 }
 0x91a   : > { %v14219_v54 = vpop.eup %14218  ;;  %v9096_v60 = vadd.f32 1.0, %v14217_v16  ;;  %14236 = vpow2.f32 %v9048_v36  ;;  %v17750_v45 = vadd.f32 %v17696_v50, %v8844_v21  ;;  %v12693_v35 = vpop.f32.mrb[110].mxu0 }
 0x91b   : > { %v14221_v24 = vpop.eup %14220  ;;  %v9094_v55 = vadd.f32 1.0, %v14219_v54  ;;  %14238 = vpow2.f32 %v9044_v32  ;;  %v9008_v43 = vsub.f32 0.0, %v17747_v62  ;;  %v17754_v37 = vadd.f32 %v12693_v35, %v17696_v50  ;;  %v8847_v19 = vpop.f32.mrb[111].mxu0 }
 0x91c   : > { %v14223_v18 = vpop.eup %14222  ;;  %14240 = vrcp.f32 %v9096_v60  ;;  %v9097_v33 = vadd.f32 1.0, %v14221_v24  ;;  %v9006_v25 = vsub.f32 0.0, %v17750_v45  ;;  %v17758_v30 = vadd.f32 %v17696_v50, %v8847_v19 }
 0x91d   : > { %14242 = vrcp.f32 %v9094_v55  ;;  %v9095_v28 = vadd.f32 1.0, %v14223_v18  ;;  %v9054_v1 = vmul.f32 1.442695, %v9008_v43  ;;  %v9009_v63 = vsub.f32 0.0, %v17754_v37 }
 0x91e   : > { %v14225_v20 = vpop.eup %14224  ;;  %14244 = vrcp.f32 %v9097_v33  ;;  %v9050_v5 = vmul.f32 1.442695, %v9006_v25  ;;  %v9007_v44 = vsub.f32 0.0, %v17758_v30 }
 0x91f   : > { %v14227_v53 = vpop.eup %14226  ;;  %v9156_v57 = vmul.f32 %v14225_v20, %v17699_v41  ;;  %14246 = vrcp.f32 %v9095_v28  ;;  %v9056_v3 = vmul.f32 1.442695, %v9009_v63  ;;  %v18880_v41 = vld [vmem:[#allocation39_spill] sm:$0xff]  ;;  %v18883_v20 = vld [vmem:[#allocation40_spill] sm:$0xff] }
 0x920   : > { %v14229_v47 = vpop.eup %14228  ;;  %v9154_v27 = vmul.f32 %v14227_v53, %v17702_v2  ;;  %14248 = vpow2.f32 %v9054_v1  ;;  %v9052_v31 = vmul.f32 1.442695, %v9007_v44  ;;  %v12696_v48 = vpop.f32.mrb[112].mxu0 }
 0x921   : > { %v14231_v4 = vpop.eup %14230  ;;  %v9188_v46 = vadd.f32 %v9156_v57, %v18879_v40  ;;  %v9157_v61 = vmul.f32 %v14229_v47, %v17706_v15  ;;  %14250 = vpow2.f32 %v9050_v5  ;;  %v17767_v34 = vadd.f32 %v12696_v48, %v17696_v50  ;;  %v8860_v23 = vpop.f32.mrb[113].mxu0 }
 0x922   : > { %v14233_v22 = vpop.eup %14232  ;;  %v9186_v58 = vadd.f32 %v9154_v27, %v18880_v41  ;;  %v9155_v59 = vmul.f32 %v14231_v4, %v17710_v26  ;;  %14252 = vpow2.f32 %v9056_v3  ;;  %v17772_v2 = vadd.f32 %v17696_v50, %v8860_v23  ;;  %v12697_v51 = vpop.f32.mrb[114].mxu0  ;;  %v18884_v3 = vld [vmem:[#allocation41_spill] sm:$0xff]  ;;  %v18885_v4 = vld [vmem:[#allocation42_spill] sm:$0xff] }
 0x923   : > { %v14235_v52 = vpop.eup %14234  ;;  %v9189_v49 = vadd.f32 %v9157_v61, %v18881_v17  ;;  %v9100_v6 = vadd.f32 1.0, %v14233_v22  ;;  %14254 = vpow2.f32 %v9052_v31  ;;  %v9012_v15 = vsub.f32 0.0, %v17767_v34  ;;  %v8863_v14 = vpop.f32.mrb[115].mxu0  ;;  %v18886_v22 = vld [vmem:[#allocation43_spill] sm:$0xff] }
 0x924   : > { %v14237_v56 = vpop.eup %14236  ;;  %v9187_v38 = vadd.f32 %v9155_v59, %v18882_v0  ;;  %v9098_v39 = vadd.f32 1.0, %v14235_v52  ;;  %v9010_v36 = vsub.f32 0.0, %v17772_v2  ;;  %v17779_v26 = vadd.f32 %v12697_v51, %v17696_v50 }
 0x925   : > { %v14239_v32 = vpop.eup %14238  ;;  %v9219_v42 = vpack.c.bf16 %v9189_v49, %v9188_v46  ;;  %14256 = vrcp.f32 %v9100_v6  ;;  %v9101_v16 = vadd.f32 1.0, %v14237_v56  ;;  %v9062_v21 = vmul.f32 1.442695, %v9012_v15 }
 0x926   : > { %v14241_v54 = vpop.eup %14240  ;;  %14258 = vrcp.f32 %v9098_v39  ;;  %v9099_v60 = vadd.f32 1.0, %v14239_v32  ;;  %v9058_v35 = vmul.f32 1.442695, %v9010_v36  ;;  %v9013_v24 = vsub.f32 0.0, %v17779_v26 }
 0x927   : > { %v14243_v55 = vpop.eup %14242  ;;  %v9160_v43 = vmul.f32 %v14241_v54, %v17715_v7  ;;  %14260 = vrcp.f32 %v9101_v16  ;;  %v17784_v19 = vadd.f32 %v17696_v50, %v8863_v14  ;;  %v9218_v18 = vpack.c.bf16 %v9187_v38, %v9186_v58 }
 0x928   : > { %v14245_v33 = vpop.eup %14244  ;;  %v9158_v25 = vmul.f32 %v14243_v55, %v17718_v8  ;;  %14262 = vrcp.f32 %v9099_v60  ;;  %v9064_v28 = vmul.f32 1.442695, %v9013_v24  ;;  %v12700_v1 = vpop.f32.mrb[116].mxu0 }
 0x929   : > { %v14247_v63 = vpop.eup %14246  ;;  %v9192_v5 = vadd.f32 %v9160_v43, %v18883_v20  ;;  %v9161_v44 = vmul.f32 %v14245_v33, %v17722_v10  ;;  %14264 = vpow2.f32 %v9062_v21  ;;  %v9011_v53 = vsub.f32 0.0, %v17784_v19  ;;  %12774 = vmatprep.mubr.bf16.mxu1 %v9218_v18  ;;  %v8876_v7 = vpop.f32.mrb[117].mxu0  ;;  %v18887_v18 = vld [vmem:[#allocation44_spill] sm:$0xff] }
 0x92a   : > { %v14249_v57 = vpop.eup %14248  ;;  %v9190_v47 = vadd.f32 %v9158_v25, %v18884_v3  ;;  %v9159_v27 = vmul.f32 %v14247_v63, %v17726_v29  ;;  %14266 = vpow2.f32 %v9058_v35  ;;  %v17793_v8 = vadd.f32 %v12700_v1, %v17696_v50  ;;  %12775 = vmatmul.mubr.bf16.vlgmr.msra.gmra.mrb[64].mxu1 %v9219_v42  ;;  %v12701_v31 = vpop.f32.mrb[118].mxu0  ;;  %v18888_v63 = vld [vmem:[#allocation45_spill] sm:$0xff] }
 0x92b   : > { %v14251_v48 = vpop.eup %14250  ;;  %v9193_v40 = vadd.f32 %v9161_v44, %v18885_v4  ;;  %v9104_v10 = vadd.f32 1.0, %v14249_v57  ;;  %14268 = vpow2.f32 %v9064_v28  ;;  %v9060_v46 = vmul.f32 1.442695, %v9011_v53  ;;  %v8879_v61 = vpop.f32.mrb[119].mxu0 }
 0x92c   : > { %v14253_v23 = vpop.eup %14252  ;;  %v9191_v41 = vadd.f32 %v9159_v27, %v18886_v22  ;;  %v9102_v58 = vadd.f32 1.0, %v14251_v48  ;;  %v9016_v59 = vsub.f32 0.0, %v17793_v8  ;;  %v17799_v29 = vadd.f32 %v17696_v50, %v8876_v7  ;;  %v18889_v7 = vld [vmem:[#allocation46_spill] sm:$0xff]  ;;  %v18890_v27 = vld [vmem:[#allocation47_spill] sm:$0xff] }
 0x92d   : > { %v14255_v51 = vpop.eup %14254  ;;  %14270 = vrcp.f32 %v9104_v10  ;;  %v9105_v52 = vadd.f32 1.0, %v14253_v23  ;;  %v17802_v17 = vadd.f32 %v12701_v31, %v17696_v50  ;;  %v17805_v49 = vadd.f32 %v17696_v50, %v8879_v61 }
 0x92e   : > { %14272 = vrcp.f32 %v9102_v58  ;;  %v9103_v6 = vadd.f32 1.0, %v14255_v51  ;;  %v9070_v15 = vmul.f32 1.442695, %v9016_v59  ;;  %v9014_v14 = vsub.f32 0.0, %v17799_v29 }
 0x92f   : > { %v14257_v56 = vpop.eup %14256  ;;  %14274 = vrcp.f32 %v9105_v52  ;;  %v9017_v0 = vsub.f32 0.0, %v17802_v17  ;;  %v9015_v38 = vsub.f32 0.0, %v17805_v49  ;;  %v9220_v39 = vpack.c.bf16 %v9191_v41, %v9190_v47 }
 0x930   : > { %v14259_v36 = vpop.eup %14258  ;;  %v9164_v32 = vmul.f32 %v14257_v56, %v17731_v12  ;;  %14276 = vrcp.f32 %v9103_v6  ;;  %v9066_v42 = vmul.f32 1.442695, %v9014_v14  ;;  %v12704_v16 = vpop.f32.mrb[120].mxu0  ;;  %v9221_v21 = vpack.c.bf16 %v9193_v40, %v9192_v5 }
 0x931   : > { %v14261_v54 = vpop.eup %14260  ;;  %v9162_v60 = vmul.f32 %v14259_v36, %v17734_v13  ;;  %14278 = vpow2.f32 %v9060_v46  ;;  %v9072_v35 = vmul.f32 1.442695, %v9017_v0  ;;  %v9068_v24 = vmul.f32 1.442695, %v9015_v38  ;;  %12778 = vmatprep.mubr.bf16.mxu1 %v9220_v39  ;;  %v8892_v55 = vpop.f32.mrb[121].mxu0  ;;  %v18891_v39 = vld [vmem:[#allocation57_spill] sm:$0xff] }
 0x932   : > { %v14263_v43 = vpop.eup %14262  ;;  %v9196_v33 = vadd.f32 %v9164_v32, %v18887_v18  ;;  %v9165_v25 = vmul.f32 %v14261_v54, %v17738_v9  ;;  %14280 = vpow2.f32 %v9070_v15  ;;  %v17815_v12 = vadd.f32 %v12704_v16, %v17696_v50  ;;  %12779 = vmatmul.mubr.bf16.gmra.mrb[68].mxu1 %v9221_v21  ;;  %v12705_v28 = vpop.f32.mrb[122].mxu0  ;;  %v18892_v21 = vld [vmem:[#allocation94_spill] sm:$0xff] }
 0x933   : > { %v14265_v1 = vpop.eup %14264  ;;  %v9194_v20 = vadd.f32 %v9162_v60, %v18888_v63  ;;  %v9163_v13 = vmul.f32 %v14263_v43, %v17742_v11  ;;  %14282 = vpow2.f32 %v9066_v42  ;;  %v17820_v5 = vadd.f32 %v17696_v50, %v8892_v55  ;;  %v8895_v44 = vpop.f32.mrb[123].mxu0  ;;  %v18893_v43 = vld [vmem:[#allocation95_spill] sm:$0xff] }
 0x934   : > { %v14267_v53 = vpop.eup %14266  ;;  %v9197_v57 = vadd.f32 %v9165_v25, %v18889_v7  ;;  %v9108_v9 = vadd.f32 1.0, %v14265_v1  ;;  %14284 = vpow2.f32 %v9072_v35  ;;  %v9020_v3 = vsub.f32 0.0, %v17815_v12 }
 0x935   : > { %v14269_v47 = vpop.eup %14268  ;;  %v9195_v31 = vadd.f32 %v9163_v13, %v18890_v27  ;;  %v9106_v48 = vadd.f32 1.0, %v14267_v53  ;;  %14286 = vpow2.f32 %v9068_v24  ;;  %v9018_v4 = vsub.f32 0.0, %v17820_v5 }
 0x936   : > { %14288 = vrcp.f32 %v9108_v9  ;;  %v9109_v11 = vadd.f32 1.0, %v14269_v47  ;;  %v9078_v40 = vmul.f32 1.442695, %v9020_v3  ;;  %v17827_v10 = vadd.f32 %v12705_v28, %v17696_v50  ;;  %v18894_v28 = vld [vmem:[#allocation96_spill] sm:$0xff] }
 0x937   : > { %v14271_v46 = vpop.eup %14270  ;;  %14290 = vrcp.f32 %v9106_v48  ;;  %v9074_v61 = vmul.f32 1.442695, %v9018_v4  ;;  %v17830_v23 = vadd.f32 %v17696_v50, %v8895_v44  ;;  %v9222_v22 = vpack.c.bf16 %v9195_v31, %v9194_v20 }
 0x938   : > { %v14273_v41 = vpop.eup %14272  ;;  %v9168_v58 = vmul.f32 %v14271_v46, %v17747_v62  ;;  %14292 = vrcp.f32 %v9109_v11  ;;  %v9021_v59 = vsub.f32 0.0, %v17827_v10  ;;  %v12708_v51 = vpop.f32.mrb[124].mxu0  ;;  %v9223_v52 = vpack.c.bf16 %v9197_v57, %v9196_v33 }
 0x939   : > { %v14275_v6 = vpop.eup %14274  ;;  %v9166_v15 = vmul.f32 %v14273_v41, %v17750_v45  ;;  %14294 = vpow2.f32 %v9078_v40  ;;  %v9019_v14 = vsub.f32 0.0, %v17830_v23  ;;  %v17837_v56 = vadd.f32 %v12708_v51, %v17696_v50  ;;  %12782 = vmatprep.mubr.bf16.mxu1 %v9222_v22  ;;  %v8908_v0 = vpop.f32.mrb[125].mxu0 }
 0x93a   : > { %v14277_v38 = vpop.eup %14276  ;;  %v9200_v36 = vadd.f32 %v9168_v58, %v18891_v39  ;;  %v9169_v62 = vmul.f32 %v14275_v6, %v17754_v37  ;;  %14296 = vpow2.f32 %v9074_v61  ;;  %v9080_v32 = vmul.f32 1.442695, %v9021_v59  ;;  %12783 = vmatmul.mubr.bf16.gmra.mrb[72].mxu1 %v9223_v52  ;;  %v12709_v42 = vpop.f32.mrb[126].mxu0  ;;  %v18895_v52 = vld [vmem:[#allocation62_spill] sm:$0xff] }
 0x93b   : > { %v14279_v16 = vpop.eup %14278  ;;  %v9198_v45 = vadd.f32 %v9166_v15, %v18892_v21  ;;  %v9167_v54 = vmul.f32 %v14277_v38, %v17758_v30  ;;  %v9076_v60 = vmul.f32 1.442695, %v9019_v14  ;;  %v9024_v35 = vsub.f32 0.0, %v17837_v56  ;;  %v8911_v24 = vpop.f32.mrb[127].mxu0 }
 0x93c   : > { %v14281_v55 = vpop.eup %14280  ;;  %v9201_v18 = vadd.f32 %v9169_v62, %v18893_v43  ;;  %v9107_v33 = vadd.f32 1.0, %v14279_v16  ;;  %14298 = vpow2.f32 %v9080_v32  ;;  %v17846_v37 = vadd.f32 %v17696_v50, %v8908_v0 }
 0x93d   : > { %v14283_v25 = vpop.eup %14282  ;;  %v9199_v1 = vadd.f32 %v9167_v54, %v18894_v28  ;;  %v9112_v63 = vadd.f32 1.0, %v14281_v55  ;;  %14300 = vpow2.f32 %v9076_v60  ;;  %v9086_v20 = vmul.f32 1.442695, %v9024_v35  ;;  %v18897_v60 = vld [vmem:[#allocation98_spill] sm:$0xff] }
 0x93e   : > { %v14285_v13 = vpop.eup %14284  ;;  %14302 = vrcp.f32 %v9107_v33  ;;  %v9110_v30 = vadd.f32 1.0, %v14283_v25  ;;  %v9022_v44 = vsub.f32 0.0, %v17846_v37  ;;  %v17851_v53 = vadd.f32 %v12709_v42, %v17696_v50 }
 0x93f   : > { %v14287_v7 = vpop.eup %14286  ;;  %14304 = vrcp.f32 %v9112_v63  ;;  %v9113_v57 = vadd.f32 1.0, %v14285_v13  ;;  %v17854_v9 = vadd.f32 %v17696_v50, %v8911_v24  ;;  %v9224_v3 = vpack.c.bf16 %v9199_v1, %v9198_v45  ;;  %v18898_v24 = vld [vmem:[#allocation63_spill] sm:$0xff]  ;;  %v18899_v1 = vld [vmem:[#allocation65_spill] sm:$0xff] }
 0x940   : > { %v14289_v47 = vpop.eup %14288  ;;  %14306 = vrcp.f32 %v9110_v30  ;;  %v9111_v27 = vadd.f32 1.0, %v14287_v7  ;;  %v9082_v31 = vmul.f32 1.442695, %v9022_v44  ;;  %v9025_v48 = vsub.f32 0.0, %v17851_v53  ;;  %v18901_v44 = vld [vmem:[#allocation37_spill] sm:$0xff] }
 0x941   : > { %v14291_v4 = vpop.eup %14290  ;;  %v9172_v11 = vmul.f32 %v14289_v47, %v17767_v34  ;;  %14308 = vrcp.f32 %v9113_v57  ;;  %v9023_v40 = vsub.f32 0.0, %v17854_v9  ;;  %12786 = vmatprep.mubr.bf16.mxu1 %v9224_v3  ;;  %v9225_v46 = vpack.c.bf16 %v9201_v18, %v9200_v36  ;;  %v18896_v34 = vld [vmem:[#allocation97_spill] sm:$0xff]  ;;  %v18902_v57 = vld [vmem:[#allocation36_spill] sm:$0xff] }
 0x942   : > { %v14293_v61 = vpop.eup %14292  ;;  %14310 = vrcp.f32 %v9111_v27  ;;  %v9088_v22 = vmul.f32 1.442695, %v9025_v48  ;;  %v9170_v39 = vmul.f32 %v14291_v4, %v17772_v2 }
 0x943   : > { %v14295_v50 = vpop.eup %14294  ;;  %v9173_v41 = vmul.f32 %v14293_v61, %v17779_v26  ;;  %14312 = vpow2.f32 %v9086_v20  ;;  %12787 = vmatmul.mubr.bf16.gmra.mrb[76].mxu1 %v9225_v46  ;;  %v9084_v51 = vmul.f32 1.442695, %v9023_v40  ;;  %v9204_v6 = vadd.f32 %v9172_v11, %v18895_v52  ;;  %v18900_v20 = vld [vmem:[#allocation67_spill] sm:$0xff]  ;;  %v18905_v52 = vld [vmem:[#allocation66_spill] sm:$0xff] }
 0x944   : > { %v14297_v58 = vpop.eup %14296  ;;  %v9116_v59 = vadd.f32 1.0, %v14295_v50  ;;  %14314 = vpow2.f32 %v9082_v31  ;;  %v9202_v35 = vadd.f32 %v9170_v39, %v18897_v60  ;;  %v18910_v60 = vld [vmem:[#allocation77_spill] sm:$0xff] }
 0x945   : > { %v9205_v15 = vadd.f32 %v9173_v41, %v18896_v34  ;;  %v9114_v14 = vadd.f32 1.0, %v14297_v58  ;;  %14316 = vpow2.f32 %v9088_v22  ;;  %v18903_v41 = vld [vmem:[#allocation69_spill] sm:$0xff]  ;;  %v18906_v34 = vld [vmem:[#allocation64_spill] sm:$0xff] }
 0x946   : > { %v14299_v0 = vpop.eup %14298  ;;  %14318 = vrcp.f32 %v9116_v59  ;;  %v18904_v59 = vld [vmem:[#allocation71_spill] sm:$0xff] }
 0x947   : > { %v14301_v38 = vpop.eup %14300  ;;  %14320 = vrcp.f32 %v9114_v14  ;;  %v9117_v36 = vadd.f32 1.0, %v14299_v0  ;;  %v9227_v26 = vpack.c.bf16 %v9205_v15, %v9204_v6 }
 0x948   : > { %v14303_v62 = vpop.eup %14302  ;;  %v9115_v32 = vadd.f32 1.0, %v14301_v38  ;;  %14322 = vpow2.f32 %v9084_v51 }
 0x949   : > { %v14305_v42 = vpop.eup %14304  ;;  %v9171_v16 = vmul.f32 %v14303_v62, %v17784_v19  ;;  %14324 = vrcp.f32 %v9117_v36 }
 0x94a   : > { %v14307_v21 = vpop.eup %14306  ;;  %v9176_v45 = vmul.f32 %v14305_v42, %v17793_v8  ;;  %14326 = vrcp.f32 %v9115_v32  ;;  %v18908_v32 = vld [vmem:[#allocation68_spill] sm:$0xff] }
 0x94b   : > { %v14309_v54 = vpop.eup %14308  ;;  %v9203_v55 = vadd.f32 %v9171_v16, %v18898_v24  ;;  %v9174_v2 = vmul.f32 %v14307_v21, %v17799_v29 }
 0x94c   : > { %v14311_v43 = vpop.eup %14310  ;;  %v9177_v18 = vmul.f32 %v14309_v54, %v17802_v17  ;;  %v9208_v63 = vadd.f32 %v9176_v45, %v18899_v1  ;;  %v18909_v45 = vld [vmem:[#allocation70_spill] sm:$0xff] }
 0x94d   : > { %v14313_v33 = vpop.eup %14312  ;;  %v9175_v25 = vmul.f32 %v14311_v43, %v17805_v49  ;;  %v9226_v28 = vpack.c.bf16 %v9203_v55, %v9202_v35  ;;  %v9206_v7 = vadd.f32 %v9174_v2, %v18901_v44 }
 0x94e   : > { %v14315_v19 = vpop.eup %14314  ;;  %v9209_v8 = vadd.f32 %v9177_v18, %v18900_v20  ;;  %v9120_v13 = vadd.f32 1.0, %v14313_v33 }
 0x94f   : > { %v14317_v30 = vpop.eup %14316  ;;  %v9207_v3 = vadd.f32 %v9175_v25, %v18902_v57  ;;  %v9118_v47 = vadd.f32 1.0, %v14315_v19  ;;  %12790 = vmatprep.mubr.bf16.mxu1 %v9226_v28 }
 0x950   : > { %v14319_v29 = vpop.eup %14318  ;;  %14328 = vrcp.f32 %v9120_v13  ;;  %v9121_v17 = vadd.f32 1.0, %v14317_v30  ;;  %12791 = vmatmul.mubr.bf16.gmra.mrb[80].mxu1 %v9227_v26  ;;  %v9229_v27 = vpack.c.bf16 %v9209_v8, %v9208_v63  ;;  %v18907_v26 = vld [vmem:[#allocation75_spill] sm:$0xff] }
 0x951   : > { %v14321_v49 = vpop.eup %14320  ;;  %14330 = vrcp.f32 %v9118_v47  ;;  %v9228_v31 = vpack.c.bf16 %v9207_v3, %v9206_v7  ;;  %v9180_v4 = vmul.f32 %v14319_v29, %v17815_v12 }
 0x952   : > { %v14323_v48 = vpop.eup %14322  ;;  %14332 = vrcp.f32 %v9121_v17  ;;  %v9178_v40 = vmul.f32 %v14321_v49, %v17820_v5 }
 0x953   : > { %v14325_v11 = vpop.eup %14324  ;;  %v9119_v46 = vadd.f32 1.0, %v14323_v48  ;;  %12794 = vmatprep.mubr.bf16.mxu1 %v9228_v31  ;;  %v9212_v58 = vadd.f32 %v9180_v4, %v18903_v41 }
 0x954   : > { %v14327_v61 = vpop.eup %14326  ;;  %v9181_v22 = vmul.f32 %v14325_v11, %v17827_v10  ;;  %v9210_v6 = vadd.f32 %v9178_v40, %v18905_v52 }
 0x955   : > { %v9179_v50 = vmul.f32 %v14327_v61, %v17830_v23  ;;  %14334 = vrcp.f32 %v9119_v46 }
 0x956   : > { %v9213_v51 = vadd.f32 %v9181_v22, %v18904_v59 }
 0x957   : > { %v9211_v12 = vadd.f32 %v9179_v50, %v18906_v34 }
 0x958   : > { %12795 = vmatmul.mubr.bf16.gmra.mrb[84].mxu1 %v9229_v27  ;;  %v9231_v15 = vpack.c.bf16 %v9213_v51, %v9212_v58 }
 0x959   : > { %v9230_v14 = vpack.c.bf16 %v9211_v12, %v9210_v6 }
 0x95a   : > { %v14329_v5 = vpop.eup %14328 }
 0x95b   : > { %v14331_v0 = vpop.eup %14330  ;;  %v9184_v38 = vmul.f32 %v14329_v5, %v17837_v56  ;;  %12798 = vmatprep.mubr.bf16.mxu1 %v9230_v14 }
 0x95c   : > { %v14333_v10 = vpop.eup %14332  ;;  %v9182_v39 = vmul.f32 %v14331_v0, %v17846_v37  ;;  %v17893_v37 = vld [vmem:[%s18111_s15] ss:$0 sm:$0xff] }
 0x95d   : > { %v9185_v23 = vmul.f32 %v14333_v10, %v17851_v53  ;;  %v9216_v62 = vadd.f32 %v9184_v38, %v18907_v26 }
 0x95e   : > { %v9214_v54 = vadd.f32 %v9182_v39, %v18909_v45 }
 0x95f   : > { %v14335_v36 = vpop.eup %14334  ;;  %v9217_v42 = vadd.f32 %v9185_v23, %v18908_v32 }
 0x960   : > { %v9183_v16 = vmul.f32 %v14335_v36, %v17854_v9  ;;  %12799 = vmatmul.mubr.bf16.gmra.mrb[88].mxu1 %v9231_v15 }
 0x961   : > { %v9233_v21 = vpack.c.bf16 %v9217_v42, %v9216_v62 }
 0x962   : > { %v9215_v35 = vadd.f32 %v9183_v16, %v18910_v60 }
 0x964   : > { %v9232_v56 = vpack.c.bf16 %v9215_v35, %v9214_v54 }
 0x966   : > { %12802 = vmatprep.mubr.bf16.mxu1 %v9232_v56 }
 0x968   : > { %12803 = vmatmul.mubr.bf16.gmra.mrb[92].mxu1 %v9233_v21 }
 0x9fd   : > { %v12776_v53 = vpop.f32.mrb[64].mxu1 }
 0x9fe   : > { %v17896_v24 = vadd.f32 %v12776_v53, %v17893_v37  ;;  %v9573_v55 = vpop.f32.mrb[65].mxu1 }
 0x9ff   : > { %v17899_v9 = vadd.f32 %v17893_v37, %v9573_v55  ;;  %v12777_v2 = vpop.f32.mrb[66].mxu1 }
 0xa00   : > { %v9741_v43 = vsub.f32 0.0, %v17896_v24  ;;  %v17903_v18 = vadd.f32 %v12777_v2, %v17893_v37  ;;  %v9576_v33 = vpop.f32.mrb[67].mxu1 }
 0xa01   : > { %v9739_v25 = vsub.f32 0.0, %v17899_v9  ;;  %v17907_v28 = vadd.f32 %v17893_v37, %v9576_v33 }
 0xa02   : > { %v9775_v19 = vmul.f32 1.442695, %v9741_v43  ;;  %v9742_v1 = vsub.f32 0.0, %v17903_v18 }
 0xa03   : > { %v9771_v63 = vmul.f32 1.442695, %v9739_v25  ;;  %v9740_v20 = vsub.f32 0.0, %v17907_v28 }
 0xa04   : > { %14336 = vpow2.f32 %v9775_v19  ;;  %v9777_v8 = vmul.f32 1.442695, %v9742_v1 }
 0xa05   : > { %14338 = vpow2.f32 %v9771_v63  ;;  %v9773_v13 = vmul.f32 1.442695, %v9740_v20  ;;  %v12780_v30 = vpop.f32.mrb[68].mxu1 }
 0xa06   : > { %14340 = vpow2.f32 %v9777_v8  ;;  %v17912_v44 = vadd.f32 %v12780_v30, %v17893_v37  ;;  %v9589_v7 = vpop.f32.mrb[69].mxu1 }
 0xa07   : > { %14342 = vpow2.f32 %v9773_v13  ;;  %v17915_v57 = vadd.f32 %v17893_v37, %v9589_v7  ;;  %v12781_v3 = vpop.f32.mrb[70].mxu1 }
 0xa08   : > { %v9745_v47 = vsub.f32 0.0, %v17912_v44  ;;  %v17919_v29 = vadd.f32 %v12781_v3, %v17893_v37  ;;  %v9592_v17 = vpop.f32.mrb[71].mxu1 }
 0xa09   : > { %v9743_v27 = vsub.f32 0.0, %v17915_v57  ;;  %v17923_v49 = vadd.f32 %v17893_v37, %v9592_v17 }
 0xa0a   : > { %v9783_v31 = vmul.f32 1.442695, %v9745_v47  ;;  %v9746_v48 = vsub.f32 0.0, %v17919_v29 }
 0xa0b   : > { %v9779_v4 = vmul.f32 1.442695, %v9743_v27  ;;  %v9744_v11 = vsub.f32 0.0, %v17923_v49 }
 0xa0c   : > { %14344 = vpow2.f32 %v9783_v31  ;;  %v9785_v40 = vmul.f32 1.442695, %v9746_v48 }
 0xa0d   : > { %14346 = vpow2.f32 %v9779_v4  ;;  %v9781_v46 = vmul.f32 1.442695, %v9744_v11  ;;  %v12784_v61 = vpop.f32.mrb[72].mxu1 }
 0xa0e   : > { %v14337_v22 = vpop.eup %14336  ;;  %14348 = vpow2.f32 %v9785_v40  ;;  %v17928_v50 = vadd.f32 %v12784_v61, %v17893_v37  ;;  %v9605_v41 = vpop.f32.mrb[73].mxu1 }
 0xa0f   : > { %v14339_v58 = vpop.eup %14338  ;;  %v9837_v59 = vadd.f32 1.0, %v14337_v22  ;;  %14350 = vpow2.f32 %v9781_v46  ;;  %v17931_v51 = vadd.f32 %v17893_v37, %v9605_v41  ;;  %v12785_v52 = vpop.f32.mrb[74].mxu1 }
 0xa10   : > { %v14341_v6 = vpop.eup %14340  ;;  %v9835_v34 = vadd.f32 1.0, %v14339_v58  ;;  %v9749_v12 = vsub.f32 0.0, %v17928_v50  ;;  %v17935_v15 = vadd.f32 %v12785_v52, %v17893_v37  ;;  %v9608_v14 = vpop.f32.mrb[75].mxu1 }
 0xa11   : > { %v14343_v5 = vpop.eup %14342  ;;  %14352 = vrcp.f32 %v9837_v59  ;;  %v9838_v0 = vadd.f32 1.0, %v14341_v6  ;;  %v9747_v38 = vsub.f32 0.0, %v17931_v51  ;;  %v17939_v10 = vadd.f32 %v17893_v37, %v9608_v14 }
 0xa12   : > { %14354 = vrcp.f32 %v9835_v34  ;;  %v9836_v23 = vadd.f32 1.0, %v14343_v5  ;;  %v9791_v39 = vmul.f32 1.442695, %v9749_v12  ;;  %v9750_v36 = vsub.f32 0.0, %v17935_v15 }
 0xa13   : > { %14356 = vrcp.f32 %v9838_v0  ;;  %v9787_v26 = vmul.f32 1.442695, %v9747_v38  ;;  %v9748_v62 = vsub.f32 0.0, %v17939_v10 }
 0xa14   : > { %14358 = vrcp.f32 %v9836_v23  ;;  %v9793_v32 = vmul.f32 1.442695, %v9750_v36 }
 0xa15   : > { %14360 = vpow2.f32 %v9791_v39  ;;  %v9789_v42 = vmul.f32 1.442695, %v9748_v62 }
 0xa16   : > { %v14345_v16 = vpop.eup %14344  ;;  %14362 = vpow2.f32 %v9787_v26  ;;  %v12788_v21 = vpop.f32.mrb[76].mxu1 }
 0xa17   : > { %v14347_v45 = vpop.eup %14346  ;;  %v9841_v54 = vadd.f32 1.0, %v14345_v16  ;;  %14364 = vpow2.f32 %v9793_v32  ;;  %v17944_v60 = vadd.f32 %v12788_v21, %v17893_v37  ;;  %v9621_v35 = vpop.f32.mrb[77].mxu1 }
 0xa18   : > { %v14349_v56 = vpop.eup %14348  ;;  %v9839_v53 = vadd.f32 1.0, %v14347_v45  ;;  %14366 = vpow2.f32 %v9789_v42  ;;  %v17948_v55 = vadd.f32 %v17893_v37, %v9621_v35  ;;  %v12789_v2 = vpop.f32.mrb[78].mxu1 }
 0xa19   : > { %v14351_v43 = vpop.eup %14350  ;;  %14368 = vrcp.f32 %v9841_v54  ;;  %v9842_v33 = vadd.f32 1.0, %v14349_v56  ;;  %v9753_v25 = vsub.f32 0.0, %v17944_v60  ;;  %v17952_v19 = vadd.f32 %v12789_v2, %v17893_v37  ;;  %v9624_v1 = vpop.f32.mrb[79].mxu1 }
 0xa1a   : > { %14370 = vrcp.f32 %v9839_v53  ;;  %v9840_v63 = vadd.f32 1.0, %v14351_v43  ;;  %v9751_v20 = vsub.f32 0.0, %v17948_v55  ;;  %v17956_v8 = vadd.f32 %v17893_v37, %v9624_v1 }
 0xa1b   : > { %v14353_v13 = vpop.eup %14352  ;;  %14372 = vrcp.f32 %v9842_v33  ;;  %v9799_v30 = vmul.f32 1.442695, %v9753_v25  ;;  %v9754_v7 = vsub.f32 0.0, %v17952_v19 }
 0xa1c   : > { %v14355_v3 = vpop.eup %14354  ;;  %v9901_v47 = vmul.f32 %v14353_v13, %v17896_v24  ;;  %14374 = vrcp.f32 %v9840_v63  ;;  %v9795_v17 = vmul.f32 1.442695, %v9751_v20  ;;  %v9752_v27 = vsub.f32 0.0, %v17956_v8 }
 0xa1d   : > { %v14357_v31 = vpop.eup %14356  ;;  %v9899_v48 = vmul.f32 %v14355_v3, %v17899_v9  ;;  %14376 = vpow2.f32 %v9799_v30  ;;  %v9801_v4 = vmul.f32 1.442695, %v9754_v7 }
 0xa1e   : > { %v14359_v11 = vpop.eup %14358  ;;  %9933 = vst [vmem:[%s17961_s28 + $0x10] sm:$0xff] %v9901_v47  ;;  %v9902_v40 = vmul.f32 %v14357_v31, %v17903_v18  ;;  %14378 = vpow2.f32 %v9795_v17  ;;  %v9797_v46 = vmul.f32 1.442695, %v9752_v27 }
 0xa1f   : > { %v14361_v61 = vpop.eup %14360  ;;  %9931 = vst [vmem:[%s17961_s28] sm:$0xff] %v9899_v48  ;;  %v9900_v24 = vmul.f32 %v14359_v11, %v17907_v28  ;;  %14380 = vpow2.f32 %v9801_v4 }
 0xa20   : > { %v14363_v22 = vpop.eup %14362  ;;  %9934 = vst [vmem:[%s17961_s28 + $0x18] sm:$0xff] %v9902_v40  ;;  %v9845_v41 = vadd.f32 1.0, %v14361_v61  ;;  %14382 = vpow2.f32 %v9797_v46 }
 0xa21   : > { %v14365_v58 = vpop.eup %14364  ;;  %9932 = vst [vmem:[%s17961_s28 + $0x8] sm:$0xff] %v9900_v24  ;;  %v9843_v9 = vadd.f32 1.0, %v14363_v22 }
 0xa22   : > { %v14367_v59 = vpop.eup %14366  ;;  %14384 = vrcp.f32 %v9845_v41  ;;  %v9846_v52 = vadd.f32 1.0, %v14365_v58 }
 0xa23   : > { %v14369_v6 = vpop.eup %14368  ;;  %14386 = vrcp.f32 %v9843_v9  ;;  %v9844_v18 = vadd.f32 1.0, %v14367_v59  ;;  %v12792_v34 = vpop.f32.mrb[80].mxu1 }
 0xa24   : > { %v14371_v12 = vpop.eup %14370  ;;  %v9905_v14 = vmul.f32 %v14369_v6, %v17912_v44  ;;  %14388 = vrcp.f32 %v9846_v52  ;;  %v17975_v28 = vadd.f32 %v12792_v34, %v17893_v37  ;;  %v9637_v5 = vpop.f32.mrb[81].mxu1 }
 0xa25   : > { %v14373_v0 = vpop.eup %14372  ;;  %v9903_v38 = vmul.f32 %v14371_v12, %v17915_v57  ;;  %14390 = vrcp.f32 %v9844_v18  ;;  %v17979_v23 = vadd.f32 %v17893_v37, %v9637_v5  ;;  %v12793_v39 = vpop.f32.mrb[82].mxu1 }
 0xa26   : > { %v14375_v36 = vpop.eup %14374  ;;  %9937 = vst [vmem:[%s17961_s28 + $0x30] sm:$0xff] %v9905_v14  ;;  %v9906_v44 = vmul.f32 %v14373_v0, %v17919_v29  ;;  %v9757_v26 = vsub.f32 0.0, %v17975_v28  ;;  %v17985_v62 = vadd.f32 %v12793_v39, %v17893_v37  ;;  %v9640_v32 = vpop.f32.mrb[83].mxu1 }
 0xa27   : > { %v14377_v42 = vpop.eup %14376  ;;  %9935 = vst [vmem:[%s17961_s28 + $0x20] sm:$0xff] %v9903_v38  ;;  %v9904_v57 = vmul.f32 %v14375_v36, %v17923_v49  ;;  %v9755_v16 = vsub.f32 0.0, %v17979_v23  ;;  %v17991_v21 = vadd.f32 %v17893_v37, %v9640_v32 }
 0xa28   : > { %v14379_v45 = vpop.eup %14378  ;;  %9938 = vst [vmem:[%s17961_s28 + $0x38] sm:$0xff] %v9906_v44  ;;  %v9849_v54 = vadd.f32 1.0, %v14377_v42  ;;  %v9758_v29 = vsub.f32 0.0, %v17985_v62  ;;  %v9807_v33 = vmul.f32 1.442695, %v9757_v26 }
 0xa29   : > { %v14381_v35 = vpop.eup %14380  ;;  %9936 = vst [vmem:[%s17961_s28 + $0x28] sm:$0xff] %v9904_v57  ;;  %v9847_v56 = vadd.f32 1.0, %v14379_v45  ;;  %v9756_v53 = vsub.f32 0.0, %v17991_v21  ;;  %v9803_v25 = vmul.f32 1.442695, %v9755_v16 }
 0xa2a   : > { %v14383_v2 = vpop.eup %14382  ;;  %14392 = vrcp.f32 %v9849_v54  ;;  %v9850_v43 = vadd.f32 1.0, %v14381_v35  ;;  %v9809_v20 = vmul.f32 1.442695, %v9758_v29 }
 0xa2b   : > { %14394 = vrcp.f32 %v9847_v56  ;;  %v9848_v49 = vadd.f32 1.0, %v14383_v2  ;;  %v12796_v1 = vpop.f32.mrb[84].mxu1  ;;  %v9805_v47 = vmul.f32 1.442695, %v9756_v53 }
 0xa2c   : > { %v14385_v63 = vpop.eup %14384  ;;  %14396 = vrcp.f32 %v9850_v43  ;;  %v17998_v13 = vadd.f32 %v12796_v1, %v17893_v37  ;;  %v9653_v30 = vpop.f32.mrb[85].mxu1 }
 0xa2d   : > { %v14387_v7 = vpop.eup %14386  ;;  %v9909_v3 = vmul.f32 %v14385_v63, %v17928_v50  ;;  %14398 = vrcp.f32 %v9848_v49  ;;  %v18002_v17 = vadd.f32 %v17893_v37, %v9653_v30  ;;  %v12797_v27 = vpop.f32.mrb[86].mxu1 }
 0xa2e   : > { %v14389_v31 = vpop.eup %14388  ;;  %v9907_v48 = vmul.f32 %v14387_v7, %v17931_v51  ;;  %14400 = vpow2.f32 %v9807_v33  ;;  %v9761_v4 = vsub.f32 0.0, %v17998_v13  ;;  %v18007_v11 = vadd.f32 %v12797_v27, %v17893_v37  ;;  %v9656_v40 = vpop.f32.mrb[87].mxu1 }
 0xa2f   : > { %v14391_v50 = vpop.eup %14390  ;;  %9941 = vst [vmem:[%s17961_s28 + $0x50] sm:$0xff] %v9909_v3  ;;  %v9910_v46 = vmul.f32 %v14389_v31, %v17935_v15  ;;  %14402 = vpow2.f32 %v9803_v25  ;;  %v9759_v61 = vsub.f32 0.0, %v18002_v17  ;;  %v18013_v24 = vadd.f32 %v17893_v37, %v9656_v40 }
 0xa30   : > { %9939 = vst [vmem:[%s17961_s28 + $0x40] sm:$0xff] %v9907_v48  ;;  %v9908_v51 = vmul.f32 %v14391_v50, %v17939_v10  ;;  %14404 = vpow2.f32 %v9809_v20  ;;  %v9815_v22 = vmul.f32 1.442695, %v9761_v4  ;;  %v9762_v41 = vsub.f32 0.0, %v18007_v11 }
 0xa31   : > { %9942 = vst [vmem:[%s17961_s28 + $0x58] sm:$0xff] %v9910_v46  ;;  %14406 = vpow2.f32 %v9805_v47  ;;  %v9811_v58 = vmul.f32 1.442695, %v9759_v61  ;;  %v9760_v9 = vsub.f32 0.0, %v18013_v24 }
 0xa32   : > { %9940 = vst [vmem:[%s17961_s28 + $0x48] sm:$0xff] %v9908_v51  ;;  %14408 = vpow2.f32 %v9815_v22  ;;  %v9817_v15 = vmul.f32 1.442695, %v9762_v41 }
 0xa33   : > { %14410 = vpow2.f32 %v9811_v58  ;;  %v9813_v59 = vmul.f32 1.442695, %v9760_v9  ;;  %v12800_v52 = vpop.f32.mrb[88].mxu1 }
 0xa34   : > { %v14393_v6 = vpop.eup %14392  ;;  %14412 = vpow2.f32 %v9817_v15  ;;  %v18022_v10 = vadd.f32 %v12800_v52, %v17893_v37  ;;  %v9669_v18 = vpop.f32.mrb[89].mxu1 }
 0xa35   : > { %v14395_v34 = vpop.eup %14394  ;;  %v9913_v12 = vmul.f32 %v14393_v6, %v17944_v60  ;;  %14414 = vpow2.f32 %v9813_v59  ;;  %v12801_v14 = vpop.f32.mrb[90].mxu1  ;;  %v18030_v26 = vadd.f32 %v17893_v37, %v9669_v18 }
 0xa36   : > { %v14397_v5 = vpop.eup %14396  ;;  %v9911_v0 = vmul.f32 %v14395_v34, %v17948_v55  ;;  %v9765_v38 = vsub.f32 0.0, %v18022_v10  ;;  %v9672_v39 = vpop.f32.mrb[91].mxu1  ;;  %v18035_v57 = vadd.f32 %v12801_v14, %v17893_v37 }
 0xa37   : > { %v14399_v36 = vpop.eup %14398  ;;  %9945 = vst [vmem:[%s17961_s28 + $0x70] sm:$0xff] %v9913_v12  ;;  %v9914_v44 = vmul.f32 %v14397_v5, %v17952_v19  ;;  %v18039_v45 = vadd.f32 %v17893_v37, %v9672_v39  ;;  %v9763_v56 = vsub.f32 0.0, %v18030_v26 }
 0xa38   : > { %v14401_v32 = vpop.eup %14400  ;;  %9943 = vst [vmem:[%s17961_s28 + $0x60] sm:$0xff] %v9911_v0  ;;  %v9912_v60 = vmul.f32 %v14399_v36, %v17956_v8  ;;  %v9823_v42 = vmul.f32 1.442695, %v9765_v38  ;;  %v9766_v43 = vsub.f32 0.0, %v18035_v57 }
 0xa39   : > { %v14403_v55 = vpop.eup %14402  ;;  %9946 = vst [vmem:[%s17961_s28 + $0x78] sm:$0xff] %v9914_v44  ;;  %v9853_v16 = vadd.f32 1.0, %v14401_v32  ;;  %v9764_v63 = vsub.f32 0.0, %v18039_v45  ;;  %v9819_v40 = vmul.f32 1.442695, %v9763_v56 }
 0xa3a   : > { %v14405_v54 = vpop.eup %14404  ;;  %9944 = vst [vmem:[%s17961_s28 + $0x68] sm:$0xff] %v9912_v60  ;;  %v9851_v19 = vadd.f32 1.0, %v14403_v55  ;;  %14416 = vpow2.f32 %v9823_v42  ;;  %v9825_v61 = vmul.f32 1.442695, %v9766_v43 }
 0xa3b   : > { %v14407_v29 = vpop.eup %14406  ;;  %14418 = vrcp.f32 %v9853_v16  ;;  %v9854_v35 = vadd.f32 1.0, %v14405_v54  ;;  %v12804_v8 = vpop.f32.mrb[92].mxu1  ;;  %v9821_v22 = vmul.f32 1.442695, %v9764_v63 }
 0xa3c   : > { %v14409_v53 = vpop.eup %14408  ;;  %14420 = vrcp.f32 %v9851_v19  ;;  %v9852_v2 = vadd.f32 1.0, %v14407_v29  ;;  %v18045_v33 = vadd.f32 %v12804_v8, %v17893_v37  ;;  %v9685_v49 = vpop.f32.mrb[93].mxu1 }
 0xa3d   : > { %v14411_v25 = vpop.eup %14410  ;;  %14422 = vrcp.f32 %v9854_v35  ;;  %v9857_v1 = vadd.f32 1.0, %v14409_v53  ;;  %v18049_v20 = vadd.f32 %v17893_v37, %v9685_v49  ;;  %v12805_v30 = vpop.f32.mrb[94].mxu1 }
 0xa3e   : > { %v14413_v7 = vpop.eup %14412  ;;  %14424 = vrcp.f32 %v9852_v2  ;;  %v9855_v3 = vadd.f32 1.0, %v14411_v25  ;;  %v9769_v47 = vsub.f32 0.0, %v18045_v33  ;;  %v18053_v27 = vadd.f32 %v12805_v30, %v17893_v37  ;;  %v9688_v31 = vpop.f32.mrb[95].mxu1 }
 0xa3f   : > { %v14415_v48 = vpop.eup %14414  ;;  %14426 = vrcp.f32 %v9857_v1  ;;  %v9858_v4 = vadd.f32 1.0, %v14413_v7  ;;  %v18056_v50 = vadd.f32 %v17893_v37, %v9688_v31  ;;  %v9767_v51 = vsub.f32 0.0, %v18049_v20 }
 0xa40   : > { %14428 = vrcp.f32 %v9855_v3  ;;  %v9856_v46 = vadd.f32 1.0, %v14415_v48  ;;  %v9770_v41 = vsub.f32 0.0, %v18053_v27  ;;  %v9831_v58 = vmul.f32 1.442695, %v9769_v47 }
 0xa41   : > { %14430 = vrcp.f32 %v9858_v4  ;;  %v9768_v9 = vsub.f32 0.0, %v18056_v50  ;;  %v9827_v59 = vmul.f32 1.442695, %v9767_v51 }
 0xa42   : > { %14432 = vrcp.f32 %v9856_v46  ;;  %v9833_v6 = vmul.f32 1.442695, %v9770_v41 }
 0xa43   : > { %14434 = vpow2.f32 %v9819_v40  ;;  %v9829_v12 = vmul.f32 1.442695, %v9768_v9 }
 0xa44   : > { %v14417_v15 = vpop.eup %14416  ;;  %14436 = vpow2.f32 %v9825_v61 }
 0xa45   : > { %v14419_v37 = vpop.eup %14418  ;;  %v9861_v52 = vadd.f32 1.0, %v14417_v15  ;;  %14438 = vpow2.f32 %v9821_v22 }
 0xa46   : > { %v14421_v18 = vpop.eup %14420  ;;  %v9917_v34 = vmul.f32 %v14419_v37, %v17975_v28  ;;  %14440 = vpow2.f32 %v9831_v58 }
 0xa47   : > { %v14423_v14 = vpop.eup %14422  ;;  %v9915_v5 = vmul.f32 %v14421_v18, %v17979_v23  ;;  %14442 = vrcp.f32 %v9861_v52 }
 0xa48   : > { %v14425_v0 = vpop.eup %14424  ;;  %9949 = vst [vmem:[%s17961_s28 + $0x90] sm:$0xff] %v9917_v34  ;;  %v9918_v38 = vmul.f32 %v14423_v14, %v17985_v62  ;;  %14444 = vpow2.f32 %v9827_v59 }
 0xa49   : > { %v14427_v39 = vpop.eup %14426  ;;  %9947 = vst [vmem:[%s17961_s28 + $0x80] sm:$0xff] %v9915_v5  ;;  %v9916_v36 = vmul.f32 %v14425_v0, %v17991_v21  ;;  %14446 = vpow2.f32 %v9833_v6 }
 0xa4a   : > { %v14429_v28 = vpop.eup %14428  ;;  %9950 = vst [vmem:[%s17961_s28 + $0x98] sm:$0xff] %v9918_v38  ;;  %v9921_v44 = vmul.f32 %v14427_v39, %v17998_v13  ;;  %14448 = vpow2.f32 %v9829_v12 }
 0xa4b   : > { %v14431_v23 = vpop.eup %14430  ;;  %9948 = vst [vmem:[%s17961_s28 + $0x88] sm:$0xff] %v9916_v36  ;;  %v9919_v32 = vmul.f32 %v14429_v28, %v18002_v17 }
 0xa4c   : > { %v14433_v60 = vpop.eup %14432  ;;  %9953 = vst [vmem:[%s17961_s28 + $0xb0] sm:$0xff] %v9921_v44  ;;  %v9922_v62 = vmul.f32 %v14431_v23, %v18007_v11 }
 0xa4d   : > { %v14435_v42 = vpop.eup %14434  ;;  %9951 = vst [vmem:[%s17961_s28 + $0xa0] sm:$0xff] %v9919_v32  ;;  %v9920_v21 = vmul.f32 %v14433_v60, %v18013_v24 }
 0xa4e   : > { %v14437_v55 = vpop.eup %14436  ;;  %9954 = vst [vmem:[%s17961_s28 + $0xb8] sm:$0xff] %v9922_v62  ;;  %v9859_v16 = vadd.f32 1.0, %v14435_v42 }
 0xa4f   : > { %v14439_v54 = vpop.eup %14438  ;;  %9952 = vst [vmem:[%s17961_s28 + $0xa8] sm:$0xff] %v9920_v21  ;;  %v9862_v13 = vadd.f32 1.0, %v14437_v55 }
 0xa50   : > { %v14441_v19 = vpop.eup %14440  ;;  %14450 = vrcp.f32 %v9859_v16  ;;  %v9860_v29 = vadd.f32 1.0, %v14439_v54 }
 0xa51   : > { %v14443_v35 = vpop.eup %14442  ;;  %14452 = vrcp.f32 %v9862_v13  ;;  %v9865_v17 = vadd.f32 1.0, %v14441_v19 }
 0xa52   : > { %v14445_v56 = vpop.eup %14444  ;;  %v9925_v11 = vmul.f32 %v14443_v35, %v18022_v10  ;;  %14454 = vrcp.f32 %v9860_v29 }
 0xa53   : > { %v14447_v8 = vpop.eup %14446  ;;  %14456 = vrcp.f32 %v9865_v17  ;;  %v9863_v24 = vadd.f32 1.0, %v14445_v56 }
 0xa54   : > { %v14449_v53 = vpop.eup %14448  ;;  %9957 = vst [vmem:[%s17961_s28 + $0xd0] sm:$0xff] %v9925_v11  ;;  %v9866_v2 = vadd.f32 1.0, %v14447_v8 }
 0xa55   : > { %14458 = vrcp.f32 %v9863_v24  ;;  %v9864_v43 = vadd.f32 1.0, %v14449_v53 }
 0xa56   : > { %14460 = vrcp.f32 %v9866_v2 }
 0xa57   : > { %14462 = vrcp.f32 %v9864_v43 }
 0xa5a   : > { %v14451_v49 = vpop.eup %14450 }
 0xa5b   : > { %v14453_v25 = vpop.eup %14452  ;;  %v9923_v10 = vmul.f32 %v14451_v49, %v18030_v26 }
 0xa5c   : > { %v14455_v1 = vpop.eup %14454  ;;  %v9926_v63 = vmul.f32 %v14453_v25, %v18035_v57 }
 0xa5d   : > { %v14457_v30 = vpop.eup %14456  ;;  %9955 = vst [vmem:[%s17961_s28 + $0xc0] sm:$0xff] %v9923_v10  ;;  %v9924_v7 = vmul.f32 %v14455_v1, %v18039_v45 }
 0xa5e   : > { %9958 = vst [vmem:[%s17961_s28 + $0xd8] sm:$0xff] %v9926_v63  ;;  %v9929_v3 = vmul.f32 %v14457_v30, %v18045_v33 }
 0xa5f   : > { %v14459_v47 = vpop.eup %14458  ;;  %9956 = vst [vmem:[%s17961_s28 + $0xc8] sm:$0xff] %v9924_v7 }
 0xa60   : > { %v14461_v31 = vpop.eup %14460  ;;  %9961 = vst [vmem:[%s17961_s28 + $0xf0] sm:$0xff] %v9929_v3  ;;  %v9927_v48 = vmul.f32 %v14459_v47, %v18049_v20 }
 0xa61   : > { %v14463_v4 = vpop.eup %14462  ;;  %v9930_v26 = vmul.f32 %v14461_v31, %v18053_v27 }
 0xa62   : > { %9959 = vst [vmem:[%s17961_s28 + $0xe0] sm:$0xff] %v9927_v48  ;;  %v9928_v57 = vmul.f32 %v14463_v4, %v18056_v50 }
 0xa63   : > { %9962 = vst [vmem:[%s17961_s28 + $0xf8] sm:$0xff] %v9930_v26 }
 0xa64   : > { %9960 = vst [vmem:[%s17961_s28 + $0xe8] sm:$0xff] %v9928_v57 }
 0xa65 PF: > { %s26_s21 = sadd.s32 1, %s14474_s21  }
 0xa66   : > { %p23_p4 = scmp.ge.s32.totalorder %s26_s21, 4  }
 0xa68   :  { %25 = sbr.rel (!%p23_p4) target bundleno = 2 (0x2), region = 130 }

</bundles_post_ra>
